<compile_context>
chip_gen: v7x
topology: tpu7x:2x2x1
jax: 0.10.0
libtpu: 0.0.40
codegen_flags: <defaults>
</compile_context>

<pallas_src>
import jax
import jax.numpy as jnp
from jax.experimental import pallas as pl
from jax.experimental.pallas import tpu as pltpu  # noqa: F401  (memory spaces, params)


def _conv1x1_sigmoid_kernel(x_ref, w_ref, b_ref, o_ref):
    # x_ref: (N, Cin, P)   pixels on lanes, channels on sublanes
    # w_ref: (Cout, Cin)   b_ref: (Cout, 1)      o_ref: (N, Cout, P)
    x = x_ref[...]                       # (N, Cin, P) f32
    w = w_ref[...]                       # (Cout, Cin)
    b = b_ref[...]                       # (Cout, 1)

    cin = x.shape[1]
    # VPU contraction over the tiny K=Cin axis: broadcast-multiply + add.
    # (Statically unrolled; broadcasts are not re-materialized per iteration.)
    acc = b[None, :, :] + w[None, :, 0:1] * x[:, 0:1, :]          # (N, Cout, P)
    for ci in range(1, cin):
        acc = acc + w[None, :, ci:ci + 1] * x[:, ci:ci + 1, :]

    # Exact sigmoid via a single EUP tanh push: sigmoid(x) = 0.5*tanh(0.5x)+0.5
    o_ref[...] = (0.5 * jnp.tanh(0.5 * acc) + 0.5).astype(o_ref.dtype)


def conv2d_1x1_sigmoid(x, weight, bias, padding=2):
    """x: (N, Cin, H, W) f32 NCHW; weight: (Cout, Cin, 1, 1); bias: (Cout,).

    Returns the padded conv + sigmoid output, shape (N, Cout, H+2p, W+2p).
    """
    N, Cin, H, W = x.shape
    Cout = weight.shape[0]
    Hp, Wp = H + 2 * padding, W + 2 * padding
    P_raw = Hp * Wp
    P = ((P_raw + 127) // 128) * 128          # lane-dense pixel axis

    # Zero-pad spatially (zero inputs -> sigmoid(bias), i.e. the output border),
    # flatten pixels onto the lane axis, pad pixels to a multiple of 128.
    xp = jnp.pad(x.astype(jnp.float32),
                 ((0, 0), (0, 0), (padding, padding), (padding, padding)))
    x3 = xp.reshape(N, Cin, P_raw)
    if P != P_raw:
        x3 = jnp.pad(x3, ((0, 0), (0, 0), (0, P - P_raw)))

    w2 = weight.reshape(Cout, Cin).astype(jnp.float32)     # (Cout, Cin)
    b2 = bias.reshape(Cout, 1).astype(jnp.float32)         # (Cout, 1)

    out3 = pl.pallas_call(
        _conv1x1_sigmoid_kernel,
        out_shape=jax.ShapeDtypeStruct((N, Cout, P), jnp.float32),
        grid_spec=pl.GridSpec(
            grid=(1,),                                     # single step: whole problem is ~0.9 MB
            in_specs=[
                pl.BlockSpec((N, Cin, P), lambda i: (0, 0, 0)),
                pl.BlockSpec((Cout, Cin), lambda i: (0, 0)),
                pl.BlockSpec((Cout, 1), lambda i: (0, 0)),
            ],
            out_specs=pl.BlockSpec((N, Cout, P), lambda i: (0, 0, 0)),
        ),
    )(x3, w2, b2)

    # Drop the lane padding and restore the spatial layout.
    return out3[:, :, :P_raw].reshape(N, Cout, Hp, Wp)


if __name__ == "__main__":
    key = jax.random.PRNGKey(0)
    kx, kw, kb = jax.random.split(key, 3)

    # Shapes from the original module spec: x = torch.randn(19, 2, 32, 34);
    # Conv2d fixes Cin=2, Cout=6.
    N, Cin, H, W = 19, 2, 32, 34
    Cout = 6

    x = jax.random.normal(kx, (N, Cin, H, W), dtype=jnp.float32)
    bound = 1.0 / (Cin ** 0.5)   # mimics PyTorch Conv2d init range
    weight = jax.random.uniform(kw, (Cout, Cin, 1, 1), jnp.float32, -bound, bound)
    bias = jax.random.uniform(kb, (Cout,), jnp.float32, -bound, bound)

    out = jax.block_until_ready(conv2d_1x1_sigmoid(x, weight, bias, padding=2))

    # Pure-JAX reference of the same forward pass.
    xp = jnp.pad(x, ((0, 0), (0, 0), (2, 2), (2, 2)))
    ref = jax.nn.sigmoid(
        jnp.einsum("nchw,oc->nohw", xp, weight.reshape(Cout, Cin))
        + bias[None, :, None, None]
    )

    assert out.shape == (N, Cout, H + 4, W + 4), out.shape
    assert jnp.allclose(out, ref, atol=1e-4, rtol=1e-4), float(
        jnp.max(jnp.abs(out - ref)))
    print("KERNEL_OK")
</pallas_src>

<mosaic_0001>
module attributes {stable_mosaic.version = 11 : i64} {
  func.func @_conv1x1_sigmoid_kernel(%arg0: i32, %arg1: memref<19x2x1408xf32, #tpu.memory_space<vmem>>, %arg2: memref<6x2xf32, #tpu.memory_space<vmem>>, %arg3: memref<6x1xf32, #tpu.memory_space<vmem>>, %arg4: memref<19x6x1408xf32, #tpu.memory_space<vmem>>) attributes {dimension_semantics = [#tpu.dimension_semantics<arbitrary>], iteration_bounds = array<i64: 1>, scalar_prefetch = 0 : i64, scratch_operands = 0 : i64, tpu.core_type = #tpu.core_type<tc>, window_params = [{pipeline_mode = #tpu.pipeline_mode<synchronous>, transform_indices = @transform_0, window_bounds = array<i64: 19, 2, 1408>}, {pipeline_mode = #tpu.pipeline_mode<synchronous>, transform_indices = @transform_1, window_bounds = array<i64: 6, 2>}, {pipeline_mode = #tpu.pipeline_mode<synchronous>, transform_indices = @transform_2, window_bounds = array<i64: 6, 1>}, {pipeline_mode = #tpu.pipeline_mode<synchronous>, transform_indices = @transform_3, window_bounds = array<i64: 19, 6, 1408>}]} {
    %c0 = arith.constant 0 : index
    %c0_0 = arith.constant 0 : index
    %c0_1 = arith.constant 0 : index
    %0 = vector.load %arg1[%c0, %c0_0, %c0_1] : memref<19x2x1408xf32, #tpu.memory_space<vmem>>, vector<19x2x1408xf32>
    %c0_2 = arith.constant 0 : index
    %c0_3 = arith.constant 0 : index
    %1 = vector.load %arg2[%c0_2, %c0_3] : memref<6x2xf32, #tpu.memory_space<vmem>>, vector<6x2xf32>
    %c0_4 = arith.constant 0 : index
    %c0_5 = arith.constant 0 : index
    %2 = vector.load %arg3[%c0_4, %c0_5] : memref<6x1xf32, #tpu.memory_space<vmem>>, vector<6x1xf32>
    %3 = vector.shape_cast %2 : vector<6x1xf32> to vector<1x6x1xf32>
    %4 = vector.extract_strided_slice %1 {offsets = [0, 0], sizes = [6, 1], strides = [1, 1]} : vector<6x2xf32> to vector<6x1xf32>
    %5 = vector.shape_cast %4 : vector<6x1xf32> to vector<1x6x1xf32>
    %6 = vector.extract_strided_slice %0 {offsets = [0, 0, 0], sizes = [19, 1, 1408], strides = [1, 1, 1]} : vector<19x2x1408xf32> to vector<19x1x1408xf32>
    %7 = vector.broadcast %5 : vector<1x6x1xf32> to vector<19x6x1408xf32>
    %8 = vector.broadcast %6 : vector<19x1x1408xf32> to vector<19x6x1408xf32>
    %9 = arith.mulf %7, %8 : vector<19x6x1408xf32>
    %10 = vector.broadcast %3 : vector<1x6x1xf32> to vector<19x6x1408xf32>
    %11 = arith.addf %10, %9 : vector<19x6x1408xf32>
    %12 = vector.extract_strided_slice %1 {offsets = [0, 1], sizes = [6, 1], strides = [1, 1]} : vector<6x2xf32> to vector<6x1xf32>
    %13 = vector.shape_cast %12 : vector<6x1xf32> to vector<1x6x1xf32>
    %14 = vector.extract_strided_slice %0 {offsets = [0, 1, 0], sizes = [19, 1, 1408], strides = [1, 1, 1]} : vector<19x2x1408xf32> to vector<19x1x1408xf32>
    %15 = vector.broadcast %13 : vector<1x6x1xf32> to vector<19x6x1408xf32>
    %16 = vector.broadcast %14 : vector<19x1x1408xf32> to vector<19x6x1408xf32>
    %17 = arith.mulf %15, %16 : vector<19x6x1408xf32>
    %18 = arith.addf %11, %17 : vector<19x6x1408xf32>
    %cst = arith.constant 5.000000e-01 : f32
    %19 = vector.broadcast %cst : f32 to vector<19x6x1408xf32>
    %20 = arith.mulf %19, %18 : vector<19x6x1408xf32>
    %21 = math.tanh %20 : vector<19x6x1408xf32>
    %cst_6 = arith.constant 5.000000e-01 : f32
    %22 = vector.broadcast %cst_6 : f32 to vector<19x6x1408xf32>
    %23 = arith.mulf %22, %21 : vector<19x6x1408xf32>
    %cst_7 = arith.constant 5.000000e-01 : f32
    %24 = vector.broadcast %cst_7 : f32 to vector<19x6x1408xf32>
    %25 = arith.addf %23, %24 : vector<19x6x1408xf32>
    %c0_8 = arith.constant 0 : index
    %c0_9 = arith.constant 0 : index
    %c0_10 = arith.constant 0 : index
    %26 = vector.load %arg4[%c0_8, %c0_9, %c0_10] : memref<19x6x1408xf32, #tpu.memory_space<vmem>>, vector<19x6x1408xf32>
    tpu.vector_store %arg4[%c0_8, %c0_9, %c0_10], %25 {strides = array<i32>} : memref<19x6x1408xf32, #tpu.memory_space<vmem>>, vector<19x6x1408xf32>,
    return
  }
  func.func @transform_0(%arg0: i32) -> (i32, i32, i32) {
    %c0_i32 = arith.constant 0 : i32
    %c0_i32_0 = arith.constant 0 : i32
    %c0_i32_1 = arith.constant 0 : i32
    %c0_i32_2 = arith.constant 0 : i32
    return %c0_i32, %c0_i32_0, %c0_i32_1 : i32, i32, i32
  }
  func.func @transform_1(%arg0: i32) -> (i32, i32) {
    %c0_i32 = arith.constant 0 : i32
    %c0_i32_0 = arith.constant 0 : i32
    %c0_i32_1 = arith.constant 0 : i32
    return %c0_i32, %c0_i32_0 : i32, i32
  }
  func.func @transform_2(%arg0: i32) -> (i32, i32) {
    %c0_i32 = arith.constant 0 : i32
    %c0_i32_0 = arith.constant 0 : i32
    %c0_i32_1 = arith.constant 0 : i32
    return %c0_i32, %c0_i32_0 : i32, i32
  }
  func.func @transform_3(%arg0: i32) -> (i32, i32, i32) {
    %c0_i32 = arith.constant 0 : i32
    %c0_i32_0 = arith.constant 0 : i32
    %c0_i32_1 = arith.constant 0 : i32
    %c0_i32_2 = arith.constant 0 : i32
    return %c0_i32, %c0_i32_0, %c0_i32_1 : i32, i32, i32
  }
}

</mosaic_0001>

<bundles_post_ra>
// kernel: tpu_custom_call.1
= control target key start
LH: loop header
LB: loop body
LE: loop exit
PB: predicated region body
PF: predicated region fallthrough
CT: control target
= control target key end

     0   :  { %8 = vsyncpa [#allocation3], 0  ;;  %s6313_s12 = smov [#allocation2]   ;;  %s15409_s0 = inlined_call_operand.hbm [shape: f32[19,2,1408], index: 0, kind: input, shape index: {}]   ;;  %s15410_s1 = inlined_call_operand.vmem [shape: f32[6,2], index: 1, kind: input, shape index: {}]   ;;  %s15411_s2 = inlined_call_operand.vmem [shape: f32[6,1], index: 2, kind: input, shape index: {}]   ;;  %s15412_s3 = inlined_call_operand.vmem [shape: f32[19,6,1408], index: 3, kind: output, shape index: {}]  }
   0x1   :  { %s14_s13 = sshll.u32 %s6313_s12, 4  ;;  %s6289_s16 = scalar_lea.hbm %s15409_s0, 6688  ;;  %s15_s13 = int_to_ptr.vmem [resolvable:$true] %s14_s13 }
   0x2   :  { %p6290_p0 = scmp.ne.s32.totalorder %s15409_s0, %s6289_s16  ;;  %p6293_p1 = scmp.lt.u32.totalorder %s6289_s16, %s15409_s0 }
   0x4   :  { %p6295_p2 = pnand %p6293_p1, %p6290_p0 }
   0x6   :  { %6298 = shalt.err (!%p6295_p2)
}
   0x7   :  { %s6299_s21 = scalar_lea.vmem %s15_s13, 6688  ;;  %p6304_p4 = scmp.lt.s32.totalorder %s15_s13, %s15_s13 }
   0x8   :  { %p6300_p3 = scmp.ne.s32.totalorder %s15_s13, %s6299_s21  ;;  %p6305_p5 = scmp.lt.s32.totalorder %s6299_s21, %s6299_s21 }
   0xa   :  { %p6306_p6 = por %p6305_p5, %p6304_p4 }
   0xc   :  { %p6307_p7 = pnand %p6306_p6, %p6300_p3 }
   0xe   :  { %6310 = shalt.err (!%p6307_p7)
}
   0xf   :  { %s6314_s22 = smov 352   ;;  %s6315_s23 = smov 22  }
  0x10   :  { %20 = dma.hbm_to_vmem [thread:$0]  %s15409_s0, 6688, %s15_s13, [#allocation3], %s6314_s22, %s6314_s22, %s6315_s23  }
  0x11   :  { %6311 = dma.done.wait [#allocation3], 6688  }
  0x12   :  { %6312 = vsyncadd [#allocation3], 4294960608  ;;  %v6316_v0 = vmov 0   ;;  %v6317_v1 = vmov 1   ;;  %v85_v2 = vld [vmem:[%s15410_s1] sm:$0x3f]  ;;  %v149_v4 = vlaneseq }
  0x13   :  { %5811 = vset.pattern.permute.xlu0 %v6316_v0  ;;  %5812 = vset.pattern.permute.xlu1 %v6317_v1  ;;  %v86_v3 = vld [vmem:[%s15411_s2] sm:$0x3f]  ;;  %v6372_v11 = vld [vmem:[#allocation2 + $0x8] sm:$0xff]  ;;  %v6374_v12 = vld [vmem:[#allocation2 + $0x10] sm:$0x3f] }
  0x14   :  { %89 = vperm.xlu0 %5811, %v85_v2   ;;  %2454 = vperm.xlu1 %5812, %v85_v2   ;;  %v6356_v5 = vshrl.u32 %v149_v4, 7  ;;  %v6361_v7 = vld [vmem:[#allocation2] sm:$0xff]  ;;  %v6376_v13 = vld [vmem:[#allocation2 + $0x16] sm:$0xff]  ;;  %v6400_v25 = vld [vmem:[#allocation2 + $0x2c] sm:$0xff] }
  0x15   :  { %v6380_v15 = vld [vmem:[#allocation2 + $0x1e] sm:$0xff]  ;;  %v6390_v20 = vld [vmem:[#allocation2 + $0x26] sm:$0x3f]  ;;  %v6410_v30 = vld [vmem:[#allocation2 + $0x34] sm:$0xff] }
  0x16   :  { %15481 = vst [vmem:[#allocation5_spill] sm:$0xff] %v6356_v5  ;;  %v6359_v6 = vsub.s32 0, %v6356_v5  ;;  %v6364_v8 = vsub.s32 2, %v6356_v5  ;;  %v6367_v9 = vsub.s32 4, %v6356_v5  ;;  %v6370_v10 = vsub.s32 6, %v6356_v5  ;;  %v6430_v40 = vld [vmem:[#allocation2 + $0x42] sm:$0xff] }
  0x17   :  { %v6420_v35 = vld [vmem:[#allocation2 + $0x3c] sm:$0x3f]  ;;  %v6440_v45 = vld [vmem:[#allocation2 + $0x4a] sm:$0xff]  ;;  %v6450_v50 = vld [vmem:[#allocation2 + $0x52] sm:$0x3f] }
  0x18   :  { %2241 = vperm.xlu0 %5811, %v86_v3   ;;  %v6452_v51 = vld [vmem:[#allocation2 + $0x58] sm:$0xff]  ;;  %v6462_v56 = vld [vmem:[#allocation2 + $0x60] sm:$0xff]  ;;  %v6472_v61 = vld [vmem:[#allocation2 + $0x68] sm:$0x3f]  ;;  %v15487_v34 = vrot.slane %v6361_v7, %v6359_v6  ;;  %v15489_v48 = vrot.slane %v6361_v7, %v6364_v8  ;;  %v15493_v33 = vrot.slane %v6361_v7, %v6370_v10 }
  0x19   :  { %v6482_v2 = vld [vmem:[#allocation2 + $0x6e] sm:$0xff]  ;;  %v6492_v60 = vld [vmem:[#allocation2 + $0x76] sm:$0xff]  ;;  %v6502_v59 = vld [vmem:[#allocation2 + $0x7e] sm:$0x3f] }
  0x1a   :  { %v6512_v58 = vld [vmem:[#allocation2 + $0x84] sm:$0xff]  ;;  %v6522_v57 = vld [vmem:[#allocation2 + $0x8c] sm:$0xff]  ;;  %v6532_v55 = vld [vmem:[#allocation2 + $0x94] sm:$0x3f]  ;;  %v6906_v18 = vrot.slane %v15487_v34, %v6359_v6  ;;  %v6912_v19 = vrot.slane %v15489_v48, %v6359_v6  ;;  %v15494_v34 = vrot.slane %v6372_v11, %v6359_v6  ;;  %v15496_v48 = vrot.slane %v6372_v11, %v6364_v8 }
  0x1b   :  { %v6542_v54 = vld [vmem:[#allocation2 + $0x9a] sm:$0xff]  ;;  %v6552_v53 = vld [vmem:[#allocation2 + $0xa2] sm:$0xff]  ;;  %v6562_v52 = vld [vmem:[#allocation2 + $0xaa] sm:$0x3f] }
  0x1c   :  { %5813 = vset.pattern.permute.xlu0 %v6317_v1  ;;  %v6564_v62 = vld [vmem:[#allocation2 + $0xb0] sm:$0xff]  ;;  %v6574_v3 = vld [vmem:[#allocation2 + $0xb8] sm:$0xff]  ;;  %v6584_v47 = vld [vmem:[#allocation2 + $0xc0] sm:$0x3f]  ;;  %15488 = vst [vmem:[#allocation11_spill] sm:$0xff] %v6906_v18  ;;  %v6930_v18 = vrot.slane %v15494_v34, %v6359_v6  ;;  %v15501_v34 = vrot.slane %v6374_v12, %v6359_v6 }
  0x1d   :  { %v6594_v46 = vld [vmem:[#allocation2 + $0xc6] sm:$0xff]  ;;  %v6604_v44 = vld [vmem:[#allocation2 + $0xce] sm:$0xff]  ;;  %v6614_v43 = vld [vmem:[#allocation2 + $0xd6] sm:$0x3f]  ;;  %15490 = vst [vmem:[#allocation12_spill] sm:$0xff] %v6912_v19  ;;  %v6936_v19 = vrot.slane %v15496_v48, %v6359_v6  ;;  %v15503_v48 = vrot.slane %v6374_v12, %v6364_v8 }
  0x1e   :  { %v6624_v42 = vld [vmem:[#allocation2 + $0xdc] sm:$0xff]  ;;  %v6634_v41 = vld [vmem:[#allocation2 + $0xe4] sm:$0xff]  ;;  %v6644_v39 = vld [vmem:[#allocation2 + $0xec] sm:$0x3f]  ;;  %15495 = vst [vmem:[#allocation14_spill] sm:$0xff] %v6930_v18  ;;  %v6954_v18 = vrot.slane %v15501_v34, %v6359_v6  ;;  %v15509_v34 = vrot.slane %v6376_v13, %v6364_v8 }
  0x1f   :  { %v6654_v38 = vld [vmem:[#allocation2 + $0xf2] sm:$0xff]  ;;  %v6664_v37 = vld [vmem:[#allocation2 + $0xfa] sm:$0xff]  ;;  %v6674_v36 = vld [vmem:[#allocation2 + $0x102] sm:$0x3f]  ;;  %15497 = vst [vmem:[#allocation15_spill] sm:$0xff] %v6936_v19  ;;  %v6960_v19 = vrot.slane %v15503_v48, %v6359_v6  ;;  %v15511_v48 = vrot.slane %v6376_v13, %v6367_v9 }
  0x20   :  { %v6676_v0 = vld [vmem:[#allocation2 + $0x108] sm:$0xff]  ;;  %v6686_v63 = vld [vmem:[#allocation2 + $0x110] sm:$0xff]  ;;  %v6696_v32 = vld [vmem:[#allocation2 + $0x118] sm:$0x3f]  ;;  %15502 = vst [vmem:[#allocation17_spill] sm:$0xff] %v6954_v18  ;;  %v6978_v18 = vrot.slane %v15509_v34, %v6359_v6  ;;  %v15517_v34 = vrot.slane %v6380_v15, %v6364_v8 }
  0x21   :  { %v6706_v31 = vld [vmem:[#allocation2 + $0x11e] sm:$0xff]  ;;  %v6716_v29 = vld [vmem:[#allocation2 + $0x126] sm:$0xff]  ;;  %v6726_v28 = vld [vmem:[#allocation2 + $0x12e] sm:$0x3f]  ;;  %15504 = vst [vmem:[#allocation18_spill] sm:$0xff] %v6960_v19  ;;  %v6984_v19 = vrot.slane %v15511_v48, %v6359_v6  ;;  %v15519_v48 = vrot.slane %v6380_v15, %v6367_v9 }
  0x22   :  { %v6736_v27 = vld [vmem:[#allocation2 + $0x134] sm:$0xff]  ;;  %v6746_v26 = vld [vmem:[#allocation2 + $0x13c] sm:$0xff]  ;;  %v6756_v24 = vld [vmem:[#allocation2 + $0x144] sm:$0x3f]  ;;  %15510 = vst [vmem:[#allocation21_spill] sm:$0xff] %v6978_v18  ;;  %v7002_v18 = vrot.slane %v15517_v34, %v6359_v6  ;;  %v15525_v34 = vrot.slane %v6390_v20, %v6364_v8 }
  0x23   :  { %v6766_v23 = vld [vmem:[#allocation2 + $0x14a] sm:$0xff]  ;;  %v6776_v22 = vld [vmem:[#allocation2 + $0x152] sm:$0xff]  ;;  %v6786_v21 = vld [vmem:[#allocation2 + $0x15a] sm:$0x3f]  ;;  %15512 = vst [vmem:[#allocation22_spill] sm:$0xff] %v6984_v19  ;;  %v7008_v19 = vrot.slane %v15519_v48, %v6359_v6  ;;  %v15527_v48 = vrot.slane %v6390_v20, %v6367_v9 }
  0x24   :  { %15482 = vst [vmem:[#allocation6_spill] sm:$0xff] %v6786_v21  ;;  %v6788_v4 = vld [vmem:[#allocation2 + $0x160] sm:$0xff]  ;;  %v6798_v1 = vld [vmem:[#allocation2 + $0x168] sm:$0xff]  ;;  %v6808_v17 = vld [vmem:[#allocation2 + $0x170] sm:$0x3f] }
  0x25   :  { %15483 = vst [vmem:[#allocation7_spill] sm:$0xff] %v6788_v4  ;;  %15484 = vst [vmem:[#allocation8_spill] sm:$0xff] %v6808_v17  ;;  %v6818_v16 = vld [vmem:[#allocation2 + $0x176] sm:$0xff]  ;;  %v6828_v14 = vld [vmem:[#allocation2 + $0x17e] sm:$0xff] }
  0x26   :  { %15485 = vst [vmem:[#allocation9_spill] sm:$0xff] %v6818_v16  ;;  %v6838_v5 = vld [vmem:[#allocation2 + $0x186] sm:$0x3f]  ;;  %v6848_v21 = vld [vmem:[#allocation2 + $0x18c] sm:$0xff]  ;;  %v6858_v4 = vld [vmem:[#allocation2 + $0x194] sm:$0xff]  ;;  %v15491_v16 = vrot.slane %v6361_v7, %v6367_v9  ;;  %v15500_v7 = vrot.slane %v6372_v11, %v6370_v10 }
  0x27   :  { %v6868_v17 = vld [vmem:[#allocation2 + $0x19c] sm:$0x3f]  ;;  %15518 = vst [vmem:[#allocation25_spill] sm:$0xff] %v7002_v18  ;;  %15520 = vst [vmem:[#allocation26_spill] sm:$0xff] %v7008_v19  ;;  %v7026_v18 = vrot.slane %v15525_v34, %v6359_v6  ;;  %v7032_v19 = vrot.slane %v15527_v48, %v6359_v6  ;;  %v15533_v34 = vrot.slane %v6400_v25, %v6367_v9 }
  0x28   :  { %15486 = vst [vmem:[#allocation10_spill] sm:$0xff] %v6868_v17  ;;  %v6918_v49 = vrot.slane %v15491_v16, %v6359_v6  ;;  %v6924_v17 = vrot.slane %v15493_v33, %v6359_v6  ;;  %v15498_v16 = vrot.slane %v6372_v11, %v6367_v9  ;;  %v6948_v33 = vrot.slane %v15500_v7, %v6359_v6 }
  0x29   :  { %v15507_v11 = vrot.slane %v6376_v13, %v6359_v6  ;;  %15526 = vst [vmem:[#allocation29_spill] sm:$0xff] %v7026_v18  ;;  %15528 = vst [vmem:[#allocation30_spill] sm:$0xff] %v7032_v19  ;;  %v7050_v18 = vrot.slane %v15533_v34, %v6359_v6  ;;  %v15541_v34 = vrot.slane %v6410_v30, %v6367_v9 }
  0x2a   :  { %15492 = vst [vmem:[#allocation13_spill] sm:$0xff] %v6918_v49  ;;  %v6942_v49 = vrot.slane %v15498_v16, %v6359_v6  ;;  %v15505_v16 = vrot.slane %v6374_v12, %v6367_v9  ;;  %v15513_v12 = vrot.slane %v6376_v13, %v6370_v10  ;;  %v15521_v13 = vrot.slane %v6380_v15, %v6370_v10 }
  0x2b   :  { %v6972_v7 = vrot.slane %v15507_v11, %v6359_v6  ;;  %v15515_v11 = vrot.slane %v6380_v15, %v6359_v6  ;;  %v15529_v15 = vrot.slane %v6400_v25, %v6359_v6  ;;  %15534 = vst [vmem:[#allocation33_spill] sm:$0xff] %v7050_v18  ;;  %v7074_v18 = vrot.slane %v15541_v34, %v6359_v6 }
  0x2c   :  { %15499 = vst [vmem:[#allocation16_spill] sm:$0xff] %v6942_v49  ;;  %v6966_v49 = vrot.slane %v15505_v16, %v6359_v6  ;;  %v6990_v16 = vrot.slane %v15513_v12, %v6359_v6  ;;  %v7014_v12 = vrot.slane %v15521_v13, %v6359_v6  ;;  %v15549_v34 = vrot.slane %v6420_v35, %v6367_v9 }
  0x2d   :  { %15508 = vst [vmem:[#allocation20_spill] sm:$0xff] %v6972_v7  ;;  %v6996_v7 = vrot.slane %v15515_v11, %v6359_v6  ;;  %v15523_v11 = vrot.slane %v6390_v20, %v6359_v6  ;;  %v7038_v13 = vrot.slane %v15529_v15, %v6359_v6  ;;  %v15535_v20 = vrot.slane %v6400_v25, %v6370_v10 }
  0x2e   :  { %15506 = vst [vmem:[#allocation19_spill] sm:$0xff] %v6966_v49  ;;  %15514 = vst [vmem:[#allocation23_spill] sm:$0xff] %v6990_v16  ;;  %v15537_v15 = vrot.slane %v6410_v30, %v6359_v6 }
  0x2f   :  { %15516 = vst [vmem:[#allocation24_spill] sm:$0xff] %v6996_v7  ;;  %15522 = vst [vmem:[#allocation27_spill] sm:$0xff] %v7014_v12  ;;  %v7020_v7 = vrot.slane %v15523_v11, %v6359_v6  ;;  %v15531_v11 = vrot.slane %v6400_v25, %v6364_v8  ;;  %v7056_v48 = vrot.slane %v15535_v20, %v6359_v6 }
  0x30   :  { %15530 = vst [vmem:[#allocation31_spill] sm:$0xff] %v7038_v13  ;;  %v7062_v13 = vrot.slane %v15537_v15, %v6359_v6  ;;  %15542 = vst [vmem:[#allocation37_spill] sm:$0xff] %v7074_v18  ;;  %v15543_v25 = vrot.slane %v6410_v30, %v6370_v10  ;;  %v15545_v15 = vrot.slane %v6420_v35, %v6359_v6 }
  0x31   :  { %15524 = vst [vmem:[#allocation28_spill] sm:$0xff] %v7020_v7  ;;  %v7044_v7 = vrot.slane %v15531_v11, %v6359_v6  ;;  %15536 = vst [vmem:[#allocation34_spill] sm:$0xff] %v7056_v48  ;;  %v15539_v11 = vrot.slane %v6410_v30, %v6364_v8  ;;  %v7098_v18 = vrot.slane %v15549_v34, %v6359_v6 }
  0x32   :  { %15538 = vst [vmem:[#allocation35_spill] sm:$0xff] %v7062_v13  ;;  %v7080_v20 = vrot.slane %v15543_v25, %v6359_v6  ;;  %v7086_v13 = vrot.slane %v15545_v15, %v6359_v6  ;;  %v15551_v30 = vrot.slane %v6430_v40, %v6359_v6  ;;  %v15553_v15 = vrot.slane %v6430_v40, %v6364_v8 }
  0x33   :  { %15532 = vst [vmem:[#allocation32_spill] sm:$0xff] %v7044_v7  ;;  %v7068_v7 = vrot.slane %v15539_v11, %v6359_v6  ;;  %v15547_v11 = vrot.slane %v6420_v35, %v6364_v8  ;;  %15550 = vst [vmem:[#allocation41_spill] sm:$0xff] %v7098_v18  ;;  %v15557_v35 = vrot.slane %v6430_v40, %v6370_v10 }
  0x34   :  { %15544 = vst [vmem:[#allocation38_spill] sm:$0xff] %v7080_v20  ;;  %15546 = vst [vmem:[#allocation39_spill] sm:$0xff] %v7086_v13  ;;  %v7104_v25 = vrot.slane %v15551_v30, %v6359_v6  ;;  %v7110_v13 = vrot.slane %v15553_v15, %v6359_v6  ;;  %v15559_v30 = vrot.slane %v6440_v45, %v6359_v6 }
  0x35   :  { %15540 = vst [vmem:[#allocation36_spill] sm:$0xff] %v7068_v7  ;;  %v7092_v7 = vrot.slane %v15547_v11, %v6359_v6  ;;  %v15555_v11 = vrot.slane %v6430_v40, %v6367_v9  ;;  %v7122_v34 = vrot.slane %v15557_v35, %v6359_v6  ;;  %v15561_v15 = vrot.slane %v6440_v45, %v6364_v8 }
  0x36   :  { %15552 = vst [vmem:[#allocation42_spill] sm:$0xff] %v7104_v25  ;;  %15554 = vst [vmem:[#allocation43_spill] sm:$0xff] %v7110_v13  ;;  %v7128_v25 = vrot.slane %v15559_v30, %v6359_v6  ;;  %v15565_v40 = vrot.slane %v6440_v45, %v6370_v10  ;;  %v15567_v30 = vrot.slane %v6450_v50, %v6359_v6 }
  0x37   :  { %15548 = vst [vmem:[#allocation40_spill] sm:$0xff] %v7092_v7  ;;  %v7116_v7 = vrot.slane %v15555_v11, %v6359_v6  ;;  %15558 = vst [vmem:[#allocation45_spill] sm:$0xff] %v7122_v34  ;;  %v7134_v13 = vrot.slane %v15561_v15, %v6359_v6  ;;  %v15563_v11 = vrot.slane %v6440_v45, %v6367_v9 }
  0x38   :  { %15560 = vst [vmem:[#allocation46_spill] sm:$0xff] %v7128_v25  ;;  %v7146_v35 = vrot.slane %v15565_v40, %v6359_v6  ;;  %v7152_v25 = vrot.slane %v15567_v30, %v6359_v6  ;;  %v15569_v15 = vrot.slane %v6450_v50, %v6364_v8  ;;  %v15573_v45 = vrot.slane %v6452_v51, %v6359_v6 }
  0x39   :  { %15556 = vst [vmem:[#allocation44_spill] sm:$0xff] %v7116_v7  ;;  %15562 = vst [vmem:[#allocation47_spill] sm:$0xff] %v7134_v13  ;;  %v7140_v7 = vrot.slane %v15563_v11, %v6359_v6  ;;  %v15571_v11 = vrot.slane %v6450_v50, %v6367_v9  ;;  %v15575_v30 = vrot.slane %v6452_v51, %v6364_v8 }
  0x3a   :  { %15566 = vst [vmem:[#allocation49_spill] sm:$0xff] %v7146_v35  ;;  %15568 = vst [vmem:[#allocation50_spill] sm:$0xff] %v7152_v25  ;;  %v7158_v13 = vrot.slane %v15569_v15, %v6359_v6  ;;  %v7170_v40 = vrot.slane %v15573_v45, %v6359_v6  ;;  %v15577_v15 = vrot.slane %v6452_v51, %v6367_v9 }
  0x3b   :  { %15564 = vst [vmem:[#allocation48_spill] sm:$0xff] %v7140_v7  ;;  %v7164_v7 = vrot.slane %v15571_v11, %v6359_v6  ;;  %v7176_v25 = vrot.slane %v15575_v30, %v6359_v6  ;;  %v15579_v50 = vrot.slane %v6452_v51, %v6370_v10  ;;  %v15581_v45 = vrot.slane %v6462_v56, %v6359_v6 }
  0x3c   :  { %15570 = vst [vmem:[#allocation51_spill] sm:$0xff] %v7158_v13  ;;  %15574 = vst [vmem:[#allocation53_spill] sm:$0xff] %v7170_v40  ;;  %v7182_v13 = vrot.slane %v15577_v15, %v6359_v6  ;;  %v15583_v30 = vrot.slane %v6462_v56, %v6364_v8  ;;  %v15585_v15 = vrot.slane %v6462_v56, %v6367_v9 }
  0x3d   :  { %15572 = vst [vmem:[#allocation52_spill] sm:$0xff] %v7164_v7  ;;  %15576 = vst [vmem:[#allocation54_spill] sm:$0xff] %v7176_v25  ;;  %v7188_v11 = vrot.slane %v15579_v50, %v6359_v6  ;;  %v7194_v40 = vrot.slane %v15581_v45, %v6359_v6  ;;  %v15587_v51 = vrot.slane %v6462_v56, %v6370_v10 }
  0x3e   :  { %15578 = vst [vmem:[#allocation55_spill] sm:$0xff] %v7182_v13  ;;  %v7200_v25 = vrot.slane %v15583_v30, %v6359_v6  ;;  %v7206_v13 = vrot.slane %v15585_v15, %v6359_v6  ;;  %v15589_v45 = vrot.slane %v6472_v61, %v6359_v6  ;;  %v15591_v30 = vrot.slane %v6472_v61, %v6364_v8 }
  0x3f   :  { %15580 = vst [vmem:[#allocation56_spill] sm:$0xff] %v7188_v11  ;;  %15582 = vst [vmem:[#allocation57_spill] sm:$0xff] %v7194_v40  ;;  %v7212_v50 = vrot.slane %v15587_v51, %v6359_v6  ;;  %v15593_v15 = vrot.slane %v6472_v61, %v6367_v9  ;;  %v15595_v56 = vrot.slane %v6482_v2, %v6359_v6 }
  0x40   :  { %15584 = vst [vmem:[#allocation58_spill] sm:$0xff] %v7200_v25  ;;  %15586 = vst [vmem:[#allocation59_spill] sm:$0xff] %v7206_v13  ;;  %v7218_v40 = vrot.slane %v15589_v45, %v6359_v6  ;;  %v7224_v25 = vrot.slane %v15591_v30, %v6359_v6  ;;  %v15597_v45 = vrot.slane %v6482_v2, %v6364_v8 }
  0x41   :  { %15588 = vst [vmem:[#allocation60_spill] sm:$0xff] %v7212_v50  ;;  %v7230_v13 = vrot.slane %v15593_v15, %v6359_v6  ;;  %v7236_v51 = vrot.slane %v15595_v56, %v6359_v6  ;;  %v15599_v30 = vrot.slane %v6482_v2, %v6367_v9  ;;  %v15601_v61 = vrot.slane %v6482_v2, %v6370_v10 }
  0x42   :  { %15590 = vst [vmem:[#allocation61_spill] sm:$0xff] %v7218_v40  ;;  %15592 = vst [vmem:[#allocation62_spill] sm:$0xff] %v7224_v25  ;;  %v7242_v40 = vrot.slane %v15597_v45, %v6359_v6  ;;  %v15603_v56 = vrot.slane %v6492_v60, %v6359_v6  ;;  %v15605_v45 = vrot.slane %v6492_v60, %v6364_v8 }
  0x43   :  { %15594 = vst [vmem:[#allocation63_spill] sm:$0xff] %v7230_v13  ;;  %15596 = vst [vmem:[#allocation64_spill] sm:$0xff] %v7236_v51  ;;  %v7248_v25 = vrot.slane %v15599_v30, %v6359_v6  ;;  %v7254_v15 = vrot.slane %v15601_v61, %v6359_v6  ;;  %v15607_v30 = vrot.slane %v6492_v60, %v6367_v9 }
  0x44   :  { %15598 = vst [vmem:[#allocation65_spill] sm:$0xff] %v7242_v40  ;;  %v7260_v51 = vrot.slane %v15603_v56, %v6359_v6  ;;  %v7266_v40 = vrot.slane %v15605_v45, %v6359_v6  ;;  %v15609_v2 = vrot.slane %v6492_v60, %v6370_v10  ;;  %v15611_v56 = vrot.slane %v6502_v59, %v6359_v6 }
  0x45   :  { %15600 = vst [vmem:[#allocation66_spill] sm:$0xff] %v7248_v25  ;;  %15602 = vst [vmem:[#allocation67_spill] sm:$0xff] %v7254_v15  ;;  %v7272_v25 = vrot.slane %v15607_v30, %v6359_v6  ;;  %v15613_v45 = vrot.slane %v6502_v59, %v6364_v8  ;;  %v15615_v30 = vrot.slane %v6502_v59, %v6367_v9 }
  0x46   :  { %15604 = vst [vmem:[#allocation68_spill] sm:$0xff] %v7260_v51  ;;  %15606 = vst [vmem:[#allocation69_spill] sm:$0xff] %v7266_v40  ;;  %v7278_v61 = vrot.slane %v15609_v2, %v6359_v6  ;;  %v7284_v51 = vrot.slane %v15611_v56, %v6359_v6  ;;  %v15617_v60 = vrot.slane %v6512_v58, %v6359_v6 }
  0x47   :  { %15608 = vst [vmem:[#allocation70_spill] sm:$0xff] %v7272_v25  ;;  %v7290_v40 = vrot.slane %v15613_v45, %v6359_v6  ;;  %v7296_v25 = vrot.slane %v15615_v30, %v6359_v6  ;;  %v15619_v56 = vrot.slane %v6512_v58, %v6364_v8  ;;  %v15621_v45 = vrot.slane %v6512_v58, %v6367_v9 }
  0x48   :  { %15610 = vst [vmem:[#allocation71_spill] sm:$0xff] %v7278_v61  ;;  %15612 = vst [vmem:[#allocation72_spill] sm:$0xff] %v7284_v51  ;;  %v7302_v2 = vrot.slane %v15617_v60, %v6359_v6  ;;  %v15623_v59 = vrot.slane %v6512_v58, %v6370_v10  ;;  %v15625_v60 = vrot.slane %v6522_v57, %v6359_v6 }
  0x49   :  { %15614 = vst [vmem:[#allocation73_spill] sm:$0xff] %v7290_v40  ;;  %15616 = vst [vmem:[#allocation74_spill] sm:$0xff] %v7296_v25  ;;  %v7308_v51 = vrot.slane %v15619_v56, %v6359_v6  ;;  %v7314_v40 = vrot.slane %v15621_v45, %v6359_v6  ;;  %v15627_v56 = vrot.slane %v6522_v57, %v6364_v8 }
  0x4a   :  { %15618 = vst [vmem:[#allocation75_spill] sm:$0xff] %v7302_v2  ;;  %v7320_v30 = vrot.slane %v15623_v59, %v6359_v6  ;;  %v7326_v2 = vrot.slane %v15625_v60, %v6359_v6  ;;  %v15629_v45 = vrot.slane %v6522_v57, %v6367_v9  ;;  %v15631_v58 = vrot.slane %v6522_v57, %v6370_v10 }
  0x4b   :  { %15620 = vst [vmem:[#allocation76_spill] sm:$0xff] %v7308_v51  ;;  %15622 = vst [vmem:[#allocation77_spill] sm:$0xff] %v7314_v40  ;;  %v7332_v51 = vrot.slane %v15627_v56, %v6359_v6  ;;  %v15633_v60 = vrot.slane %v6532_v55, %v6359_v6  ;;  %v15635_v56 = vrot.slane %v6532_v55, %v6364_v8 }
  0x4c   :  { %15624 = vst [vmem:[#allocation78_spill] sm:$0xff] %v7320_v30  ;;  %15626 = vst [vmem:[#allocation79_spill] sm:$0xff] %v7326_v2  ;;  %v7338_v40 = vrot.slane %v15629_v45, %v6359_v6  ;;  %v7344_v59 = vrot.slane %v15631_v58, %v6359_v6  ;;  %v15637_v45 = vrot.slane %v6532_v55, %v6367_v9 }
  0x4d   :  { %15628 = vst [vmem:[#allocation80_spill] sm:$0xff] %v7332_v51  ;;  %v7350_v2 = vrot.slane %v15633_v60, %v6359_v6  ;;  %v7356_v51 = vrot.slane %v15635_v56, %v6359_v6  ;;  %v15639_v57 = vrot.slane %v6542_v54, %v6359_v6  ;;  %v15641_v60 = vrot.slane %v6542_v54, %v6364_v8 }
  0x4e   :  { %15630 = vst [vmem:[#allocation81_spill] sm:$0xff] %v7338_v40  ;;  %15632 = vst [vmem:[#allocation82_spill] sm:$0xff] %v7344_v59  ;;  %v7362_v40 = vrot.slane %v15637_v45, %v6359_v6  ;;  %v15643_v56 = vrot.slane %v6542_v54, %v6367_v9  ;;  %v15645_v55 = vrot.slane %v6542_v54, %v6370_v10 }
  0x4f   :  { %15634 = vst [vmem:[#allocation83_spill] sm:$0xff] %v7350_v2  ;;  %15636 = vst [vmem:[#allocation84_spill] sm:$0xff] %v7356_v51  ;;  %v7368_v58 = vrot.slane %v15639_v57, %v6359_v6  ;;  %v7374_v2 = vrot.slane %v15641_v60, %v6359_v6  ;;  %v15647_v57 = vrot.slane %v6552_v53, %v6359_v6 }
  0x50   :  { %15638 = vst [vmem:[#allocation85_spill] sm:$0xff] %v7362_v40  ;;  %v7380_v51 = vrot.slane %v15643_v56, %v6359_v6  ;;  %v7386_v45 = vrot.slane %v15645_v55, %v6359_v6  ;;  %v15649_v60 = vrot.slane %v6552_v53, %v6364_v8  ;;  %v15651_v56 = vrot.slane %v6552_v53, %v6367_v9 }
  0x51   :  { %15640 = vst [vmem:[#allocation86_spill] sm:$0xff] %v7368_v58  ;;  %15642 = vst [vmem:[#allocation87_spill] sm:$0xff] %v7374_v2  ;;  %v7392_v58 = vrot.slane %v15647_v57, %v6359_v6  ;;  %v15653_v54 = vrot.slane %v6552_v53, %v6370_v10  ;;  %v15655_v57 = vrot.slane %v6562_v52, %v6359_v6 }
  0x52   :  { %15644 = vst [vmem:[#allocation88_spill] sm:$0xff] %v7380_v51  ;;  %15646 = vst [vmem:[#allocation89_spill] sm:$0xff] %v7386_v45  ;;  %v7398_v2 = vrot.slane %v15649_v60, %v6359_v6  ;;  %v7404_v51 = vrot.slane %v15651_v56, %v6359_v6  ;;  %v15657_v60 = vrot.slane %v6562_v52, %v6364_v8 }
  0x53   :  { %15648 = vst [vmem:[#allocation90_spill] sm:$0xff] %v7392_v58  ;;  %v7410_v55 = vrot.slane %v15653_v54, %v6359_v6  ;;  %v7416_v58 = vrot.slane %v15655_v57, %v6359_v6  ;;  %v15659_v56 = vrot.slane %v6562_v52, %v6367_v9  ;;  %v15661_v53 = vrot.slane %v6564_v62, %v6359_v6 }
  0x54   :  { %15650 = vst [vmem:[#allocation91_spill] sm:$0xff] %v7398_v2  ;;  %15652 = vst [vmem:[#allocation92_spill] sm:$0xff] %v7404_v51  ;;  %v7422_v2 = vrot.slane %v15657_v60, %v6359_v6  ;;  %v15663_v57 = vrot.slane %v6564_v62, %v6364_v8  ;;  %v15665_v60 = vrot.slane %v6564_v62, %v6367_v9 }
  0x55   :  { %15654 = vst [vmem:[#allocation93_spill] sm:$0xff] %v7410_v55  ;;  %15656 = vst [vmem:[#allocation94_spill] sm:$0xff] %v7416_v58  ;;  %v7428_v51 = vrot.slane %v15659_v56, %v6359_v6  ;;  %v7434_v54 = vrot.slane %v15661_v53, %v6359_v6  ;;  %v15667_v52 = vrot.slane %v6564_v62, %v6370_v10 }
  0x56   :  { %15658 = vst [vmem:[#allocation95_spill] sm:$0xff] %v7422_v2  ;;  %v7440_v58 = vrot.slane %v15663_v57, %v6359_v6  ;;  %v7446_v2 = vrot.slane %v15665_v60, %v6359_v6  ;;  %v15669_v53 = vrot.slane %v6574_v3, %v6359_v6  ;;  %v15671_v57 = vrot.slane %v6574_v3, %v6364_v8 }
  0x57   :  { %15660 = vst [vmem:[#allocation96_spill] sm:$0xff] %v7428_v51  ;;  %15662 = vst [vmem:[#allocation97_spill] sm:$0xff] %v7434_v54  ;;  %v7452_v56 = vrot.slane %v15667_v52, %v6359_v6  ;;  %v15673_v60 = vrot.slane %v6574_v3, %v6367_v9  ;;  %v15675_v62 = vrot.slane %v6574_v3, %v6370_v10 }
  0x58   :  { %15664 = vst [vmem:[#allocation98_spill] sm:$0xff] %v7440_v58  ;;  %15666 = vst [vmem:[#allocation99_spill] sm:$0xff] %v7446_v2  ;;  %v7458_v54 = vrot.slane %v15669_v53, %v6359_v6  ;;  %v7464_v58 = vrot.slane %v15671_v57, %v6359_v6  ;;  %v15677_v53 = vrot.slane %v6584_v47, %v6359_v6 }
  0x59   :  { %15668 = vst [vmem:[#allocation100_spill] sm:$0xff] %v7452_v56  ;;  %v7470_v2 = vrot.slane %v15673_v60, %v6359_v6  ;;  %v7476_v52 = vrot.slane %v15675_v62, %v6359_v6  ;;  %v15679_v57 = vrot.slane %v6584_v47, %v6364_v8  ;;  %v15681_v60 = vrot.slane %v6584_v47, %v6367_v9 }
  0x5a   :  { %15670 = vst [vmem:[#allocation101_spill] sm:$0xff] %v7458_v54  ;;  %15672 = vst [vmem:[#allocation102_spill] sm:$0xff] %v7464_v58  ;;  %v7482_v54 = vrot.slane %v15677_v53, %v6359_v6  ;;  %v15683_v3 = vrot.slane %v6594_v46, %v6359_v6  ;;  %v15685_v53 = vrot.slane %v6594_v46, %v6364_v8 }
  0x5b   :  { %15674 = vst [vmem:[#allocation103_spill] sm:$0xff] %v7470_v2  ;;  %15676 = vst [vmem:[#allocation104_spill] sm:$0xff] %v7476_v52  ;;  %v7488_v58 = vrot.slane %v15679_v57, %v6359_v6  ;;  %v7494_v2 = vrot.slane %v15681_v60, %v6359_v6  ;;  %v15687_v57 = vrot.slane %v6594_v46, %v6367_v9 }
  0x5c   :  { %15678 = vst [vmem:[#allocation105_spill] sm:$0xff] %v7482_v54  ;;  %v7500_v62 = vrot.slane %v15683_v3, %v6359_v6  ;;  %v7506_v54 = vrot.slane %v15685_v53, %v6359_v6  ;;  %v15689_v47 = vrot.slane %v6594_v46, %v6370_v10  ;;  %v15691_v3 = vrot.slane %v6604_v44, %v6359_v6 }
  0x5d   :  { %15680 = vst [vmem:[#allocation106_spill] sm:$0xff] %v7488_v58  ;;  %15682 = vst [vmem:[#allocation107_spill] sm:$0xff] %v7494_v2  ;;  %v7512_v58 = vrot.slane %v15687_v57, %v6359_v6  ;;  %v15693_v53 = vrot.slane %v6604_v44, %v6364_v8  ;;  %v15695_v57 = vrot.slane %v6604_v44, %v6367_v9 }
  0x5e   :  { %15684 = vst [vmem:[#allocation108_spill] sm:$0xff] %v7500_v62  ;;  %15686 = vst [vmem:[#allocation109_spill] sm:$0xff] %v7506_v54  ;;  %v7518_v60 = vrot.slane %v15689_v47, %v6359_v6  ;;  %v7524_v62 = vrot.slane %v15691_v3, %v6359_v6  ;;  %v15697_v46 = vrot.slane %v6604_v44, %v6370_v10 }
  0x5f   :  { %15688 = vst [vmem:[#allocation110_spill] sm:$0xff] %v7512_v58  ;;  %v7530_v54 = vrot.slane %v15693_v53, %v6359_v6  ;;  %v7536_v58 = vrot.slane %v15695_v57, %v6359_v6  ;;  %v15699_v3 = vrot.slane %v6614_v43, %v6359_v6  ;;  %v15701_v53 = vrot.slane %v6614_v43, %v6364_v8 }
  0x60   :  { %15690 = vst [vmem:[#allocation111_spill] sm:$0xff] %v7518_v60  ;;  %15692 = vst [vmem:[#allocation112_spill] sm:$0xff] %v7524_v62  ;;  %v7542_v47 = vrot.slane %v15697_v46, %v6359_v6  ;;  %v15703_v57 = vrot.slane %v6614_v43, %v6367_v9  ;;  %v15705_v44 = vrot.slane %v6624_v42, %v6359_v6 }
  0x61   :  { %15694 = vst [vmem:[#allocation113_spill] sm:$0xff] %v7530_v54  ;;  %15696 = vst [vmem:[#allocation114_spill] sm:$0xff] %v7536_v58  ;;  %v7548_v62 = vrot.slane %v15699_v3, %v6359_v6  ;;  %v7554_v54 = vrot.slane %v15701_v53, %v6359_v6  ;;  %v15707_v3 = vrot.slane %v6624_v42, %v6364_v8 }
  0x62   :  { %15698 = vst [vmem:[#allocation115_spill] sm:$0xff] %v7542_v47  ;;  %v7560_v58 = vrot.slane %v15703_v57, %v6359_v6  ;;  %v7566_v46 = vrot.slane %v15705_v44, %v6359_v6  ;;  %v15709_v53 = vrot.slane %v6624_v42, %v6367_v9  ;;  %v15711_v43 = vrot.slane %v6624_v42, %v6370_v10 }
  0x63   :  { %15700 = vst [vmem:[#allocation116_spill] sm:$0xff] %v7548_v62  ;;  %15702 = vst [vmem:[#allocation117_spill] sm:$0xff] %v7554_v54  ;;  %v7572_v62 = vrot.slane %v15707_v3, %v6359_v6  ;;  %v15713_v44 = vrot.slane %v6634_v41, %v6359_v6  ;;  %v15715_v3 = vrot.slane %v6634_v41, %v6364_v8 }
  0x64   :  { %15704 = vst [vmem:[#allocation118_spill] sm:$0xff] %v7560_v58  ;;  %15706 = vst [vmem:[#allocation119_spill] sm:$0xff] %v7566_v46  ;;  %v7578_v54 = vrot.slane %v15709_v53, %v6359_v6  ;;  %v7584_v57 = vrot.slane %v15711_v43, %v6359_v6  ;;  %v15717_v53 = vrot.slane %v6634_v41, %v6367_v9 }
  0x65   :  { %15708 = vst [vmem:[#allocation120_spill] sm:$0xff] %v7572_v62  ;;  %v7590_v46 = vrot.slane %v15713_v44, %v6359_v6  ;;  %v7596_v62 = vrot.slane %v15715_v3, %v6359_v6  ;;  %v15719_v42 = vrot.slane %v6634_v41, %v6370_v10  ;;  %v15721_v44 = vrot.slane %v6644_v39, %v6359_v6 }
  0x66   :  { %15710 = vst [vmem:[#allocation121_spill] sm:$0xff] %v7578_v54  ;;  %15712 = vst [vmem:[#allocation122_spill] sm:$0xff] %v7584_v57  ;;  %v7602_v54 = vrot.slane %v15717_v53, %v6359_v6  ;;  %v15723_v3 = vrot.slane %v6644_v39, %v6364_v8  ;;  %v15725_v53 = vrot.slane %v6644_v39, %v6367_v9 }
  0x67   :  { %15714 = vst [vmem:[#allocation123_spill] sm:$0xff] %v7590_v46  ;;  %15716 = vst [vmem:[#allocation124_spill] sm:$0xff] %v7596_v62  ;;  %v7608_v43 = vrot.slane %v15719_v42, %v6359_v6  ;;  %v7614_v46 = vrot.slane %v15721_v44, %v6359_v6  ;;  %v15727_v41 = vrot.slane %v6654_v38, %v6359_v6 }
  0x68   :  { %15718 = vst [vmem:[#allocation125_spill] sm:$0xff] %v7602_v54  ;;  %v7620_v62 = vrot.slane %v15723_v3, %v6359_v6  ;;  %v7626_v54 = vrot.slane %v15725_v53, %v6359_v6  ;;  %v15729_v44 = vrot.slane %v6654_v38, %v6364_v8  ;;  %v15731_v3 = vrot.slane %v6654_v38, %v6367_v9 }
  0x69   :  { %15720 = vst [vmem:[#allocation126_spill] sm:$0xff] %v7608_v43  ;;  %15722 = vst [vmem:[#allocation127_spill] sm:$0xff] %v7614_v46  ;;  %v7632_v42 = vrot.slane %v15727_v41, %v6359_v6  ;;  %v15733_v39 = vrot.slane %v6654_v38, %v6370_v10  ;;  %v15735_v41 = vrot.slane %v6664_v37, %v6359_v6 }
  0x6a   :  { %15724 = vst [vmem:[#allocation128_spill] sm:$0xff] %v7620_v62  ;;  %15726 = vst [vmem:[#allocation129_spill] sm:$0xff] %v7626_v54  ;;  %v7638_v46 = vrot.slane %v15729_v44, %v6359_v6  ;;  %v7644_v62 = vrot.slane %v15731_v3, %v6359_v6  ;;  %v15737_v44 = vrot.slane %v6664_v37, %v6364_v8 }
  0x6b   :  { %15728 = vst [vmem:[#allocation130_spill] sm:$0xff] %v7632_v42  ;;  %v7650_v53 = vrot.slane %v15733_v39, %v6359_v6  ;;  %v7656_v42 = vrot.slane %v15735_v41, %v6359_v6  ;;  %v15739_v3 = vrot.slane %v6664_v37, %v6367_v9  ;;  %v15740_v38 = vrot.slane %v6664_v37, %v6370_v10 }
  0x6c   :  { %15730 = vst [vmem:[#allocation131_spill] sm:$0xff] %v7638_v46  ;;  %15732 = vst [vmem:[#allocation132_spill] sm:$0xff] %v7644_v62  ;;  %v7662_v46 = vrot.slane %v15737_v44, %v6359_v6  ;;  %v15742_v41 = vrot.slane %v6674_v36, %v6359_v6  ;;  %v15744_v44 = vrot.slane %v6674_v36, %v6364_v8 }
  0x6d   :  { %15734 = vst [vmem:[#allocation133_spill] sm:$0xff] %v7650_v53  ;;  %15736 = vst [vmem:[#allocation134_spill] sm:$0xff] %v7656_v42  ;;  %v7668_v62 = vrot.slane %v15739_v3, %v6359_v6  ;;  %v7674_v39 = vrot.slane %v15740_v38, %v6359_v6  ;;  %v15745_v3 = vrot.slane %v6674_v36, %v6367_v9 }
  0x6e   :  { %15738 = vst [vmem:[#allocation135_spill] sm:$0xff] %v7662_v46  ;;  %v7680_v42 = vrot.slane %v15742_v41, %v6359_v6  ;;  %v7686_v46 = vrot.slane %v15744_v44, %v6359_v6  ;;  %v15746_v37 = vrot.slane %v6676_v0, %v6359_v6  ;;  %v15748_v41 = vrot.slane %v6676_v0, %v6364_v8 }
  0x6f   :  { %15741 = vst [vmem:[#allocation136_spill] sm:$0xff] %v7674_v39  ;;  %v7692_v53 = vrot.slane %v15745_v3, %v6359_v6  ;;  %v15749_v44 = vrot.slane %v6676_v0, %v6367_v9  ;;  %v15750_v36 = vrot.slane %v6676_v0, %v6370_v10  ;;  %v15755_v0 = vrot.slane %v6686_v63, %v6370_v10 }
  0x70   :  { %15743 = vst [vmem:[#allocation137_spill] sm:$0xff] %v7680_v42  ;;  %v7698_v38 = vrot.slane %v15746_v37, %v6359_v6  ;;  %v7704_v54 = vrot.slane %v15748_v41, %v6359_v6  ;;  %v15751_v37 = vrot.slane %v6686_v63, %v6359_v6  ;;  %v15753_v41 = vrot.slane %v6686_v63, %v6364_v8 }
  0x71   :  { %v7710_v43 = vrot.slane %v15749_v44, %v6359_v6  ;;  %v7716_v3 = vrot.slane %v15750_v36, %v6359_v6  ;;  %v15754_v44 = vrot.slane %v6686_v63, %v6367_v9  ;;  %v7740_v36 = vrot.slane %v15755_v0, %v6359_v6 }
  0x72   :  { %15747 = vst [vmem:[#allocation138_spill] sm:$0xff] %v7698_v38  ;;  %v7722_v57 = vrot.slane %v15751_v37, %v6359_v6  ;;  %v7728_v58 = vrot.slane %v15753_v41, %v6359_v6  ;;  %v15756_v37 = vrot.slane %v6696_v32, %v6359_v6  ;;  %v15758_v41 = vrot.slane %v6696_v32, %v6364_v8 }
  0x73   :  { %v7734_v47 = vrot.slane %v15754_v44, %v6359_v6  ;;  %v15759_v44 = vrot.slane %v6696_v32, %v6367_v9  ;;  %v15760_v63 = vrot.slane %v6706_v31, %v6359_v6  ;;  %v15764_v32 = vrot.slane %v6706_v31, %v6370_v10 }
  0x74   :  { %15752 = vst [vmem:[#allocation139_spill] sm:$0xff] %v7722_v57  ;;  %v7746_v60 = vrot.slane %v15756_v37, %v6359_v6  ;;  %v7752_v2 = vrot.slane %v15758_v41, %v6359_v6  ;;  %v15762_v37 = vrot.slane %v6706_v31, %v6364_v8  ;;  %v15763_v41 = vrot.slane %v6706_v31, %v6367_v9 }
  0x75   :  { %v7758_v52 = vrot.slane %v15759_v44, %v6359_v6  ;;  %v7764_v0 = vrot.slane %v15760_v63, %v6359_v6  ;;  %v7782_v44 = vrot.slane %v15764_v32, %v6359_v6  ;;  %v15765_v63 = vrot.slane %v6716_v29, %v6359_v6 }
  0x76   :  { %15757 = vst [vmem:[#allocation140_spill] sm:$0xff] %v7746_v60  ;;  %v7770_v56 = vrot.slane %v15762_v37, %v6359_v6  ;;  %v7776_v51 = vrot.slane %v15763_v41, %v6359_v6  ;;  %v15767_v37 = vrot.slane %v6716_v29, %v6364_v8  ;;  %v15768_v41 = vrot.slane %v6716_v29, %v6367_v9 }
  0x77   :  { %15761 = vst [vmem:[#allocation141_spill] sm:$0xff] %v7764_v0  ;;  %v7788_v55 = vrot.slane %v15765_v63, %v6359_v6  ;;  %v15769_v31 = vrot.slane %v6716_v29, %v6370_v10  ;;  %v15770_v63 = vrot.slane %v6726_v28, %v6359_v6  ;;  %v15774_v29 = vrot.slane %v6736_v27, %v6359_v6 }
  0x78   :  { %v7794_v45 = vrot.slane %v15767_v37, %v6359_v6  ;;  %v7800_v40 = vrot.slane %v15768_v41, %v6359_v6  ;;  %v15772_v37 = vrot.slane %v6726_v28, %v6364_v8  ;;  %v15773_v41 = vrot.slane %v6726_v28, %v6367_v9 }
  0x79   :  { %15766 = vst [vmem:[#allocation142_spill] sm:$0xff] %v7788_v55  ;;  %v7806_v32 = vrot.slane %v15769_v31, %v6359_v6  ;;  %v7812_v59 = vrot.slane %v15770_v63, %v6359_v6  ;;  %v7830_v31 = vrot.slane %v15774_v29, %v6359_v6  ;;  %v15776_v63 = vrot.slane %v6736_v27, %v6364_v8 }
  0x7a   :  { %v7818_v30 = vrot.slane %v15772_v37, %v6359_v6  ;;  %v7824_v25 = vrot.slane %v15773_v41, %v6359_v6  ;;  %v15777_v37 = vrot.slane %v6736_v27, %v6367_v9  ;;  %v15778_v28 = vrot.slane %v6736_v27, %v6370_v10 }
  0x7b   :  { %15771 = vst [vmem:[#allocation143_spill] sm:$0xff] %v7812_v59  ;;  %15775 = vst [vmem:[#allocation144_spill] sm:$0xff] %v7830_v31  ;;  %v7836_v61 = vrot.slane %v15776_v63, %v6359_v6  ;;  %v15779_v29 = vrot.slane %v6746_v26, %v6359_v6  ;;  %v15781_v63 = vrot.slane %v6746_v26, %v6364_v8 }
  0x7c   :  { %v7842_v15 = vrot.slane %v15777_v37, %v6359_v6  ;;  %v7848_v41 = vrot.slane %v15778_v28, %v6359_v6  ;;  %v15782_v37 = vrot.slane %v6746_v26, %v6367_v9  ;;  %v15783_v27 = vrot.slane %v6746_v26, %v6370_v10 }
  0x7d   :  { %v7854_v13 = vrot.slane %v15779_v29, %v6359_v6  ;;  %v7860_v50 = vrot.slane %v15781_v63, %v6359_v6  ;;  %v15784_v29 = vrot.slane %v6756_v24, %v6359_v6  ;;  %v15786_v63 = vrot.slane %v6756_v24, %v6364_v8 }
  0x7e   :  { %v7866_v11 = vrot.slane %v15782_v37, %v6359_v6  ;;  %v7872_v28 = vrot.slane %v15783_v27, %v6359_v6  ;;  %v15787_v37 = vrot.slane %v6756_v24, %v6367_v9  ;;  %v15788_v26 = vrot.slane %v6766_v23, %v6359_v6 }
  0x7f   :  { %15780 = vst [vmem:[#allocation145_spill] sm:$0xff] %v7854_v13  ;;  %v7878_v7 = vrot.slane %v15784_v29, %v6359_v6  ;;  %v7884_v35 = vrot.slane %v15786_v63, %v6359_v6  ;;  %v15790_v29 = vrot.slane %v6766_v23, %v6364_v8  ;;  %v15791_v63 = vrot.slane %v6766_v23, %v6367_v9 }
  0x80   :  { %v7890_v34 = vrot.slane %v15787_v37, %v6359_v6  ;;  %v7896_v27 = vrot.slane %v15788_v26, %v6359_v6  ;;  %v15792_v24 = vrot.slane %v6766_v23, %v6370_v10  ;;  %v15793_v26 = vrot.slane %v6776_v22, %v6359_v6 }
  0x81   :  { %15785 = vst [vmem:[#allocation146_spill] sm:$0xff] %v7878_v7  ;;  %v7902_v18 = vrot.slane %v15790_v29, %v6359_v6  ;;  %v7908_v20 = vrot.slane %v15791_v63, %v6359_v6  ;;  %v15795_v29 = vrot.slane %v6776_v22, %v6364_v8  ;;  %v15796_v63 = vrot.slane %v6776_v22, %v6367_v9 }
  0x82   :  { %15789 = vst [vmem:[#allocation147_spill] sm:$0xff] %v7896_v27  ;;  %v7914_v37 = vrot.slane %v15792_v24, %v6359_v6  ;;  %v7920_v48 = vrot.slane %v15793_v26, %v6359_v6  ;;  %v15797_v23 = vrot.slane %v6776_v22, %v6370_v10  ;;  %v15798_v26 = vld [vmem:[#allocation6_spill] sm:$0xff] }
  0x83   :  { %v7926_v19 = vrot.slane %v15795_v29, %v6359_v6  ;;  %v7932_v12 = vrot.slane %v15796_v63, %v6359_v6  ;;  %v15801_v29 = vrot.slane %v15798_v26, %v6364_v8  ;;  %v15802_v63 = vrot.slane %v15798_v26, %v6367_v9 }
  0x84   :  { %15794 = vst [vmem:[#allocation148_spill] sm:$0xff] %v7920_v48  ;;  %v7938_v24 = vrot.slane %v15797_v23, %v6359_v6  ;;  %v15799_v48 = vrot.slane %v15798_v26, %v6359_v6  ;;  %v15803_v23 = vld [vmem:[#allocation7_spill] sm:$0xff] }
  0x85   :  { %v7950_v7 = vrot.slane %v15801_v29, %v6359_v6  ;;  %v7956_v13 = vrot.slane %v15802_v63, %v6359_v6  ;;  %v15804_v31 = vrot.slane %v15803_v23, %v6359_v6  ;;  %v15807_v26 = vrot.slane %v15803_v23, %v6367_v9 }
  0x86   :  { %v7944_v27 = vrot.slane %v15799_v48, %v6359_v6  ;;  %v15808_v59 = vrot.slane %v15803_v23, %v6370_v10 }
  0x87   :  { %v7964_v48 = vrot.slane %v15804_v31, %v6359_v6  ;;  %v7976_v63 = vrot.slane %v15807_v26, %v6359_v6  ;;  %v15809_v31 = vrot.slane %v6798_v1, %v6359_v6  ;;  %v15812_v26 = vrot.slane %v6798_v1, %v6367_v9 }
  0x88   :  { %15800 = vst [vmem:[#allocation6_spill] sm:$0xff] %v7944_v27  ;;  %v15806_v27 = vrot.slane %v15803_v23, %v6364_v8  ;;  %v7982_v55 = vrot.slane %v15808_v59, %v6359_v6  ;;  %v15813_v59 = vrot.slane %v6798_v1, %v6370_v10 }
  0x89   :  { %15805 = vst [vmem:[#allocation7_spill] sm:$0xff] %v7964_v48  ;;  %v7988_v48 = vrot.slane %v15809_v31, %v6359_v6  ;;  %v8000_v60 = vrot.slane %v15812_v26, %v6359_v6  ;;  %v15814_v31 = vld [vmem:[#allocation8_spill] sm:$0xff] }
  0x8a   :  { %v7970_v29 = vrot.slane %v15806_v27, %v6359_v6  ;;  %v15811_v27 = vrot.slane %v6798_v1, %v6364_v8  ;;  %v8006_v23 = vrot.slane %v15813_v59, %v6359_v6  ;;  %v15818_v26 = vrot.slane %v15814_v31, %v6367_v9  ;;  %v15819_v1 = vld [vmem:[#allocation9_spill] sm:$0xff] }
  0x8b   :  { %15810 = vst [vmem:[#allocation149_spill] sm:$0xff] %v7988_v48  ;;  %v15815_v48 = vrot.slane %v15814_v31, %v6359_v6  ;;  %v15820_v59 = vrot.slane %v15819_v1, %v6359_v6 }
  0x8c   :  { %v7994_v0 = vrot.slane %v15811_v27, %v6359_v6  ;;  %v15817_v27 = vrot.slane %v15814_v31, %v6364_v8  ;;  %v8024_v42 = vrot.slane %v15818_v26, %v6359_v6  ;;  %v15824_v31 = vrot.slane %v15819_v1, %v6370_v10 }
  0x8d   :  { %v8012_v57 = vrot.slane %v15815_v48, %v6359_v6  ;;  %v8030_v39 = vrot.slane %v15820_v59, %v6359_v6  ;;  %v15822_v48 = vrot.slane %v15819_v1, %v6364_v8 }
  0x8e   :  { %v8018_v38 = vrot.slane %v15817_v27, %v6359_v6  ;;  %v15823_v27 = vrot.slane %v15819_v1, %v6367_v9  ;;  %v8048_v26 = vrot.slane %v15824_v31, %v6359_v6  ;;  %v15829_v31 = vrot.slane %v6828_v14, %v6367_v9 }
  0x8f   :  { %15816 = vst [vmem:[#allocation8_spill] sm:$0xff] %v8012_v57  ;;  %15821 = vst [vmem:[#allocation9_spill] sm:$0xff] %v8030_v39  ;;  %v8036_v57 = vrot.slane %v15822_v48, %v6359_v6  ;;  %v15826_v48 = vrot.slane %v6828_v14, %v6359_v6 }
  0x90   :  { %v8042_v16 = vrot.slane %v15823_v27, %v6359_v6  ;;  %v15827_v27 = vrot.slane %v6828_v14, %v6364_v8 }
  0x91   :  { %v8058_v39 = vrot.slane %v15826_v48, %v6359_v6  ;;  %v1969_v48 = vrot.slane %v15829_v31, %v6359_v6 }
  0x92   :  { %v8064_v49 = vrot.slane %v15827_v27, %v6359_v6 }
  0x93   :  { %v7958_v22 = vpop.permute.xlu0 %89 }
  0x94   :  { %v8052_v59 = vmul.f32 %v7668_v62, %v7958_v22  ;;  %v8068_v1 = vmul.f32 %v7686_v46, %v7958_v22  ;;  %v8072_v62 = vmul.f32 %v7692_v53, %v7958_v22  ;;  %v8084_v27 = vmul.f32 %v7710_v43, %v7958_v22 }
  0x95   :  { %v8088_v46 = vmul.f32 %v7716_v3, %v7958_v22  ;;  %v15831_v53 = vrot.slane %v6828_v14, %v6370_v10  ;;  %v8096_v31 = vmul.f32 %v7728_v58, %v7958_v22  ;;  %v8104_v43 = vmul.f32 %v7740_v36, %v7958_v22 }
  0x96   :  { %15825 = vst [vmem:[#allocation150_spill] sm:$0xff] %v8052_v59  ;;  %15828 = vst [vmem:[#allocation151_spill] sm:$0xff] %v8072_v62  ;;  %v8080_v59 = vmul.f32 %v7704_v54, %v7958_v22  ;;  %v8100_v54 = vmul.f32 %v7734_v47, %v7958_v22  ;;  %v15833_v3 = vrot.slane %v6838_v5, %v6359_v6 }
  0x97   :  { %15830 = vst [vmem:[#allocation152_spill] sm:$0xff] %v8088_v46  ;;  %v1973_v62 = vrot.slane %v15831_v53, %v6359_v6  ;;  %15832 = vst [vmem:[#allocation153_spill] sm:$0xff] %v8104_v43  ;;  %v15834_v14 = vrot.slane %v6838_v5, %v6364_v8  ;;  %v8118_v53 = vmul.f32 %v7752_v2, %v7958_v22 }
  0x98   :  { %v8110_v46 = vrot.slane %v15833_v3, %v6359_v6  ;;  %v8122_v47 = vmul.f32 %v7758_v52, %v7958_v22  ;;  %v15836_v36 = vrot.slane %v6838_v5, %v6367_v9  ;;  %v8130_v3 = vmul.f32 %v7770_v56, %v7958_v22 }
  0x99   :  { %v1981_v58 = vrot.slane %v15834_v14, %v6359_v6  ;;  %v8134_v14 = vmul.f32 %v7776_v51, %v7958_v22  ;;  %v8138_v2 = vmul.f32 %v7782_v44, %v7958_v22  ;;  %v15837_v52 = vrot.slane %v6848_v21, %v6359_v6 }
  0x9a   :  { %15835 = vst [vmem:[#allocation154_spill] sm:$0xff] %v8122_v47  ;;  %v1985_v43 = vrot.slane %v15836_v36, %v6359_v6  ;;  %v8148_v5 = vmul.f32 %v7794_v45, %v7958_v22  ;;  %v8152_v56 = vmul.f32 %v7800_v40, %v7958_v22  ;;  %v8156_v51 = vmul.f32 %v7806_v32, %v7958_v22 }
  0x9b   :  { %v8144_v47 = vrot.slane %v15837_v52, %v6359_v6  ;;  %v15839_v44 = vrot.slane %v6848_v21, %v6364_v8  ;;  %v8164_v52 = vmul.f32 %v7818_v30, %v7958_v22  ;;  %v8168_v45 = vmul.f32 %v7824_v25, %v7958_v22 }
  0x9c   :  { %15838 = vst [vmem:[#allocation155_spill] sm:$0xff] %v8156_v51  ;;  %v8172_v40 = vmul.f32 %v7836_v61, %v7958_v22  ;;  %v15841_v32 = vrot.slane %v6848_v21, %v6367_v9  ;;  %v8184_v30 = vmul.f32 %v7848_v41, %v7958_v22  ;;  %v8188_v25 = vmul.f32 %v7860_v50, %v7958_v22 }
  0x9d   :  { %v1993_v36 = vrot.slane %v15839_v44, %v6359_v6  ;;  %v8180_v44 = vmul.f32 %v7842_v15, %v7958_v22  ;;  %v15843_v61 = vrot.slane %v6848_v21, %v6370_v10  ;;  %v8200_v15 = vmul.f32 %v7872_v28, %v7958_v22 }
  0x9e   :  { %15840 = vst [vmem:[#allocation156_spill] sm:$0xff] %v8172_v40  ;;  %v1997_v51 = vrot.slane %v15841_v32, %v6359_v6  ;;  %15842 = vst [vmem:[#allocation157_spill] sm:$0xff] %v8188_v25  ;;  %v8196_v32 = vmul.f32 %v7866_v11, %v7958_v22  ;;  %v8204_v41 = vmul.f32 %v7884_v35, %v7958_v22 }
  0x9f   :  { %v2001_v40 = vrot.slane %v15843_v61, %v6359_v6  ;;  %v15844_v50 = vrot.slane %v6858_v4, %v6359_v6  ;;  %v8214_v21 = vmul.f32 %v7890_v34, %v7958_v22  ;;  %v8218_v11 = vmul.f32 %v7902_v18, %v7958_v22 }
  0xa0   :  { %v8222_v28 = vmul.f32 %v7908_v20, %v7958_v22  ;;  %v15846_v35 = vrot.slane %v6858_v4, %v6364_v8  ;;  %v8234_v34 = vmul.f32 %v7926_v19, %v7958_v22  ;;  %v8238_v18 = vmul.f32 %v7932_v12, %v7958_v22 }
  0xa1   :  { %v8210_v25 = vrot.slane %v15844_v50, %v6359_v6  ;;  %v8230_v50 = vmul.f32 %v7914_v37, %v7958_v22  ;;  %v15848_v20 = vrot.slane %v6858_v4, %v6367_v9  ;;  %v8250_v37 = vmul.f32 %v7950_v7, %v7958_v22 }
  0xa2   :  { %15845 = vst [vmem:[#allocation158_spill] sm:$0xff] %v8222_v28  ;;  %v2009_v61 = vrot.slane %v15846_v35, %v6359_v6  ;;  %15847 = vst [vmem:[#allocation159_spill] sm:$0xff] %v8238_v18  ;;  %v8246_v35 = vmul.f32 %v7938_v24, %v7958_v22  ;;  %v8254_v19 = vmul.f32 %v7956_v13, %v7958_v22  ;;  %v15852_v13 = vld [vmem:[#allocation10_spill] sm:$0xff] }
  0xa3   :  { %v2013_v28 = vrot.slane %v15848_v20, %v6359_v6  ;;  %15849 = vst [vmem:[#allocation160_spill] sm:$0xff] %v8250_v37  ;;  %v15851_v12 = vrot.slane %v6858_v4, %v6370_v10  ;;  %v8262_v20 = vmul.f32 %v7970_v29, %v7958_v22  ;;  %v8266_v24 = vmul.f32 %v7976_v63, %v7958_v22 }
  0xa4   :  { %15850 = vst [vmem:[#allocation161_spill] sm:$0xff] %v8254_v19  ;;  %v8270_v7 = vmul.f32 %v7982_v55, %v7958_v22  ;;  %v15853_v19 = vrot.slane %v15852_v13, %v6364_v8  ;;  %v8278_v10 = vmul.f32 %v7994_v0, %v7958_v22  ;;  %v8282_v4 = vmul.f32 %v8000_v60, %v7958_v22 }
  0xa5   :  { %v2017_v18 = vrot.slane %v15851_v12, %v6359_v6  ;;  %v8286_v29 = vmul.f32 %v8006_v23, %v7958_v22  ;;  %v15854_v55 = vrot.slane %v15852_v13, %v6367_v9  ;;  %v8294_v8 = vmul.f32 %v8018_v38, %v7958_v22 }
  0xa6   :  { %v2025_v37 = vrot.slane %v15853_v19, %v6359_v6  ;;  %v8298_v0 = vmul.f32 %v8024_v42, %v7958_v22  ;;  %v15855_v19 = vld [vmem:[#allocation5_spill] sm:$0xff]  ;;  %v8305_v23 = vmul.f32 %v8036_v57, %v7958_v22  ;;  %v8309_v12 = vmul.f32 %v8042_v16, %v7958_v22 }
  0xa7   :  { %v2029_v63 = vrot.slane %v15854_v55, %v6359_v6  ;;  %v8301_v60 = vsub.s32 1, %v15855_v19  ;;  %v8313_v9 = vmul.f32 %v8048_v26, %v7958_v22  ;;  %v8316_v38 = vsub.s32 3, %v15855_v19 }
  0xa8   :  { %15857 = vst [vmem:[#allocation5_spill] sm:$0xff] %v8309_v12  ;;  %v8320_v42 = vmul.f32 %v8064_v49, %v7958_v22  ;;  %v8323_v55 = vmul.f32 %v1969_v48, %v7958_v22  ;;  %v8326_v57 = vmul.f32 %v1973_v62, %v7958_v22  ;;  %v8329_v16 = vsub.s32 5, %v15855_v19 }
  0xa9   :  { %15856 = vst [vmem:[#allocation10_spill] sm:$0xff] %v8301_v60  ;;  %15858 = vst [vmem:[#allocation162_spill] sm:$0xff] %v8313_v9  ;;  %v8332_v12 = vmul.f32 %v1981_v58, %v7958_v22  ;;  %v8335_v26 = vmul.f32 %v1985_v43, %v7958_v22  ;;  %v8338_v9 = vmul.f32 %v1993_v36, %v7958_v22  ;;  %v8341_v49 = vsub.s32 7, %v15855_v19  ;;  %v15920_v60 = vld [vmem:[#allocation20_spill] sm:$0xff] }
  0xaa   :  { %15859 = vst [vmem:[#allocation163_spill] sm:$0xff] %v8316_v38  ;;  %15860 = vst [vmem:[#allocation164_spill] sm:$0xff] %v8320_v42  ;;  %v15868_v62 = vrot.slane %v15852_v13, %v6359_v6  ;;  %v8353_v58 = vmul.f32 %v2001_v40, %v7958_v22  ;;  %v8356_v43 = vmul.f32 %v2009_v61, %v7958_v22  ;;  %v8374_v13 = vld [vmem:[#allocation2 + $0x8] sm:$0xff]  ;;  %v8378_v61 = vld [vmem:[#allocation2 + $0x10] sm:$0x3f] }
  0xab   :  { %15861 = vst [vmem:[#allocation165_spill] sm:$0xff] %v8323_v55  ;;  %15862 = vst [vmem:[#allocation166_spill] sm:$0xff] %v8326_v57  ;;  %v8350_v57 = vmul.f32 %v1997_v51, %v7958_v22  ;;  %v8359_v36 = vmul.f32 %v2013_v28, %v7958_v22  ;;  %v8362_v19 = vmul.f32 %v2017_v18, %v7958_v22  ;;  %v8418_v18 = vld [vmem:[#allocation2 + $0x26] sm:$0x3f]  ;;  %v15902_v51 = vld [vmem:[#allocation12_spill] sm:$0xff] }
  0xac   :  { %15863 = vst [vmem:[#allocation167_spill] sm:$0xff] %v8329_v16  ;;  %15864 = vst [vmem:[#allocation168_spill] sm:$0xff] %v8332_v12  ;;  %v8347_v48 = vrot.slane %v15868_v62, %v6359_v6  ;;  %v8367_v6 = vld [vmem:[#allocation2] sm:$0xff]  ;;  %v8372_v40 = vmul.f32 %v2029_v63, %v7958_v22  ;;  %v15907_v28 = vld [vmem:[#allocation14_spill] sm:$0xff] }
  0xad   :  { %15865 = vst [vmem:[#allocation169_spill] sm:$0xff] %v8335_v26  ;;  %15866 = vst [vmem:[#allocation170_spill] sm:$0xff] %v8338_v9  ;;  %v8365_v9 = vmul.f32 %v2025_v37, %v7958_v22  ;;  %v8382_v37 = vld [vmem:[#allocation2 + $0x16] sm:$0xff]  ;;  %v15904_v63 = vld [vmem:[#allocation13_spill] sm:$0xff] }
  0xae   :  { %15867 = vst [vmem:[#allocation171_spill] sm:$0xff] %v8341_v49  ;;  %15869 = vst [vmem:[#allocation172_spill] sm:$0xff] %v8350_v57  ;;  %v15914_v49 = vld [vmem:[#allocation17_spill] sm:$0xff]  ;;  %v15916_v16 = vld [vmem:[#allocation18_spill] sm:$0xff] }
  0xaf   :  { %15870 = vst [vmem:[#allocation173_spill] sm:$0xff] %v8353_v58  ;;  %15871 = vst [vmem:[#allocation174_spill] sm:$0xff] %v8356_v43  ;;  %v15918_v38 = vld [vmem:[#allocation19_spill] sm:$0xff]  ;;  %v15944_v43 = vld [vmem:[#allocation148_spill] sm:$0xff] }
  0xb0   :  { %15872 = vst [vmem:[#allocation175_spill] sm:$0xff] %v8359_v36  ;;  %15873 = vst [vmem:[#allocation176_spill] sm:$0xff] %v8362_v19  ;;  %v8684_v36 = vpop.permute.xlu0 %2241  ;;  %v15945_v58 = vld [vmem:[#allocation6_spill] sm:$0xff]  ;;  %v15946_v57 = vld [vmem:[#allocation7_spill] sm:$0xff] }
  0xb1   :  { %15874 = vst [vmem:[#allocation177_spill] sm:$0xff] %v8365_v9  ;;  %15875 = vst [vmem:[#allocation178_spill] sm:$0xff] %v8367_v6  ;;  %v8408_v6 = vld [vmem:[#allocation2 + $0x1e] sm:$0xff]  ;;  %v15909_v9 = vld [vmem:[#allocation15_spill] sm:$0xff] }
  0xb2   :  { %15876 = vst [vmem:[#allocation179_spill] sm:$0xff] %v8372_v40  ;;  %15877 = vst [vmem:[#allocation180_spill] sm:$0xff] %v8374_v13  ;;  %v8608_v40 = vmul.f32 %v6924_v17, %v7958_v22  ;;  %v8612_v13 = vmul.f32 %v15907_v28, %v7958_v22  ;;  %v8628_v17 = vmul.f32 %v15914_v49, %v7958_v22  ;;  %v15947_v26 = vld [vmem:[#allocation149_spill] sm:$0xff]  ;;  %v15948_v12 = vld [vmem:[#allocation8_spill] sm:$0xff] }
  0xb3   :  { %15878 = vst [vmem:[#allocation181_spill] sm:$0xff] %v8378_v61  ;;  %15879 = vst [vmem:[#allocation182_spill] sm:$0xff] %v8382_v37  ;;  %v8426_v37 = vld [vmem:[#allocation2 + $0x2c] sm:$0xff]  ;;  %v8600_v61 = vmul.f32 %v15902_v51, %v7958_v22  ;;  %v8632_v28 = vmul.f32 %v15916_v16, %v7958_v22  ;;  %v15949_v55 = vld [vmem:[#allocation9_spill] sm:$0xff] }
  0xb4   :  { %15880 = vst [vmem:[#allocation183_spill] sm:$0xff] %v8408_v6  ;;  %15881 = vst [vmem:[#allocation184_spill] sm:$0xff] %v8418_v18  ;;  %v8436_v6 = vld [vmem:[#allocation2 + $0x34] sm:$0xff]  ;;  %v8446_v18 = vld [vmem:[#allocation2 + $0x3c] sm:$0x3f]  ;;  %v8702_v42 = vmul.f32 %v15949_v55, %v7958_v22  ;;  %v8722_v55 = vmul.f32 %v8347_v48, %v7958_v22 }
  0xb5   :  { %15882 = vst [vmem:[#allocation185_spill] sm:$0xff] %v8426_v37  ;;  %15883 = vst [vmem:[#allocation186_spill] sm:$0xff] %v8436_v6  ;;  %v8454_v37 = vld [vmem:[#allocation2 + $0x42] sm:$0xff]  ;;  %v8464_v6 = vld [vmem:[#allocation2 + $0x4a] sm:$0xff] }
  0xb6   :  { %15884 = vst [vmem:[#allocation187_spill] sm:$0xff] %v8446_v18  ;;  %15885 = vst [vmem:[#allocation188_spill] sm:$0xff] %v8454_v37  ;;  %v8474_v18 = vld [vmem:[#allocation2 + $0x52] sm:$0x3f]  ;;  %v8482_v37 = vld [vmem:[#allocation2 + $0x58] sm:$0xff] }
  0xb7   :  { %15886 = vst [vmem:[#allocation189_spill] sm:$0xff] %v8464_v6  ;;  %15887 = vst [vmem:[#allocation190_spill] sm:$0xff] %v8474_v18  ;;  %v8492_v6 = vld [vmem:[#allocation2 + $0x60] sm:$0xff]  ;;  %v8502_v18 = vld [vmem:[#allocation2 + $0x68] sm:$0x3f] }
  0xb8   :  { %15888 = vst [vmem:[#allocation191_spill] sm:$0xff] %v8482_v37  ;;  %15889 = vst [vmem:[#allocation192_spill] sm:$0xff] %v8492_v6  ;;  %v8510_v37 = vld [vmem:[#allocation2 + $0x6e] sm:$0xff]  ;;  %v8520_v6 = vld [vmem:[#allocation2 + $0x76] sm:$0xff] }
  0xb9   :  { %15890 = vst [vmem:[#allocation193_spill] sm:$0xff] %v8502_v18  ;;  %15891 = vst [vmem:[#allocation194_spill] sm:$0xff] %v8510_v37  ;;  %v8530_v18 = vld [vmem:[#allocation2 + $0x7e] sm:$0x3f]  ;;  %v8538_v37 = vld [vmem:[#allocation2 + $0x84] sm:$0xff] }
  0xba   :  { %15892 = vst [vmem:[#allocation195_spill] sm:$0xff] %v8520_v6  ;;  %15893 = vst [vmem:[#allocation196_spill] sm:$0xff] %v8530_v18  ;;  %v8548_v6 = vld [vmem:[#allocation2 + $0x8c] sm:$0xff]  ;;  %v8558_v18 = vld [vmem:[#allocation2 + $0x94] sm:$0x3f] }
  0xbb   :  { %15894 = vst [vmem:[#allocation197_spill] sm:$0xff] %v8538_v37  ;;  %15895 = vst [vmem:[#allocation198_spill] sm:$0xff] %v8548_v6  ;;  %v8566_v37 = vld [vmem:[#allocation2 + $0x9a] sm:$0xff]  ;;  %v8576_v6 = vld [vmem:[#allocation2 + $0xa2] sm:$0xff] }
  0xbc   :  { %15896 = vst [vmem:[#allocation199_spill] sm:$0xff] %v8558_v18  ;;  %15897 = vst [vmem:[#allocation200_spill] sm:$0xff] %v8566_v37  ;;  %v8586_v18 = vld [vmem:[#allocation2 + $0xaa] sm:$0x3f]  ;;  %v15900_v37 = vld [vmem:[#allocation11_spill] sm:$0xff] }
  0xbd   :  { %15898 = vst [vmem:[#allocation201_spill] sm:$0xff] %v8576_v6  ;;  %15899 = vst [vmem:[#allocation202_spill] sm:$0xff] %v8586_v18  ;;  %v8596_v62 = vmul.f32 %v15900_v37, %v7958_v22  ;;  %v8604_v6 = vmul.f32 %v15904_v63, %v7958_v22  ;;  %v8616_v37 = vmul.f32 %v15909_v9, %v7958_v22  ;;  %v15911_v18 = vld [vmem:[#allocation16_spill] sm:$0xff] }
  0xbe   :  { %15903 = vst [vmem:[#allocation12_spill] sm:$0xff] %v8600_v61  ;;  %15906 = vst [vmem:[#allocation203_spill] sm:$0xff] %v8608_v40  ;;  %v8620_v51 = vmul.f32 %v15911_v18, %v7958_v22  ;;  %v8624_v63 = vmul.f32 %v6948_v33, %v7958_v22  ;;  %v8636_v9 = vmul.f32 %v15918_v38, %v7958_v22 }
  0xbf   :  { %15901 = vst [vmem:[#allocation11_spill] sm:$0xff] %v8596_v62  ;;  %15905 = vst [vmem:[#allocation13_spill] sm:$0xff] %v8604_v6  ;;  %v8640_v18 = vmul.f32 %v15920_v60, %v7958_v22 }
  0xc0   :  { %15908 = vst [vmem:[#allocation14_spill] sm:$0xff] %v8612_v13  ;;  %15910 = vst [vmem:[#allocation15_spill] sm:$0xff] %v8616_v37  ;;  %v15936_v13 = vld [vmem:[#allocation140_spill] sm:$0xff] }
  0xc1   :  { %15912 = vst [vmem:[#allocation16_spill] sm:$0xff] %v8620_v51  ;;  %15913 = vst [vmem:[#allocation204_spill] sm:$0xff] %v8624_v63  ;;  %v15922_v51 = vld [vmem:[#allocation21_spill] sm:$0xff]  ;;  %v15924_v63 = vld [vmem:[#allocation22_spill] sm:$0xff] }
  0xc2   :  { %15915 = vst [vmem:[#allocation17_spill] sm:$0xff] %v8628_v17  ;;  %15917 = vst [vmem:[#allocation18_spill] sm:$0xff] %v8632_v28  ;;  %v8644_v33 = vmul.f32 %v15922_v51, %v7958_v22  ;;  %v8648_v49 = vmul.f32 %v15924_v63, %v7958_v22  ;;  %v15926_v17 = vld [vmem:[#allocation23_spill] sm:$0xff]  ;;  %v15928_v28 = vld [vmem:[#allocation24_spill] sm:$0xff] }
  0xc3   :  { %15919 = vst [vmem:[#allocation19_spill] sm:$0xff] %v8636_v9  ;;  %15921 = vst [vmem:[#allocation20_spill] sm:$0xff] %v8640_v18  ;;  %v8652_v16 = vmul.f32 %v15926_v17, %v7958_v22  ;;  %v8656_v38 = vmul.f32 %v15928_v28, %v7958_v22  ;;  %v15930_v9 = vld [vmem:[#allocation25_spill] sm:$0xff]  ;;  %v15932_v18 = vld [vmem:[#allocation136_spill] sm:$0xff]  ;;  %v2170_v28 = vmul.f32 %v15936_v13, %v7958_v22 }
  0xc4   :  { %15923 = vst [vmem:[#allocation21_spill] sm:$0xff] %v8644_v33  ;;  %15925 = vst [vmem:[#allocation22_spill] sm:$0xff] %v8648_v49  ;;  %v8660_v60 = vmul.f32 %v15930_v9, %v7958_v22  ;;  %v2158_v51 = vmul.f32 %v15932_v18, %v7958_v22  ;;  %v15933_v33 = vld [vmem:[#allocation137_spill] sm:$0xff]  ;;  %v15934_v63 = vld [vmem:[#allocation138_spill] sm:$0xff] }
  0xc5   :  { %15927 = vst [vmem:[#allocation23_spill] sm:$0xff] %v8652_v16  ;;  %15929 = vst [vmem:[#allocation24_spill] sm:$0xff] %v8656_v38  ;;  %v2159_v37 = vmul.f32 %v15933_v33, %v7958_v22  ;;  %v2162_v49 = vmul.f32 %v15934_v63, %v7958_v22  ;;  %v15935_v17 = vld [vmem:[#allocation139_spill] sm:$0xff]  ;;  %v15937_v38 = vld [vmem:[#allocation141_spill] sm:$0xff] }
  0xc6   :  { %15931 = vst [vmem:[#allocation25_spill] sm:$0xff] %v8660_v60  ;;  %v2166_v16 = vmul.f32 %v15935_v17, %v7958_v22  ;;  %v2173_v40 = vmul.f32 %v15937_v38, %v7958_v22  ;;  %v15938_v9 = vld [vmem:[#allocation142_spill] sm:$0xff]  ;;  %v15939_v18 = vld [vmem:[#allocation143_spill] sm:$0xff]  ;;  %v15940_v33 = vld [vmem:[#allocation144_spill] sm:$0xff] }
  0xc7   :  { %v2177_v60 = vmul.f32 %v15938_v9, %v7958_v22  ;;  %v2181_v6 = vmul.f32 %v15939_v18, %v7958_v22  ;;  %v2184_v61 = vmul.f32 %v15940_v33, %v7958_v22  ;;  %v15941_v63 = vld [vmem:[#allocation145_spill] sm:$0xff]  ;;  %v15942_v17 = vld [vmem:[#allocation146_spill] sm:$0xff]  ;;  %v15943_v13 = vld [vmem:[#allocation147_spill] sm:$0xff]  ;;  %v2199_v9 = vmul.f32 %v15944_v43, %v7958_v22 }
  0xc8   :  { %v2188_v62 = vmul.f32 %v15941_v63, %v7958_v22  ;;  %v2192_v19 = vmul.f32 %v15942_v17, %v7958_v22  ;;  %v2195_v38 = vmul.f32 %v15943_v13, %v7958_v22  ;;  %v2203_v18 = vmul.f32 %v15945_v58, %v7958_v22 }
  0xc9   :  { %v2206_v33 = vmul.f32 %v15946_v57, %v7958_v22  ;;  %v2210_v63 = vmul.f32 %v15947_v26, %v7958_v22  ;;  %v8698_v17 = vmul.f32 %v15948_v12, %v7958_v22  ;;  %v8706_v43 = vmul.f32 %v8058_v39, %v7958_v22  ;;  %v15951_v26 = vld [vmem:[#allocation150_spill] sm:$0xff] }
  0xca   :  { %v8710_v58 = vmul.f32 %v8110_v46, %v7958_v22  ;;  %v8714_v57 = vmul.f32 %v8144_v47, %v7958_v22  ;;  %v8718_v12 = vmul.f32 %v8210_v25, %v7958_v22  ;;  %v8726_v39 = vadd.f32 %v8684_v36, %v15951_v26  ;;  %v15956_v25 = vld [vmem:[#allocation151_spill] sm:$0xff] }
  0xcb   :  { %v8729_v13 = vadd.f32 %v8684_v36, %v2158_v51  ;;  %v8732_v46 = vadd.f32 %v8684_v36, %v2159_v37  ;;  %v8736_v47 = vadd.f32 %v8684_v36, %v8068_v1  ;;  %v8743_v48 = vadd.f32 %v8684_v36, %v2162_v49  ;;  %v15961_v37 = vld [vmem:[#allocation152_spill] sm:$0xff] }
  0xcc   :  { %15950 = vst [vmem:[#allocation136_spill] sm:$0xff] %v8718_v12  ;;  %15952 = vst [vmem:[#allocation137_spill] sm:$0xff] %v8726_v39  ;;  %v8740_v12 = vadd.f32 %v8684_v36, %v15956_v25  ;;  %v8747_v26 = vadd.f32 %v8684_v36, %v8080_v59  ;;  %v8751_v51 = vadd.f32 %v8684_v36, %v8084_v27  ;;  %v15966_v59 = vld [vmem:[#allocation153_spill] sm:$0xff]  ;;  %v16122_v39 = vld [vmem:[#allocation82_spill] sm:$0xff] }
  0xcd   :  { %15953 = vst [vmem:[#allocation138_spill] sm:$0xff] %v8729_v13  ;;  %15954 = vst [vmem:[#allocation139_spill] sm:$0xff] %v8732_v46  ;;  %v8755_v46 = vadd.f32 %v8684_v36, %v15961_v37  ;;  %v8758_v1 = vadd.f32 %v8684_v36, %v2166_v16  ;;  %v8762_v25 = vadd.f32 %v8684_v36, %v8096_v31  ;;  %v15970_v16 = vld [vmem:[#allocation154_spill] sm:$0xff]  ;;  %v16120_v13 = vld [vmem:[#allocation81_spill] sm:$0xff] }
  0xce   :  { %15955 = vst [vmem:[#allocation140_spill] sm:$0xff] %v8736_v47  ;;  %15957 = vst [vmem:[#allocation141_spill] sm:$0xff] %v8740_v12  ;;  %v8766_v49 = vadd.f32 %v8684_v36, %v8100_v54  ;;  %v8773_v27 = vadd.f32 %v8684_v36, %v2170_v28  ;;  %v8777_v37 = vadd.f32 %v8684_v36, %v8118_v53  ;;  %v16116_v12 = vld [vmem:[#allocation79_spill] sm:$0xff]  ;;  %v16118_v47 = vld [vmem:[#allocation80_spill] sm:$0xff] }
  0xcf   :  { %15958 = vst [vmem:[#allocation142_spill] sm:$0xff] %v8743_v48  ;;  %15959 = vst [vmem:[#allocation143_spill] sm:$0xff] %v8747_v26  ;;  %v8770_v26 = vadd.f32 %v8684_v36, %v15966_v59  ;;  %v8784_v31 = vadd.f32 %v8684_v36, %v2173_v40  ;;  %v8788_v54 = vadd.f32 %v8684_v36, %v8130_v3  ;;  %v15979_v3 = vld [vmem:[#allocation155_spill] sm:$0xff]  ;;  %v16114_v48 = vld [vmem:[#allocation78_spill] sm:$0xff] }
  0xd0   :  { %15960 = vst [vmem:[#allocation144_spill] sm:$0xff] %v8751_v51  ;;  %15962 = vst [vmem:[#allocation145_spill] sm:$0xff] %v8755_v46  ;;  %v8792_v59 = vadd.f32 %v8684_v36, %v8134_v14  ;;  %v8796_v28 = vadd.f32 %v8684_v36, %v8138_v2  ;;  %v8799_v53 = vadd.f32 %v8684_v36, %v2177_v60  ;;  %v16111_v46 = vld [vmem:[#allocation76_spill] sm:$0xff]  ;;  %v16112_v51 = vld [vmem:[#allocation77_spill] sm:$0xff] }
  0xd1   :  { %15963 = vst [vmem:[#allocation146_spill] sm:$0xff] %v8758_v1  ;;  %15964 = vst [vmem:[#allocation147_spill] sm:$0xff] %v8762_v25  ;;  %v8781_v1 = vadd.f32 %v8684_v36, %v15970_v16  ;;  %v8803_v16 = vadd.f32 %v8684_v36, %v8148_v5  ;;  %v8807_v40 = vadd.f32 %v8684_v36, %v8152_v56  ;;  %v15985_v56 = vld [vmem:[#allocation156_spill] sm:$0xff]  ;;  %v16110_v25 = vld [vmem:[#allocation75_spill] sm:$0xff] }
  0xd2   :  { %15965 = vst [vmem:[#allocation148_spill] sm:$0xff] %v8766_v49  ;;  %15967 = vst [vmem:[#allocation6_spill] sm:$0xff] %v8770_v26  ;;  %v8814_v14 = vadd.f32 %v8684_v36, %v2181_v6  ;;  %v8818_v2 = vadd.f32 %v8684_v36, %v8164_v52  ;;  %v8822_v60 = vadd.f32 %v8684_v36, %v8168_v45  ;;  %v15990_v45 = vld [vmem:[#allocation157_spill] sm:$0xff]  ;;  %v16109_v49 = vld [vmem:[#allocation74_spill] sm:$0xff] }
  0xd3   :  { %15968 = vst [vmem:[#allocation7_spill] sm:$0xff] %v8773_v27  ;;  %15969 = vst [vmem:[#allocation149_spill] sm:$0xff] %v8777_v37  ;;  %v8825_v5 = vadd.f32 %v8684_v36, %v2184_v61  ;;  %v8837_v6 = vadd.f32 %v8684_v36, %v8184_v30  ;;  %v8840_v52 = vadd.f32 %v8684_v36, %v2188_v62  ;;  %v16106_v37 = vld [vmem:[#allocation71_spill] sm:$0xff]  ;;  %v16107_v27 = vld [vmem:[#allocation72_spill] sm:$0xff] }
  0xd4   :  { %15971 = vst [vmem:[#allocation8_spill] sm:$0xff] %v8781_v1  ;;  %15972 = vst [vmem:[#allocation9_spill] sm:$0xff] %v8784_v31  ;;  %v8848_v61 = vadd.f32 %v8684_v36, %v8196_v32  ;;  %v8859_v30 = vadd.f32 %v8684_v36, %v8204_v41  ;;  %v8863_v62 = vadd.f32 %v8684_v36, %v8214_v21  ;;  %v16104_v31 = vld [vmem:[#allocation69_spill] sm:$0xff]  ;;  %v16105_v1 = vld [vmem:[#allocation70_spill] sm:$0xff] }
  0xd5   :  { %15973 = vst [vmem:[#allocation150_spill] sm:$0xff] %v8788_v54  ;;  %15974 = vst [vmem:[#allocation151_spill] sm:$0xff] %v8792_v59  ;;  %v8811_v54 = vadd.f32 %v8684_v36, %v15979_v3  ;;  %v8833_v3 = vadd.f32 %v8684_v36, %v8180_v44  ;;  %v8855_v44 = vadd.f32 %v8684_v36, %v2192_v19  ;;  %v16103_v59 = vld [vmem:[#allocation68_spill] sm:$0xff]  ;;  %v16108_v26 = vld [vmem:[#allocation73_spill] sm:$0xff] }
  0xd6   :  { %15975 = vst [vmem:[#allocation152_spill] sm:$0xff] %v8796_v28  ;;  %15976 = vst [vmem:[#allocation153_spill] sm:$0xff] %v8799_v53  ;;  %v8870_v32 = vadd.f32 %v8684_v36, %v8218_v11  ;;  %v8878_v19 = vadd.f32 %v8684_v36, %v8230_v50  ;;  %v8881_v41 = vadd.f32 %v8684_v36, %v2199_v9  ;;  %v16008_v50 = vld [vmem:[#allocation160_spill] sm:$0xff]  ;;  %v16010_v9 = vld [vmem:[#allocation161_spill] sm:$0xff] }
  0xd7   :  { %15977 = vst [vmem:[#allocation154_spill] sm:$0xff] %v8803_v16  ;;  %15978 = vst [vmem:[#allocation205_spill] sm:$0xff] %v8807_v40  ;;  %v8829_v40 = vadd.f32 %v8684_v36, %v15985_v56  ;;  %v8852_v56 = vadd.f32 %v8684_v36, %v8200_v15  ;;  %v15999_v15 = vld [vmem:[#allocation158_spill] sm:$0xff]  ;;  %v8885_v21 = vadd.f32 %v8684_v36, %v8234_v34  ;;  %v16100_v16 = vld [vmem:[#allocation65_spill] sm:$0xff] }
  0xd8   :  { %15980 = vst [vmem:[#allocation155_spill] sm:$0xff] %v8811_v54  ;;  %15981 = vst [vmem:[#allocation206_spill] sm:$0xff] %v8814_v14  ;;  %v8893_v11 = vadd.f32 %v8684_v36, %v8246_v35  ;;  %v8907_v34 = vadd.f32 %v8684_v36, %v2206_v33  ;;  %v8915_v35 = vadd.f32 %v8684_v36, %v8266_v24  ;;  %v16098_v14 = vld [vmem:[#allocation63_spill] sm:$0xff]  ;;  %v16099_v54 = vld [vmem:[#allocation64_spill] sm:$0xff] }
  0xd9   :  { %15982 = vst [vmem:[#allocation207_spill] sm:$0xff] %v8818_v2  ;;  %15983 = vst [vmem:[#allocation208_spill] sm:$0xff] %v8822_v60  ;;  %v8844_v60 = vadd.f32 %v8684_v36, %v15990_v45  ;;  %v8866_v45 = vadd.f32 %v8684_v36, %v2195_v38  ;;  %v16004_v38 = vld [vmem:[#allocation159_spill] sm:$0xff]  ;;  %v8930_v33 = vadd.f32 %v8684_v36, %v8282_v4  ;;  %v16097_v2 = vld [vmem:[#allocation62_spill] sm:$0xff] }
  0xda   :  { %15984 = vst [vmem:[#allocation209_spill] sm:$0xff] %v8825_v5  ;;  %15986 = vst [vmem:[#allocation156_spill] sm:$0xff] %v8829_v40  ;;  %v8938_v24 = vadd.f32 %v8684_v36, %v8698_v17  ;;  %v8950_v4 = vadd.f32 %v8684_v36, %v8702_v42  ;;  %v16095_v40 = vld [vmem:[#allocation60_spill] sm:$0xff]  ;;  %v16096_v5 = vld [vmem:[#allocation61_spill] sm:$0xff] }
  0xdb   :  { %15987 = vst [vmem:[#allocation210_spill] sm:$0xff] %v8833_v3  ;;  %15988 = vst [vmem:[#allocation211_spill] sm:$0xff] %v8837_v6  ;;  %v16093_v6 = vld [vmem:[#allocation58_spill] sm:$0xff]  ;;  %v16094_v3 = vld [vmem:[#allocation59_spill] sm:$0xff] }
  0xdc   :  { %15989 = vst [vmem:[#allocation212_spill] sm:$0xff] %v8840_v52  ;;  %15991 = vst [vmem:[#allocation157_spill] sm:$0xff] %v8844_v60  ;;  %v16091_v60 = vld [vmem:[#allocation56_spill] sm:$0xff]  ;;  %v16092_v52 = vld [vmem:[#allocation57_spill] sm:$0xff] }
  0xdd   :  { %15992 = vst [vmem:[#allocation213_spill] sm:$0xff] %v8848_v61  ;;  %15993 = vst [vmem:[#allocation214_spill] sm:$0xff] %v8852_v56  ;;  %v8874_v56 = vadd.f32 %v8684_v36, %v15999_v15  ;;  %v8896_v15 = vadd.f32 %v8684_v36, %v2203_v18  ;;  %v8919_v18 = vadd.f32 %v8684_v36, %v8270_v7  ;;  %v16090_v61 = vld [vmem:[#allocation55_spill] sm:$0xff]  ;;  %v16101_v53 = vld [vmem:[#allocation66_spill] sm:$0xff] }
  0xde   :  { %15994 = vst [vmem:[#allocation215_spill] sm:$0xff] %v8855_v44  ;;  %15995 = vst [vmem:[#allocation216_spill] sm:$0xff] %v8859_v30  ;;  %v8942_v7 = vadd.f32 %v8684_v36, %v8294_v8  ;;  %v16088_v30 = vld [vmem:[#allocation53_spill] sm:$0xff]  ;;  %v16089_v44 = vld [vmem:[#allocation54_spill] sm:$0xff] }
  0xdf   :  { %15996 = vst [vmem:[#allocation217_spill] sm:$0xff] %v8863_v62  ;;  %15997 = vst [vmem:[#allocation218_spill] sm:$0xff] %v8866_v45  ;;  %v8889_v45 = vadd.f32 %v8684_v36, %v16004_v38  ;;  %v8911_v38 = vadd.f32 %v8684_v36, %v8262_v20  ;;  %v8934_v20 = vadd.f32 %v8684_v36, %v8286_v29  ;;  %v16087_v62 = vld [vmem:[#allocation52_spill] sm:$0xff]  ;;  %v16102_v28 = vld [vmem:[#allocation67_spill] sm:$0xff] }
  0xe0   :  { %15998 = vst [vmem:[#allocation219_spill] sm:$0xff] %v8870_v32  ;;  %16000 = vst [vmem:[#allocation158_spill] sm:$0xff] %v8874_v56  ;;  %v8954_v29 = vadd.f32 %v8684_v36, %v8305_v23  ;;  %v16085_v56 = vld [vmem:[#allocation50_spill] sm:$0xff]  ;;  %v16086_v32 = vld [vmem:[#allocation51_spill] sm:$0xff] }
  0xe1   :  { %16001 = vst [vmem:[#allocation220_spill] sm:$0xff] %v8878_v19  ;;  %16002 = vst [vmem:[#allocation221_spill] sm:$0xff] %v8881_v41  ;;  %v8900_v19 = vadd.f32 %v8684_v36, %v16008_v50  ;;  %v8904_v41 = vadd.f32 %v8684_v36, %v16010_v9  ;;  %v8922_v50 = vadd.f32 %v8684_v36, %v2210_v63  ;;  %v16025_v63 = vld [vmem:[#allocation5_spill] sm:$0xff] }
  0xe2   :  { %16003 = vst [vmem:[#allocation222_spill] sm:$0xff] %v8885_v21  ;;  %16005 = vst [vmem:[#allocation159_spill] sm:$0xff] %v8889_v45  ;;  %v8926_v9 = vadd.f32 %v8684_v36, %v8278_v10  ;;  %v8946_v10 = vadd.f32 %v8684_v36, %v8298_v0  ;;  %v8958_v17 = vadd.f32 %v8684_v36, %v16025_v63  ;;  %v16083_v45 = vld [vmem:[#allocation48_spill] sm:$0xff]  ;;  %v16084_v21 = vld [vmem:[#allocation49_spill] sm:$0xff] }
  0xe3   :  { %16006 = vst [vmem:[#allocation223_spill] sm:$0xff] %v8893_v11  ;;  %16007 = vst [vmem:[#allocation224_spill] sm:$0xff] %v8896_v15  ;;  %v8966_v0 = vadd.f32 %v8684_v36, %v8706_v43  ;;  %v16081_v15 = vld [vmem:[#allocation46_spill] sm:$0xff]  ;;  %v16082_v11 = vld [vmem:[#allocation47_spill] sm:$0xff] }
  0xe4   :  { %16009 = vst [vmem:[#allocation160_spill] sm:$0xff] %v8900_v19  ;;  %16011 = vst [vmem:[#allocation161_spill] sm:$0xff] %v8904_v41  ;;  %v16079_v41 = vld [vmem:[#allocation44_spill] sm:$0xff]  ;;  %v16080_v19 = vld [vmem:[#allocation45_spill] sm:$0xff] }
  0xe5   :  { %16012 = vst [vmem:[#allocation225_spill] sm:$0xff] %v8907_v34  ;;  %16013 = vst [vmem:[#allocation226_spill] sm:$0xff] %v8911_v38  ;;  %v16077_v38 = vld [vmem:[#allocation42_spill] sm:$0xff]  ;;  %v16078_v34 = vld [vmem:[#allocation43_spill] sm:$0xff] }
  0xe6   :  { %16014 = vst [vmem:[#allocation227_spill] sm:$0xff] %v8915_v35  ;;  %16015 = vst [vmem:[#allocation228_spill] sm:$0xff] %v8919_v18  ;;  %v16075_v18 = vld [vmem:[#allocation40_spill] sm:$0xff]  ;;  %v16076_v35 = vld [vmem:[#allocation41_spill] sm:$0xff] }
  0xe7   :  { %16016 = vst [vmem:[#allocation229_spill] sm:$0xff] %v8922_v50  ;;  %16017 = vst [vmem:[#allocation230_spill] sm:$0xff] %v8926_v9  ;;  %v16073_v9 = vld [vmem:[#allocation38_spill] sm:$0xff]  ;;  %v16074_v50 = vld [vmem:[#allocation39_spill] sm:$0xff] }
  0xe8   :  { %16018 = vst [vmem:[#allocation231_spill] sm:$0xff] %v8930_v33  ;;  %16019 = vst [vmem:[#allocation232_spill] sm:$0xff] %v8934_v20  ;;  %v16071_v20 = vld [vmem:[#allocation36_spill] sm:$0xff]  ;;  %v16072_v33 = vld [vmem:[#allocation37_spill] sm:$0xff] }
  0xe9   :  { %16020 = vst [vmem:[#allocation233_spill] sm:$0xff] %v8938_v24  ;;  %16021 = vst [vmem:[#allocation234_spill] sm:$0xff] %v8942_v7  ;;  %v16027_v24 = vld [vmem:[#allocation162_spill] sm:$0xff]  ;;  %v16070_v7 = vld [vmem:[#allocation35_spill] sm:$0xff] }
  0xea   :  { %16022 = vst [vmem:[#allocation235_spill] sm:$0xff] %v8946_v10  ;;  %16023 = vst [vmem:[#allocation236_spill] sm:$0xff] %v8950_v4  ;;  %v8962_v8 = vadd.f32 %v8684_v36, %v16027_v24  ;;  %v16030_v10 = vld [vmem:[#allocation164_spill] sm:$0xff]  ;;  %v16032_v4 = vld [vmem:[#allocation165_spill] sm:$0xff]  ;;  %v8982_v24 = vadd.f32 %v8684_v36, %v8710_v58 }
  0xeb   :  { %16024 = vst [vmem:[#allocation237_spill] sm:$0xff] %v8954_v29  ;;  %16026 = vst [vmem:[#allocation5_spill] sm:$0xff] %v8958_v17  ;;  %v8970_v42 = vadd.f32 %v8684_v36, %v16030_v10  ;;  %v8974_v23 = vadd.f32 %v8684_v36, %v16032_v4  ;;  %v16034_v29 = vld [vmem:[#allocation166_spill] sm:$0xff]  ;;  %v8994_v4 = vadd.f32 %v8684_v36, %v8714_v57 }
  0xec   :  { %16028 = vst [vmem:[#allocation162_spill] sm:$0xff] %v8962_v8  ;;  %16029 = vst [vmem:[#allocation238_spill] sm:$0xff] %v8966_v0  ;;  %v8978_v63 = vadd.f32 %v8684_v36, %v16034_v29  ;;  %v16037_v8 = vld [vmem:[#allocation168_spill] sm:$0xff]  ;;  %v16039_v0 = vld [vmem:[#allocation169_spill] sm:$0xff] }
  0xed   :  { %16031 = vst [vmem:[#allocation164_spill] sm:$0xff] %v8970_v42  ;;  %16033 = vst [vmem:[#allocation165_spill] sm:$0xff] %v8974_v23  ;;  %v8986_v43 = vadd.f32 %v8684_v36, %v16037_v8  ;;  %v8990_v10 = vadd.f32 %v8684_v36, %v16039_v0  ;;  %v16042_v23 = vld [vmem:[#allocation170_spill] sm:$0xff]  ;;  %v16066_v42 = vld [vmem:[#allocation31_spill] sm:$0xff] }
  0xee   :  { %16035 = vst [vmem:[#allocation166_spill] sm:$0xff] %v8978_v63  ;;  %16036 = vst [vmem:[#allocation239_spill] sm:$0xff] %v8982_v24  ;;  %v8998_v29 = vadd.f32 %v8684_v36, %v16042_v23  ;;  %v16044_v63 = vld [vmem:[#allocation172_spill] sm:$0xff]  ;;  %v16046_v24 = vld [vmem:[#allocation173_spill] sm:$0xff] }
  0xef   :  { %16038 = vst [vmem:[#allocation168_spill] sm:$0xff] %v8986_v43  ;;  %16040 = vst [vmem:[#allocation169_spill] sm:$0xff] %v8990_v10  ;;  %v9002_v58 = vadd.f32 %v8684_v36, %v16044_v63  ;;  %v9006_v8 = vadd.f32 %v8684_v36, %v16046_v24  ;;  %v16048_v43 = vld [vmem:[#allocation136_spill] sm:$0xff]  ;;  %v16050_v10 = vld [vmem:[#allocation174_spill] sm:$0xff]  ;;  %v9026_v24 = vadd.f32 %v8684_v36, %v8722_v55 }
  0xf0   :  { %16041 = vst [vmem:[#allocation240_spill] sm:$0xff] %v8994_v4  ;;  %16043 = vst [vmem:[#allocation170_spill] sm:$0xff] %v8998_v29  ;;  %v9010_v0 = vadd.f32 %v8684_v36, %v16048_v43  ;;  %v9014_v57 = vadd.f32 %v8684_v36, %v16050_v10  ;;  %v16052_v4 = vld [vmem:[#allocation175_spill] sm:$0xff]  ;;  %v16054_v29 = vld [vmem:[#allocation176_spill] sm:$0xff] }
  0xf1   :  { %16045 = vst [vmem:[#allocation172_spill] sm:$0xff] %v9002_v58  ;;  %16047 = vst [vmem:[#allocation173_spill] sm:$0xff] %v9006_v8  ;;  %v9018_v23 = vadd.f32 %v8684_v36, %v16052_v4  ;;  %v9022_v63 = vadd.f32 %v8684_v36, %v16054_v29  ;;  %v16057_v8 = vld [vmem:[#allocation26_spill] sm:$0xff] }
  0xf2   :  { %16049 = vst [vmem:[#allocation136_spill] sm:$0xff] %v9010_v0  ;;  %16051 = vst [vmem:[#allocation174_spill] sm:$0xff] %v9014_v57  ;;  %v9030_v43 = vmul.f32 %v16057_v8, %v7958_v22  ;;  %v16058_v0 = vld [vmem:[#allocation27_spill] sm:$0xff]  ;;  %v16059_v57 = vld [vmem:[#allocation177_spill] sm:$0xff] }
  0xf3   :  { %16053 = vst [vmem:[#allocation175_spill] sm:$0xff] %v9018_v23  ;;  %16055 = vst [vmem:[#allocation176_spill] sm:$0xff] %v9022_v63  ;;  %v9034_v10 = vmul.f32 %v16058_v0, %v7958_v22  ;;  %v9038_v4 = vadd.f32 %v8684_v36, %v16059_v57  ;;  %v16061_v23 = vld [vmem:[#allocation179_spill] sm:$0xff]  ;;  %v16063_v63 = vld [vmem:[#allocation28_spill] sm:$0xff]  ;;  %v9058_v57 = vmul.f32 %v16066_v42, %v7958_v22 }
  0xf4   :  { %16056 = vst [vmem:[#allocation241_spill] sm:$0xff] %v9026_v24  ;;  %v9042_v29 = vadd.f32 %v8684_v36, %v16061_v23  ;;  %v9046_v55 = vmul.f32 %v16063_v63, %v7958_v22  ;;  %v16064_v24 = vld [vmem:[#allocation29_spill] sm:$0xff]  ;;  %v16065_v58 = vld [vmem:[#allocation30_spill] sm:$0xff]  ;;  %v9078_v42 = vmul.f32 %v16071_v20, %v7958_v22  ;;  %v9098_v20 = vmul.f32 %v16076_v35, %v7958_v22 }
  0xf5   :  { %16060 = vst [vmem:[#allocation26_spill] sm:$0xff] %v9038_v4  ;;  %v9050_v8 = vmul.f32 %v16064_v24, %v7958_v22  ;;  %v9054_v0 = vmul.f32 %v16065_v58, %v7958_v22  ;;  %v16067_v4 = vld [vmem:[#allocation32_spill] sm:$0xff]  ;;  %v16069_v17 = vld [vmem:[#allocation34_spill] sm:$0xff]  ;;  %v9074_v58 = vmul.f32 %v16070_v7, %v7958_v22  ;;  %v9094_v7 = vmul.f32 %v16075_v18, %v7958_v22 }
  0xf6   :  { %16062 = vst [vmem:[#allocation27_spill] sm:$0xff] %v9042_v29  ;;  %v9062_v23 = vmul.f32 %v16067_v4, %v7958_v22  ;;  %v16068_v29 = vld [vmem:[#allocation33_spill] sm:$0xff]  ;;  %v9070_v24 = vmul.f32 %v16069_v17, %v7958_v22  ;;  %v9082_v4 = vmul.f32 %v16072_v33, %v7958_v22  ;;  %v9090_v17 = vmul.f32 %v16074_v50, %v7958_v22 }
  0xf7   :  { %v9066_v63 = vmul.f32 %v16068_v29, %v7958_v22  ;;  %v9086_v29 = vmul.f32 %v16073_v9, %v7958_v22  ;;  %v9102_v33 = vmul.f32 %v16077_v38, %v7958_v22  ;;  %v9106_v9 = vmul.f32 %v16078_v34, %v7958_v22 }
  0xf8   :  { %v9110_v50 = vmul.f32 %v16079_v41, %v7958_v22  ;;  %v9114_v18 = vmul.f32 %v16080_v19, %v7958_v22  ;;  %v9118_v35 = vmul.f32 %v16081_v15, %v7958_v22  ;;  %v9122_v38 = vmul.f32 %v16082_v11, %v7958_v22 }
  0xf9   :  { %v9126_v34 = vmul.f32 %v16083_v45, %v7958_v22  ;;  %v9130_v41 = vmul.f32 %v16084_v21, %v7958_v22  ;;  %v9134_v19 = vmul.f32 %v16085_v56, %v7958_v22  ;;  %v9138_v15 = vmul.f32 %v16086_v32, %v7958_v22 }
  0xfa   :  { %v9142_v11 = vmul.f32 %v16087_v62, %v7958_v22  ;;  %v9146_v45 = vmul.f32 %v16088_v30, %v7958_v22  ;;  %v9150_v21 = vmul.f32 %v16089_v44, %v7958_v22  ;;  %v9154_v56 = vmul.f32 %v16090_v61, %v7958_v22 }
  0xfb   :  { %v9158_v32 = vmul.f32 %v16091_v60, %v7958_v22  ;;  %v9162_v62 = vmul.f32 %v16092_v52, %v7958_v22  ;;  %v9166_v30 = vmul.f32 %v16093_v6, %v7958_v22  ;;  %v9170_v44 = vmul.f32 %v16094_v3, %v7958_v22 }
  0xfc   :  { %v9174_v61 = vmul.f32 %v16095_v40, %v7958_v22  ;;  %v9178_v60 = vmul.f32 %v16096_v5, %v7958_v22  ;;  %v9182_v52 = vmul.f32 %v16097_v2, %v7958_v22  ;;  %v9186_v6 = vmul.f32 %v16098_v14, %v7958_v22 }
  0xfd   :  { %v9190_v3 = vmul.f32 %v16099_v54, %v7958_v22  ;;  %v9194_v40 = vmul.f32 %v16100_v16, %v7958_v22  ;;  %v9198_v5 = vmul.f32 %v16101_v53, %v7958_v22  ;;  %v9202_v2 = vmul.f32 %v16102_v28, %v7958_v22 }
  0xfe   :  { %v9206_v14 = vmul.f32 %v16103_v59, %v7958_v22  ;;  %v9210_v54 = vmul.f32 %v16104_v31, %v7958_v22  ;;  %v9214_v16 = vmul.f32 %v16105_v1, %v7958_v22  ;;  %v9218_v53 = vmul.f32 %v16106_v37, %v7958_v22 }
  0xff   :  { %v9222_v28 = vmul.f32 %v16107_v27, %v7958_v22  ;;  %v9226_v59 = vmul.f32 %v16108_v26, %v7958_v22  ;;  %v9230_v31 = vmul.f32 %v16109_v49, %v7958_v22  ;;  %v9234_v1 = vmul.f32 %v16110_v25, %v7958_v22 }
 0x100   :  { %v9238_v37 = vmul.f32 %v16111_v46, %v7958_v22  ;;  %v9242_v27 = vmul.f32 %v16112_v51, %v7958_v22  ;;  %v9246_v26 = vmul.f32 %v16114_v48, %v7958_v22  ;;  %v9250_v49 = vmul.f32 %v16116_v12, %v7958_v22 }
 0x101   :  { %v9254_v25 = vmul.f32 %v16118_v47, %v7958_v22  ;;  %v9258_v46 = vmul.f32 %v16120_v13, %v7958_v22  ;;  %v9262_v51 = vmul.f32 %v16122_v39, %v7958_v22 }
 0x102   :  { %16113 = vst [vmem:[#allocation177_spill] sm:$0xff] %v9242_v27  ;;  %16115 = vst [vmem:[#allocation179_spill] sm:$0xff] %v9246_v26  ;;  %v16124_v27 = vld [vmem:[#allocation83_spill] sm:$0xff]  ;;  %v16126_v26 = vld [vmem:[#allocation84_spill] sm:$0xff] }
 0x103   :  { %16117 = vst [vmem:[#allocation28_spill] sm:$0xff] %v9250_v49  ;;  %16119 = vst [vmem:[#allocation29_spill] sm:$0xff] %v9254_v25  ;;  %v9266_v48 = vmul.f32 %v16124_v27, %v7958_v22  ;;  %v9270_v12 = vmul.f32 %v16126_v26, %v7958_v22  ;;  %v16128_v49 = vld [vmem:[#allocation85_spill] sm:$0xff]  ;;  %v16130_v25 = vld [vmem:[#allocation86_spill] sm:$0xff] }
 0x104   :  { %16121 = vst [vmem:[#allocation30_spill] sm:$0xff] %v9258_v46  ;;  %16123 = vst [vmem:[#allocation31_spill] sm:$0xff] %v9262_v51  ;;  %v9274_v47 = vmul.f32 %v16128_v49, %v7958_v22  ;;  %v9278_v13 = vmul.f32 %v16130_v25, %v7958_v22  ;;  %v16132_v46 = vld [vmem:[#allocation87_spill] sm:$0xff]  ;;  %v16134_v51 = vld [vmem:[#allocation88_spill] sm:$0xff] }
 0x105   :  { %16125 = vst [vmem:[#allocation32_spill] sm:$0xff] %v9266_v48  ;;  %16127 = vst [vmem:[#allocation33_spill] sm:$0xff] %v9270_v12  ;;  %v9282_v39 = vmul.f32 %v16132_v46, %v7958_v22  ;;  %v9286_v27 = vmul.f32 %v16134_v51, %v7958_v22  ;;  %v16136_v48 = vld [vmem:[#allocation89_spill] sm:$0xff]  ;;  %v16138_v12 = vld [vmem:[#allocation90_spill] sm:$0xff] }
 0x106   :  { %16129 = vst [vmem:[#allocation34_spill] sm:$0xff] %v9274_v47  ;;  %16131 = vst [vmem:[#allocation35_spill] sm:$0xff] %v9278_v13  ;;  %v9290_v26 = vmul.f32 %v16136_v48, %v7958_v22  ;;  %v9294_v49 = vmul.f32 %v16138_v12, %v7958_v22  ;;  %v16140_v47 = vld [vmem:[#allocation91_spill] sm:$0xff]  ;;  %v16142_v13 = vld [vmem:[#allocation92_spill] sm:$0xff] }
 0x107   :  { %16133 = vst [vmem:[#allocation36_spill] sm:$0xff] %v9282_v39  ;;  %16135 = vst [vmem:[#allocation37_spill] sm:$0xff] %v9286_v27  ;;  %v9298_v25 = vmul.f32 %v16140_v47, %v7958_v22  ;;  %v9302_v46 = vmul.f32 %v16142_v13, %v7958_v22  ;;  %v16144_v39 = vld [vmem:[#allocation93_spill] sm:$0xff]  ;;  %v16146_v27 = vld [vmem:[#allocation94_spill] sm:$0xff] }
 0x108   :  { %16137 = vst [vmem:[#allocation38_spill] sm:$0xff] %v9290_v26  ;;  %16139 = vst [vmem:[#allocation39_spill] sm:$0xff] %v9294_v49  ;;  %v9306_v51 = vmul.f32 %v16144_v39, %v7958_v22  ;;  %v9310_v48 = vmul.f32 %v16146_v27, %v7958_v22  ;;  %v16148_v26 = vld [vmem:[#allocation95_spill] sm:$0xff]  ;;  %v16150_v49 = vld [vmem:[#allocation96_spill] sm:$0xff] }
 0x109   :  { %16141 = vst [vmem:[#allocation40_spill] sm:$0xff] %v9298_v25  ;;  %16143 = vst [vmem:[#allocation41_spill] sm:$0xff] %v9302_v46  ;;  %v9314_v12 = vmul.f32 %v16148_v26, %v7958_v22  ;;  %v9318_v47 = vmul.f32 %v16150_v49, %v7958_v22  ;;  %v16152_v25 = vld [vmem:[#allocation97_spill] sm:$0xff]  ;;  %v16154_v46 = vld [vmem:[#allocation98_spill] sm:$0xff] }
 0x10a   :  { %16145 = vst [vmem:[#allocation42_spill] sm:$0xff] %v9306_v51  ;;  %16147 = vst [vmem:[#allocation43_spill] sm:$0xff] %v9310_v48  ;;  %v9322_v13 = vmul.f32 %v16152_v25, %v7958_v22  ;;  %v9326_v39 = vmul.f32 %v16154_v46, %v7958_v22  ;;  %v16156_v51 = vld [vmem:[#allocation99_spill] sm:$0xff]  ;;  %v16158_v48 = vld [vmem:[#allocation100_spill] sm:$0xff] }
 0x10b   :  { %16149 = vst [vmem:[#allocation44_spill] sm:$0xff] %v9314_v12  ;;  %16151 = vst [vmem:[#allocation45_spill] sm:$0xff] %v9318_v47  ;;  %v9330_v27 = vmul.f32 %v16156_v51, %v7958_v22  ;;  %v9334_v26 = vmul.f32 %v16158_v48, %v7958_v22  ;;  %v16160_v12 = vld [vmem:[#allocation101_spill] sm:$0xff]  ;;  %v16162_v47 = vld [vmem:[#allocation102_spill] sm:$0xff] }
 0x10c   :  { %16153 = vst [vmem:[#allocation46_spill] sm:$0xff] %v9322_v13  ;;  %16155 = vst [vmem:[#allocation47_spill] sm:$0xff] %v9326_v39  ;;  %v9338_v49 = vmul.f32 %v16160_v12, %v7958_v22  ;;  %v9342_v25 = vmul.f32 %v16162_v47, %v7958_v22  ;;  %v16164_v13 = vld [vmem:[#allocation103_spill] sm:$0xff]  ;;  %v16166_v39 = vld [vmem:[#allocation104_spill] sm:$0xff] }
 0x10d   :  { %16157 = vst [vmem:[#allocation48_spill] sm:$0xff] %v9330_v27  ;;  %16159 = vst [vmem:[#allocation49_spill] sm:$0xff] %v9334_v26  ;;  %v9346_v46 = vmul.f32 %v16164_v13, %v7958_v22  ;;  %v9350_v51 = vmul.f32 %v16166_v39, %v7958_v22  ;;  %v16168_v27 = vld [vmem:[#allocation105_spill] sm:$0xff]  ;;  %v16170_v26 = vld [vmem:[#allocation106_spill] sm:$0xff] }
 0x10e   :  { %16161 = vst [vmem:[#allocation50_spill] sm:$0xff] %v9338_v49  ;;  %16163 = vst [vmem:[#allocation51_spill] sm:$0xff] %v9342_v25  ;;  %v9354_v48 = vmul.f32 %v16168_v27, %v7958_v22  ;;  %v9358_v12 = vmul.f32 %v16170_v26, %v7958_v22  ;;  %v16172_v49 = vld [vmem:[#allocation107_spill] sm:$0xff]  ;;  %v16174_v25 = vld [vmem:[#allocation108_spill] sm:$0xff] }
 0x10f   :  { %16165 = vst [vmem:[#allocation52_spill] sm:$0xff] %v9346_v46  ;;  %16167 = vst [vmem:[#allocation53_spill] sm:$0xff] %v9350_v51  ;;  %v9362_v47 = vmul.f32 %v16172_v49, %v7958_v22  ;;  %v9366_v13 = vmul.f32 %v16174_v25, %v7958_v22  ;;  %v16176_v46 = vld [vmem:[#allocation109_spill] sm:$0xff]  ;;  %v16178_v51 = vld [vmem:[#allocation110_spill] sm:$0xff] }
 0x110   :  { %16169 = vst [vmem:[#allocation54_spill] sm:$0xff] %v9354_v48  ;;  %16171 = vst [vmem:[#allocation55_spill] sm:$0xff] %v9358_v12  ;;  %v9370_v39 = vmul.f32 %v16176_v46, %v7958_v22  ;;  %v9374_v27 = vmul.f32 %v16178_v51, %v7958_v22  ;;  %v16180_v48 = vld [vmem:[#allocation111_spill] sm:$0xff]  ;;  %v16182_v12 = vld [vmem:[#allocation112_spill] sm:$0xff] }
 0x111   :  { %16173 = vst [vmem:[#allocation56_spill] sm:$0xff] %v9362_v47  ;;  %16175 = vst [vmem:[#allocation57_spill] sm:$0xff] %v9366_v13  ;;  %v9378_v26 = vmul.f32 %v16180_v48, %v7958_v22  ;;  %v9382_v49 = vmul.f32 %v16182_v12, %v7958_v22  ;;  %v16184_v47 = vld [vmem:[#allocation113_spill] sm:$0xff]  ;;  %v16186_v13 = vld [vmem:[#allocation114_spill] sm:$0xff] }
 0x112   :  { %16177 = vst [vmem:[#allocation58_spill] sm:$0xff] %v9370_v39  ;;  %16179 = vst [vmem:[#allocation59_spill] sm:$0xff] %v9374_v27  ;;  %v9386_v25 = vmul.f32 %v16184_v47, %v7958_v22  ;;  %v9390_v46 = vmul.f32 %v16186_v13, %v7958_v22  ;;  %v16188_v39 = vld [vmem:[#allocation115_spill] sm:$0xff]  ;;  %v16190_v27 = vld [vmem:[#allocation116_spill] sm:$0xff] }
 0x113   :  { %16181 = vst [vmem:[#allocation60_spill] sm:$0xff] %v9378_v26  ;;  %16183 = vst [vmem:[#allocation61_spill] sm:$0xff] %v9382_v49  ;;  %v9394_v51 = vmul.f32 %v16188_v39, %v7958_v22  ;;  %v9398_v48 = vmul.f32 %v16190_v27, %v7958_v22  ;;  %v16192_v26 = vld [vmem:[#allocation117_spill] sm:$0xff]  ;;  %v16194_v49 = vld [vmem:[#allocation118_spill] sm:$0xff] }
 0x114   :  { %16185 = vst [vmem:[#allocation62_spill] sm:$0xff] %v9386_v25  ;;  %16187 = vst [vmem:[#allocation63_spill] sm:$0xff] %v9390_v46  ;;  %v9402_v12 = vmul.f32 %v16192_v26, %v7958_v22  ;;  %v9406_v47 = vmul.f32 %v16194_v49, %v7958_v22  ;;  %v16196_v25 = vld [vmem:[#allocation119_spill] sm:$0xff]  ;;  %v16198_v46 = vld [vmem:[#allocation120_spill] sm:$0xff] }
 0x115   :  { %16189 = vst [vmem:[#allocation64_spill] sm:$0xff] %v9394_v51  ;;  %16191 = vst [vmem:[#allocation65_spill] sm:$0xff] %v9398_v48  ;;  %v9410_v13 = vmul.f32 %v16196_v25, %v7958_v22  ;;  %v9414_v39 = vmul.f32 %v16198_v46, %v7958_v22  ;;  %v16200_v51 = vld [vmem:[#allocation121_spill] sm:$0xff]  ;;  %v16202_v48 = vld [vmem:[#allocation122_spill] sm:$0xff] }
 0x116   :  { %16193 = vst [vmem:[#allocation66_spill] sm:$0xff] %v9402_v12  ;;  %16195 = vst [vmem:[#allocation67_spill] sm:$0xff] %v9406_v47  ;;  %v9418_v27 = vmul.f32 %v16200_v51, %v7958_v22  ;;  %v9422_v26 = vmul.f32 %v16202_v48, %v7958_v22  ;;  %v16204_v12 = vld [vmem:[#allocation123_spill] sm:$0xff]  ;;  %v16206_v47 = vld [vmem:[#allocation124_spill] sm:$0xff] }
 0x117   :  { %16197 = vst [vmem:[#allocation68_spill] sm:$0xff] %v9410_v13  ;;  %16199 = vst [vmem:[#allocation69_spill] sm:$0xff] %v9414_v39  ;;  %v9426_v49 = vmul.f32 %v16204_v12, %v7958_v22  ;;  %v9430_v25 = vmul.f32 %v16206_v47, %v7958_v22  ;;  %v16208_v13 = vld [vmem:[#allocation125_spill] sm:$0xff]  ;;  %v16210_v39 = vld [vmem:[#allocation126_spill] sm:$0xff] }
 0x118   :  { %16201 = vst [vmem:[#allocation70_spill] sm:$0xff] %v9418_v27  ;;  %16203 = vst [vmem:[#allocation71_spill] sm:$0xff] %v9422_v26  ;;  %v9434_v46 = vmul.f32 %v16208_v13, %v7958_v22  ;;  %v9438_v51 = vmul.f32 %v16210_v39, %v7958_v22  ;;  %v16212_v27 = vld [vmem:[#allocation127_spill] sm:$0xff]  ;;  %v16214_v26 = vld [vmem:[#allocation128_spill] sm:$0xff] }
 0x119   :  { %16205 = vst [vmem:[#allocation72_spill] sm:$0xff] %v9426_v49  ;;  %16207 = vst [vmem:[#allocation73_spill] sm:$0xff] %v9430_v25  ;;  %v9442_v48 = vmul.f32 %v16212_v27, %v7958_v22  ;;  %v9446_v12 = vmul.f32 %v16214_v26, %v7958_v22  ;;  %v16216_v49 = vld [vmem:[#allocation129_spill] sm:$0xff]  ;;  %v16218_v25 = vld [vmem:[#allocation130_spill] sm:$0xff] }
 0x11a   :  { %16209 = vst [vmem:[#allocation74_spill] sm:$0xff] %v9434_v46  ;;  %16211 = vst [vmem:[#allocation75_spill] sm:$0xff] %v9438_v51  ;;  %v9450_v47 = vmul.f32 %v16216_v49, %v7958_v22  ;;  %v9454_v13 = vmul.f32 %v16218_v25, %v7958_v22  ;;  %v16220_v46 = vld [vmem:[#allocation131_spill] sm:$0xff]  ;;  %v16222_v51 = vld [vmem:[#allocation132_spill] sm:$0xff] }
 0x11b   :  { %16213 = vst [vmem:[#allocation76_spill] sm:$0xff] %v9442_v48  ;;  %16215 = vst [vmem:[#allocation77_spill] sm:$0xff] %v9446_v12  ;;  %v9458_v39 = vmul.f32 %v16220_v46, %v7958_v22  ;;  %v9462_v27 = vmul.f32 %v16222_v51, %v7958_v22  ;;  %v16224_v48 = vld [vmem:[#allocation133_spill] sm:$0xff]  ;;  %v16226_v12 = vld [vmem:[#allocation134_spill] sm:$0xff] }
 0x11c   :  { %16217 = vst [vmem:[#allocation78_spill] sm:$0xff] %v9450_v47  ;;  %16219 = vst [vmem:[#allocation79_spill] sm:$0xff] %v9454_v13  ;;  %v9466_v26 = vmul.f32 %v16224_v48, %v7958_v22  ;;  %v9470_v49 = vmul.f32 %v16226_v12, %v7958_v22  ;;  %v16228_v47 = vld [vmem:[#allocation135_spill] sm:$0xff] }
 0x11d   :  { %16221 = vst [vmem:[#allocation80_spill] sm:$0xff] %v9458_v39  ;;  %16223 = vst [vmem:[#allocation81_spill] sm:$0xff] %v9462_v27  ;;  %v9474_v25 = vmul.f32 %v16228_v47, %v7958_v22  ;;  %v16229_v13 = vld [vmem:[#allocation11_spill] sm:$0xff]  ;;  %v16231_v39 = vld [vmem:[#allocation12_spill] sm:$0xff] }
 0x11e   :  { %16225 = vst [vmem:[#allocation82_spill] sm:$0xff] %v9466_v26  ;;  %16227 = vst [vmem:[#allocation83_spill] sm:$0xff] %v9470_v49  ;;  %v9478_v46 = vadd.f32 %v8684_v36, %v16229_v13  ;;  %v9482_v51 = vadd.f32 %v8684_v36, %v16231_v39  ;;  %v16233_v27 = vld [vmem:[#allocation13_spill] sm:$0xff]  ;;  %v16235_v26 = vld [vmem:[#allocation203_spill] sm:$0xff] }
 0x11f   :  { %v9486_v48 = vadd.f32 %v8684_v36, %v16233_v27  ;;  %v9490_v12 = vadd.f32 %v8684_v36, %v16235_v26  ;;  %v16237_v49 = vld [vmem:[#allocation14_spill] sm:$0xff]  ;;  %v16239_v47 = vld [vmem:[#allocation15_spill] sm:$0xff] }
 0x120   :  { %16230 = vst [vmem:[#allocation84_spill] sm:$0xff] %v9478_v46  ;;  %16232 = vst [vmem:[#allocation85_spill] sm:$0xff] %v9482_v51  ;;  %v9494_v22 = vadd.f32 %v8684_v36, %v16237_v49  ;;  %v9498_v13 = vadd.f32 %v8684_v36, %v16239_v47  ;;  %v16241_v46 = vld [vmem:[#allocation16_spill] sm:$0xff] }
 0x121   :  { %16234 = vst [vmem:[#allocation86_spill] sm:$0xff] %v9486_v48  ;;  %16236 = vst [vmem:[#allocation87_spill] sm:$0xff] %v9490_v12  ;;  %v9502_v39 = vadd.f32 %v8684_v36, %v16241_v46  ;;  %v16243_v51 = vld [vmem:[#allocation204_spill] sm:$0xff]  ;;  %v16245_v48 = vld [vmem:[#allocation17_spill] sm:$0xff] }
 0x122   :  { %16238 = vst [vmem:[#allocation88_spill] sm:$0xff] %v9494_v22  ;;  %16240 = vst [vmem:[#allocation89_spill] sm:$0xff] %v9498_v13  ;;  %v9506_v27 = vadd.f32 %v8684_v36, %v16243_v51  ;;  %v9510_v26 = vadd.f32 %v8684_v36, %v16245_v48  ;;  %v16247_v12 = vld [vmem:[#allocation18_spill] sm:$0xff]  ;;  %v16249_v22 = vld [vmem:[#allocation19_spill] sm:$0xff] }
 0x123   :  { %16242 = vst [vmem:[#allocation90_spill] sm:$0xff] %v9502_v39  ;;  %v9514_v49 = vadd.f32 %v8684_v36, %v16247_v12  ;;  %v9518_v47 = vadd.f32 %v8684_v36, %v16249_v22  ;;  %v16251_v13 = vld [vmem:[#allocation20_spill] sm:$0xff]  ;;  %v16253_v39 = vld [vmem:[#allocation21_spill] sm:$0xff] }
 0x124   :  { %16244 = vst [vmem:[#allocation91_spill] sm:$0xff] %v9506_v27  ;;  %16246 = vst [vmem:[#allocation92_spill] sm:$0xff] %v9510_v26  ;;  %v9522_v46 = vadd.f32 %v8684_v36, %v16251_v13  ;;  %v9526_v51 = vadd.f32 %v8684_v36, %v16253_v39  ;;  %v16255_v27 = vld [vmem:[#allocation22_spill] sm:$0xff]  ;;  %v16257_v26 = vld [vmem:[#allocation23_spill] sm:$0xff]  ;;  %v9546_v39 = vadd.f32 %v8684_v36, %v9030_v43 }
 0x125   :  { %16248 = vst [vmem:[#allocation93_spill] sm:$0xff] %v9514_v49  ;;  %16250 = vst [vmem:[#allocation94_spill] sm:$0xff] %v9518_v47  ;;  %v9530_v48 = vadd.f32 %v8684_v36, %v16255_v27  ;;  %v9534_v12 = vadd.f32 %v8684_v36, %v16257_v26  ;;  %v16259_v49 = vld [vmem:[#allocation24_spill] sm:$0xff]  ;;  %v16261_v47 = vld [vmem:[#allocation25_spill] sm:$0xff]  ;;  %v9550_v27 = vadd.f32 %v8684_v36, %v9034_v10 }
 0x126   :  { %16252 = vst [vmem:[#allocation95_spill] sm:$0xff] %v9522_v46  ;;  %16254 = vst [vmem:[#allocation96_spill] sm:$0xff] %v9526_v51  ;;  %v9538_v22 = vadd.f32 %v8684_v36, %v16259_v49  ;;  %v9542_v13 = vadd.f32 %v8684_v36, %v16261_v47  ;;  %v9554_v26 = vadd.f32 %v8684_v36, %v9046_v55 }
 0x127   :  { %16256 = vst [vmem:[#allocation97_spill] sm:$0xff] %v9530_v48  ;;  %16258 = vst [vmem:[#allocation98_spill] sm:$0xff] %v9534_v12  ;;  %v9558_v49 = vadd.f32 %v8684_v36, %v9050_v8  ;;  %v9562_v47 = vadd.f32 %v8684_v36, %v9054_v0  ;;  %v9566_v43 = vadd.f32 %v8684_v36, %v9058_v57 }
 0x128   :  { %16260 = vst [vmem:[#allocation99_spill] sm:$0xff] %v9538_v22  ;;  %16262 = vst [vmem:[#allocation100_spill] sm:$0xff] %v9542_v13  ;;  %v9570_v10 = vadd.f32 %v8684_v36, %v9062_v23  ;;  %v9574_v55 = vadd.f32 %v8684_v36, %v9066_v63  ;;  %v9578_v8 = vadd.f32 %v8684_v36, %v9070_v24 }
 0x129   :  { %16263 = vst [vmem:[#allocation101_spill] sm:$0xff] %v9546_v39  ;;  %16264 = vst [vmem:[#allocation102_spill] sm:$0xff] %v9550_v27  ;;  %v9582_v0 = vadd.f32 %v8684_v36, %v9074_v58  ;;  %v9586_v57 = vadd.f32 %v8684_v36, %v9078_v42  ;;  %v9590_v23 = vadd.f32 %v8684_v36, %v9082_v4 }
 0x12a   :  { %16265 = vst [vmem:[#allocation103_spill] sm:$0xff] %v9554_v26  ;;  %16266 = vst [vmem:[#allocation104_spill] sm:$0xff] %v9558_v49  ;;  %v9594_v63 = vadd.f32 %v8684_v36, %v9086_v29  ;;  %v9598_v24 = vadd.f32 %v8684_v36, %v9090_v17  ;;  %v9602_v58 = vadd.f32 %v8684_v36, %v9094_v7 }
 0x12b   :  { %16267 = vst [vmem:[#allocation105_spill] sm:$0xff] %v9562_v47  ;;  %16268 = vst [vmem:[#allocation106_spill] sm:$0xff] %v9566_v43  ;;  %v9606_v42 = vadd.f32 %v8684_v36, %v9098_v20  ;;  %v9610_v4 = vadd.f32 %v8684_v36, %v9102_v33  ;;  %v9614_v29 = vadd.f32 %v8684_v36, %v9106_v9 }
 0x12c   :  { %16269 = vst [vmem:[#allocation107_spill] sm:$0xff] %v9570_v10  ;;  %16270 = vst [vmem:[#allocation108_spill] sm:$0xff] %v9574_v55  ;;  %v9618_v17 = vadd.f32 %v8684_v36, %v9110_v50  ;;  %v9622_v7 = vadd.f32 %v8684_v36, %v9114_v18  ;;  %v9626_v20 = vadd.f32 %v8684_v36, %v9118_v35 }
 0x12d   :  { %16271 = vst [vmem:[#allocation109_spill] sm:$0xff] %v9578_v8  ;;  %16272 = vst [vmem:[#allocation110_spill] sm:$0xff] %v9582_v0  ;;  %v9630_v33 = vadd.f32 %v8684_v36, %v9122_v38  ;;  %v9634_v9 = vadd.f32 %v8684_v36, %v9126_v34  ;;  %v9638_v50 = vadd.f32 %v8684_v36, %v9130_v41 }
 0x12e   :  { %16273 = vst [vmem:[#allocation111_spill] sm:$0xff] %v9586_v57  ;;  %16274 = vst [vmem:[#allocation112_spill] sm:$0xff] %v9590_v23  ;;  %v9642_v18 = vadd.f32 %v8684_v36, %v9134_v19  ;;  %v9646_v35 = vadd.f32 %v8684_v36, %v9138_v15  ;;  %v9650_v38 = vadd.f32 %v8684_v36, %v9142_v11 }
 0x12f   :  { %16275 = vst [vmem:[#allocation113_spill] sm:$0xff] %v9594_v63  ;;  %16276 = vst [vmem:[#allocation114_spill] sm:$0xff] %v9598_v24  ;;  %v9654_v34 = vadd.f32 %v8684_v36, %v9146_v45  ;;  %v9658_v41 = vadd.f32 %v8684_v36, %v9150_v21  ;;  %v9662_v19 = vadd.f32 %v8684_v36, %v9154_v56 }
 0x130   :  { %16277 = vst [vmem:[#allocation115_spill] sm:$0xff] %v9602_v58  ;;  %16278 = vst [vmem:[#allocation116_spill] sm:$0xff] %v9606_v42  ;;  %v9666_v15 = vadd.f32 %v8684_v36, %v9158_v32  ;;  %v9670_v11 = vadd.f32 %v8684_v36, %v9162_v62  ;;  %v9674_v45 = vadd.f32 %v8684_v36, %v9166_v30  ;;  %v10284_v42 = vld [vmem:[#allocation2 + $0x19c] sm:$0x3f]  ;;  %v16435_v58 = vld [vmem:[#allocation178_spill] sm:$0xff] }
 0x131   :  { %16279 = vst [vmem:[#allocation117_spill] sm:$0xff] %v9610_v4  ;;  %16280 = vst [vmem:[#allocation118_spill] sm:$0xff] %v9614_v29  ;;  %v9678_v21 = vadd.f32 %v8684_v36, %v9170_v44  ;;  %v9682_v56 = vadd.f32 %v8684_v36, %v9174_v61  ;;  %v9686_v32 = vadd.f32 %v8684_v36, %v9178_v60  ;;  %v10264_v29 = vld [vmem:[#allocation2 + $0x18c] sm:$0xff]  ;;  %v10274_v4 = vld [vmem:[#allocation2 + $0x194] sm:$0xff] }
 0x132   :  { %16281 = vst [vmem:[#allocation119_spill] sm:$0xff] %v9618_v17  ;;  %16282 = vst [vmem:[#allocation120_spill] sm:$0xff] %v9622_v7  ;;  %v9690_v62 = vadd.f32 %v8684_v36, %v9182_v52  ;;  %v9694_v30 = vadd.f32 %v8684_v36, %v9186_v6  ;;  %v9698_v44 = vadd.f32 %v8684_v36, %v9190_v3  ;;  %v10246_v7 = vld [vmem:[#allocation2 + $0x17e] sm:$0xff]  ;;  %v10256_v17 = vld [vmem:[#allocation2 + $0x186] sm:$0x3f] }
 0x133   :  { %16283 = vst [vmem:[#allocation121_spill] sm:$0xff] %v9626_v20  ;;  %16284 = vst [vmem:[#allocation122_spill] sm:$0xff] %v9630_v33  ;;  %v9702_v61 = vadd.f32 %v8684_v36, %v9194_v40  ;;  %v9706_v60 = vadd.f32 %v8684_v36, %v9198_v5  ;;  %v9710_v52 = vadd.f32 %v8684_v36, %v9202_v2  ;;  %v10228_v33 = vld [vmem:[#allocation2 + $0x170] sm:$0x3f]  ;;  %v10236_v20 = vld [vmem:[#allocation2 + $0x176] sm:$0xff] }
 0x134   :  { %16285 = vst [vmem:[#allocation123_spill] sm:$0xff] %v9634_v9  ;;  %16286 = vst [vmem:[#allocation124_spill] sm:$0xff] %v9638_v50  ;;  %v9714_v6 = vadd.f32 %v8684_v36, %v9206_v14  ;;  %v9718_v3 = vadd.f32 %v8684_v36, %v9210_v54  ;;  %v9722_v40 = vadd.f32 %v8684_v36, %v9214_v16  ;;  %v10208_v50 = vld [vmem:[#allocation2 + $0x160] sm:$0xff]  ;;  %v10218_v9 = vld [vmem:[#allocation2 + $0x168] sm:$0xff] }
 0x135   :  { %16287 = vst [vmem:[#allocation125_spill] sm:$0xff] %v9642_v18  ;;  %16288 = vst [vmem:[#allocation126_spill] sm:$0xff] %v9646_v35  ;;  %v9726_v5 = vadd.f32 %v8684_v36, %v9218_v53  ;;  %v9730_v2 = vadd.f32 %v8684_v36, %v9222_v28  ;;  %v9734_v14 = vadd.f32 %v8684_v36, %v9226_v59  ;;  %v10190_v35 = vld [vmem:[#allocation2 + $0x152] sm:$0xff]  ;;  %v10200_v18 = vld [vmem:[#allocation2 + $0x15a] sm:$0x3f] }
 0x136   :  { %16289 = vst [vmem:[#allocation127_spill] sm:$0xff] %v9650_v38  ;;  %16290 = vst [vmem:[#allocation128_spill] sm:$0xff] %v9654_v34  ;;  %v9738_v54 = vadd.f32 %v8684_v36, %v9230_v31  ;;  %v9742_v16 = vadd.f32 %v8684_v36, %v9234_v1  ;;  %v9746_v53 = vadd.f32 %v8684_v36, %v9238_v37  ;;  %v10172_v34 = vld [vmem:[#allocation2 + $0x144] sm:$0x3f]  ;;  %v10180_v38 = vld [vmem:[#allocation2 + $0x14a] sm:$0xff] }
 0x137   :  { %16291 = vst [vmem:[#allocation129_spill] sm:$0xff] %v9658_v41  ;;  %16292 = vst [vmem:[#allocation130_spill] sm:$0xff] %v9662_v19  ;;  %v10152_v19 = vld [vmem:[#allocation2 + $0x134] sm:$0xff]  ;;  %v10162_v41 = vld [vmem:[#allocation2 + $0x13c] sm:$0xff] }
 0x138   :  { %16293 = vst [vmem:[#allocation131_spill] sm:$0xff] %v9666_v15  ;;  %16294 = vst [vmem:[#allocation132_spill] sm:$0xff] %v9670_v11  ;;  %v10134_v11 = vld [vmem:[#allocation2 + $0x126] sm:$0xff]  ;;  %v10144_v15 = vld [vmem:[#allocation2 + $0x12e] sm:$0x3f] }
 0x139   :  { %16295 = vst [vmem:[#allocation133_spill] sm:$0xff] %v9674_v45  ;;  %16296 = vst [vmem:[#allocation134_spill] sm:$0xff] %v9678_v21  ;;  %v10116_v21 = vld [vmem:[#allocation2 + $0x118] sm:$0x3f]  ;;  %v10124_v45 = vld [vmem:[#allocation2 + $0x11e] sm:$0xff] }
 0x13a   :  { %16297 = vst [vmem:[#allocation135_spill] sm:$0xff] %v9682_v56  ;;  %16298 = vst [vmem:[#allocation11_spill] sm:$0xff] %v9686_v32  ;;  %v10096_v32 = vld [vmem:[#allocation2 + $0x108] sm:$0xff]  ;;  %v10106_v56 = vld [vmem:[#allocation2 + $0x110] sm:$0xff] }
 0x13b   :  { %16299 = vst [vmem:[#allocation12_spill] sm:$0xff] %v9690_v62  ;;  %16300 = vst [vmem:[#allocation13_spill] sm:$0xff] %v9694_v30  ;;  %v10078_v30 = vld [vmem:[#allocation2 + $0xfa] sm:$0xff]  ;;  %v10088_v62 = vld [vmem:[#allocation2 + $0x102] sm:$0x3f] }
 0x13c   :  { %16301 = vst [vmem:[#allocation203_spill] sm:$0xff] %v9698_v44  ;;  %16302 = vst [vmem:[#allocation14_spill] sm:$0xff] %v9702_v61  ;;  %v10060_v61 = vld [vmem:[#allocation2 + $0xec] sm:$0x3f]  ;;  %v10068_v44 = vld [vmem:[#allocation2 + $0xf2] sm:$0xff] }
 0x13d   :  { %16303 = vst [vmem:[#allocation15_spill] sm:$0xff] %v9706_v60  ;;  %16304 = vst [vmem:[#allocation16_spill] sm:$0xff] %v9710_v52  ;;  %v10040_v52 = vld [vmem:[#allocation2 + $0xdc] sm:$0xff]  ;;  %v10050_v60 = vld [vmem:[#allocation2 + $0xe4] sm:$0xff] }
 0x13e   :  { %16305 = vst [vmem:[#allocation204_spill] sm:$0xff] %v9714_v6  ;;  %16306 = vst [vmem:[#allocation17_spill] sm:$0xff] %v9718_v3  ;;  %v10022_v3 = vld [vmem:[#allocation2 + $0xce] sm:$0xff]  ;;  %v10032_v6 = vld [vmem:[#allocation2 + $0xd6] sm:$0x3f] }
 0x13f   :  { %16307 = vst [vmem:[#allocation18_spill] sm:$0xff] %v9722_v40  ;;  %16308 = vst [vmem:[#allocation19_spill] sm:$0xff] %v9726_v5  ;;  %v16314_v5 = vld [vmem:[#allocation177_spill] sm:$0xff] }
 0x140   :  { %16309 = vst [vmem:[#allocation20_spill] sm:$0xff] %v9730_v2  ;;  %16310 = vst [vmem:[#allocation21_spill] sm:$0xff] %v9734_v14  ;;  %v9750_v28 = vadd.f32 %v8684_v36, %v16314_v5  ;;  %v16316_v2 = vld [vmem:[#allocation179_spill] sm:$0xff]  ;;  %v16318_v14 = vld [vmem:[#allocation28_spill] sm:$0xff] }
 0x141   :  { %16311 = vst [vmem:[#allocation22_spill] sm:$0xff] %v9738_v54  ;;  %16312 = vst [vmem:[#allocation23_spill] sm:$0xff] %v9742_v16  ;;  %v9754_v59 = vadd.f32 %v8684_v36, %v16316_v2  ;;  %v9758_v31 = vadd.f32 %v8684_v36, %v16318_v14  ;;  %v16320_v54 = vld [vmem:[#allocation29_spill] sm:$0xff]  ;;  %v16322_v16 = vld [vmem:[#allocation30_spill] sm:$0xff] }
 0x142   :  { %16313 = vst [vmem:[#allocation24_spill] sm:$0xff] %v9746_v53  ;;  %16315 = vst [vmem:[#allocation25_spill] sm:$0xff] %v9750_v28  ;;  %v9762_v1 = vadd.f32 %v8684_v36, %v16320_v54  ;;  %v9766_v37 = vadd.f32 %v8684_v36, %v16322_v16  ;;  %v16324_v53 = vld [vmem:[#allocation31_spill] sm:$0xff]  ;;  %v16326_v28 = vld [vmem:[#allocation32_spill] sm:$0xff] }
 0x143   :  { %16317 = vst [vmem:[#allocation177_spill] sm:$0xff] %v9754_v59  ;;  %16319 = vst [vmem:[#allocation179_spill] sm:$0xff] %v9758_v31  ;;  %v9770_v5 = vadd.f32 %v8684_v36, %v16324_v53  ;;  %v9774_v2 = vadd.f32 %v8684_v36, %v16326_v28  ;;  %v16328_v59 = vld [vmem:[#allocation33_spill] sm:$0xff]  ;;  %v16330_v31 = vld [vmem:[#allocation34_spill] sm:$0xff] }
 0x144   :  { %16321 = vst [vmem:[#allocation28_spill] sm:$0xff] %v9762_v1  ;;  %16323 = vst [vmem:[#allocation29_spill] sm:$0xff] %v9766_v37  ;;  %v9778_v14 = vadd.f32 %v8684_v36, %v16328_v59  ;;  %v9782_v54 = vadd.f32 %v8684_v36, %v16330_v31  ;;  %v16332_v1 = vld [vmem:[#allocation35_spill] sm:$0xff]  ;;  %v16334_v37 = vld [vmem:[#allocation36_spill] sm:$0xff] }
 0x145   :  { %16325 = vst [vmem:[#allocation30_spill] sm:$0xff] %v9770_v5  ;;  %16327 = vst [vmem:[#allocation31_spill] sm:$0xff] %v9774_v2  ;;  %v9786_v16 = vadd.f32 %v8684_v36, %v16332_v1  ;;  %v9790_v53 = vadd.f32 %v8684_v36, %v16334_v37  ;;  %v16336_v5 = vld [vmem:[#allocation37_spill] sm:$0xff]  ;;  %v16338_v2 = vld [vmem:[#allocation38_spill] sm:$0xff] }
 0x146   :  { %16329 = vst [vmem:[#allocation32_spill] sm:$0xff] %v9778_v14  ;;  %16331 = vst [vmem:[#allocation33_spill] sm:$0xff] %v9782_v54  ;;  %v9794_v28 = vadd.f32 %v8684_v36, %v16336_v5  ;;  %v9798_v59 = vadd.f32 %v8684_v36, %v16338_v2  ;;  %v16340_v14 = vld [vmem:[#allocation39_spill] sm:$0xff]  ;;  %v16342_v54 = vld [vmem:[#allocation40_spill] sm:$0xff] }
 0x147   :  { %16333 = vst [vmem:[#allocation34_spill] sm:$0xff] %v9786_v16  ;;  %16335 = vst [vmem:[#allocation35_spill] sm:$0xff] %v9790_v53  ;;  %v9802_v31 = vadd.f32 %v8684_v36, %v16340_v14  ;;  %v9806_v1 = vadd.f32 %v8684_v36, %v16342_v54  ;;  %v16344_v16 = vld [vmem:[#allocation41_spill] sm:$0xff]  ;;  %v16346_v53 = vld [vmem:[#allocation42_spill] sm:$0xff] }
 0x148   :  { %16337 = vst [vmem:[#allocation36_spill] sm:$0xff] %v9794_v28  ;;  %16339 = vst [vmem:[#allocation37_spill] sm:$0xff] %v9798_v59  ;;  %v9810_v37 = vadd.f32 %v8684_v36, %v16344_v16  ;;  %v9814_v5 = vadd.f32 %v8684_v36, %v16346_v53  ;;  %v16348_v28 = vld [vmem:[#allocation43_spill] sm:$0xff]  ;;  %v16350_v59 = vld [vmem:[#allocation44_spill] sm:$0xff] }
 0x149   :  { %16341 = vst [vmem:[#allocation38_spill] sm:$0xff] %v9802_v31  ;;  %16343 = vst [vmem:[#allocation39_spill] sm:$0xff] %v9806_v1  ;;  %v9818_v2 = vadd.f32 %v8684_v36, %v16348_v28  ;;  %v9822_v14 = vadd.f32 %v8684_v36, %v16350_v59  ;;  %v16352_v31 = vld [vmem:[#allocation45_spill] sm:$0xff]  ;;  %v16354_v1 = vld [vmem:[#allocation46_spill] sm:$0xff] }
 0x14a   :  { %16345 = vst [vmem:[#allocation40_spill] sm:$0xff] %v9810_v37  ;;  %16347 = vst [vmem:[#allocation41_spill] sm:$0xff] %v9814_v5  ;;  %v9826_v54 = vadd.f32 %v8684_v36, %v16352_v31  ;;  %v9830_v16 = vadd.f32 %v8684_v36, %v16354_v1  ;;  %v16356_v37 = vld [vmem:[#allocation47_spill] sm:$0xff]  ;;  %v16358_v5 = vld [vmem:[#allocation48_spill] sm:$0xff] }
 0x14b   :  { %16349 = vst [vmem:[#allocation42_spill] sm:$0xff] %v9818_v2  ;;  %16351 = vst [vmem:[#allocation43_spill] sm:$0xff] %v9822_v14  ;;  %v9834_v53 = vadd.f32 %v8684_v36, %v16356_v37  ;;  %v9838_v28 = vadd.f32 %v8684_v36, %v16358_v5  ;;  %v16360_v2 = vld [vmem:[#allocation49_spill] sm:$0xff]  ;;  %v16362_v14 = vld [vmem:[#allocation50_spill] sm:$0xff] }
 0x14c   :  { %16353 = vst [vmem:[#allocation44_spill] sm:$0xff] %v9826_v54  ;;  %16355 = vst [vmem:[#allocation45_spill] sm:$0xff] %v9830_v16  ;;  %v9842_v59 = vadd.f32 %v8684_v36, %v16360_v2  ;;  %v9846_v31 = vadd.f32 %v8684_v36, %v16362_v14  ;;  %v16364_v54 = vld [vmem:[#allocation51_spill] sm:$0xff]  ;;  %v16366_v16 = vld [vmem:[#allocation52_spill] sm:$0xff] }
 0x14d   :  { %16357 = vst [vmem:[#allocation46_spill] sm:$0xff] %v9834_v53  ;;  %16359 = vst [vmem:[#allocation47_spill] sm:$0xff] %v9838_v28  ;;  %v9850_v1 = vadd.f32 %v8684_v36, %v16364_v54  ;;  %v9854_v37 = vadd.f32 %v8684_v36, %v16366_v16  ;;  %v16368_v53 = vld [vmem:[#allocation53_spill] sm:$0xff]  ;;  %v16370_v28 = vld [vmem:[#allocation54_spill] sm:$0xff] }
 0x14e   :  { %16361 = vst [vmem:[#allocation48_spill] sm:$0xff] %v9842_v59  ;;  %16363 = vst [vmem:[#allocation49_spill] sm:$0xff] %v9846_v31  ;;  %v9858_v5 = vadd.f32 %v8684_v36, %v16368_v53  ;;  %v9862_v2 = vadd.f32 %v8684_v36, %v16370_v28  ;;  %v16372_v59 = vld [vmem:[#allocation55_spill] sm:$0xff]  ;;  %v16374_v31 = vld [vmem:[#allocation56_spill] sm:$0xff] }
 0x14f   :  { %16365 = vst [vmem:[#allocation50_spill] sm:$0xff] %v9850_v1  ;;  %16367 = vst [vmem:[#allocation51_spill] sm:$0xff] %v9854_v37  ;;  %v9866_v14 = vadd.f32 %v8684_v36, %v16372_v59  ;;  %v9870_v54 = vadd.f32 %v8684_v36, %v16374_v31  ;;  %v16376_v1 = vld [vmem:[#allocation57_spill] sm:$0xff]  ;;  %v16378_v37 = vld [vmem:[#allocation58_spill] sm:$0xff] }
 0x150   :  { %16369 = vst [vmem:[#allocation52_spill] sm:$0xff] %v9858_v5  ;;  %16371 = vst [vmem:[#allocation53_spill] sm:$0xff] %v9862_v2  ;;  %v9874_v16 = vadd.f32 %v8684_v36, %v16376_v1  ;;  %v9878_v53 = vadd.f32 %v8684_v36, %v16378_v37  ;;  %v16380_v5 = vld [vmem:[#allocation59_spill] sm:$0xff]  ;;  %v16382_v2 = vld [vmem:[#allocation60_spill] sm:$0xff] }
 0x151   :  { %16373 = vst [vmem:[#allocation54_spill] sm:$0xff] %v9866_v14  ;;  %16375 = vst [vmem:[#allocation55_spill] sm:$0xff] %v9870_v54  ;;  %v9882_v28 = vadd.f32 %v8684_v36, %v16380_v5  ;;  %v9886_v59 = vadd.f32 %v8684_v36, %v16382_v2  ;;  %v16384_v14 = vld [vmem:[#allocation61_spill] sm:$0xff]  ;;  %v16386_v54 = vld [vmem:[#allocation62_spill] sm:$0xff] }
 0x152   :  { %16377 = vst [vmem:[#allocation56_spill] sm:$0xff] %v9874_v16  ;;  %16379 = vst [vmem:[#allocation57_spill] sm:$0xff] %v9878_v53  ;;  %v9890_v31 = vadd.f32 %v8684_v36, %v16384_v14  ;;  %v9894_v1 = vadd.f32 %v8684_v36, %v16386_v54  ;;  %v16388_v16 = vld [vmem:[#allocation63_spill] sm:$0xff]  ;;  %v16390_v53 = vld [vmem:[#allocation64_spill] sm:$0xff] }
 0x153   :  { %16381 = vst [vmem:[#allocation58_spill] sm:$0xff] %v9882_v28  ;;  %16383 = vst [vmem:[#allocation59_spill] sm:$0xff] %v9886_v59  ;;  %v9898_v37 = vadd.f32 %v8684_v36, %v16388_v16  ;;  %v9902_v5 = vadd.f32 %v8684_v36, %v16390_v53  ;;  %v16392_v28 = vld [vmem:[#allocation65_spill] sm:$0xff]  ;;  %v16394_v59 = vld [vmem:[#allocation66_spill] sm:$0xff] }
 0x154   :  { %16385 = vst [vmem:[#allocation60_spill] sm:$0xff] %v9890_v31  ;;  %16387 = vst [vmem:[#allocation61_spill] sm:$0xff] %v9894_v1  ;;  %v9906_v2 = vadd.f32 %v8684_v36, %v16392_v28  ;;  %v9910_v14 = vadd.f32 %v8684_v36, %v16394_v59  ;;  %v16396_v31 = vld [vmem:[#allocation67_spill] sm:$0xff]  ;;  %v16398_v1 = vld [vmem:[#allocation68_spill] sm:$0xff] }
 0x155   :  { %16389 = vst [vmem:[#allocation62_spill] sm:$0xff] %v9898_v37  ;;  %16391 = vst [vmem:[#allocation63_spill] sm:$0xff] %v9902_v5  ;;  %v9914_v54 = vadd.f32 %v8684_v36, %v16396_v31  ;;  %v9918_v16 = vadd.f32 %v8684_v36, %v16398_v1  ;;  %v16400_v37 = vld [vmem:[#allocation69_spill] sm:$0xff]  ;;  %v16402_v5 = vld [vmem:[#allocation70_spill] sm:$0xff] }
 0x156   :  { %16393 = vst [vmem:[#allocation64_spill] sm:$0xff] %v9906_v2  ;;  %16395 = vst [vmem:[#allocation65_spill] sm:$0xff] %v9910_v14  ;;  %v9922_v53 = vadd.f32 %v8684_v36, %v16400_v37  ;;  %v9926_v28 = vadd.f32 %v8684_v36, %v16402_v5  ;;  %v16404_v2 = vld [vmem:[#allocation71_spill] sm:$0xff]  ;;  %v16406_v14 = vld [vmem:[#allocation72_spill] sm:$0xff] }
 0x157   :  { %16397 = vst [vmem:[#allocation66_spill] sm:$0xff] %v9914_v54  ;;  %16399 = vst [vmem:[#allocation67_spill] sm:$0xff] %v9918_v16  ;;  %v9930_v59 = vadd.f32 %v8684_v36, %v16404_v2  ;;  %v9934_v31 = vadd.f32 %v8684_v36, %v16406_v14  ;;  %v16408_v54 = vld [vmem:[#allocation73_spill] sm:$0xff]  ;;  %v16410_v16 = vld [vmem:[#allocation74_spill] sm:$0xff] }
 0x158   :  { %16401 = vst [vmem:[#allocation68_spill] sm:$0xff] %v9922_v53  ;;  %16403 = vst [vmem:[#allocation69_spill] sm:$0xff] %v9926_v28  ;;  %v9938_v1 = vadd.f32 %v8684_v36, %v16408_v54  ;;  %v9942_v37 = vadd.f32 %v8684_v36, %v16410_v16  ;;  %v16412_v53 = vld [vmem:[#allocation75_spill] sm:$0xff]  ;;  %v16414_v28 = vld [vmem:[#allocation76_spill] sm:$0xff] }
 0x159   :  { %16405 = vst [vmem:[#allocation70_spill] sm:$0xff] %v9930_v59  ;;  %16407 = vst [vmem:[#allocation71_spill] sm:$0xff] %v9934_v31  ;;  %v9946_v5 = vadd.f32 %v8684_v36, %v16412_v53  ;;  %v9950_v2 = vadd.f32 %v8684_v36, %v16414_v28  ;;  %v16416_v59 = vld [vmem:[#allocation77_spill] sm:$0xff]  ;;  %v16418_v31 = vld [vmem:[#allocation78_spill] sm:$0xff] }
 0x15a   :  { %16409 = vst [vmem:[#allocation72_spill] sm:$0xff] %v9938_v1  ;;  %16411 = vst [vmem:[#allocation73_spill] sm:$0xff] %v9942_v37  ;;  %v9954_v14 = vadd.f32 %v8684_v36, %v16416_v59  ;;  %v9958_v54 = vadd.f32 %v8684_v36, %v16418_v31  ;;  %v16420_v1 = vld [vmem:[#allocation79_spill] sm:$0xff]  ;;  %v16422_v37 = vld [vmem:[#allocation80_spill] sm:$0xff] }
 0x15b   :  { %16413 = vst [vmem:[#allocation74_spill] sm:$0xff] %v9946_v5  ;;  %16415 = vst [vmem:[#allocation75_spill] sm:$0xff] %v9950_v2  ;;  %v9962_v16 = vadd.f32 %v8684_v36, %v16420_v1  ;;  %v9966_v53 = vadd.f32 %v8684_v36, %v16422_v37  ;;  %v16424_v5 = vld [vmem:[#allocation81_spill] sm:$0xff]  ;;  %v16426_v2 = vld [vmem:[#allocation82_spill] sm:$0xff]  ;;  %v9982_v1 = vadd.f32 %v8684_v36, %v9474_v25 }
 0x15c   :  { %16417 = vst [vmem:[#allocation76_spill] sm:$0xff] %v9954_v14  ;;  %16419 = vst [vmem:[#allocation77_spill] sm:$0xff] %v9958_v54  ;;  %v9970_v28 = vadd.f32 %v8684_v36, %v16424_v5  ;;  %v9974_v59 = vadd.f32 %v8684_v36, %v16426_v2  ;;  %v16428_v14 = vld [vmem:[#allocation83_spill] sm:$0xff]  ;;  %v16431_v37 = vld [vmem:[#allocation10_spill] sm:$0xff] }
 0x15d   :  { %16421 = vst [vmem:[#allocation78_spill] sm:$0xff] %v9962_v16  ;;  %16423 = vst [vmem:[#allocation79_spill] sm:$0xff] %v9966_v53  ;;  %v9978_v31 = vadd.f32 %v8684_v36, %v16428_v14  ;;  %v9984_v16 = vld [vmem:[#allocation2 + $0xb0] sm:$0xff]  ;;  %v9994_v14 = vld [vmem:[#allocation2 + $0xb8] sm:$0xff]  ;;  %v16436_v5 = vrot.slane %v16435_v58, %v16431_v37 }
 0x15e   :  { %16425 = vst [vmem:[#allocation80_spill] sm:$0xff] %v9970_v28  ;;  %16427 = vst [vmem:[#allocation81_spill] sm:$0xff] %v9974_v59  ;;  %v16432_v54 = vld [vmem:[#allocation163_spill] sm:$0xff] }
 0x15f   :  { %16429 = vst [vmem:[#allocation82_spill] sm:$0xff] %v9978_v31  ;;  %16430 = vst [vmem:[#allocation83_spill] sm:$0xff] %v9982_v1  ;;  %v16433_v28 = vld [vmem:[#allocation167_spill] sm:$0xff]  ;;  %v10004_v1 = vld [vmem:[#allocation2 + $0xc0] sm:$0x3f]  ;;  %v10296_v24 = vrot.slane %v16436_v5, %v16431_v37  ;;  %v16437_v40 = vrot.slane %v16435_v58, %v16432_v54 }
 0x160   :  { %v16434_v59 = vld [vmem:[#allocation171_spill] sm:$0xff]  ;;  %v10012_v31 = vld [vmem:[#allocation2 + $0xc6] sm:$0xff]  ;;  %v16438_v36 = vrot.slane %v16435_v58, %v16433_v28  ;;  %v16440_v5 = vld [vmem:[#allocation180_spill] sm:$0xff] }
 0x161   :  { %v10302_v2 = vrot.slane %v16437_v40, %v16431_v37  ;;  %v16439_v53 = vrot.slane %v16435_v58, %v16434_v59  ;;  %v16441_v23 = vrot.slane %v16440_v5, %v16431_v37  ;;  %v16442_v40 = vrot.slane %v16440_v5, %v16432_v54 }
 0x162   :  { %v10308_v25 = vrot.slane %v16438_v36, %v16431_v37  ;;  %v16443_v36 = vrot.slane %v16440_v5, %v16433_v28  ;;  %v16444_v58 = vrot.slane %v16440_v5, %v16434_v59  ;;  %v16449_v5 = vld [vmem:[#allocation182_spill] sm:$0xff] }
 0x163   :  { %v10314_v63 = vrot.slane %v16439_v53, %v16431_v37  ;;  %v10320_v57 = vrot.slane %v16441_v23, %v16431_v37  ;;  %v10326_v0 = vrot.slane %v16442_v40, %v16431_v37  ;;  %v16445_v23 = vld [vmem:[#allocation181_spill] sm:$0xff] }
 0x164   :  { %v10332_v8 = vrot.slane %v16443_v36, %v16431_v37  ;;  %v10338_v53 = vrot.slane %v16444_v58, %v16431_v37  ;;  %v16446_v55 = vrot.slane %v16445_v23, %v16431_v37  ;;  %v16447_v40 = vrot.slane %v16445_v23, %v16432_v54 }
 0x165   :  { %v16448_v36 = vrot.slane %v16445_v23, %v16433_v28  ;;  %v16450_v58 = vrot.slane %v16449_v5, %v16431_v37  ;;  %v16453_v23 = vrot.slane %v16449_v5, %v16434_v59 }
 0x166   :  { %v10344_v10 = vrot.slane %v16446_v55, %v16431_v37  ;;  %v10350_v43 = vrot.slane %v16447_v40, %v16431_v37  ;;  %v16451_v55 = vrot.slane %v16449_v5, %v16432_v54  ;;  %v16452_v40 = vrot.slane %v16449_v5, %v16433_v28 }
 0x167   :  { %v10356_v47 = vrot.slane %v16448_v36, %v16431_v37  ;;  %v10362_v49 = vrot.slane %v16450_v58, %v16431_v37  ;;  %v10380_v36 = vrot.slane %v16453_v23, %v16431_v37  ;;  %v16454_v58 = vld [vmem:[#allocation183_spill] sm:$0xff] }
 0x168   :  { %v10368_v26 = vrot.slane %v16451_v55, %v16431_v37  ;;  %v10374_v27 = vrot.slane %v16452_v40, %v16431_v37  ;;  %v16455_v39 = vrot.slane %v16454_v58, %v16431_v37  ;;  %v16456_v55 = vrot.slane %v16454_v58, %v16432_v54 }
 0x169   :  { %v16457_v40 = vrot.slane %v16454_v58, %v16433_v28  ;;  %v16459_v5 = vrot.slane %v16454_v58, %v16434_v59  ;;  %v16468_v58 = vld [vmem:[#allocation185_spill] sm:$0xff] }
 0x16a   :  { %v10386_v13 = vrot.slane %v16455_v39, %v16431_v37  ;;  %v10392_v22 = vrot.slane %v16456_v55, %v16431_v37  ;;  %v16461_v39 = vld [vmem:[#allocation184_spill] sm:$0xff] }
 0x16b   :  { %v10398_v12 = vrot.slane %v16457_v40, %v16431_v37  ;;  %v10404_v23 = vrot.slane %v16459_v5, %v16431_v37  ;;  %v16462_v48 = vrot.slane %v16461_v39, %v16431_v37  ;;  %v16464_v55 = vrot.slane %v16461_v39, %v16432_v54 }
 0x16c   :  { %v16466_v40 = vrot.slane %v16461_v39, %v16433_v28  ;;  %v16469_v5 = vrot.slane %v16468_v58, %v16431_v37  ;;  %v16475_v39 = vrot.slane %v16468_v58, %v16434_v59 }
 0x16d   :  { %16458 = vst [vmem:[#allocation10_spill] sm:$0xff] %v10398_v12  ;;  %16460 = vst [vmem:[#allocation163_spill] sm:$0xff] %v10404_v23  ;;  %v10410_v51 = vrot.slane %v16462_v48, %v16431_v37  ;;  %v10416_v46 = vrot.slane %v16464_v55, %v16431_v37  ;;  %v16471_v48 = vrot.slane %v16468_v58, %v16432_v54 }
 0x16e   :  { %v10422_v12 = vrot.slane %v16466_v40, %v16431_v37  ;;  %v10428_v23 = vrot.slane %v16469_v5, %v16431_v37  ;;  %v16473_v55 = vrot.slane %v16468_v58, %v16433_v28  ;;  %v10446_v40 = vrot.slane %v16475_v39, %v16431_v37  ;;  %v16477_v5 = vld [vmem:[#allocation186_spill] sm:$0xff] }
 0x16f   :  { %16463 = vst [vmem:[#allocation167_spill] sm:$0xff] %v10410_v51  ;;  %16465 = vst [vmem:[#allocation171_spill] sm:$0xff] %v10416_v46  ;;  %v10434_v51 = vrot.slane %v16471_v48, %v16431_v37  ;;  %v16480_v48 = vrot.slane %v16477_v5, %v16432_v54  ;;  %v16484_v58 = vrot.slane %v16477_v5, %v16434_v59 }
 0x170   :  { %16467 = vst [vmem:[#allocation178_spill] sm:$0xff] %v10422_v12  ;;  %16470 = vst [vmem:[#allocation180_spill] sm:$0xff] %v10428_v23  ;;  %v10440_v46 = vrot.slane %v16473_v55, %v16431_v37  ;;  %v16478_v23 = vrot.slane %v16477_v5, %v16431_v37  ;;  %v16482_v55 = vrot.slane %v16477_v5, %v16433_v28  ;;  %v16493_v5 = vld [vmem:[#allocation188_spill] sm:$0xff] }
 0x171   :  { %16472 = vst [vmem:[#allocation181_spill] sm:$0xff] %v10434_v51  ;;  %16476 = vst [vmem:[#allocation183_spill] sm:$0xff] %v10446_v40  ;;  %v10458_v51 = vrot.slane %v16480_v48, %v16431_v37  ;;  %v10470_v39 = vrot.slane %v16484_v58, %v16431_v37  ;;  %v16494_v58 = vrot.slane %v16493_v5, %v16431_v37 }
 0x172   :  { %16474 = vst [vmem:[#allocation182_spill] sm:$0xff] %v10440_v46  ;;  %v10452_v12 = vrot.slane %v16478_v23, %v16431_v37  ;;  %v10464_v46 = vrot.slane %v16482_v55, %v16431_v37  ;;  %v16486_v23 = vld [vmem:[#allocation187_spill] sm:$0xff] }
 0x173   :  { %16481 = vst [vmem:[#allocation185_spill] sm:$0xff] %v10458_v51  ;;  %16485 = vst [vmem:[#allocation242_spill] sm:$0xff] %v10470_v39  ;;  %v16489_v48 = vrot.slane %v16486_v23, %v16432_v54  ;;  %v16491_v55 = vrot.slane %v16486_v23, %v16433_v28  ;;  %v10494_v39 = vrot.slane %v16494_v58, %v16431_v37  ;;  %v16502_v58 = vld [vmem:[#allocation189_spill] sm:$0xff] }
 0x174   :  { %16479 = vst [vmem:[#allocation184_spill] sm:$0xff] %v10452_v12  ;;  %16483 = vst [vmem:[#allocation186_spill] sm:$0xff] %v10464_v46  ;;  %v16487_v12 = vrot.slane %v16486_v23, %v16431_v37  ;;  %v16500_v23 = vrot.slane %v16493_v5, %v16434_v59 }
 0x175   :  { %v10482_v51 = vrot.slane %v16489_v48, %v16431_v37  ;;  %v10488_v46 = vrot.slane %v16491_v55, %v16431_v37  ;;  %16495 = vst [vmem:[#allocation188_spill] sm:$0xff] %v10494_v39  ;;  %v16498_v48 = vrot.slane %v16493_v5, %v16433_v28  ;;  %v16503_v39 = vrot.slane %v16502_v58, %v16431_v37 }
 0x176   :  { %v10476_v40 = vrot.slane %v16487_v12, %v16431_v37  ;;  %v16496_v12 = vrot.slane %v16493_v5, %v16432_v54  ;;  %v10512_v55 = vrot.slane %v16500_v23, %v16431_v37  ;;  %v16509_v5 = vrot.slane %v16502_v58, %v16434_v59 }
 0x177   :  { %16490 = vst [vmem:[#allocation243_spill] sm:$0xff] %v10482_v51  ;;  %16492 = vst [vmem:[#allocation244_spill] sm:$0xff] %v10488_v46  ;;  %v10506_v51 = vrot.slane %v16498_v48, %v16431_v37  ;;  %v10518_v46 = vrot.slane %v16503_v39, %v16431_v37  ;;  %v16507_v48 = vrot.slane %v16502_v58, %v16433_v28  ;;  %v16511_v39 = vld [vmem:[#allocation190_spill] sm:$0xff] }
 0x178   :  { %16488 = vst [vmem:[#allocation187_spill] sm:$0xff] %v10476_v40  ;;  %v10500_v40 = vrot.slane %v16496_v12, %v16431_v37  ;;  %16501 = vst [vmem:[#allocation247_spill] sm:$0xff] %v10512_v55  ;;  %v16505_v12 = vrot.slane %v16502_v58, %v16432_v54  ;;  %v10536_v23 = vrot.slane %v16509_v5, %v16431_v37  ;;  %v16518_v58 = vld [vmem:[#allocation191_spill] sm:$0xff] }
 0x179   :  { %16499 = vst [vmem:[#allocation246_spill] sm:$0xff] %v10506_v51  ;;  %16504 = vst [vmem:[#allocation189_spill] sm:$0xff] %v10518_v46  ;;  %v10530_v51 = vrot.slane %v16507_v48, %v16431_v37  ;;  %v16512_v46 = vrot.slane %v16511_v39, %v16431_v37  ;;  %v16516_v48 = vrot.slane %v16511_v39, %v16433_v28 }
 0x17a   :  { %16497 = vst [vmem:[#allocation245_spill] sm:$0xff] %v10500_v40  ;;  %v10524_v40 = vrot.slane %v16505_v12, %v16431_v37  ;;  %16510 = vst [vmem:[#allocation250_spill] sm:$0xff] %v10536_v23  ;;  %v16514_v12 = vrot.slane %v16511_v39, %v16432_v54  ;;  %v16519_v5 = vrot.slane %v16518_v58, %v16431_v37 }
 0x17b   :  { %16508 = vst [vmem:[#allocation249_spill] sm:$0xff] %v10530_v51  ;;  %v10542_v55 = vrot.slane %v16512_v46, %v16431_v37  ;;  %v10554_v51 = vrot.slane %v16516_v48, %v16431_v37  ;;  %v16521_v46 = vrot.slane %v16518_v58, %v16432_v54  ;;  %v16525_v39 = vrot.slane %v16518_v58, %v16434_v59 }
 0x17c   :  { %16506 = vst [vmem:[#allocation248_spill] sm:$0xff] %v10524_v40  ;;  %v10548_v40 = vrot.slane %v16514_v12, %v16431_v37  ;;  %v10560_v23 = vrot.slane %v16519_v5, %v16431_v37  ;;  %v16523_v12 = vrot.slane %v16518_v58, %v16433_v28  ;;  %v16527_v5 = vld [vmem:[#allocation192_spill] sm:$0xff] }
 0x17d   :  { %16513 = vst [vmem:[#allocation190_spill] sm:$0xff] %v10542_v55  ;;  %16517 = vst [vmem:[#allocation252_spill] sm:$0xff] %v10554_v51  ;;  %v10566_v55 = vrot.slane %v16521_v46, %v16431_v37  ;;  %v10578_v48 = vrot.slane %v16525_v39, %v16431_v37  ;;  %v16530_v46 = vrot.slane %v16527_v5, %v16432_v54 }
 0x17e   :  { %16515 = vst [vmem:[#allocation251_spill] sm:$0xff] %v10548_v40  ;;  %16520 = vst [vmem:[#allocation191_spill] sm:$0xff] %v10560_v23  ;;  %v10572_v40 = vrot.slane %v16523_v12, %v16431_v37  ;;  %v16528_v23 = vrot.slane %v16527_v5, %v16431_v37  ;;  %v16532_v12 = vrot.slane %v16527_v5, %v16433_v28 }
 0x17f   :  { %16522 = vst [vmem:[#allocation253_spill] sm:$0xff] %v10566_v55  ;;  %16526 = vst [vmem:[#allocation255_spill] sm:$0xff] %v10578_v48  ;;  %v10590_v55 = vrot.slane %v16530_v46, %v16431_v37  ;;  %v16534_v58 = vrot.slane %v16527_v5, %v16434_v59  ;;  %v16543_v5 = vld [vmem:[#allocation194_spill] sm:$0xff] }
 0x180   :  { %16524 = vst [vmem:[#allocation254_spill] sm:$0xff] %v10572_v40  ;;  %v10584_v51 = vrot.slane %v16528_v23, %v16431_v37  ;;  %v10596_v40 = vrot.slane %v16532_v12, %v16431_v37  ;;  %v16536_v23 = vld [vmem:[#allocation193_spill] sm:$0xff] }
 0x181   :  { %16531 = vst [vmem:[#allocation256_spill] sm:$0xff] %v10590_v55  ;;  %v10602_v39 = vrot.slane %v16534_v58, %v16431_v37  ;;  %v16539_v46 = vrot.slane %v16536_v23, %v16432_v54  ;;  %v16541_v12 = vrot.slane %v16536_v23, %v16433_v28  ;;  %v16544_v58 = vrot.slane %v16543_v5, %v16431_v37 }
 0x182   :  { %16529 = vst [vmem:[#allocation192_spill] sm:$0xff] %v10584_v51  ;;  %16533 = vst [vmem:[#allocation257_spill] sm:$0xff] %v10596_v40  ;;  %v16537_v51 = vrot.slane %v16536_v23, %v16431_v37  ;;  %v16550_v23 = vrot.slane %v16543_v5, %v16434_v59 }
 0x183   :  { %16535 = vst [vmem:[#allocation258_spill] sm:$0xff] %v10602_v39  ;;  %v10614_v55 = vrot.slane %v16539_v46, %v16431_v37  ;;  %v10620_v40 = vrot.slane %v16541_v12, %v16431_v37  ;;  %v10626_v39 = vrot.slane %v16544_v58, %v16431_v37  ;;  %v16548_v46 = vrot.slane %v16543_v5, %v16433_v28  ;;  %v16552_v58 = vld [vmem:[#allocation195_spill] sm:$0xff] }
 0x184   :  { %v10608_v48 = vrot.slane %v16537_v51, %v16431_v37  ;;  %v16546_v51 = vrot.slane %v16543_v5, %v16432_v54  ;;  %v10644_v12 = vrot.slane %v16550_v23, %v16431_v37  ;;  %v16559_v5 = vrot.slane %v16552_v58, %v16434_v59 }
 0x185   :  { %16540 = vst [vmem:[#allocation259_spill] sm:$0xff] %v10614_v55  ;;  %16542 = vst [vmem:[#allocation260_spill] sm:$0xff] %v10620_v40  ;;  %v10638_v55 = vrot.slane %v16548_v46, %v16431_v37  ;;  %v16557_v46 = vrot.slane %v16552_v58, %v16433_v28 }
 0x186   :  { %16538 = vst [vmem:[#allocation193_spill] sm:$0xff] %v10608_v48  ;;  %16545 = vst [vmem:[#allocation194_spill] sm:$0xff] %v10626_v39  ;;  %v10632_v48 = vrot.slane %v16546_v51, %v16431_v37  ;;  %v16553_v39 = vrot.slane %v16552_v58, %v16431_v37  ;;  %v16555_v51 = vrot.slane %v16552_v58, %v16432_v54  ;;  %v16568_v58 = vld [vmem:[#allocation197_spill] sm:$0xff] }
 0x187   :  { %16549 = vst [vmem:[#allocation262_spill] sm:$0xff] %v10638_v55  ;;  %16551 = vst [vmem:[#allocation263_spill] sm:$0xff] %v10644_v12  ;;  %v10662_v55 = vrot.slane %v16557_v46, %v16431_v37  ;;  %v10668_v23 = vrot.slane %v16559_v5, %v16431_v37  ;;  %v16569_v5 = vrot.slane %v16568_v58, %v16431_v37 }
 0x188   :  { %16547 = vst [vmem:[#allocation261_spill] sm:$0xff] %v10632_v48  ;;  %v10650_v40 = vrot.slane %v16553_v39, %v16431_v37  ;;  %v10656_v48 = vrot.slane %v16555_v51, %v16431_v37  ;;  %v16561_v39 = vld [vmem:[#allocation196_spill] sm:$0xff] }
 0x189   :  { %16558 = vst [vmem:[#allocation265_spill] sm:$0xff] %v10662_v55  ;;  %16560 = vst [vmem:[#allocation266_spill] sm:$0xff] %v10668_v23  ;;  %v16564_v51 = vrot.slane %v16561_v39, %v16432_v54  ;;  %v16566_v46 = vrot.slane %v16561_v39, %v16433_v28  ;;  %v10692_v23 = vrot.slane %v16569_v5, %v16431_v37  ;;  %v16577_v5 = vld [vmem:[#allocation198_spill] sm:$0xff] }
 0x18a   :  { %16554 = vst [vmem:[#allocation195_spill] sm:$0xff] %v10650_v40  ;;  %16556 = vst [vmem:[#allocation264_spill] sm:$0xff] %v10656_v48  ;;  %v16562_v40 = vrot.slane %v16561_v39, %v16431_v37  ;;  %v16575_v39 = vrot.slane %v16568_v58, %v16434_v59 }
 0x18b   :  { %v10680_v48 = vrot.slane %v16564_v51, %v16431_v37  ;;  %v10686_v55 = vrot.slane %v16566_v46, %v16431_v37  ;;  %16570 = vst [vmem:[#allocation197_spill] sm:$0xff] %v10692_v23  ;;  %v16573_v51 = vrot.slane %v16568_v58, %v16433_v28  ;;  %v16578_v23 = vrot.slane %v16577_v5, %v16431_v37 }
 0x18c   :  { %v10674_v12 = vrot.slane %v16562_v40, %v16431_v37  ;;  %v16571_v40 = vrot.slane %v16568_v58, %v16432_v54  ;;  %v10710_v46 = vrot.slane %v16575_v39, %v16431_v37  ;;  %v16584_v58 = vrot.slane %v16577_v5, %v16434_v59 }
 0x18d   :  { %16565 = vst [vmem:[#allocation267_spill] sm:$0xff] %v10680_v48  ;;  %16567 = vst [vmem:[#allocation268_spill] sm:$0xff] %v10686_v55  ;;  %v10704_v48 = vrot.slane %v16573_v51, %v16431_v37  ;;  %v10716_v55 = vrot.slane %v16578_v23, %v16431_v37  ;;  %v16582_v51 = vrot.slane %v16577_v5, %v16433_v28  ;;  %v16586_v23 = vld [vmem:[#allocation199_spill] sm:$0xff] }
 0x18e   :  { %16563 = vst [vmem:[#allocation196_spill] sm:$0xff] %v10674_v12  ;;  %v10698_v12 = vrot.slane %v16571_v40, %v16431_v37  ;;  %16576 = vst [vmem:[#allocation271_spill] sm:$0xff] %v10710_v46  ;;  %v16580_v40 = vrot.slane %v16577_v5, %v16432_v54  ;;  %v10734_v39 = vrot.slane %v16584_v58, %v16431_v37  ;;  %v16593_v5 = vld [vmem:[#allocation200_spill] sm:$0xff] }
 0x18f   :  { %16574 = vst [vmem:[#allocation270_spill] sm:$0xff] %v10704_v48  ;;  %16579 = vst [vmem:[#allocation198_spill] sm:$0xff] %v10716_v55  ;;  %v10728_v48 = vrot.slane %v16582_v51, %v16431_v37  ;;  %v16587_v55 = vrot.slane %v16586_v23, %v16431_v37  ;;  %v16591_v51 = vrot.slane %v16586_v23, %v16433_v28 }
 0x190   :  { %16572 = vst [vmem:[#allocation269_spill] sm:$0xff] %v10698_v12  ;;  %v10722_v12 = vrot.slane %v16580_v40, %v16431_v37  ;;  %16585 = vst [vmem:[#allocation274_spill] sm:$0xff] %v10734_v39  ;;  %v16589_v40 = vrot.slane %v16586_v23, %v16432_v54  ;;  %v16594_v58 = vrot.slane %v16593_v5, %v16431_v37 }
 0x191   :  { %16583 = vst [vmem:[#allocation273_spill] sm:$0xff] %v10728_v48  ;;  %v10740_v46 = vrot.slane %v16587_v55, %v16431_v37  ;;  %v10752_v48 = vrot.slane %v16591_v51, %v16431_v37  ;;  %v16596_v55 = vrot.slane %v16593_v5, %v16432_v54  ;;  %v16600_v23 = vrot.slane %v16593_v5, %v16434_v59 }
 0x192   :  { %16581 = vst [vmem:[#allocation272_spill] sm:$0xff] %v10722_v12  ;;  %v10746_v12 = vrot.slane %v16589_v40, %v16431_v37  ;;  %v10758_v39 = vrot.slane %v16594_v58, %v16431_v37  ;;  %v16598_v40 = vrot.slane %v16593_v5, %v16433_v28  ;;  %v16602_v58 = vld [vmem:[#allocation201_spill] sm:$0xff] }
 0x193   :  { %16588 = vst [vmem:[#allocation199_spill] sm:$0xff] %v10740_v46  ;;  %16592 = vst [vmem:[#allocation276_spill] sm:$0xff] %v10752_v48  ;;  %v10764_v46 = vrot.slane %v16596_v55, %v16431_v37  ;;  %v10776_v51 = vrot.slane %v16600_v23, %v16431_v37  ;;  %v16605_v55 = vrot.slane %v16602_v58, %v16432_v54 }
 0x194   :  { %16590 = vst [vmem:[#allocation275_spill] sm:$0xff] %v10746_v12  ;;  %16595 = vst [vmem:[#allocation200_spill] sm:$0xff] %v10758_v39  ;;  %v10770_v12 = vrot.slane %v16598_v40, %v16431_v37  ;;  %v16603_v39 = vrot.slane %v16602_v58, %v16431_v37  ;;  %v16607_v40 = vrot.slane %v16602_v58, %v16433_v28 }
 0x195   :  { %16597 = vst [vmem:[#allocation277_spill] sm:$0xff] %v10764_v46  ;;  %16601 = vst [vmem:[#allocation279_spill] sm:$0xff] %v10776_v51  ;;  %v10788_v46 = vrot.slane %v16605_v55, %v16431_v37  ;;  %v16609_v5 = vrot.slane %v16602_v58, %v16434_v59  ;;  %v16618_v58 = vrot.slane %v9984_v16, %v16431_v37 }
 0x196   :  { %16599 = vst [vmem:[#allocation278_spill] sm:$0xff] %v10770_v12  ;;  %v10782_v48 = vrot.slane %v16603_v39, %v16431_v37  ;;  %v10794_v12 = vrot.slane %v16607_v40, %v16431_v37  ;;  %v16611_v39 = vld [vmem:[#allocation202_spill] sm:$0xff] }
 0x197   :  { %16606 = vst [vmem:[#allocation280_spill] sm:$0xff] %v10788_v46  ;;  %v10800_v23 = vrot.slane %v16609_v5, %v16431_v37  ;;  %v16614_v55 = vrot.slane %v16611_v39, %v16432_v54  ;;  %v16616_v40 = vrot.slane %v16611_v39, %v16433_v28  ;;  %v10824_v5 = vrot.slane %v16618_v58, %v16431_v37 }
 0x198   :  { %16604 = vst [vmem:[#allocation201_spill] sm:$0xff] %v10782_v48  ;;  %16608 = vst [vmem:[#allocation281_spill] sm:$0xff] %v10794_v12  ;;  %v16612_v48 = vrot.slane %v16611_v39, %v16431_v37  ;;  %v16624_v39 = vrot.slane %v9984_v16, %v16434_v59  ;;  %v16626_v58 = vrot.slane %v9994_v14, %v16431_v37 }
 0x199   :  { %16610 = vst [vmem:[#allocation282_spill] sm:$0xff] %v10800_v23  ;;  %v10812_v46 = vrot.slane %v16614_v55, %v16431_v37  ;;  %v10818_v12 = vrot.slane %v16616_v40, %v16431_v37  ;;  %16619 = vst [vmem:[#allocation285_spill] sm:$0xff] %v10824_v5  ;;  %v16622_v55 = vrot.slane %v9984_v16, %v16433_v28 }
 0x19a   :  { %v10806_v51 = vrot.slane %v16612_v48, %v16431_v37  ;;  %v16620_v48 = vrot.slane %v9984_v16, %v16432_v54  ;;  %v10842_v40 = vrot.slane %v16624_v39, %v16431_v37  ;;  %v10848_v5 = vrot.slane %v16626_v58, %v16431_v37 }
 0x19b   :  { %16615 = vst [vmem:[#allocation283_spill] sm:$0xff] %v10812_v46  ;;  %16617 = vst [vmem:[#allocation284_spill] sm:$0xff] %v10818_v12  ;;  %v10836_v46 = vrot.slane %v16622_v55, %v16431_v37  ;;  %v16630_v55 = vrot.slane %v9994_v14, %v16433_v28  ;;  %v16632_v16 = vrot.slane %v9994_v14, %v16434_v59 }
 0x19c   :  { %16613 = vst [vmem:[#allocation202_spill] sm:$0xff] %v10806_v51  ;;  %v10830_v51 = vrot.slane %v16620_v48, %v16431_v37  ;;  %16625 = vst [vmem:[#allocation288_spill] sm:$0xff] %v10842_v40  ;;  %v16628_v48 = vrot.slane %v9994_v14, %v16432_v54  ;;  %v16634_v58 = vrot.slane %v10004_v1, %v16431_v37 }
 0x19d   :  { %16623 = vst [vmem:[#allocation287_spill] sm:$0xff] %v10836_v46  ;;  %16627 = vst [vmem:[#allocation289_spill] sm:$0xff] %v10848_v5  ;;  %v10860_v46 = vrot.slane %v16630_v55, %v16431_v37  ;;  %v10866_v39 = vrot.slane %v16632_v16, %v16431_v37  ;;  %v16638_v55 = vrot.slane %v10004_v1, %v16433_v28 }
 0x19e   :  { %16621 = vst [vmem:[#allocation286_spill] sm:$0xff] %v10830_v51  ;;  %v10854_v51 = vrot.slane %v16628_v48, %v16431_v37  ;;  %v10872_v5 = vrot.slane %v16634_v58, %v16431_v37  ;;  %v16636_v48 = vrot.slane %v10004_v1, %v16432_v54  ;;  %v16640_v14 = vrot.slane %v10012_v31, %v16431_v37 }
 0x19f   :  { %16631 = vst [vmem:[#allocation291_spill] sm:$0xff] %v10860_v46  ;;  %16633 = vst [vmem:[#allocation292_spill] sm:$0xff] %v10866_v39  ;;  %v10884_v46 = vrot.slane %v16638_v55, %v16431_v37  ;;  %v16642_v58 = vrot.slane %v10012_v31, %v16432_v54  ;;  %v16646_v1 = vrot.slane %v10012_v31, %v16434_v59 }
 0x1a0   :  { %16629 = vst [vmem:[#allocation290_spill] sm:$0xff] %v10854_v51  ;;  %16635 = vst [vmem:[#allocation293_spill] sm:$0xff] %v10872_v5  ;;  %v10878_v51 = vrot.slane %v16636_v48, %v16431_v37  ;;  %v10890_v16 = vrot.slane %v16640_v14, %v16431_v37  ;;  %v16644_v48 = vrot.slane %v10012_v31, %v16433_v28 }
 0x1a1   :  { %16639 = vst [vmem:[#allocation295_spill] sm:$0xff] %v10884_v46  ;;  %v10896_v5 = vrot.slane %v16642_v58, %v16431_v37  ;;  %v10908_v55 = vrot.slane %v16646_v1, %v16431_v37  ;;  %v16648_v14 = vrot.slane %v10022_v3, %v16431_v37  ;;  %v16650_v58 = vrot.slane %v10022_v3, %v16432_v54 }
 0x1a2   :  { %16637 = vst [vmem:[#allocation294_spill] sm:$0xff] %v10878_v51  ;;  %16641 = vst [vmem:[#allocation296_spill] sm:$0xff] %v10890_v16  ;;  %v10902_v51 = vrot.slane %v16644_v48, %v16431_v37  ;;  %v16652_v48 = vrot.slane %v10022_v3, %v16433_v28  ;;  %v16654_v31 = vrot.slane %v10022_v3, %v16434_v59 }
 0x1a3   :  { %16643 = vst [vmem:[#allocation297_spill] sm:$0xff] %v10896_v5  ;;  %16647 = vst [vmem:[#allocation299_spill] sm:$0xff] %v10908_v55  ;;  %v10914_v16 = vrot.slane %v16648_v14, %v16431_v37  ;;  %v10920_v5 = vrot.slane %v16650_v58, %v16431_v37  ;;  %v16656_v14 = vrot.slane %v10032_v6, %v16431_v37 }
 0x1a4   :  { %16645 = vst [vmem:[#allocation298_spill] sm:$0xff] %v10902_v51  ;;  %v10926_v51 = vrot.slane %v16652_v48, %v16431_v37  ;;  %v10932_v1 = vrot.slane %v16654_v31, %v16431_v37  ;;  %v16658_v58 = vrot.slane %v10032_v6, %v16432_v54  ;;  %v16660_v48 = vrot.slane %v10032_v6, %v16433_v28 }
 0x1a5   :  { %16649 = vst [vmem:[#allocation300_spill] sm:$0xff] %v10914_v16  ;;  %16651 = vst [vmem:[#allocation301_spill] sm:$0xff] %v10920_v5  ;;  %v10938_v16 = vrot.slane %v16656_v14, %v16431_v37  ;;  %v16662_v3 = vrot.slane %v10040_v52, %v16431_v37  ;;  %v16664_v14 = vrot.slane %v10040_v52, %v16432_v54 }
 0x1a6   :  { %16653 = vst [vmem:[#allocation302_spill] sm:$0xff] %v10926_v51  ;;  %16655 = vst [vmem:[#allocation303_spill] sm:$0xff] %v10932_v1  ;;  %v10944_v5 = vrot.slane %v16658_v58, %v16431_v37  ;;  %v10950_v51 = vrot.slane %v16660_v48, %v16431_v37  ;;  %v16666_v58 = vrot.slane %v10040_v52, %v16433_v28 }
 0x1a7   :  { %16657 = vst [vmem:[#allocation304_spill] sm:$0xff] %v10938_v16  ;;  %v10956_v31 = vrot.slane %v16662_v3, %v16431_v37  ;;  %v10962_v16 = vrot.slane %v16664_v14, %v16431_v37  ;;  %v16668_v6 = vrot.slane %v10040_v52, %v16434_v59  ;;  %v16670_v3 = vrot.slane %v10050_v60, %v16431_v37 }
 0x1a8   :  { %16659 = vst [vmem:[#allocation305_spill] sm:$0xff] %v10944_v5  ;;  %16661 = vst [vmem:[#allocation306_spill] sm:$0xff] %v10950_v51  ;;  %v10968_v5 = vrot.slane %v16666_v58, %v16431_v37  ;;  %v16672_v14 = vrot.slane %v10050_v60, %v16432_v54  ;;  %v16674_v58 = vrot.slane %v10050_v60, %v16433_v28 }
 0x1a9   :  { %16663 = vst [vmem:[#allocation307_spill] sm:$0xff] %v10956_v31  ;;  %16665 = vst [vmem:[#allocation308_spill] sm:$0xff] %v10962_v16  ;;  %v10974_v48 = vrot.slane %v16668_v6, %v16431_v37  ;;  %v10980_v31 = vrot.slane %v16670_v3, %v16431_v37  ;;  %v16676_v52 = vrot.slane %v10050_v60, %v16434_v59 }
 0x1aa   :  { %16667 = vst [vmem:[#allocation309_spill] sm:$0xff] %v10968_v5  ;;  %v10986_v16 = vrot.slane %v16672_v14, %v16431_v37  ;;  %v10992_v5 = vrot.slane %v16674_v58, %v16431_v37  ;;  %v16678_v3 = vrot.slane %v10060_v61, %v16431_v37  ;;  %v16680_v14 = vrot.slane %v10060_v61, %v16432_v54 }
 0x1ab   :  { %16669 = vst [vmem:[#allocation310_spill] sm:$0xff] %v10974_v48  ;;  %16671 = vst [vmem:[#allocation311_spill] sm:$0xff] %v10980_v31  ;;  %v10998_v6 = vrot.slane %v16676_v52, %v16431_v37  ;;  %v16682_v58 = vrot.slane %v10060_v61, %v16433_v28  ;;  %v16684_v60 = vrot.slane %v10068_v44, %v16431_v37 }
 0x1ac   :  { %16673 = vst [vmem:[#allocation312_spill] sm:$0xff] %v10986_v16  ;;  %16675 = vst [vmem:[#allocation313_spill] sm:$0xff] %v10992_v5  ;;  %v11004_v31 = vrot.slane %v16678_v3, %v16431_v37  ;;  %v11010_v16 = vrot.slane %v16680_v14, %v16431_v37  ;;  %v16686_v3 = vrot.slane %v10068_v44, %v16432_v54 }
 0x1ad   :  { %16677 = vst [vmem:[#allocation314_spill] sm:$0xff] %v10998_v6  ;;  %v11016_v5 = vrot.slane %v16682_v58, %v16431_v37  ;;  %v11022_v52 = vrot.slane %v16684_v60, %v16431_v37  ;;  %v16688_v14 = vrot.slane %v10068_v44, %v16433_v28  ;;  %v16690_v61 = vrot.slane %v10068_v44, %v16434_v59 }
 0x1ae   :  { %16679 = vst [vmem:[#allocation315_spill] sm:$0xff] %v11004_v31  ;;  %16681 = vst [vmem:[#allocation316_spill] sm:$0xff] %v11010_v16  ;;  %v11028_v31 = vrot.slane %v16686_v3, %v16431_v37  ;;  %v16692_v60 = vrot.slane %v10078_v30, %v16431_v37  ;;  %v16694_v3 = vrot.slane %v10078_v30, %v16432_v54 }
 0x1af   :  { %16683 = vst [vmem:[#allocation317_spill] sm:$0xff] %v11016_v5  ;;  %16685 = vst [vmem:[#allocation318_spill] sm:$0xff] %v11022_v52  ;;  %v11034_v16 = vrot.slane %v16688_v14, %v16431_v37  ;;  %v11040_v58 = vrot.slane %v16690_v61, %v16431_v37  ;;  %v16696_v14 = vrot.slane %v10078_v30, %v16433_v28 }
 0x1b0   :  { %16687 = vst [vmem:[#allocation319_spill] sm:$0xff] %v11028_v31  ;;  %v11046_v52 = vrot.slane %v16692_v60, %v16431_v37  ;;  %v11052_v31 = vrot.slane %v16694_v3, %v16431_v37  ;;  %v16697_v44 = vrot.slane %v10078_v30, %v16434_v59  ;;  %v16698_v60 = vrot.slane %v10088_v62, %v16431_v37 }
 0x1b1   :  { %16689 = vst [vmem:[#allocation320_spill] sm:$0xff] %v11034_v16  ;;  %16691 = vst [vmem:[#allocation321_spill] sm:$0xff] %v11040_v58  ;;  %v11058_v16 = vrot.slane %v16696_v14, %v16431_v37  ;;  %v16699_v3 = vrot.slane %v10088_v62, %v16432_v54  ;;  %v16700_v14 = vrot.slane %v10088_v62, %v16433_v28 }
 0x1b2   :  { %16693 = vst [vmem:[#allocation322_spill] sm:$0xff] %v11046_v52  ;;  %16695 = vst [vmem:[#allocation323_spill] sm:$0xff] %v11052_v31  ;;  %v11064_v61 = vrot.slane %v16697_v44, %v16431_v37  ;;  %v11070_v52 = vrot.slane %v16698_v60, %v16431_v37  ;;  %v16701_v30 = vrot.slane %v10096_v32, %v16431_v37 }
 0x1b3   :  { %v11076_v31 = vrot.slane %v16699_v3, %v16431_v37  ;;  %v11082_v58 = vrot.slane %v16700_v14, %v16431_v37  ;;  %v16702_v60 = vrot.slane %v10096_v32, %v16432_v54  ;;  %v16703_v3 = vrot.slane %v10096_v32, %v16433_v28 }
 0x1b4   :  { %v11088_v44 = vrot.slane %v16701_v30, %v16431_v37  ;;  %v16704_v62 = vrot.slane %v10096_v32, %v16434_v59  ;;  %v16705_v30 = vrot.slane %v10106_v56, %v16431_v37  ;;  %v16708_v32 = vrot.slane %v10106_v56, %v16434_v59 }
 0x1b5   :  { %v11094_v5 = vrot.slane %v16702_v60, %v16431_v37  ;;  %v11100_v6 = vrot.slane %v16703_v3, %v16431_v37  ;;  %v16706_v60 = vrot.slane %v10106_v56, %v16432_v54  ;;  %v16707_v3 = vrot.slane %v10106_v56, %v16433_v28 }
 0x1b6   :  { %v11106_v14 = vrot.slane %v16704_v62, %v16431_v37  ;;  %v11112_v48 = vrot.slane %v16705_v30, %v16431_v37  ;;  %v11130_v62 = vrot.slane %v16708_v32, %v16431_v37  ;;  %v16709_v30 = vrot.slane %v10116_v21, %v16431_v37 }
 0x1b7   :  { %v11118_v51 = vrot.slane %v16706_v60, %v16431_v37  ;;  %v11124_v1 = vrot.slane %v16707_v3, %v16431_v37  ;;  %v16710_v60 = vrot.slane %v10116_v21, %v16432_v54  ;;  %v16711_v3 = vrot.slane %v10116_v21, %v16433_v28 }
 0x1b8   :  { %v11136_v55 = vrot.slane %v16709_v30, %v16431_v37  ;;  %v16712_v56 = vrot.slane %v10124_v45, %v16431_v37  ;;  %v16713_v30 = vrot.slane %v10124_v45, %v16432_v54  ;;  %v16717_v21 = vrot.slane %v10124_v45, %v16434_v59 }
 0x1b9   :  { %v11142_v46 = vrot.slane %v16710_v60, %v16431_v37  ;;  %v11148_v39 = vrot.slane %v16711_v3, %v16431_v37  ;;  %v16715_v60 = vrot.slane %v10124_v45, %v16433_v28  ;;  %v16724_v45 = vrot.slane %v10134_v11, %v16434_v59 }
 0x1ba   :  { %v11154_v32 = vrot.slane %v16712_v56, %v16431_v37  ;;  %v11160_v40 = vrot.slane %v16713_v30, %v16431_v37  ;;  %v11172_v3 = vrot.slane %v16717_v21, %v16431_v37  ;;  %v16718_v56 = vrot.slane %v10134_v11, %v16431_v37 }
 0x1bb   :  { %v11166_v12 = vrot.slane %v16715_v60, %v16431_v37  ;;  %v16720_v30 = vrot.slane %v10134_v11, %v16432_v54  ;;  %v16722_v60 = vrot.slane %v10134_v11, %v16433_v28  ;;  %v11196_v21 = vrot.slane %v16724_v45, %v16431_v37 }
 0x1bc   :  { %16714 = vst [vmem:[#allocation324_spill] sm:$0xff] %v11160_v40  ;;  %v11178_v23 = vrot.slane %v16718_v56, %v16431_v37  ;;  %v16725_v56 = vrot.slane %v10144_v15, %v16431_v37  ;;  %v16730_v11 = vrot.slane %v10152_v19, %v16431_v37 }
 0x1bd   :  { %16716 = vst [vmem:[#allocation325_spill] sm:$0xff] %v11166_v12  ;;  %v11184_v40 = vrot.slane %v16720_v30, %v16431_v37  ;;  %v11190_v12 = vrot.slane %v16722_v60, %v16431_v37  ;;  %v16727_v30 = vrot.slane %v10144_v15, %v16432_v54  ;;  %v16729_v60 = vrot.slane %v10144_v15, %v16433_v28 }
 0x1be   :  { %16719 = vst [vmem:[#allocation326_spill] sm:$0xff] %v11178_v23  ;;  %v11202_v23 = vrot.slane %v16725_v56, %v16431_v37  ;;  %v11220_v45 = vrot.slane %v16730_v11, %v16431_v37  ;;  %v16732_v56 = vrot.slane %v10152_v19, %v16432_v54  ;;  %v16736_v15 = vrot.slane %v10152_v19, %v16434_v59 }
 0x1bf   :  { %16721 = vst [vmem:[#allocation327_spill] sm:$0xff] %v11184_v40  ;;  %16723 = vst [vmem:[#allocation328_spill] sm:$0xff] %v11190_v12  ;;  %v11208_v40 = vrot.slane %v16727_v30, %v16431_v37  ;;  %v11214_v12 = vrot.slane %v16729_v60, %v16431_v37  ;;  %v16734_v30 = vrot.slane %v10152_v19, %v16433_v28 }
 0x1c0   :  { %16726 = vst [vmem:[#allocation329_spill] sm:$0xff] %v11202_v23  ;;  %16731 = vst [vmem:[#allocation331_spill] sm:$0xff] %v11220_v45  ;;  %v11226_v23 = vrot.slane %v16732_v56, %v16431_v37  ;;  %v11238_v60 = vrot.slane %v16736_v15, %v16431_v37  ;;  %v16737_v11 = vrot.slane %v10162_v41, %v16431_v37 }
 0x1c1   :  { %16728 = vst [vmem:[#allocation330_spill] sm:$0xff] %v11208_v40  ;;  %v11232_v40 = vrot.slane %v16734_v30, %v16431_v37  ;;  %v16739_v56 = vrot.slane %v10162_v41, %v16432_v54  ;;  %v16741_v30 = vrot.slane %v10162_v41, %v16433_v28  ;;  %v16743_v19 = vrot.slane %v10162_v41, %v16434_v59 }
 0x1c2   :  { %16733 = vst [vmem:[#allocation332_spill] sm:$0xff] %v11226_v23  ;;  %v11244_v45 = vrot.slane %v16737_v11, %v16431_v37  ;;  %v16744_v11 = vrot.slane %v10172_v34, %v16431_v37  ;;  %v16749_v41 = vrot.slane %v10180_v38, %v16431_v37 }
 0x1c3   :  { %16735 = vst [vmem:[#allocation333_spill] sm:$0xff] %v11232_v40  ;;  %v11250_v23 = vrot.slane %v16739_v56, %v16431_v37  ;;  %v11256_v40 = vrot.slane %v16741_v30, %v16431_v37  ;;  %v11262_v15 = vrot.slane %v16743_v19, %v16431_v37  ;;  %v16746_v56 = vrot.slane %v10172_v34, %v16432_v54 }
 0x1c4   :  { %16738 = vst [vmem:[#allocation334_spill] sm:$0xff] %v11244_v45  ;;  %v11268_v45 = vrot.slane %v16744_v11, %v16431_v37  ;;  %v16748_v30 = vrot.slane %v10172_v34, %v16433_v28  ;;  %v11286_v19 = vrot.slane %v16749_v41, %v16431_v37  ;;  %v16751_v11 = vrot.slane %v10180_v38, %v16432_v54 }
 0x1c5   :  { %16740 = vst [vmem:[#allocation335_spill] sm:$0xff] %v11250_v23  ;;  %16742 = vst [vmem:[#allocation336_spill] sm:$0xff] %v11256_v40  ;;  %v11274_v23 = vrot.slane %v16746_v56, %v16431_v37  ;;  %v16753_v56 = vrot.slane %v10180_v38, %v16433_v28  ;;  %v16755_v34 = vrot.slane %v10180_v38, %v16434_v59 }
 0x1c6   :  { %16745 = vst [vmem:[#allocation337_spill] sm:$0xff] %v11268_v45  ;;  %v11280_v40 = vrot.slane %v16748_v30, %v16431_v37  ;;  %16750 = vst [vmem:[#allocation339_spill] sm:$0xff] %v11286_v19  ;;  %v11292_v45 = vrot.slane %v16751_v11, %v16431_v37  ;;  %v16756_v41 = vrot.slane %v10190_v35, %v16431_v37 }
 0x1c7   :  { %16747 = vst [vmem:[#allocation338_spill] sm:$0xff] %v11274_v23  ;;  %v11298_v23 = vrot.slane %v16753_v56, %v16431_v37  ;;  %v11304_v30 = vrot.slane %v16755_v34, %v16431_v37  ;;  %v16758_v11 = vrot.slane %v10190_v35, %v16432_v54  ;;  %v16760_v56 = vrot.slane %v10190_v35, %v16433_v28 }
 0x1c8   :  { %16752 = vst [vmem:[#allocation340_spill] sm:$0xff] %v11292_v45  ;;  %v11310_v19 = vrot.slane %v16756_v41, %v16431_v37  ;;  %v16762_v38 = vrot.slane %v10190_v35, %v16434_v59  ;;  %v16763_v41 = vrot.slane %v10200_v18, %v16431_v37  ;;  %v16768_v35 = vrot.slane %v10208_v50, %v16431_v37 }
 0x1c9   :  { %16754 = vst [vmem:[#allocation341_spill] sm:$0xff] %v11298_v23  ;;  %v11316_v45 = vrot.slane %v16758_v11, %v16431_v37  ;;  %v11322_v23 = vrot.slane %v16760_v56, %v16431_v37  ;;  %v16765_v11 = vrot.slane %v10200_v18, %v16432_v54  ;;  %v16767_v56 = vrot.slane %v10200_v18, %v16433_v28 }
 0x1ca   :  { %16757 = vst [vmem:[#allocation342_spill] sm:$0xff] %v11310_v19  ;;  %v11328_v34 = vrot.slane %v16762_v38, %v16431_v37  ;;  %v11334_v19 = vrot.slane %v16763_v41, %v16431_v37  ;;  %v11352_v38 = vrot.slane %v16768_v35, %v16431_v37  ;;  %v16770_v41 = vrot.slane %v10208_v50, %v16432_v54 }
 0x1cb   :  { %16759 = vst [vmem:[#allocation343_spill] sm:$0xff] %v11316_v45  ;;  %16761 = vst [vmem:[#allocation344_spill] sm:$0xff] %v11322_v23  ;;  %v11340_v45 = vrot.slane %v16765_v11, %v16431_v37  ;;  %v11346_v23 = vrot.slane %v16767_v56, %v16431_v37  ;;  %v16772_v11 = vrot.slane %v10208_v50, %v16433_v28 }
 0x1cc   :  { %16764 = vst [vmem:[#allocation345_spill] sm:$0xff] %v11334_v19  ;;  %16769 = vst [vmem:[#allocation347_spill] sm:$0xff] %v11352_v38  ;;  %v11358_v19 = vrot.slane %v16770_v41, %v16431_v37  ;;  %v16774_v18 = vrot.slane %v10208_v50, %v16434_v59  ;;  %v16775_v35 = vrot.slane %v10218_v9, %v16431_v37 }
 0x1cd   :  { %16766 = vst [vmem:[#allocation346_spill] sm:$0xff] %v11340_v45  ;;  %v11364_v45 = vrot.slane %v16772_v11, %v16431_v37  ;;  %v16777_v41 = vrot.slane %v10218_v9, %v16432_v54  ;;  %v16779_v11 = vrot.slane %v10218_v9, %v16433_v28  ;;  %v16781_v50 = vrot.slane %v10218_v9, %v16434_v59 }
 0x1ce   :  { %16771 = vst [vmem:[#allocation348_spill] sm:$0xff] %v11358_v19  ;;  %v11370_v56 = vrot.slane %v16774_v18, %v16431_v37  ;;  %v11376_v38 = vrot.slane %v16775_v35, %v16431_v37  ;;  %v16782_v35 = vrot.slane %v10228_v33, %v16431_v37  ;;  %v16787_v9 = vrot.slane %v10236_v20, %v16431_v37 }
 0x1cf   :  { %16773 = vst [vmem:[#allocation349_spill] sm:$0xff] %v11364_v45  ;;  %v11382_v19 = vrot.slane %v16777_v41, %v16431_v37  ;;  %v11388_v45 = vrot.slane %v16779_v11, %v16431_v37  ;;  %v11394_v18 = vrot.slane %v16781_v50, %v16431_v37  ;;  %v16784_v41 = vrot.slane %v10228_v33, %v16432_v54 }
 0x1d0   :  { %16776 = vst [vmem:[#allocation350_spill] sm:$0xff] %v11376_v38  ;;  %v11400_v38 = vrot.slane %v16782_v35, %v16431_v37  ;;  %v16786_v11 = vrot.slane %v10228_v33, %v16433_v28  ;;  %v11418_v50 = vrot.slane %v16787_v9, %v16431_v37  ;;  %v16789_v35 = vrot.slane %v10236_v20, %v16432_v54 }
 0x1d1   :  { %16778 = vst [vmem:[#allocation351_spill] sm:$0xff] %v11382_v19  ;;  %16780 = vst [vmem:[#allocation352_spill] sm:$0xff] %v11388_v45  ;;  %v11406_v19 = vrot.slane %v16784_v41, %v16431_v37  ;;  %v16791_v41 = vrot.slane %v10236_v20, %v16433_v28  ;;  %v16793_v33 = vrot.slane %v10236_v20, %v16434_v59 }
 0x1d2   :  { %16783 = vst [vmem:[#allocation353_spill] sm:$0xff] %v11400_v38  ;;  %v11412_v45 = vrot.slane %v16786_v11, %v16431_v37  ;;  %16788 = vst [vmem:[#allocation355_spill] sm:$0xff] %v11418_v50  ;;  %v11424_v38 = vrot.slane %v16789_v35, %v16431_v37  ;;  %v16794_v9 = vrot.slane %v10246_v7, %v16431_v37 }
 0x1d3   :  { %16785 = vst [vmem:[#allocation354_spill] sm:$0xff] %v11406_v19  ;;  %v11430_v19 = vrot.slane %v16791_v41, %v16431_v37  ;;  %v11436_v11 = vrot.slane %v16793_v33, %v16431_v37  ;;  %v16796_v35 = vrot.slane %v10246_v7, %v16432_v54  ;;  %v16798_v41 = vrot.slane %v10246_v7, %v16433_v28 }
 0x1d4   :  { %16790 = vst [vmem:[#allocation356_spill] sm:$0xff] %v11424_v38  ;;  %v11442_v50 = vrot.slane %v16794_v9, %v16431_v37  ;;  %v16800_v20 = vrot.slane %v10246_v7, %v16434_v59  ;;  %v16802_v9 = vrot.slane %v10256_v17, %v16431_v37  ;;  %v16806_v7 = vrot.slane %v10256_v17, %v16433_v28 }
 0x1d5   :  { %16792 = vst [vmem:[#allocation357_spill] sm:$0xff] %v11430_v19  ;;  %v11448_v38 = vrot.slane %v16796_v35, %v16431_v37  ;;  %v11454_v19 = vrot.slane %v16798_v41, %v16431_v37  ;;  %v11468_v35 = vpop.permute.xlu1 %2454 }
 0x1d6   :  { %16795 = vst [vmem:[#allocation358_spill] sm:$0xff] %v11442_v50  ;;  %v11460_v33 = vrot.slane %v16800_v20, %v16431_v37  ;;  %v11466_v50 = vrot.slane %v16802_v9, %v16431_v37  ;;  %v11480_v20 = vrot.slane %v16806_v7, %v16431_v37 }
 0x1d7   :  { %16797 = vst [vmem:[#allocation359_spill] sm:$0xff] %v11448_v38  ;;  %16799 = vst [vmem:[#allocation360_spill] sm:$0xff] %v11454_v19  ;;  %v16804_v38 = vrot.slane %v10256_v17, %v16432_v54  ;;  %v16813_v17 = vrot.slane %v10264_v29, %v16434_v59 }
 0x1d8   :  { %16801 = vst [vmem:[#allocation361_spill] sm:$0xff] %v11460_v33  ;;  %16803 = vst [vmem:[#allocation362_spill] sm:$0xff] %v11466_v50  ;;  %v16807_v33 = vrot.slane %v10264_v29, %v16431_v37  ;;  %v16809_v50 = vrot.slane %v10264_v29, %v16432_v54 }
 0x1d9   :  { %v11474_v41 = vrot.slane %v16804_v38, %v16431_v37  ;;  %v16811_v38 = vrot.slane %v10264_v29, %v16433_v28  ;;  %v11504_v7 = vrot.slane %v16813_v17, %v16431_v37  ;;  %v16820_v29 = vrot.slane %v10274_v4, %v16434_v59 }
 0x1da   :  { %v11486_v9 = vrot.slane %v16807_v33, %v16431_v37  ;;  %v11492_v19 = vrot.slane %v16809_v50, %v16431_v37  ;;  %v16814_v33 = vrot.slane %v10274_v4, %v16431_v37  ;;  %v16816_v50 = vrot.slane %v10274_v4, %v16432_v54 }
 0x1db   :  { %16805 = vst [vmem:[#allocation363_spill] sm:$0xff] %v11474_v41  ;;  %v11498_v41 = vrot.slane %v16811_v38, %v16431_v37  ;;  %v16818_v38 = vrot.slane %v10274_v4, %v16433_v28  ;;  %v11528_v17 = vrot.slane %v16820_v29, %v16431_v37  ;;  %v11550_v4 = vmul.f32 %v10296_v24, %v11468_v35 }
 0x1dc   :  { %16808 = vst [vmem:[#allocation364_spill] sm:$0xff] %v11486_v9  ;;  %16810 = vst [vmem:[#allocation365_spill] sm:$0xff] %v11492_v19  ;;  %v11510_v9 = vrot.slane %v16814_v33, %v16431_v37  ;;  %v11516_v19 = vrot.slane %v16816_v50, %v16431_v37  ;;  %v16821_v33 = vrot.slane %v10284_v42, %v16431_v37 }
 0x1dd   :  { %16812 = vst [vmem:[#allocation366_spill] sm:$0xff] %v11498_v41  ;;  %v11522_v41 = vrot.slane %v16818_v38, %v16431_v37  ;;  %v16822_v50 = vrot.slane %v10284_v42, %v16432_v54  ;;  %v16823_v38 = vrot.slane %v10284_v42, %v16433_v28  ;;  %16824 = vst [vmem:[#allocation370_spill] sm:$0xff] %v11550_v4  ;;  %v16866_v4 = vld [vmem:[#allocation345_spill] sm:$0xff] }
 0x1de   :  { %16815 = vst [vmem:[#allocation367_spill] sm:$0xff] %v11510_v9  ;;  %16817 = vst [vmem:[#allocation368_spill] sm:$0xff] %v11516_v19  ;;  %v11534_v9 = vrot.slane %v16821_v33, %v16431_v37  ;;  %v11554_v59 = vmul.f32 %v10302_v2, %v11468_v35  ;;  %v11558_v29 = vmul.f32 %v10308_v25, %v11468_v35  ;;  %v16843_v33 = vld [vmem:[#allocation326_spill] sm:$0xff] }
 0x1df   :  { %16819 = vst [vmem:[#allocation369_spill] sm:$0xff] %v11522_v41  ;;  %v11540_v19 = vrot.slane %v16822_v50, %v16431_v37  ;;  %v11546_v41 = vrot.slane %v16823_v38, %v16431_v37  ;;  %v11562_v54 = vmul.f32 %v10314_v63, %v11468_v35  ;;  %v11566_v42 = vmul.f32 %v10320_v57, %v11468_v35  ;;  %v16844_v50 = vld [vmem:[#allocation327_spill] sm:$0xff]  ;;  %v16845_v38 = vld [vmem:[#allocation328_spill] sm:$0xff] }
 0x1e0   :  { %16825 = vst [vmem:[#allocation371_spill] sm:$0xff] %v11554_v59  ;;  %16826 = vst [vmem:[#allocation372_spill] sm:$0xff] %v11558_v29  ;;  %v11570_v24 = vmul.f32 %v10326_v0, %v11468_v35  ;;  %v11574_v28 = vmul.f32 %v10332_v8, %v11468_v35  ;;  %v11578_v37 = vmul.f32 %v10338_v53, %v11468_v35  ;;  %v16861_v29 = vld [vmem:[#allocation343_spill] sm:$0xff]  ;;  %v16863_v59 = vld [vmem:[#allocation344_spill] sm:$0xff] }
 0x1e1   :  { %16827 = vst [vmem:[#allocation373_spill] sm:$0xff] %v11562_v54  ;;  %16828 = vst [vmem:[#allocation374_spill] sm:$0xff] %v11566_v42  ;;  %v11582_v63 = vmul.f32 %v10344_v10, %v11468_v35  ;;  %v11586_v57 = vmul.f32 %v10350_v43, %v11468_v35  ;;  %v11590_v0 = vmul.f32 %v10356_v47, %v11468_v35  ;;  %v16858_v42 = vld [vmem:[#allocation341_spill] sm:$0xff]  ;;  %v16860_v54 = vld [vmem:[#allocation342_spill] sm:$0xff] }
 0x1e2   :  { %16829 = vst [vmem:[#allocation375_spill] sm:$0xff] %v11570_v24  ;;  %16830 = vst [vmem:[#allocation376_spill] sm:$0xff] %v11574_v28  ;;  %v11594_v8 = vmul.f32 %v10362_v49, %v11468_v35  ;;  %v11598_v2 = vmul.f32 %v10368_v26, %v11468_v35  ;;  %v11602_v10 = vmul.f32 %v10374_v27, %v11468_v35  ;;  %v16856_v28 = vld [vmem:[#allocation339_spill] sm:$0xff]  ;;  %v16857_v24 = vld [vmem:[#allocation340_spill] sm:$0xff] }
 0x1e3   :  { %16831 = vst [vmem:[#allocation377_spill] sm:$0xff] %v11578_v37  ;;  %16832 = vst [vmem:[#allocation378_spill] sm:$0xff] %v11582_v63  ;;  %v11606_v43 = vmul.f32 %v10380_v36, %v11468_v35  ;;  %v11610_v47 = vmul.f32 %v10386_v13, %v11468_v35  ;;  %v11614_v49 = vmul.f32 %v10392_v22, %v11468_v35  ;;  %v16854_v63 = vld [vmem:[#allocation337_spill] sm:$0xff]  ;;  %v16855_v37 = vld [vmem:[#allocation338_spill] sm:$0xff] }
 0x1e4   :  { %16833 = vst [vmem:[#allocation379_spill] sm:$0xff] %v11586_v57  ;;  %16834 = vst [vmem:[#allocation380_spill] sm:$0xff] %v11590_v0  ;;  %v11618_v26 = vmul.f32 %v11058_v16, %v11468_v35  ;;  %v11622_v27 = vmul.f32 %v11064_v61, %v11468_v35  ;;  %v11626_v25 = vmul.f32 %v11070_v52, %v11468_v35  ;;  %v16852_v0 = vld [vmem:[#allocation335_spill] sm:$0xff]  ;;  %v16853_v57 = vld [vmem:[#allocation336_spill] sm:$0xff] }
 0x1e5   :  { %16835 = vst [vmem:[#allocation381_spill] sm:$0xff] %v11594_v8  ;;  %16836 = vst [vmem:[#allocation382_spill] sm:$0xff] %v11598_v2  ;;  %v11630_v13 = vmul.f32 %v11076_v31, %v11468_v35  ;;  %v11634_v22 = vmul.f32 %v11082_v58, %v11468_v35  ;;  %v11638_v53 = vmul.f32 %v11088_v44, %v11468_v35  ;;  %v16841_v44 = vld [vmem:[#allocation324_spill] sm:$0xff]  ;;  %v16850_v2 = vld [vmem:[#allocation333_spill] sm:$0xff] }
 0x1e6   :  { %16837 = vst [vmem:[#allocation383_spill] sm:$0xff] %v11602_v10  ;;  %16838 = vst [vmem:[#allocation384_spill] sm:$0xff] %v11606_v43  ;;  %v11642_v36 = vmul.f32 %v11094_v5, %v11468_v35  ;;  %v11646_v16 = vmul.f32 %v11100_v6, %v11468_v35  ;;  %v11650_v31 = vmul.f32 %v11106_v14, %v11468_v35  ;;  %v16848_v43 = vld [vmem:[#allocation331_spill] sm:$0xff]  ;;  %v16849_v10 = vld [vmem:[#allocation332_spill] sm:$0xff] }
 0x1e7   :  { %16839 = vst [vmem:[#allocation385_spill] sm:$0xff] %v11610_v47  ;;  %16840 = vst [vmem:[#allocation386_spill] sm:$0xff] %v11614_v49  ;;  %v11654_v52 = vmul.f32 %v11112_v48, %v11468_v35  ;;  %v11658_v58 = vmul.f32 %v11118_v51, %v11468_v35  ;;  %v11662_v5 = vmul.f32 %v11124_v1, %v11468_v35  ;;  %v16846_v49 = vld [vmem:[#allocation329_spill] sm:$0xff]  ;;  %v16847_v47 = vld [vmem:[#allocation330_spill] sm:$0xff] }
 0x1e8   :  { %v11666_v6 = vmul.f32 %v11130_v62, %v11468_v35  ;;  %v11670_v61 = vmul.f32 %v11136_v55, %v11468_v35  ;;  %v11674_v48 = vmul.f32 %v11142_v46, %v11468_v35  ;;  %v11678_v51 = vmul.f32 %v11148_v39, %v11468_v35  ;;  %v16842_v62 = vld [vmem:[#allocation325_spill] sm:$0xff]  ;;  %v16851_v8 = vld [vmem:[#allocation334_spill] sm:$0xff] }
 0x1e9   :  { %v11682_v1 = vmul.f32 %v11154_v32, %v11468_v35  ;;  %v11686_v14 = vmul.f32 %v16841_v44, %v11468_v35  ;;  %v11690_v55 = vmul.f32 %v16842_v62, %v11468_v35  ;;  %v11694_v46 = vmul.f32 %v11172_v3, %v11468_v35 }
 0x1ea   :  { %v11698_v39 = vmul.f32 %v16843_v33, %v11468_v35  ;;  %v11702_v32 = vmul.f32 %v16844_v50, %v11468_v35  ;;  %v11706_v44 = vmul.f32 %v16845_v38, %v11468_v35  ;;  %v11710_v62 = vmul.f32 %v11196_v21, %v11468_v35 }
 0x1eb   :  { %v11714_v3 = vmul.f32 %v16846_v49, %v11468_v35  ;;  %v11718_v33 = vmul.f32 %v16847_v47, %v11468_v35  ;;  %v11722_v50 = vmul.f32 %v11214_v12, %v11468_v35  ;;  %v11726_v38 = vmul.f32 %v16848_v43, %v11468_v35 }
 0x1ec   :  { %v11730_v21 = vmul.f32 %v16849_v10, %v11468_v35  ;;  %v11734_v49 = vmul.f32 %v16850_v2, %v11468_v35  ;;  %v11738_v47 = vmul.f32 %v11238_v60, %v11468_v35  ;;  %v11742_v12 = vmul.f32 %v16851_v8, %v11468_v35 }
 0x1ed   :  { %v11746_v43 = vmul.f32 %v16852_v0, %v11468_v35  ;;  %v11750_v10 = vmul.f32 %v16853_v57, %v11468_v35  ;;  %v11754_v2 = vmul.f32 %v11262_v15, %v11468_v35  ;;  %v11758_v60 = vmul.f32 %v16854_v63, %v11468_v35 }
 0x1ee   :  { %v11762_v8 = vmul.f32 %v16855_v37, %v11468_v35  ;;  %v11766_v0 = vmul.f32 %v11280_v40, %v11468_v35  ;;  %v11770_v57 = vmul.f32 %v16856_v28, %v11468_v35  ;;  %v11774_v15 = vmul.f32 %v16857_v24, %v11468_v35 }
 0x1ef   :  { %v11778_v63 = vmul.f32 %v16858_v42, %v11468_v35  ;;  %v11782_v37 = vmul.f32 %v11304_v30, %v11468_v35  ;;  %v11786_v40 = vmul.f32 %v16860_v54, %v11468_v35  ;;  %v11790_v28 = vmul.f32 %v16861_v29, %v11468_v35 }
 0x1f0   :  { %v11794_v24 = vmul.f32 %v16863_v59, %v11468_v35  ;;  %v11798_v42 = vmul.f32 %v11328_v34, %v11468_v35  ;;  %v11802_v30 = vmul.f32 %v16866_v4, %v11468_v35  ;;  %v11810_v29 = vmul.f32 %v11346_v23, %v11468_v35 }
 0x1f1   :  { %16859 = vst [vmem:[#allocation324_spill] sm:$0xff] %v11782_v37  ;;  %16862 = vst [vmem:[#allocation325_spill] sm:$0xff] %v11790_v28  ;;  %v16867_v37 = vld [vmem:[#allocation346_spill] sm:$0xff]  ;;  %v16870_v28 = vld [vmem:[#allocation347_spill] sm:$0xff] }
 0x1f2   :  { %16864 = vst [vmem:[#allocation326_spill] sm:$0xff] %v11794_v24  ;;  %16865 = vst [vmem:[#allocation327_spill] sm:$0xff] %v11798_v42  ;;  %v11806_v54 = vmul.f32 %v16867_v37, %v11468_v35  ;;  %v11814_v59 = vmul.f32 %v16870_v28, %v11468_v35  ;;  %v16872_v24 = vld [vmem:[#allocation348_spill] sm:$0xff]  ;;  %v16873_v42 = vld [vmem:[#allocation349_spill] sm:$0xff]  ;;  %v11826_v37 = vmul.f32 %v11370_v56, %v11468_v35 }
 0x1f3   :  { %16869 = vst [vmem:[#allocation329_spill] sm:$0xff] %v11810_v29  ;;  %v11818_v34 = vmul.f32 %v16872_v24, %v11468_v35  ;;  %v11822_v4 = vmul.f32 %v16873_v42, %v11468_v35  ;;  %v16877_v29 = vld [vmem:[#allocation351_spill] sm:$0xff]  ;;  %v11842_v42 = vmul.f32 %v11394_v18, %v11468_v35 }
 0x1f4   :  { %16868 = vst [vmem:[#allocation328_spill] sm:$0xff] %v11806_v54  ;;  %16871 = vst [vmem:[#allocation330_spill] sm:$0xff] %v11814_v59  ;;  %v16876_v54 = vld [vmem:[#allocation350_spill] sm:$0xff]  ;;  %v11834_v28 = vmul.f32 %v16877_v29, %v11468_v35  ;;  %v16879_v59 = vld [vmem:[#allocation352_spill] sm:$0xff]  ;;  %v11854_v29 = vmul.f32 %v11412_v45, %v11468_v35 }
 0x1f5   :  { %16874 = vst [vmem:[#allocation331_spill] sm:$0xff] %v11822_v4  ;;  %16875 = vst [vmem:[#allocation332_spill] sm:$0xff] %v11826_v37  ;;  %v11830_v23 = vmul.f32 %v16876_v54, %v11468_v35  ;;  %v11838_v24 = vmul.f32 %v16879_v59, %v11468_v35  ;;  %v16882_v4 = vld [vmem:[#allocation353_spill] sm:$0xff]  ;;  %v16883_v37 = vld [vmem:[#allocation354_spill] sm:$0xff] }
 0x1f6   :  { %16878 = vst [vmem:[#allocation333_spill] sm:$0xff] %v11834_v28  ;;  %16881 = vst [vmem:[#allocation335_spill] sm:$0xff] %v11842_v42  ;;  %v11846_v56 = vmul.f32 %v16882_v4, %v11468_v35  ;;  %v11850_v54 = vmul.f32 %v16883_v37, %v11468_v35  ;;  %v16886_v28 = vld [vmem:[#allocation355_spill] sm:$0xff]  ;;  %v16890_v42 = vld [vmem:[#allocation357_spill] sm:$0xff]  ;;  %v11870_v37 = vmul.f32 %v11436_v11, %v11468_v35 }
 0x1f7   :  { %16880 = vst [vmem:[#allocation334_spill] sm:$0xff] %v11838_v24  ;;  %16885 = vst [vmem:[#allocation337_spill] sm:$0xff] %v11854_v29  ;;  %v11858_v59 = vmul.f32 %v16886_v28, %v11468_v35  ;;  %v16888_v24 = vld [vmem:[#allocation356_spill] sm:$0xff]  ;;  %v11866_v4 = vmul.f32 %v16890_v42, %v11468_v35  ;;  %v16894_v29 = vld [vmem:[#allocation359_spill] sm:$0xff] }
 0x1f8   :  { %16884 = vst [vmem:[#allocation336_spill] sm:$0xff] %v11850_v54  ;;  %v11862_v18 = vmul.f32 %v16888_v24, %v11468_v35  ;;  %16892 = vst [vmem:[#allocation341_spill] sm:$0xff] %v11870_v37  ;;  %v16893_v54 = vld [vmem:[#allocation358_spill] sm:$0xff]  ;;  %v11878_v28 = vmul.f32 %v16894_v29, %v11468_v35  ;;  %v16901_v37 = vld [vmem:[#allocation363_spill] sm:$0xff]  ;;  %v11898_v29 = vmul.f32 %v11480_v20, %v11468_v35 }
 0x1f9   :  { %16887 = vst [vmem:[#allocation338_spill] sm:$0xff] %v11858_v59  ;;  %16891 = vst [vmem:[#allocation340_spill] sm:$0xff] %v11866_v4  ;;  %v11874_v45 = vmul.f32 %v16893_v54, %v11468_v35  ;;  %v16896_v59 = vld [vmem:[#allocation360_spill] sm:$0xff]  ;;  %v16900_v4 = vld [vmem:[#allocation362_spill] sm:$0xff]  ;;  %v11894_v54 = vmul.f32 %v16901_v37, %v11468_v35  ;;  %v11914_v37 = vmul.f32 %v11504_v7, %v11468_v35 }
 0x1fa   :  { %16889 = vst [vmem:[#allocation339_spill] sm:$0xff] %v11862_v18  ;;  %16895 = vst [vmem:[#allocation342_spill] sm:$0xff] %v11878_v28  ;;  %v11882_v24 = vmul.f32 %v16896_v59, %v11468_v35  ;;  %v16898_v18 = vld [vmem:[#allocation361_spill] sm:$0xff]  ;;  %v11890_v11 = vmul.f32 %v16900_v4, %v11468_v35  ;;  %v16904_v28 = vld [vmem:[#allocation364_spill] sm:$0xff]  ;;  %v11934_v7 = vmul.f32 %v11534_v9, %v11468_v35 }
 0x1fb   :  { %v11886_v42 = vmul.f32 %v16898_v18, %v11468_v35  ;;  %16902 = vst [vmem:[#allocation345_spill] sm:$0xff] %v11894_v54  ;;  %16903 = vst [vmem:[#allocation346_spill] sm:$0xff] %v11898_v29  ;;  %v11902_v59 = vmul.f32 %v16904_v28, %v11468_v35  ;;  %v16908_v54 = vld [vmem:[#allocation367_spill] sm:$0xff]  ;;  %v16909_v29 = vld [vmem:[#allocation368_spill] sm:$0xff] }
 0x1fc   :  { %16897 = vst [vmem:[#allocation343_spill] sm:$0xff] %v11882_v24  ;;  %v16906_v24 = vld [vmem:[#allocation365_spill] sm:$0xff]  ;;  %v11918_v20 = vmul.f32 %v16908_v54, %v11468_v35  ;;  %v11922_v28 = vmul.f32 %v16909_v29, %v11468_v35  ;;  %16914 = vst [vmem:[#allocation351_spill] sm:$0xff] %v11934_v7  ;;  %v11938_v54 = vmul.f32 %v11540_v19, %v11468_v35  ;;  %v16923_v7 = vld [vmem:[#allocation140_spill] sm:$0xff] }
 0x1fd   :  { %16899 = vst [vmem:[#allocation344_spill] sm:$0xff] %v11886_v42  ;;  %16905 = vst [vmem:[#allocation347_spill] sm:$0xff] %v11902_v59  ;;  %v11906_v18 = vmul.f32 %v16906_v24, %v11468_v35  ;;  %v16907_v42 = vld [vmem:[#allocation366_spill] sm:$0xff]  ;;  %v16911_v59 = vld [vmem:[#allocation369_spill] sm:$0xff]  ;;  %v11942_v29 = vmul.f32 %v11546_v41, %v11468_v35  ;;  %v11958_v19 = vadd.f32 %v11630_v13, %v16923_v7 }
 0x1fe   :  { %v11910_v4 = vmul.f32 %v16907_v42, %v11468_v35  ;;  %16910 = vst [vmem:[#allocation348_spill] sm:$0xff] %v11922_v28  ;;  %v11926_v24 = vmul.f32 %v16911_v59, %v11468_v35  ;;  %v11930_v42 = vmul.f32 %v11528_v17, %v11468_v35  ;;  %16915 = vst [vmem:[#allocation352_spill] sm:$0xff] %v11938_v54  ;;  %v16917_v28 = vld [vmem:[#allocation137_spill] sm:$0xff]  ;;  %v16935_v7 = vld [vmem:[#allocation146_spill] sm:$0xff] }
 0x1ff   :  { %16916 = vst [vmem:[#allocation353_spill] sm:$0xff] %v11942_v29  ;;  %v11946_v59 = vadd.f32 %v11618_v26, %v16917_v28  ;;  %16924 = vst [vmem:[#allocation357_spill] sm:$0xff] %v11958_v19  ;;  %v16925_v54 = vld [vmem:[#allocation141_spill] sm:$0xff]  ;;  %v16927_v29 = vld [vmem:[#allocation142_spill] sm:$0xff] }
 0x200   :  { %16912 = vst [vmem:[#allocation349_spill] sm:$0xff] %v11926_v24  ;;  %16913 = vst [vmem:[#allocation350_spill] sm:$0xff] %v11930_v42  ;;  %v16919_v24 = vld [vmem:[#allocation138_spill] sm:$0xff]  ;;  %v16921_v42 = vld [vmem:[#allocation139_spill] sm:$0xff]  ;;  %v11962_v41 = vadd.f32 %v11634_v22, %v16925_v54  ;;  %v11966_v26 = vadd.f32 %v11638_v53, %v16927_v29  ;;  %v11982_v22 = vadd.f32 %v11654_v52, %v16935_v7 }
 0x201   :  { %16918 = vst [vmem:[#allocation354_spill] sm:$0xff] %v11946_v59  ;;  %v11950_v17 = vadd.f32 %v11622_v27, %v16919_v24  ;;  %v11954_v9 = vadd.f32 %v11626_v25, %v16921_v42  ;;  %v16929_v28 = vld [vmem:[#allocation143_spill] sm:$0xff]  ;;  %v16931_v24 = vld [vmem:[#allocation144_spill] sm:$0xff]  ;;  %v16933_v42 = vld [vmem:[#allocation145_spill] sm:$0xff] }
 0x202   :  { %16926 = vst [vmem:[#allocation358_spill] sm:$0xff] %v11962_v41  ;;  %16928 = vst [vmem:[#allocation359_spill] sm:$0xff] %v11966_v26  ;;  %v11970_v27 = vadd.f32 %v11642_v36, %v16929_v28  ;;  %v11974_v25 = vadd.f32 %v11646_v16, %v16931_v24  ;;  %v11978_v13 = vadd.f32 %v11650_v31, %v16933_v42  ;;  %v16937_v54 = vld [vmem:[#allocation147_spill] sm:$0xff]  ;;  %v16939_v29 = vld [vmem:[#allocation148_spill] sm:$0xff] }
 0x203   :  { %16920 = vst [vmem:[#allocation355_spill] sm:$0xff] %v11950_v17  ;;  %16922 = vst [vmem:[#allocation356_spill] sm:$0xff] %v11954_v9  ;;  %v11986_v53 = vadd.f32 %v11658_v58, %v16937_v54  ;;  %v11990_v36 = vadd.f32 %v11662_v5, %v16939_v29  ;;  %v16941_v28 = vld [vmem:[#allocation6_spill] sm:$0xff]  ;;  %v16943_v24 = vld [vmem:[#allocation7_spill] sm:$0xff] }
 0x204   :  { %16930 = vst [vmem:[#allocation360_spill] sm:$0xff] %v11970_v27  ;;  %16932 = vst [vmem:[#allocation361_spill] sm:$0xff] %v11974_v25  ;;  %v11994_v16 = vadd.f32 %v11666_v6, %v16941_v28  ;;  %v11998_v31 = vadd.f32 %v11670_v61, %v16943_v24  ;;  %v16945_v42 = vld [vmem:[#allocation149_spill] sm:$0xff]  ;;  %v16947_v7 = vld [vmem:[#allocation8_spill] sm:$0xff] }
 0x205   :  { %16934 = vst [vmem:[#allocation362_spill] sm:$0xff] %v11978_v13  ;;  %16936 = vst [vmem:[#allocation363_spill] sm:$0xff] %v11982_v22  ;;  %v12002_v52 = vadd.f32 %v11674_v48, %v16945_v42  ;;  %v12006_v58 = vadd.f32 %v11678_v51, %v16947_v7  ;;  %v16949_v54 = vld [vmem:[#allocation9_spill] sm:$0xff]  ;;  %v16951_v29 = vld [vmem:[#allocation150_spill] sm:$0xff] }
 0x206   :  { %16938 = vst [vmem:[#allocation364_spill] sm:$0xff] %v11986_v53  ;;  %16940 = vst [vmem:[#allocation365_spill] sm:$0xff] %v11990_v36  ;;  %v12010_v5 = vadd.f32 %v11682_v1, %v16949_v54  ;;  %v12014_v6 = vadd.f32 %v11686_v14, %v16951_v29  ;;  %v16953_v28 = vld [vmem:[#allocation151_spill] sm:$0xff]  ;;  %v16955_v24 = vld [vmem:[#allocation152_spill] sm:$0xff] }
 0x207   :  { %16942 = vst [vmem:[#allocation366_spill] sm:$0xff] %v11994_v16  ;;  %16944 = vst [vmem:[#allocation367_spill] sm:$0xff] %v11998_v31  ;;  %v12018_v61 = vadd.f32 %v11690_v55, %v16953_v28  ;;  %v12022_v48 = vadd.f32 %v11694_v46, %v16955_v24  ;;  %v16957_v42 = vld [vmem:[#allocation153_spill] sm:$0xff]  ;;  %v16959_v7 = vld [vmem:[#allocation154_spill] sm:$0xff] }
 0x208   :  { %16946 = vst [vmem:[#allocation368_spill] sm:$0xff] %v12002_v52  ;;  %16948 = vst [vmem:[#allocation369_spill] sm:$0xff] %v12006_v58  ;;  %v12026_v51 = vadd.f32 %v11698_v39, %v16957_v42  ;;  %v12030_v1 = vadd.f32 %v11702_v32, %v16959_v7  ;;  %v16961_v54 = vld [vmem:[#allocation205_spill] sm:$0xff]  ;;  %v16963_v29 = vld [vmem:[#allocation155_spill] sm:$0xff] }
 0x209   :  { %16950 = vst [vmem:[#allocation137_spill] sm:$0xff] %v12010_v5  ;;  %16952 = vst [vmem:[#allocation138_spill] sm:$0xff] %v12014_v6  ;;  %v12034_v14 = vadd.f32 %v11706_v44, %v16961_v54  ;;  %v12038_v55 = vadd.f32 %v11710_v62, %v16963_v29  ;;  %v16965_v28 = vld [vmem:[#allocation206_spill] sm:$0xff]  ;;  %v16967_v24 = vld [vmem:[#allocation207_spill] sm:$0xff] }
 0x20a   :  { %16954 = vst [vmem:[#allocation139_spill] sm:$0xff] %v12018_v61  ;;  %16956 = vst [vmem:[#allocation140_spill] sm:$0xff] %v12022_v48  ;;  %v12042_v46 = vadd.f32 %v11714_v3, %v16965_v28  ;;  %v12046_v39 = vadd.f32 %v11718_v33, %v16967_v24  ;;  %v16969_v42 = vld [vmem:[#allocation208_spill] sm:$0xff]  ;;  %v16971_v7 = vld [vmem:[#allocation209_spill] sm:$0xff] }
 0x20b   :  { %16958 = vst [vmem:[#allocation141_spill] sm:$0xff] %v12026_v51  ;;  %16960 = vst [vmem:[#allocation142_spill] sm:$0xff] %v12030_v1  ;;  %v12050_v32 = vadd.f32 %v11722_v50, %v16969_v42  ;;  %v12054_v44 = vadd.f32 %v11726_v38, %v16971_v7  ;;  %v16973_v54 = vld [vmem:[#allocation156_spill] sm:$0xff]  ;;  %v16975_v29 = vld [vmem:[#allocation210_spill] sm:$0xff] }
 0x20c   :  { %16962 = vst [vmem:[#allocation143_spill] sm:$0xff] %v12034_v14  ;;  %16964 = vst [vmem:[#allocation144_spill] sm:$0xff] %v12038_v55  ;;  %v12058_v62 = vadd.f32 %v11730_v21, %v16973_v54  ;;  %v12062_v3 = vadd.f32 %v11734_v49, %v16975_v29  ;;  %v16977_v28 = vld [vmem:[#allocation211_spill] sm:$0xff]  ;;  %v16979_v24 = vld [vmem:[#allocation212_spill] sm:$0xff] }
 0x20d   :  { %16966 = vst [vmem:[#allocation145_spill] sm:$0xff] %v12042_v46  ;;  %16968 = vst [vmem:[#allocation146_spill] sm:$0xff] %v12046_v39  ;;  %v12066_v33 = vadd.f32 %v11738_v47, %v16977_v28  ;;  %v12070_v50 = vadd.f32 %v11742_v12, %v16979_v24  ;;  %v16981_v42 = vld [vmem:[#allocation157_spill] sm:$0xff]  ;;  %v16985_v54 = vld [vmem:[#allocation214_spill] sm:$0xff] }
 0x20e   :  { %16970 = vst [vmem:[#allocation147_spill] sm:$0xff] %v12050_v32  ;;  %16972 = vst [vmem:[#allocation148_spill] sm:$0xff] %v12054_v44  ;;  %v12074_v38 = vadd.f32 %v11746_v43, %v16981_v42  ;;  %v16983_v7 = vld [vmem:[#allocation213_spill] sm:$0xff]  ;;  %v12082_v49 = vadd.f32 %v11754_v2, %v16985_v54  ;;  %v16987_v29 = vld [vmem:[#allocation215_spill] sm:$0xff] }
 0x20f   :  { %16974 = vst [vmem:[#allocation6_spill] sm:$0xff] %v12058_v62  ;;  %16976 = vst [vmem:[#allocation7_spill] sm:$0xff] %v12062_v3  ;;  %v12078_v21 = vadd.f32 %v11750_v10, %v16983_v7  ;;  %v12086_v47 = vadd.f32 %v11758_v60, %v16987_v29  ;;  %v16989_v28 = vld [vmem:[#allocation216_spill] sm:$0xff]  ;;  %v16991_v24 = vld [vmem:[#allocation217_spill] sm:$0xff] }
 0x210   :  { %16978 = vst [vmem:[#allocation149_spill] sm:$0xff] %v12066_v33  ;;  %16980 = vst [vmem:[#allocation8_spill] sm:$0xff] %v12070_v50  ;;  %v12090_v12 = vadd.f32 %v11762_v8, %v16989_v28  ;;  %v12094_v43 = vadd.f32 %v11766_v0, %v16991_v24  ;;  %v16993_v42 = vld [vmem:[#allocation218_spill] sm:$0xff]  ;;  %v16995_v7 = vld [vmem:[#allocation219_spill] sm:$0xff] }
 0x211   :  { %16982 = vst [vmem:[#allocation9_spill] sm:$0xff] %v12074_v38  ;;  %16984 = vst [vmem:[#allocation150_spill] sm:$0xff] %v12078_v21  ;;  %v12098_v10 = vadd.f32 %v11770_v57, %v16993_v42  ;;  %v12102_v2 = vadd.f32 %v11774_v15, %v16995_v7  ;;  %v16997_v54 = vld [vmem:[#allocation158_spill] sm:$0xff]  ;;  %v16999_v29 = vld [vmem:[#allocation220_spill] sm:$0xff] }
 0x212   :  { %16986 = vst [vmem:[#allocation151_spill] sm:$0xff] %v12082_v49  ;;  %16988 = vst [vmem:[#allocation152_spill] sm:$0xff] %v12086_v47  ;;  %v12106_v60 = vadd.f32 %v11778_v63, %v16997_v54  ;;  %v17000_v47 = vld [vmem:[#allocation324_spill] sm:$0xff]  ;;  %v17002_v28 = vld [vmem:[#allocation221_spill] sm:$0xff] }
 0x213   :  { %16990 = vst [vmem:[#allocation153_spill] sm:$0xff] %v12090_v12  ;;  %16992 = vst [vmem:[#allocation154_spill] sm:$0xff] %v12094_v43  ;;  %v12110_v8 = vadd.f32 %v17000_v47, %v16999_v29  ;;  %v12114_v0 = vadd.f32 %v11786_v40, %v17002_v28  ;;  %v17004_v24 = vld [vmem:[#allocation222_spill] sm:$0xff]  ;;  %v17005_v43 = vld [vmem:[#allocation325_spill] sm:$0xff] }
 0x214   :  { %16994 = vst [vmem:[#allocation205_spill] sm:$0xff] %v12098_v10  ;;  %16996 = vst [vmem:[#allocation155_spill] sm:$0xff] %v12102_v2  ;;  %v12118_v57 = vadd.f32 %v17005_v43, %v17004_v24  ;;  %v17007_v42 = vld [vmem:[#allocation159_spill] sm:$0xff]  ;;  %v17008_v10 = vld [vmem:[#allocation326_spill] sm:$0xff] }
 0x215   :  { %16998 = vst [vmem:[#allocation206_spill] sm:$0xff] %v12106_v60  ;;  %17001 = vst [vmem:[#allocation207_spill] sm:$0xff] %v12110_v8  ;;  %v12122_v15 = vadd.f32 %v17008_v10, %v17007_v42  ;;  %v17010_v7 = vld [vmem:[#allocation223_spill] sm:$0xff]  ;;  %v17013_v54 = vld [vmem:[#allocation224_spill] sm:$0xff] }
 0x216   :  { %17003 = vst [vmem:[#allocation208_spill] sm:$0xff] %v12114_v0  ;;  %17006 = vst [vmem:[#allocation209_spill] sm:$0xff] %v12118_v57  ;;  %v17011_v2 = vld [vmem:[#allocation327_spill] sm:$0xff]  ;;  %v12130_v47 = vadd.f32 %v11802_v30, %v17013_v54  ;;  %v17015_v29 = vld [vmem:[#allocation160_spill] sm:$0xff] }
 0x217   :  { %17009 = vst [vmem:[#allocation156_spill] sm:$0xff] %v12122_v15  ;;  %v12126_v63 = vadd.f32 %v17011_v2, %v17010_v7  ;;  %v17016_v8 = vld [vmem:[#allocation328_spill] sm:$0xff]  ;;  %v17018_v28 = vld [vmem:[#allocation161_spill] sm:$0xff]  ;;  %v17022_v57 = vld [vmem:[#allocation330_spill] sm:$0xff] }
 0x218   :  { %17014 = vst [vmem:[#allocation211_spill] sm:$0xff] %v12130_v47  ;;  %v12134_v40 = vadd.f32 %v17016_v8, %v17015_v29  ;;  %v17019_v0 = vld [vmem:[#allocation329_spill] sm:$0xff]  ;;  %v17024_v42 = vld [vmem:[#allocation226_spill] sm:$0xff]  ;;  %v17026_v7 = vld [vmem:[#allocation227_spill] sm:$0xff] }
 0x219   :  { %17012 = vst [vmem:[#allocation210_spill] sm:$0xff] %v12126_v63  ;;  %v12138_v43 = vadd.f32 %v17019_v0, %v17018_v28  ;;  %v17021_v24 = vld [vmem:[#allocation225_spill] sm:$0xff]  ;;  %v12146_v2 = vadd.f32 %v11818_v34, %v17024_v42  ;;  %v17027_v63 = vld [vmem:[#allocation331_spill] sm:$0xff]  ;;  %v17029_v54 = vld [vmem:[#allocation228_spill] sm:$0xff] }
 0x21a   :  { %17017 = vst [vmem:[#allocation212_spill] sm:$0xff] %v12134_v40  ;;  %v12142_v10 = vadd.f32 %v17022_v57, %v17021_v24  ;;  %v12150_v30 = vadd.f32 %v17027_v63, %v17026_v7  ;;  %v17030_v47 = vld [vmem:[#allocation332_spill] sm:$0xff]  ;;  %v17032_v29 = vld [vmem:[#allocation229_spill] sm:$0xff]  ;;  %v17034_v28 = vld [vmem:[#allocation230_spill] sm:$0xff] }
 0x21b   :  { %17020 = vst [vmem:[#allocation157_spill] sm:$0xff] %v12138_v43  ;;  %17025 = vst [vmem:[#allocation214_spill] sm:$0xff] %v12146_v2  ;;  %v12154_v8 = vadd.f32 %v17030_v47, %v17029_v54  ;;  %v12158_v0 = vadd.f32 %v11830_v23, %v17032_v29  ;;  %v17035_v43 = vld [vmem:[#allocation333_spill] sm:$0xff]  ;;  %v17037_v24 = vld [vmem:[#allocation231_spill] sm:$0xff] }
 0x21c   :  { %17023 = vst [vmem:[#allocation213_spill] sm:$0xff] %v12142_v10  ;;  %17028 = vst [vmem:[#allocation215_spill] sm:$0xff] %v12150_v30  ;;  %v12162_v57 = vadd.f32 %v17035_v43, %v17034_v28  ;;  %v17038_v10 = vld [vmem:[#allocation334_spill] sm:$0xff]  ;;  %v17040_v42 = vld [vmem:[#allocation232_spill] sm:$0xff] }
 0x21d   :  { %17031 = vst [vmem:[#allocation216_spill] sm:$0xff] %v12154_v8  ;;  %17033 = vst [vmem:[#allocation217_spill] sm:$0xff] %v12158_v0  ;;  %v12166_v34 = vadd.f32 %v17038_v10, %v17037_v24  ;;  %v17041_v2 = vld [vmem:[#allocation335_spill] sm:$0xff]  ;;  %v17043_v7 = vld [vmem:[#allocation233_spill] sm:$0xff] }
 0x21e   :  { %17036 = vst [vmem:[#allocation218_spill] sm:$0xff] %v12162_v57  ;;  %v12170_v63 = vadd.f32 %v17041_v2, %v17040_v42  ;;  %v12174_v47 = vadd.f32 %v11846_v56, %v17043_v7  ;;  %v17045_v54 = vld [vmem:[#allocation234_spill] sm:$0xff]  ;;  %v17046_v8 = vld [vmem:[#allocation336_spill] sm:$0xff]  ;;  %v17048_v29 = vld [vmem:[#allocation235_spill] sm:$0xff] }
 0x21f   :  { %17039 = vst [vmem:[#allocation219_spill] sm:$0xff] %v12166_v34  ;;  %v12178_v23 = vadd.f32 %v17046_v8, %v17045_v54  ;;  %v17049_v0 = vld [vmem:[#allocation337_spill] sm:$0xff]  ;;  %v17051_v28 = vld [vmem:[#allocation236_spill] sm:$0xff]  ;;  %v17052_v57 = vld [vmem:[#allocation338_spill] sm:$0xff] }
 0x220   :  { %17042 = vst [vmem:[#allocation158_spill] sm:$0xff] %v12170_v63  ;;  %17044 = vst [vmem:[#allocation220_spill] sm:$0xff] %v12174_v47  ;;  %v12182_v43 = vadd.f32 %v17049_v0, %v17048_v29  ;;  %v12186_v10 = vadd.f32 %v17052_v57, %v17051_v28  ;;  %v17054_v24 = vld [vmem:[#allocation237_spill] sm:$0xff]  ;;  %v17055_v34 = vld [vmem:[#allocation339_spill] sm:$0xff] }
 0x221   :  { %17047 = vst [vmem:[#allocation324_spill] sm:$0xff] %v12178_v23  ;;  %v12190_v2 = vadd.f32 %v17055_v34, %v17054_v24  ;;  %v17057_v42 = vld [vmem:[#allocation5_spill] sm:$0xff]  ;;  %v17058_v63 = vld [vmem:[#allocation340_spill] sm:$0xff]  ;;  %v17060_v7 = vld [vmem:[#allocation162_spill] sm:$0xff] }
 0x222   :  { %17050 = vst [vmem:[#allocation221_spill] sm:$0xff] %v12182_v43  ;;  %17053 = vst [vmem:[#allocation222_spill] sm:$0xff] %v12186_v10  ;;  %v12194_v56 = vadd.f32 %v17058_v63, %v17057_v42  ;;  %v17061_v47 = vld [vmem:[#allocation341_spill] sm:$0xff]  ;;  %v17063_v54 = vld [vmem:[#allocation238_spill] sm:$0xff] }
 0x223   :  { %17056 = vst [vmem:[#allocation325_spill] sm:$0xff] %v12190_v2  ;;  %v12198_v8 = vadd.f32 %v17061_v47, %v17060_v7  ;;  %v12202_v0 = vadd.f32 %v11874_v45, %v17063_v54  ;;  %v17065_v29 = vld [vmem:[#allocation164_spill] sm:$0xff]  ;;  %v17066_v43 = vld [vmem:[#allocation342_spill] sm:$0xff]  ;;  %v17068_v28 = vld [vmem:[#allocation165_spill] sm:$0xff] }
 0x224   :  { %17059 = vst [vmem:[#allocation159_spill] sm:$0xff] %v12194_v56  ;;  %v12206_v57 = vadd.f32 %v17066_v43, %v17065_v29  ;;  %v17069_v10 = vld [vmem:[#allocation343_spill] sm:$0xff]  ;;  %v17071_v24 = vld [vmem:[#allocation166_spill] sm:$0xff]  ;;  %v17072_v2 = vld [vmem:[#allocation344_spill] sm:$0xff] }
 0x225   :  { %17062 = vst [vmem:[#allocation326_spill] sm:$0xff] %v12198_v8  ;;  %17064 = vst [vmem:[#allocation223_spill] sm:$0xff] %v12202_v0  ;;  %v12210_v34 = vadd.f32 %v17069_v10, %v17068_v28  ;;  %v12214_v63 = vadd.f32 %v17072_v2, %v17071_v24  ;;  %v17074_v42 = vld [vmem:[#allocation239_spill] sm:$0xff]  ;;  %v17076_v7 = vld [vmem:[#allocation168_spill] sm:$0xff] }
 0x226   :  { %17067 = vst [vmem:[#allocation327_spill] sm:$0xff] %v12206_v57  ;;  %v12218_v47 = vadd.f32 %v11890_v11, %v17074_v42  ;;  %v17077_v8 = vld [vmem:[#allocation345_spill] sm:$0xff]  ;;  %v17080_v0 = vld [vmem:[#allocation346_spill] sm:$0xff]  ;;  %v17082_v29 = vld [vmem:[#allocation240_spill] sm:$0xff] }
 0x227   :  { %17070 = vst [vmem:[#allocation224_spill] sm:$0xff] %v12210_v34  ;;  %17073 = vst [vmem:[#allocation160_spill] sm:$0xff] %v12214_v63  ;;  %v12222_v45 = vadd.f32 %v17077_v8, %v17076_v7  ;;  %v17079_v54 = vld [vmem:[#allocation169_spill] sm:$0xff]  ;;  %v17083_v57 = vld [vmem:[#allocation347_spill] sm:$0xff] }
 0x228   :  { %17075 = vst [vmem:[#allocation328_spill] sm:$0xff] %v12218_v47  ;;  %v12226_v43 = vadd.f32 %v17080_v0, %v17079_v54  ;;  %v12230_v10 = vadd.f32 %v17083_v57, %v17082_v29  ;;  %v17085_v28 = vld [vmem:[#allocation170_spill] sm:$0xff]  ;;  %v17087_v24 = vld [vmem:[#allocation172_spill] sm:$0xff]  ;;  %v17089_v42 = vld [vmem:[#allocation173_spill] sm:$0xff] }
 0x229   :  { %17078 = vst [vmem:[#allocation161_spill] sm:$0xff] %v12222_v45  ;;  %v12234_v2 = vadd.f32 %v11906_v18, %v17085_v28  ;;  %v12238_v11 = vadd.f32 %v11910_v4, %v17087_v24  ;;  %v12242_v8 = vadd.f32 %v11914_v37, %v17089_v42  ;;  %v17091_v7 = vld [vmem:[#allocation136_spill] sm:$0xff]  ;;  %v17093_v54 = vld [vmem:[#allocation174_spill] sm:$0xff]  ;;  %v17096_v29 = vld [vmem:[#allocation175_spill] sm:$0xff] }
 0x22a   :  { %17081 = vst [vmem:[#allocation329_spill] sm:$0xff] %v12226_v43  ;;  %17084 = vst [vmem:[#allocation225_spill] sm:$0xff] %v12230_v10  ;;  %v12246_v0 = vadd.f32 %v11918_v20, %v17091_v7  ;;  %v17094_v43 = vld [vmem:[#allocation348_spill] sm:$0xff]  ;;  %v17097_v10 = vld [vmem:[#allocation349_spill] sm:$0xff] }
 0x22b   :  { %17086 = vst [vmem:[#allocation330_spill] sm:$0xff] %v12234_v2  ;;  %17088 = vst [vmem:[#allocation226_spill] sm:$0xff] %v12238_v11  ;;  %v12250_v57 = vadd.f32 %v17094_v43, %v17093_v54  ;;  %v12254_v18 = vadd.f32 %v17097_v10, %v17096_v29  ;;  %v17099_v28 = vld [vmem:[#allocation176_spill] sm:$0xff]  ;;  %v17100_v2 = vld [vmem:[#allocation350_spill] sm:$0xff] }
 0x22c   :  { %17090 = vst [vmem:[#allocation227_spill] sm:$0xff] %v12242_v8  ;;  %17092 = vst [vmem:[#allocation331_spill] sm:$0xff] %v12246_v0  ;;  %v12258_v4 = vadd.f32 %v17100_v2, %v17099_v28  ;;  %v17102_v24 = vld [vmem:[#allocation241_spill] sm:$0xff]  ;;  %v17103_v11 = vld [vmem:[#allocation351_spill] sm:$0xff] }
 0x22d   :  { %17095 = vst [vmem:[#allocation228_spill] sm:$0xff] %v12250_v57  ;;  %17098 = vst [vmem:[#allocation332_spill] sm:$0xff] %v12254_v18  ;;  %v12262_v37 = vadd.f32 %v17103_v11, %v17102_v24  ;;  %v17105_v42 = vld [vmem:[#allocation10_spill] sm:$0xff]  ;;  %v17106_v7 = vld [vmem:[#allocation163_spill] sm:$0xff] }
 0x22e   :  { %17101 = vst [vmem:[#allocation229_spill] sm:$0xff] %v12258_v4  ;;  %v12266_v20 = vmul.f32 %v17105_v42, %v11468_v35  ;;  %v12270_v43 = vmul.f32 %v17106_v7, %v11468_v35  ;;  %v17107_v54 = vld [vmem:[#allocation26_spill] sm:$0xff]  ;;  %v17108_v57 = vld [vmem:[#allocation352_spill] sm:$0xff]  ;;  %v17110_v29 = vld [vmem:[#allocation27_spill] sm:$0xff] }
 0x22f   :  { %17104 = vst [vmem:[#allocation230_spill] sm:$0xff] %v12262_v37  ;;  %v12274_v10 = vadd.f32 %v17108_v57, %v17107_v54  ;;  %v17111_v18 = vld [vmem:[#allocation353_spill] sm:$0xff]  ;;  %v17113_v28 = vld [vmem:[#allocation167_spill] sm:$0xff]  ;;  %v17115_v37 = vld [vmem:[#allocation178_spill] sm:$0xff] }
 0x230   :  { %v12278_v2 = vadd.f32 %v17111_v18, %v17110_v29  ;;  %v12282_v11 = vmul.f32 %v17113_v28, %v11468_v35  ;;  %v17114_v24 = vld [vmem:[#allocation171_spill] sm:$0xff]  ;;  %v12290_v7 = vmul.f32 %v17115_v37, %v11468_v35  ;;  %v17116_v4 = vld [vmem:[#allocation180_spill] sm:$0xff]  ;;  %v17117_v54 = vld [vmem:[#allocation181_spill] sm:$0xff] }
 0x231   :  { %17109 = vst [vmem:[#allocation333_spill] sm:$0xff] %v12274_v10  ;;  %v12286_v42 = vmul.f32 %v17114_v24, %v11468_v35  ;;  %v12294_v57 = vmul.f32 %v17116_v4, %v11468_v35  ;;  %v12298_v18 = vmul.f32 %v17117_v54, %v11468_v35  ;;  %v17118_v29 = vld [vmem:[#allocation182_spill] sm:$0xff]  ;;  %v17120_v10 = vld [vmem:[#allocation184_spill] sm:$0xff]  ;;  %v17121_v0 = vld [vmem:[#allocation185_spill] sm:$0xff] }
 0x232   :  { %17112 = vst [vmem:[#allocation231_spill] sm:$0xff] %v12278_v2  ;;  %v12302_v28 = vmul.f32 %v17118_v29, %v11468_v35  ;;  %v17119_v2 = vld [vmem:[#allocation183_spill] sm:$0xff]  ;;  %v12310_v37 = vmul.f32 %v17120_v10, %v11468_v35  ;;  %v12314_v4 = vmul.f32 %v17121_v0, %v11468_v35  ;;  %v17122_v8 = vld [vmem:[#allocation186_spill] sm:$0xff]  ;;  %v17126_v34 = vld [vmem:[#allocation244_spill] sm:$0xff] }
 0x233   :  { %v12306_v24 = vmul.f32 %v17119_v2, %v11468_v35  ;;  %v12318_v54 = vmul.f32 %v17122_v8, %v11468_v35  ;;  %v17123_v45 = vld [vmem:[#allocation242_spill] sm:$0xff]  ;;  %v17124_v47 = vld [vmem:[#allocation187_spill] sm:$0xff]  ;;  %v12334_v0 = vmul.f32 %v17126_v34, %v11468_v35  ;;  %v17127_v56 = vld [vmem:[#allocation188_spill] sm:$0xff] }
 0x234   :  { %v12322_v29 = vmul.f32 %v17123_v45, %v11468_v35  ;;  %v12326_v2 = vmul.f32 %v17124_v47, %v11468_v35  ;;  %v17125_v63 = vld [vmem:[#allocation243_spill] sm:$0xff]  ;;  %v12338_v8 = vmul.f32 %v17127_v56, %v11468_v35  ;;  %v17128_v23 = vld [vmem:[#allocation245_spill] sm:$0xff]  ;;  %v17129_v30 = vld [vmem:[#allocation246_spill] sm:$0xff] }
 0x235   :  { %v12330_v10 = vmul.f32 %v17125_v63, %v11468_v35  ;;  %v12342_v45 = vmul.f32 %v17128_v23, %v11468_v35  ;;  %v12346_v47 = vmul.f32 %v17129_v30, %v11468_v35  ;;  %v17130_v40 = vld [vmem:[#allocation247_spill] sm:$0xff]  ;;  %v17131_v15 = vld [vmem:[#allocation189_spill] sm:$0xff]  ;;  %v17132_v60 = vld [vmem:[#allocation248_spill] sm:$0xff] }
 0x236   :  { %v12350_v63 = vmul.f32 %v17130_v40, %v11468_v35  ;;  %v12354_v34 = vmul.f32 %v17131_v15, %v11468_v35  ;;  %v12358_v56 = vmul.f32 %v17132_v60, %v11468_v35  ;;  %v17133_v12 = vld [vmem:[#allocation249_spill] sm:$0xff]  ;;  %v17134_v49 = vld [vmem:[#allocation250_spill] sm:$0xff]  ;;  %v17136_v38 = vld [vmem:[#allocation251_spill] sm:$0xff] }
 0x237   :  { %v12362_v23 = vmul.f32 %v17133_v12, %v11468_v35  ;;  %v12366_v30 = vmul.f32 %v17134_v49, %v11468_v35  ;;  %v17135_v21 = vld [vmem:[#allocation190_spill] sm:$0xff]  ;;  %v12374_v15 = vmul.f32 %v17136_v38, %v11468_v35  ;;  %v17137_v50 = vld [vmem:[#allocation252_spill] sm:$0xff]  ;;  %v17138_v33 = vld [vmem:[#allocation191_spill] sm:$0xff] }
 0x238   :  { %v12370_v40 = vmul.f32 %v17135_v21, %v11468_v35  ;;  %v12378_v60 = vmul.f32 %v17137_v50, %v11468_v35  ;;  %v12382_v12 = vmul.f32 %v17138_v33, %v11468_v35  ;;  %v17139_v3 = vld [vmem:[#allocation253_spill] sm:$0xff]  ;;  %v17140_v62 = vld [vmem:[#allocation254_spill] sm:$0xff]  ;;  %v17141_v44 = vld [vmem:[#allocation255_spill] sm:$0xff] }
 0x239   :  { %v12386_v49 = vmul.f32 %v17139_v3, %v11468_v35  ;;  %v12390_v21 = vmul.f32 %v17140_v62, %v11468_v35  ;;  %v12394_v38 = vmul.f32 %v17141_v44, %v11468_v35  ;;  %v17142_v32 = vld [vmem:[#allocation192_spill] sm:$0xff]  ;;  %v17144_v46 = vld [vmem:[#allocation257_spill] sm:$0xff]  ;;  %v17145_v55 = vld [vmem:[#allocation258_spill] sm:$0xff] }
 0x23a   :  { %v12398_v50 = vmul.f32 %v17142_v32, %v11468_v35  ;;  %v17143_v39 = vld [vmem:[#allocation256_spill] sm:$0xff]  ;;  %v12406_v3 = vmul.f32 %v17144_v46, %v11468_v35  ;;  %v12410_v62 = vmul.f32 %v17145_v55, %v11468_v35  ;;  %v17146_v14 = vld [vmem:[#allocation193_spill] sm:$0xff]  ;;  %v17147_v1 = vld [vmem:[#allocation259_spill] sm:$0xff] }
 0x23b   :  { %v12402_v33 = vmul.f32 %v17143_v39, %v11468_v35  ;;  %v12414_v44 = vmul.f32 %v17146_v14, %v11468_v35  ;;  %v12418_v32 = vmul.f32 %v17147_v1, %v11468_v35  ;;  %v17148_v51 = vld [vmem:[#allocation260_spill] sm:$0xff]  ;;  %v17149_v48 = vld [vmem:[#allocation194_spill] sm:$0xff]  ;;  %v17150_v61 = vld [vmem:[#allocation261_spill] sm:$0xff] }
 0x23c   :  { %v12422_v39 = vmul.f32 %v17148_v51, %v11468_v35  ;;  %v12426_v46 = vmul.f32 %v17149_v48, %v11468_v35  ;;  %v12430_v55 = vmul.f32 %v17150_v61, %v11468_v35  ;;  %v17151_v6 = vld [vmem:[#allocation262_spill] sm:$0xff]  ;;  %v17152_v5 = vld [vmem:[#allocation263_spill] sm:$0xff]  ;;  %v17154_v52 = vld [vmem:[#allocation264_spill] sm:$0xff] }
 0x23d   :  { %v12434_v14 = vmul.f32 %v17151_v6, %v11468_v35  ;;  %v12438_v1 = vmul.f32 %v17152_v5, %v11468_v35  ;;  %v17153_v58 = vld [vmem:[#allocation195_spill] sm:$0xff]  ;;  %v12446_v48 = vmul.f32 %v17154_v52, %v11468_v35  ;;  %v17155_v31 = vld [vmem:[#allocation265_spill] sm:$0xff]  ;;  %v17156_v16 = vld [vmem:[#allocation266_spill] sm:$0xff] }
 0x23e   :  { %v12442_v51 = vmul.f32 %v17153_v58, %v11468_v35  ;;  %v12450_v61 = vmul.f32 %v17155_v31, %v11468_v35  ;;  %v12454_v6 = vmul.f32 %v17156_v16, %v11468_v35  ;;  %v17157_v36 = vld [vmem:[#allocation196_spill] sm:$0xff]  ;;  %v17158_v53 = vld [vmem:[#allocation267_spill] sm:$0xff]  ;;  %v17162_v13 = vld [vmem:[#allocation197_spill] sm:$0xff] }
 0x23f   :  { %v12458_v5 = vmul.f32 %v17157_v36, %v11468_v35  ;;  %v12462_v58 = vmul.f32 %v17158_v53, %v11468_v35  ;;  %v17160_v22 = vld [vmem:[#allocation268_spill] sm:$0xff]  ;;  %v12470_v31 = vmul.f32 %v17162_v13, %v11468_v35  ;;  %v17164_v25 = vld [vmem:[#allocation269_spill] sm:$0xff]  ;;  %v17166_v27 = vld [vmem:[#allocation270_spill] sm:$0xff] }
 0x240   :  { %v12466_v52 = vmul.f32 %v17160_v22, %v11468_v35  ;;  %v12474_v16 = vmul.f32 %v17164_v25, %v11468_v35  ;;  %v12478_v36 = vmul.f32 %v17166_v27, %v11468_v35  ;;  %v17168_v26 = vld [vmem:[#allocation271_spill] sm:$0xff]  ;;  %v17170_v41 = vld [vmem:[#allocation198_spill] sm:$0xff]  ;;  %v17172_v19 = vld [vmem:[#allocation272_spill] sm:$0xff] }
 0x241   :  { %17159 = vst [vmem:[#allocation334_spill] sm:$0xff] %v12462_v58  ;;  %17163 = vst [vmem:[#allocation335_spill] sm:$0xff] %v12470_v31  ;;  %v12482_v53 = vmul.f32 %v17168_v26, %v11468_v35  ;;  %v12486_v22 = vmul.f32 %v17170_v41, %v11468_v35  ;;  %v12490_v13 = vmul.f32 %v17172_v19, %v11468_v35  ;;  %v17174_v9 = vld [vmem:[#allocation273_spill] sm:$0xff]  ;;  %v17176_v17 = vld [vmem:[#allocation274_spill] sm:$0xff] }
 0x242   :  { %17161 = vst [vmem:[#allocation232_spill] sm:$0xff] %v12466_v52  ;;  %17165 = vst [vmem:[#allocation233_spill] sm:$0xff] %v12474_v16  ;;  %v12494_v25 = vmul.f32 %v17174_v9, %v11468_v35  ;;  %v12498_v27 = vmul.f32 %v17176_v17, %v11468_v35  ;;  %v17178_v59 = vld [vmem:[#allocation199_spill] sm:$0xff]  ;;  %v17291_v31 = vld [vmem:[#allocation372_spill] sm:$0xff] }
 0x243   :  { %17167 = vst [vmem:[#allocation234_spill] sm:$0xff] %v12478_v36  ;;  %17169 = vst [vmem:[#allocation336_spill] sm:$0xff] %v12482_v53  ;;  %v12502_v26 = vmul.f32 %v17178_v59, %v11468_v35  ;;  %v17180_v53 = vld [vmem:[#allocation275_spill] sm:$0xff]  ;;  %v17285_v36 = vld [vmem:[#allocation370_spill] sm:$0xff] }
 0x244   :  { %17171 = vst [vmem:[#allocation235_spill] sm:$0xff] %v12486_v22  ;;  %17173 = vst [vmem:[#allocation337_spill] sm:$0xff] %v12490_v13  ;;  %v12506_v41 = vmul.f32 %v17180_v53, %v11468_v35  ;;  %v17182_v22 = vld [vmem:[#allocation276_spill] sm:$0xff]  ;;  %v17288_v16 = vld [vmem:[#allocation371_spill] sm:$0xff] }
 0x245   :  { %17175 = vst [vmem:[#allocation236_spill] sm:$0xff] %v12494_v25  ;;  %17177 = vst [vmem:[#allocation338_spill] sm:$0xff] %v12498_v27  ;;  %v12510_v19 = vmul.f32 %v17182_v22, %v11468_v35  ;;  %v17184_v13 = vld [vmem:[#allocation200_spill] sm:$0xff]  ;;  %v17186_v25 = vld [vmem:[#allocation277_spill] sm:$0xff] }
 0x246   :  { %17179 = vst [vmem:[#allocation237_spill] sm:$0xff] %v12502_v26  ;;  %17181 = vst [vmem:[#allocation339_spill] sm:$0xff] %v12506_v41  ;;  %v12514_v9 = vmul.f32 %v17184_v13, %v11468_v35  ;;  %v12518_v17 = vmul.f32 %v17186_v25, %v11468_v35  ;;  %v17188_v27 = vld [vmem:[#allocation278_spill] sm:$0xff]  ;;  %v17190_v26 = vld [vmem:[#allocation279_spill] sm:$0xff] }
 0x247   :  { %17183 = vst [vmem:[#allocation5_spill] sm:$0xff] %v12510_v19  ;;  %v12522_v59 = vmul.f32 %v17188_v27, %v11468_v35  ;;  %v12526_v53 = vmul.f32 %v17190_v26, %v11468_v35  ;;  %v17192_v41 = vld [vmem:[#allocation201_spill] sm:$0xff]  ;;  %v17194_v19 = vld [vmem:[#allocation280_spill] sm:$0xff]  ;;  %v17297_v58 = vld [vmem:[#allocation374_spill] sm:$0xff] }
 0x248   :  { %17185 = vst [vmem:[#allocation340_spill] sm:$0xff] %v12514_v9  ;;  %17187 = vst [vmem:[#allocation162_spill] sm:$0xff] %v12518_v17  ;;  %v12530_v22 = vmul.f32 %v17192_v41, %v11468_v35  ;;  %v12534_v13 = vmul.f32 %v17194_v19, %v11468_v35  ;;  %v17196_v9 = vld [vmem:[#allocation281_spill] sm:$0xff]  ;;  %v17198_v17 = vld [vmem:[#allocation282_spill] sm:$0xff] }
 0x249   :  { %17189 = vst [vmem:[#allocation341_spill] sm:$0xff] %v12522_v59  ;;  %17191 = vst [vmem:[#allocation238_spill] sm:$0xff] %v12526_v53  ;;  %v12538_v25 = vmul.f32 %v17196_v9, %v11468_v35  ;;  %v12542_v27 = vmul.f32 %v17198_v17, %v11468_v35  ;;  %v17200_v59 = vld [vmem:[#allocation202_spill] sm:$0xff]  ;;  %v17202_v53 = vld [vmem:[#allocation283_spill] sm:$0xff] }
 0x24a   :  { %17193 = vst [vmem:[#allocation164_spill] sm:$0xff] %v12530_v22  ;;  %17195 = vst [vmem:[#allocation342_spill] sm:$0xff] %v12534_v13  ;;  %v12546_v26 = vmul.f32 %v17200_v59, %v11468_v35  ;;  %v12550_v41 = vmul.f32 %v17202_v53, %v11468_v35  ;;  %v17204_v22 = vld [vmem:[#allocation284_spill] sm:$0xff]  ;;  %v17206_v13 = vld [vmem:[#allocation285_spill] sm:$0xff] }
 0x24b   :  { %17197 = vst [vmem:[#allocation165_spill] sm:$0xff] %v12538_v25  ;;  %17199 = vst [vmem:[#allocation343_spill] sm:$0xff] %v12542_v27  ;;  %v12554_v19 = vmul.f32 %v17204_v22, %v11468_v35  ;;  %v12558_v9 = vmul.f32 %v17206_v13, %v11468_v35  ;;  %v17208_v25 = vld [vmem:[#allocation286_spill] sm:$0xff]  ;;  %v17210_v27 = vld [vmem:[#allocation287_spill] sm:$0xff] }
 0x24c   :  { %17201 = vst [vmem:[#allocation166_spill] sm:$0xff] %v12546_v26  ;;  %17203 = vst [vmem:[#allocation344_spill] sm:$0xff] %v12550_v41  ;;  %v12562_v17 = vmul.f32 %v17208_v25, %v11468_v35  ;;  %v12566_v59 = vmul.f32 %v17210_v27, %v11468_v35  ;;  %v17212_v26 = vld [vmem:[#allocation288_spill] sm:$0xff]  ;;  %v17214_v41 = vld [vmem:[#allocation289_spill] sm:$0xff] }
 0x24d   :  { %17205 = vst [vmem:[#allocation239_spill] sm:$0xff] %v12554_v19  ;;  %17207 = vst [vmem:[#allocation168_spill] sm:$0xff] %v12558_v9  ;;  %v12570_v53 = vmul.f32 %v17212_v26, %v11468_v35  ;;  %v12574_v22 = vmul.f32 %v17214_v41, %v11468_v35  ;;  %v17216_v19 = vld [vmem:[#allocation290_spill] sm:$0xff]  ;;  %v17218_v9 = vld [vmem:[#allocation291_spill] sm:$0xff] }
 0x24e   :  { %17209 = vst [vmem:[#allocation345_spill] sm:$0xff] %v12562_v17  ;;  %17211 = vst [vmem:[#allocation169_spill] sm:$0xff] %v12566_v59  ;;  %v12578_v13 = vmul.f32 %v17216_v19, %v11468_v35  ;;  %v12582_v25 = vmul.f32 %v17218_v9, %v11468_v35  ;;  %v17220_v17 = vld [vmem:[#allocation292_spill] sm:$0xff]  ;;  %v17222_v59 = vld [vmem:[#allocation293_spill] sm:$0xff] }
 0x24f   :  { %17213 = vst [vmem:[#allocation346_spill] sm:$0xff] %v12570_v53  ;;  %17215 = vst [vmem:[#allocation240_spill] sm:$0xff] %v12574_v22  ;;  %v12586_v27 = vmul.f32 %v17220_v17, %v11468_v35  ;;  %v12590_v26 = vmul.f32 %v17222_v59, %v11468_v35  ;;  %v17224_v53 = vld [vmem:[#allocation294_spill] sm:$0xff]  ;;  %v17226_v22 = vld [vmem:[#allocation295_spill] sm:$0xff] }
 0x250   :  { %17217 = vst [vmem:[#allocation347_spill] sm:$0xff] %v12578_v13  ;;  %17219 = vst [vmem:[#allocation170_spill] sm:$0xff] %v12582_v25  ;;  %v12594_v41 = vmul.f32 %v17224_v53, %v11468_v35  ;;  %v12598_v19 = vmul.f32 %v17226_v22, %v11468_v35  ;;  %v17228_v13 = vld [vmem:[#allocation296_spill] sm:$0xff]  ;;  %v17230_v25 = vld [vmem:[#allocation297_spill] sm:$0xff] }
 0x251   :  { %17221 = vst [vmem:[#allocation172_spill] sm:$0xff] %v12586_v27  ;;  %17223 = vst [vmem:[#allocation173_spill] sm:$0xff] %v12590_v26  ;;  %v12602_v9 = vmul.f32 %v17228_v13, %v11468_v35  ;;  %v12606_v17 = vmul.f32 %v17230_v25, %v11468_v35  ;;  %v17232_v27 = vld [vmem:[#allocation298_spill] sm:$0xff]  ;;  %v17234_v26 = vld [vmem:[#allocation299_spill] sm:$0xff] }
 0x252   :  { %17225 = vst [vmem:[#allocation136_spill] sm:$0xff] %v12594_v41  ;;  %17227 = vst [vmem:[#allocation174_spill] sm:$0xff] %v12598_v19  ;;  %v12610_v59 = vmul.f32 %v17232_v27, %v11468_v35  ;;  %v12614_v53 = vmul.f32 %v17234_v26, %v11468_v35  ;;  %v17236_v41 = vld [vmem:[#allocation300_spill] sm:$0xff]  ;;  %v17238_v19 = vld [vmem:[#allocation301_spill] sm:$0xff] }
 0x253   :  { %17229 = vst [vmem:[#allocation348_spill] sm:$0xff] %v12602_v9  ;;  %17231 = vst [vmem:[#allocation175_spill] sm:$0xff] %v12606_v17  ;;  %v12618_v22 = vmul.f32 %v17236_v41, %v11468_v35  ;;  %v12622_v13 = vmul.f32 %v17238_v19, %v11468_v35  ;;  %v17240_v9 = vld [vmem:[#allocation302_spill] sm:$0xff]  ;;  %v17242_v17 = vld [vmem:[#allocation303_spill] sm:$0xff] }
 0x254   :  { %17233 = vst [vmem:[#allocation349_spill] sm:$0xff] %v12610_v59  ;;  %17235 = vst [vmem:[#allocation176_spill] sm:$0xff] %v12614_v53  ;;  %v12626_v25 = vmul.f32 %v17240_v9, %v11468_v35  ;;  %v12630_v27 = vmul.f32 %v17242_v17, %v11468_v35  ;;  %v17244_v59 = vld [vmem:[#allocation304_spill] sm:$0xff]  ;;  %v17246_v53 = vld [vmem:[#allocation305_spill] sm:$0xff] }
 0x255   :  { %17237 = vst [vmem:[#allocation350_spill] sm:$0xff] %v12618_v22  ;;  %17239 = vst [vmem:[#allocation241_spill] sm:$0xff] %v12622_v13  ;;  %v12634_v26 = vmul.f32 %v17244_v59, %v11468_v35  ;;  %v12638_v41 = vmul.f32 %v17246_v53, %v11468_v35  ;;  %v17248_v22 = vld [vmem:[#allocation306_spill] sm:$0xff]  ;;  %v17250_v13 = vld [vmem:[#allocation307_spill] sm:$0xff] }
 0x256   :  { %17241 = vst [vmem:[#allocation351_spill] sm:$0xff] %v12626_v25  ;;  %17243 = vst [vmem:[#allocation10_spill] sm:$0xff] %v12630_v27  ;;  %v12642_v19 = vmul.f32 %v17248_v22, %v11468_v35  ;;  %v12646_v9 = vmul.f32 %v17250_v13, %v11468_v35  ;;  %v17252_v25 = vld [vmem:[#allocation308_spill] sm:$0xff]  ;;  %v17254_v27 = vld [vmem:[#allocation309_spill] sm:$0xff] }
 0x257   :  { %17245 = vst [vmem:[#allocation163_spill] sm:$0xff] %v12634_v26  ;;  %17247 = vst [vmem:[#allocation26_spill] sm:$0xff] %v12638_v41  ;;  %v12650_v17 = vmul.f32 %v17252_v25, %v11468_v35  ;;  %v12654_v59 = vmul.f32 %v17254_v27, %v11468_v35  ;;  %v17256_v26 = vld [vmem:[#allocation310_spill] sm:$0xff]  ;;  %v17258_v41 = vld [vmem:[#allocation311_spill] sm:$0xff] }
 0x258   :  { %17249 = vst [vmem:[#allocation352_spill] sm:$0xff] %v12642_v19  ;;  %17251 = vst [vmem:[#allocation27_spill] sm:$0xff] %v12646_v9  ;;  %v12658_v53 = vmul.f32 %v17256_v26, %v11468_v35  ;;  %v12662_v22 = vmul.f32 %v17258_v41, %v11468_v35  ;;  %v17260_v19 = vld [vmem:[#allocation312_spill] sm:$0xff]  ;;  %v17262_v9 = vld [vmem:[#allocation313_spill] sm:$0xff] }
 0x259   :  { %17253 = vst [vmem:[#allocation353_spill] sm:$0xff] %v12650_v17  ;;  %17255 = vst [vmem:[#allocation167_spill] sm:$0xff] %v12654_v59  ;;  %v12666_v13 = vmul.f32 %v17260_v19, %v11468_v35  ;;  %v12670_v25 = vmul.f32 %v17262_v9, %v11468_v35  ;;  %v17264_v17 = vld [vmem:[#allocation314_spill] sm:$0xff]  ;;  %v17266_v59 = vld [vmem:[#allocation315_spill] sm:$0xff] }
 0x25a   :  { %17257 = vst [vmem:[#allocation171_spill] sm:$0xff] %v12658_v53  ;;  %17259 = vst [vmem:[#allocation178_spill] sm:$0xff] %v12662_v22  ;;  %v12674_v27 = vmul.f32 %v17264_v17, %v11468_v35  ;;  %v12678_v26 = vmul.f32 %v17266_v59, %v11468_v35  ;;  %v17268_v53 = vld [vmem:[#allocation316_spill] sm:$0xff]  ;;  %v17270_v22 = vld [vmem:[#allocation317_spill] sm:$0xff] }
 0x25b   :  { %17261 = vst [vmem:[#allocation180_spill] sm:$0xff] %v12666_v13  ;;  %17263 = vst [vmem:[#allocation181_spill] sm:$0xff] %v12670_v25  ;;  %v12682_v41 = vmul.f32 %v17268_v53, %v11468_v35  ;;  %v12686_v19 = vmul.f32 %v17270_v22, %v11468_v35  ;;  %v17272_v13 = vld [vmem:[#allocation318_spill] sm:$0xff]  ;;  %v17274_v25 = vld [vmem:[#allocation319_spill] sm:$0xff] }
 0x25c   :  { %17265 = vst [vmem:[#allocation182_spill] sm:$0xff] %v12674_v27  ;;  %17267 = vst [vmem:[#allocation183_spill] sm:$0xff] %v12678_v26  ;;  %v12690_v9 = vmul.f32 %v17272_v13, %v11468_v35  ;;  %v12694_v17 = vmul.f32 %v17274_v25, %v11468_v35  ;;  %v17276_v27 = vld [vmem:[#allocation320_spill] sm:$0xff]  ;;  %v17278_v26 = vld [vmem:[#allocation321_spill] sm:$0xff] }
 0x25d   :  { %17269 = vst [vmem:[#allocation184_spill] sm:$0xff] %v12682_v41  ;;  %17271 = vst [vmem:[#allocation185_spill] sm:$0xff] %v12686_v19  ;;  %v12698_v59 = vmul.f32 %v17276_v27, %v11468_v35  ;;  %v12702_v53 = vmul.f32 %v17278_v26, %v11468_v35  ;;  %v17280_v41 = vld [vmem:[#allocation322_spill] sm:$0xff]  ;;  %v17282_v19 = vld [vmem:[#allocation323_spill] sm:$0xff] }
 0x25e   :  { %17273 = vst [vmem:[#allocation186_spill] sm:$0xff] %v12690_v9  ;;  %17275 = vst [vmem:[#allocation242_spill] sm:$0xff] %v12694_v17  ;;  %v12706_v22 = vmul.f32 %v17280_v41, %v11468_v35  ;;  %v12710_v13 = vmul.f32 %v17282_v19, %v11468_v35  ;;  %v17284_v9 = vld [vmem:[#allocation84_spill] sm:$0xff]  ;;  %v17287_v17 = vld [vmem:[#allocation85_spill] sm:$0xff] }
 0x25f   :  { %17277 = vst [vmem:[#allocation187_spill] sm:$0xff] %v12698_v59  ;;  %17279 = vst [vmem:[#allocation243_spill] sm:$0xff] %v12702_v53  ;;  %v12714_v25 = vadd.f32 %v17285_v36, %v17284_v9  ;;  %v12718_v27 = vadd.f32 %v17288_v16, %v17287_v17  ;;  %v17290_v59 = vld [vmem:[#allocation86_spill] sm:$0xff]  ;;  %v17293_v53 = vld [vmem:[#allocation87_spill] sm:$0xff] }
 0x260   :  { %17281 = vst [vmem:[#allocation244_spill] sm:$0xff] %v12706_v22  ;;  %17283 = vst [vmem:[#allocation188_spill] sm:$0xff] %v12710_v13  ;;  %v12722_v26 = vadd.f32 %v17291_v31, %v17290_v59  ;;  %v17294_v52 = vld [vmem:[#allocation373_spill] sm:$0xff]  ;;  %v17296_v22 = vld [vmem:[#allocation88_spill] sm:$0xff] }
 0x261   :  { %17286 = vst [vmem:[#allocation245_spill] sm:$0xff] %v12714_v25  ;;  %17289 = vst [vmem:[#allocation246_spill] sm:$0xff] %v12718_v27  ;;  %v12726_v41 = vadd.f32 %v17294_v52, %v17293_v53  ;;  %v12730_v35 = vadd.f32 %v17297_v58, %v17296_v22  ;;  %v17299_v19 = vld [vmem:[#allocation89_spill] sm:$0xff]  ;;  %v17300_v13 = vld [vmem:[#allocation375_spill] sm:$0xff] }
 0x262   :  { %17292 = vst [vmem:[#allocation247_spill] sm:$0xff] %v12722_v26  ;;  %v12734_v36 = vadd.f32 %v17300_v13, %v17299_v19  ;;  %v17302_v9 = vld [vmem:[#allocation90_spill] sm:$0xff]  ;;  %v17303_v25 = vld [vmem:[#allocation376_spill] sm:$0xff]  ;;  %v17305_v17 = vld [vmem:[#allocation91_spill] sm:$0xff] }
 0x263   :  { %17295 = vst [vmem:[#allocation189_spill] sm:$0xff] %v12726_v41  ;;  %17298 = vst [vmem:[#allocation248_spill] sm:$0xff] %v12730_v35  ;;  %v12738_v16 = vadd.f32 %v17303_v25, %v17302_v9  ;;  %v17306_v27 = vld [vmem:[#allocation377_spill] sm:$0xff]  ;;  %v17308_v59 = vld [vmem:[#allocation92_spill] sm:$0xff] }
 0x264   :  { %17301 = vst [vmem:[#allocation249_spill] sm:$0xff] %v12734_v36  ;;  %v12742_v31 = vadd.f32 %v17306_v27, %v17305_v17  ;;  %v17309_v26 = vld [vmem:[#allocation378_spill] sm:$0xff]  ;;  %v17311_v53 = vld [vmem:[#allocation93_spill] sm:$0xff]  ;;  %v17312_v41 = vld [vmem:[#allocation379_spill] sm:$0xff] }
 0x265   :  { %17304 = vst [vmem:[#allocation250_spill] sm:$0xff] %v12738_v16  ;;  %v12746_v52 = vadd.f32 %v17309_v26, %v17308_v59  ;;  %v12750_v58 = vadd.f32 %v17312_v41, %v17311_v53  ;;  %v17314_v22 = vld [vmem:[#allocation94_spill] sm:$0xff]  ;;  %v17315_v35 = vld [vmem:[#allocation380_spill] sm:$0xff]  ;;  %v17317_v19 = vld [vmem:[#allocation95_spill] sm:$0xff] }
 0x266   :  { %17307 = vst [vmem:[#allocation190_spill] sm:$0xff] %v12742_v31  ;;  %v12754_v13 = vadd.f32 %v17315_v35, %v17314_v22  ;;  %v17318_v36 = vld [vmem:[#allocation381_spill] sm:$0xff]  ;;  %v17319_v9 = vld [vmem:[#allocation96_spill] sm:$0xff]  ;;  %v17320_v16 = vld [vmem:[#allocation382_spill] sm:$0xff] }
 0x267   :  { %17310 = vst [vmem:[#allocation251_spill] sm:$0xff] %v12746_v52  ;;  %17313 = vst [vmem:[#allocation252_spill] sm:$0xff] %v12750_v58  ;;  %v12758_v25 = vadd.f32 %v17318_v36, %v17317_v19  ;;  %v12762_v27 = vadd.f32 %v17320_v16, %v17319_v9  ;;  %v17321_v17 = vld [vmem:[#allocation97_spill] sm:$0xff]  ;;  %v17322_v31 = vld [vmem:[#allocation383_spill] sm:$0xff] }
 0x268   :  { %17316 = vst [vmem:[#allocation191_spill] sm:$0xff] %v12754_v13  ;;  %v12766_v26 = vadd.f32 %v17322_v31, %v17321_v17  ;;  %v17323_v59 = vld [vmem:[#allocation98_spill] sm:$0xff]  ;;  %v17324_v52 = vld [vmem:[#allocation384_spill] sm:$0xff]  ;;  %v17325_v53 = vld [vmem:[#allocation99_spill] sm:$0xff] }
 0x269   :  { %v12770_v41 = vadd.f32 %v17324_v52, %v17323_v59  ;;  %v17326_v58 = vld [vmem:[#allocation385_spill] sm:$0xff]  ;;  %v17327_v22 = vld [vmem:[#allocation100_spill] sm:$0xff]  ;;  %v17328_v13 = vld [vmem:[#allocation386_spill] sm:$0xff] }
 0x26a   :  { %v12774_v35 = vadd.f32 %v17326_v58, %v17325_v53  ;;  %v12778_v36 = vadd.f32 %v17328_v13, %v17327_v22  ;;  %v17329_v19 = vld [vmem:[#allocation101_spill] sm:$0xff]  ;;  %v17330_v9 = vld [vmem:[#allocation102_spill] sm:$0xff]  ;;  %v17331_v17 = vld [vmem:[#allocation103_spill] sm:$0xff] }
 0x26b   :  { %v12782_v16 = vadd.f32 %v12266_v20, %v17329_v19  ;;  %v12786_v31 = vadd.f32 %v12270_v43, %v17330_v9  ;;  %v12790_v52 = vadd.f32 %v12282_v11, %v17331_v17  ;;  %v17332_v59 = vld [vmem:[#allocation104_spill] sm:$0xff]  ;;  %v17333_v53 = vld [vmem:[#allocation105_spill] sm:$0xff]  ;;  %v17334_v22 = vld [vmem:[#allocation106_spill] sm:$0xff] }
 0x26c   :  { %v12794_v58 = vadd.f32 %v12286_v42, %v17332_v59  ;;  %v12798_v13 = vadd.f32 %v12290_v7, %v17333_v53  ;;  %v12802_v20 = vadd.f32 %v12294_v57, %v17334_v22  ;;  %v17335_v19 = vld [vmem:[#allocation107_spill] sm:$0xff]  ;;  %v17336_v9 = vld [vmem:[#allocation108_spill] sm:$0xff]  ;;  %v17337_v17 = vld [vmem:[#allocation109_spill] sm:$0xff] }
 0x26d   :  { %v12806_v43 = vadd.f32 %v12298_v18, %v17335_v19  ;;  %v12810_v11 = vadd.f32 %v12302_v28, %v17336_v9  ;;  %v12814_v42 = vadd.f32 %v12306_v24, %v17337_v17  ;;  %v17338_v59 = vld [vmem:[#allocation110_spill] sm:$0xff]  ;;  %v17339_v53 = vld [vmem:[#allocation111_spill] sm:$0xff]  ;;  %v17340_v22 = vld [vmem:[#allocation112_spill] sm:$0xff] }
 0x26e   :  { %v12818_v7 = vadd.f32 %v12310_v37, %v17338_v59  ;;  %v12822_v57 = vadd.f32 %v12314_v4, %v17339_v53  ;;  %v12826_v18 = vadd.f32 %v12318_v54, %v17340_v22  ;;  %v17341_v19 = vld [vmem:[#allocation113_spill] sm:$0xff]  ;;  %v17342_v9 = vld [vmem:[#allocation114_spill] sm:$0xff]  ;;  %v17343_v17 = vld [vmem:[#allocation115_spill] sm:$0xff] }
 0x26f   :  { %v12830_v28 = vadd.f32 %v12322_v29, %v17341_v19  ;;  %v12834_v24 = vadd.f32 %v12326_v2, %v17342_v9  ;;  %v12838_v37 = vadd.f32 %v12330_v10, %v17343_v17  ;;  %v17344_v59 = vld [vmem:[#allocation116_spill] sm:$0xff]  ;;  %v17345_v53 = vld [vmem:[#allocation117_spill] sm:$0xff]  ;;  %v17346_v22 = vld [vmem:[#allocation118_spill] sm:$0xff] }
 0x270   :  { %v12842_v4 = vadd.f32 %v12334_v0, %v17344_v59  ;;  %v12846_v54 = vadd.f32 %v12338_v8, %v17345_v53  ;;  %v12850_v29 = vadd.f32 %v12342_v45, %v17346_v22  ;;  %v17347_v19 = vld [vmem:[#allocation119_spill] sm:$0xff]  ;;  %v17348_v9 = vld [vmem:[#allocation120_spill] sm:$0xff]  ;;  %v17349_v17 = vld [vmem:[#allocation121_spill] sm:$0xff] }
 0x271   :  { %v12854_v2 = vadd.f32 %v12346_v47, %v17347_v19  ;;  %v12858_v10 = vadd.f32 %v12350_v63, %v17348_v9  ;;  %v12862_v0 = vadd.f32 %v12354_v34, %v17349_v17  ;;  %v17350_v59 = vld [vmem:[#allocation122_spill] sm:$0xff]  ;;  %v17351_v53 = vld [vmem:[#allocation123_spill] sm:$0xff]  ;;  %v17352_v22 = vld [vmem:[#allocation124_spill] sm:$0xff] }
 0x272   :  { %v12866_v8 = vadd.f32 %v12358_v56, %v17350_v59  ;;  %v12870_v45 = vadd.f32 %v12362_v23, %v17351_v53  ;;  %v12874_v47 = vadd.f32 %v12366_v30, %v17352_v22  ;;  %v17353_v19 = vld [vmem:[#allocation125_spill] sm:$0xff]  ;;  %v17354_v9 = vld [vmem:[#allocation126_spill] sm:$0xff]  ;;  %v17355_v17 = vld [vmem:[#allocation127_spill] sm:$0xff] }
 0x273   :  { %v12878_v63 = vadd.f32 %v12370_v40, %v17353_v19  ;;  %v12882_v34 = vadd.f32 %v12374_v15, %v17354_v9  ;;  %v12886_v56 = vadd.f32 %v12378_v60, %v17355_v17  ;;  %v17356_v59 = vld [vmem:[#allocation128_spill] sm:$0xff]  ;;  %v17357_v53 = vld [vmem:[#allocation129_spill] sm:$0xff]  ;;  %v17358_v22 = vld [vmem:[#allocation130_spill] sm:$0xff] }
 0x274   :  { %v12890_v23 = vadd.f32 %v12382_v12, %v17356_v59  ;;  %v12894_v30 = vadd.f32 %v12386_v49, %v17357_v53  ;;  %v12898_v40 = vadd.f32 %v12390_v21, %v17358_v22  ;;  %v17359_v19 = vld [vmem:[#allocation131_spill] sm:$0xff]  ;;  %v17360_v9 = vld [vmem:[#allocation132_spill] sm:$0xff]  ;;  %v17361_v17 = vld [vmem:[#allocation133_spill] sm:$0xff] }
 0x275   :  { %v12902_v15 = vadd.f32 %v12394_v38, %v17359_v19  ;;  %v12906_v60 = vadd.f32 %v12398_v50, %v17360_v9  ;;  %v12910_v12 = vadd.f32 %v12402_v33, %v17361_v17  ;;  %v17362_v59 = vld [vmem:[#allocation134_spill] sm:$0xff]  ;;  %v17363_v53 = vld [vmem:[#allocation135_spill] sm:$0xff]  ;;  %v17365_v19 = vld [vmem:[#allocation12_spill] sm:$0xff] }
 0x276   :  { %v12914_v49 = vadd.f32 %v12406_v3, %v17362_v59  ;;  %v12918_v21 = vadd.f32 %v12410_v62, %v17363_v53  ;;  %v17364_v22 = vld [vmem:[#allocation11_spill] sm:$0xff]  ;;  %v12926_v50 = vadd.f32 %v12418_v32, %v17365_v19  ;;  %v17366_v9 = vld [vmem:[#allocation13_spill] sm:$0xff]  ;;  %v17369_v59 = vld [vmem:[#allocation14_spill] sm:$0xff] }
 0x277   :  { %v12922_v38 = vadd.f32 %v12414_v44, %v17364_v22  ;;  %v12930_v33 = vadd.f32 %v12422_v39, %v17366_v9  ;;  %v17367_v17 = vld [vmem:[#allocation203_spill] sm:$0xff]  ;;  %v12938_v62 = vadd.f32 %v12430_v55, %v17369_v59  ;;  %v17373_v22 = vld [vmem:[#allocation16_spill] sm:$0xff]  ;;  %v17377_v9 = vld [vmem:[#allocation17_spill] sm:$0xff] }
 0x278   :  { %v12934_v3 = vadd.f32 %v12426_v46, %v17367_v17  ;;  %v17371_v53 = vld [vmem:[#allocation15_spill] sm:$0xff]  ;;  %v12946_v32 = vadd.f32 %v12438_v1, %v17373_v22  ;;  %v17375_v19 = vld [vmem:[#allocation204_spill] sm:$0xff]  ;;  %v12954_v46 = vadd.f32 %v12446_v48, %v17377_v9  ;;  %v17379_v17 = vld [vmem:[#allocation18_spill] sm:$0xff] }
 0x279   :  { %17370 = vst [vmem:[#allocation254_spill] sm:$0xff] %v12938_v62  ;;  %v12942_v44 = vadd.f32 %v12434_v14, %v17371_v53  ;;  %v12950_v39 = vadd.f32 %v12442_v51, %v17375_v19  ;;  %v12958_v55 = vadd.f32 %v12450_v61, %v17379_v17  ;;  %v17381_v59 = vld [vmem:[#allocation19_spill] sm:$0xff]  ;;  %v17383_v53 = vld [vmem:[#allocation20_spill] sm:$0xff]  ;;  %v17385_v22 = vld [vmem:[#allocation21_spill] sm:$0xff] }
 0x27a   :  { %17368 = vst [vmem:[#allocation253_spill] sm:$0xff] %v12934_v3  ;;  %17374 = vst [vmem:[#allocation192_spill] sm:$0xff] %v12946_v32  ;;  %v12962_v14 = vadd.f32 %v12454_v6, %v17381_v59  ;;  %v12966_v1 = vadd.f32 %v12458_v5, %v17383_v53  ;;  %v17386_v32 = vld [vmem:[#allocation334_spill] sm:$0xff]  ;;  %v17391_v9 = vld [vmem:[#allocation23_spill] sm:$0xff] }
 0x27b   :  { %17372 = vst [vmem:[#allocation255_spill] sm:$0xff] %v12942_v44  ;;  %17376 = vst [vmem:[#allocation256_spill] sm:$0xff] %v12950_v39  ;;  %v12970_v51 = vadd.f32 %v17386_v32, %v17385_v22  ;;  %v17388_v19 = vld [vmem:[#allocation22_spill] sm:$0xff]  ;;  %v17389_v39 = vld [vmem:[#allocation232_spill] sm:$0xff] }
 0x27c   :  { %17378 = vst [vmem:[#allocation257_spill] sm:$0xff] %v12954_v46  ;;  %17380 = vst [vmem:[#allocation258_spill] sm:$0xff] %v12958_v55  ;;  %v12974_v48 = vadd.f32 %v17389_v39, %v17388_v19  ;;  %v17392_v46 = vld [vmem:[#allocation335_spill] sm:$0xff]  ;;  %v17394_v17 = vld [vmem:[#allocation24_spill] sm:$0xff] }
 0x27d   :  { %17382 = vst [vmem:[#allocation193_spill] sm:$0xff] %v12962_v14  ;;  %17384 = vst [vmem:[#allocation259_spill] sm:$0xff] %v12966_v1  ;;  %v12978_v61 = vadd.f32 %v17392_v46, %v17391_v9  ;;  %v17395_v55 = vld [vmem:[#allocation233_spill] sm:$0xff]  ;;  %v17398_v14 = vld [vmem:[#allocation234_spill] sm:$0xff] }
 0x27e   :  { %17387 = vst [vmem:[#allocation260_spill] sm:$0xff] %v12970_v51  ;;  %17390 = vst [vmem:[#allocation194_spill] sm:$0xff] %v12974_v48  ;;  %v12982_v6 = vadd.f32 %v17395_v55, %v17394_v17  ;;  %v17397_v59 = vld [vmem:[#allocation25_spill] sm:$0xff]  ;;  %v17401_v1 = vld [vmem:[#allocation336_spill] sm:$0xff] }
 0x27f   :  { %17393 = vst [vmem:[#allocation261_spill] sm:$0xff] %v12978_v61  ;;  %v12986_v5 = vadd.f32 %v17398_v14, %v17397_v59  ;;  %v17400_v53 = vld [vmem:[#allocation177_spill] sm:$0xff]  ;;  %v17403_v22 = vld [vmem:[#allocation179_spill] sm:$0xff]  ;;  %v17406_v19 = vld [vmem:[#allocation28_spill] sm:$0xff] }
 0x280   :  { %17396 = vst [vmem:[#allocation262_spill] sm:$0xff] %v12982_v6  ;;  %v12990_v32 = vadd.f32 %v17401_v1, %v17400_v53  ;;  %v17404_v51 = vld [vmem:[#allocation235_spill] sm:$0xff]  ;;  %v17407_v48 = vld [vmem:[#allocation337_spill] sm:$0xff]  ;;  %v17410_v61 = vld [vmem:[#allocation236_spill] sm:$0xff] }
 0x281   :  { %17399 = vst [vmem:[#allocation263_spill] sm:$0xff] %v12986_v5  ;;  %v12994_v39 = vadd.f32 %v17404_v51, %v17403_v22  ;;  %v12998_v46 = vadd.f32 %v17407_v48, %v17406_v19  ;;  %v17409_v9 = vld [vmem:[#allocation29_spill] sm:$0xff]  ;;  %v17412_v17 = vld [vmem:[#allocation30_spill] sm:$0xff]  ;;  %v17415_v59 = vld [vmem:[#allocation31_spill] sm:$0xff] }
 0x282   :  { %17402 = vst [vmem:[#allocation195_spill] sm:$0xff] %v12990_v32  ;;  %v13002_v55 = vadd.f32 %v17410_v61, %v17409_v9  ;;  %v17413_v6 = vld [vmem:[#allocation338_spill] sm:$0xff]  ;;  %v17416_v5 = vld [vmem:[#allocation237_spill] sm:$0xff]  ;;  %v17418_v53 = vld [vmem:[#allocation32_spill] sm:$0xff] }
 0x283   :  { %17405 = vst [vmem:[#allocation264_spill] sm:$0xff] %v12994_v39  ;;  %17408 = vst [vmem:[#allocation265_spill] sm:$0xff] %v12998_v46  ;;  %v13006_v14 = vadd.f32 %v17413_v6, %v17412_v17  ;;  %v13010_v1 = vadd.f32 %v17416_v5, %v17415_v59  ;;  %v17419_v32 = vld [vmem:[#allocation339_spill] sm:$0xff]  ;;  %v17421_v22 = vld [vmem:[#allocation33_spill] sm:$0xff] }
 0x284   :  { %17411 = vst [vmem:[#allocation266_spill] sm:$0xff] %v13002_v55  ;;  %v13014_v51 = vadd.f32 %v17419_v32, %v17418_v53  ;;  %v17422_v39 = vld [vmem:[#allocation5_spill] sm:$0xff]  ;;  %v17424_v19 = vld [vmem:[#allocation34_spill] sm:$0xff]  ;;  %v17425_v46 = vld [vmem:[#allocation340_spill] sm:$0xff] }
 0x285   :  { %17414 = vst [vmem:[#allocation196_spill] sm:$0xff] %v13006_v14  ;;  %17417 = vst [vmem:[#allocation267_spill] sm:$0xff] %v13010_v1  ;;  %v13018_v48 = vadd.f32 %v17422_v39, %v17421_v22  ;;  %v13022_v61 = vadd.f32 %v17425_v46, %v17424_v19  ;;  %v17427_v9 = vld [vmem:[#allocation35_spill] sm:$0xff]  ;;  %v17428_v55 = vld [vmem:[#allocation162_spill] sm:$0xff] }
 0x286   :  { %17420 = vst [vmem:[#allocation268_spill] sm:$0xff] %v13014_v51  ;;  %v13026_v6 = vadd.f32 %v17428_v55, %v17427_v9  ;;  %v17430_v17 = vld [vmem:[#allocation36_spill] sm:$0xff]  ;;  %v17431_v14 = vld [vmem:[#allocation341_spill] sm:$0xff]  ;;  %v17434_v1 = vld [vmem:[#allocation238_spill] sm:$0xff] }
 0x287   :  { %17423 = vst [vmem:[#allocation197_spill] sm:$0xff] %v13018_v48  ;;  %17426 = vst [vmem:[#allocation269_spill] sm:$0xff] %v13022_v61  ;;  %v13030_v5 = vadd.f32 %v17431_v14, %v17430_v17  ;;  %v17433_v59 = vld [vmem:[#allocation37_spill] sm:$0xff]  ;;  %v17436_v53 = vld [vmem:[#allocation38_spill] sm:$0xff] }
 0x288   :  { %17429 = vst [vmem:[#allocation270_spill] sm:$0xff] %v13026_v6  ;;  %v13034_v32 = vadd.f32 %v17434_v1, %v17433_v59  ;;  %v17437_v51 = vld [vmem:[#allocation164_spill] sm:$0xff]  ;;  %v17439_v22 = vld [vmem:[#allocation39_spill] sm:$0xff]  ;;  %v17440_v48 = vld [vmem:[#allocation342_spill] sm:$0xff] }
 0x289   :  { %17432 = vst [vmem:[#allocation271_spill] sm:$0xff] %v13030_v5  ;;  %v13038_v39 = vadd.f32 %v17437_v51, %v17436_v53  ;;  %v13042_v46 = vadd.f32 %v17440_v48, %v17439_v22  ;;  %v17442_v19 = vld [vmem:[#allocation245_spill] sm:$0xff]  ;;  %v17443_v55 = vld [vmem:[#allocation40_spill] sm:$0xff]  ;;  %v17447_v17 = vld [vmem:[#allocation343_spill] sm:$0xff] }
 0x28a   :  { %17435 = vst [vmem:[#allocation198_spill] sm:$0xff] %v13034_v32  ;;  %v4756_v61 = vmul.f32 0.5, %v17442_v19  ;;  %v17444_v9 = vld [vmem:[#allocation165_spill] sm:$0xff]  ;;  %v17449_v1 = vld [vmem:[#allocation42_spill] sm:$0xff]  ;;  %v17454_v44 = vld [vmem:[#allocation344_spill] sm:$0xff] }
 0x28b   :  { %17438 = vst [vmem:[#allocation272_spill] sm:$0xff] %v13038_v39  ;;  %17441 = vst [vmem:[#allocation273_spill] sm:$0xff] %v13042_v46  ;;  %v13047_v6 = vadd.f32 %v17444_v9, %v17443_v55  ;;  %v17446_v14 = vld [vmem:[#allocation41_spill] sm:$0xff]  ;;  %v17450_v59 = vld [vmem:[#allocation166_spill] sm:$0xff] }
 0x28c   :  { %v13051_v5 = vadd.f32 %v17447_v17, %v17446_v14  ;;  %v13055_v32 = vadd.f32 %v17450_v59, %v17449_v1  ;;  %v17452_v51 = vld [vmem:[#allocation246_spill] sm:$0xff]  ;;  %v17453_v39 = vld [vmem:[#allocation43_spill] sm:$0xff]  ;;  %v17456_v22 = vld [vmem:[#allocation44_spill] sm:$0xff]  ;;  %5814 = vtanh.f32 %v4756_v61 }
 0x28d   :  { %17445 = vst [vmem:[#allocation274_spill] sm:$0xff] %v13047_v6  ;;  %v4757_v53 = vmul.f32 0.5, %v17452_v51  ;;  %v13060_v48 = vadd.f32 %v17454_v44, %v17453_v39  ;;  %v17457_v19 = vld [vmem:[#allocation239_spill] sm:$0xff]  ;;  %v17459_v55 = vld [vmem:[#allocation45_spill] sm:$0xff]  ;;  %v17460_v9 = vld [vmem:[#allocation168_spill] sm:$0xff] }
 0x28e   :  { %17448 = vst [vmem:[#allocation199_spill] sm:$0xff] %v13051_v5  ;;  %17451 = vst [vmem:[#allocation275_spill] sm:$0xff] %v13055_v32  ;;  %v13064_v46 = vadd.f32 %v17457_v19, %v17456_v22  ;;  %v13068_v6 = vadd.f32 %v17460_v9, %v17459_v55  ;;  %v17462_v14 = vld [vmem:[#allocation247_spill] sm:$0xff]  ;;  %v17463_v5 = vld [vmem:[#allocation46_spill] sm:$0xff] }
 0x28f   :  { %17455 = vst [vmem:[#allocation276_spill] sm:$0xff] %v13060_v48  ;;  %v4758_v17 = vmul.f32 0.5, %v17462_v14  ;;  %v17464_v62 = vld [vmem:[#allocation345_spill] sm:$0xff]  ;;  %v17466_v59 = vld [vmem:[#allocation47_spill] sm:$0xff]  ;;  %v17469_v44 = vld [vmem:[#allocation48_spill] sm:$0xff]  ;;  %5816 = vtanh.f32 %v4757_v53 }
 0x290   :  { %17458 = vst [vmem:[#allocation200_spill] sm:$0xff] %v13064_v46  ;;  %17461 = vst [vmem:[#allocation277_spill] sm:$0xff] %v13068_v6  ;;  %v13073_v1 = vadd.f32 %v17464_v62, %v17463_v5  ;;  %v17467_v51 = vld [vmem:[#allocation169_spill] sm:$0xff]  ;;  %v17470_v39 = vld [vmem:[#allocation346_spill] sm:$0xff] }
 0x291   :  { %v13077_v32 = vadd.f32 %v17467_v51, %v17466_v59  ;;  %v13081_v48 = vadd.f32 %v17470_v39, %v17469_v44  ;;  %v17472_v22 = vld [vmem:[#allocation189_spill] sm:$0xff]  ;;  %v17474_v3 = vld [vmem:[#allocation240_spill] sm:$0xff]  ;;  %v17476_v9 = vld [vmem:[#allocation50_spill] sm:$0xff]  ;;  %5818 = vtanh.f32 %v4758_v17 }
 0x292   :  { %17465 = vst [vmem:[#allocation278_spill] sm:$0xff] %v13073_v1  ;;  %v4759_v19 = vmul.f32 0.5, %v17472_v22  ;;  %v17473_v46 = vld [vmem:[#allocation49_spill] sm:$0xff]  ;;  %v17477_v14 = vld [vmem:[#allocation347_spill] sm:$0xff]  ;;  %v17479_v62 = vld [vmem:[#allocation248_spill] sm:$0xff] }
 0x293   :  { %17468 = vst [vmem:[#allocation279_spill] sm:$0xff] %v13077_v32  ;;  %17471 = vst [vmem:[#allocation201_spill] sm:$0xff] %v13081_v48  ;;  %v13086_v55 = vadd.f32 %v17474_v3, %v17473_v46  ;;  %v13090_v6 = vadd.f32 %v17477_v14, %v17476_v9  ;;  %v4760_v5 = vmul.f32 0.5, %v17479_v62  ;;  %v17480_v1 = vld [vmem:[#allocation51_spill] sm:$0xff]  ;;  %v17481_v59 = vld [vmem:[#allocation170_spill] sm:$0xff] }
 0x294   :  { %v13095_v51 = vadd.f32 %v17481_v59, %v17480_v1  ;;  %v17483_v32 = vld [vmem:[#allocation52_spill] sm:$0xff]  ;;  %v17486_v22 = vld [vmem:[#allocation249_spill] sm:$0xff]  ;;  %v17490_v9 = vld [vmem:[#allocation54_spill] sm:$0xff]  ;;  %5820 = vtanh.f32 %v4759_v19 }
 0x295   :  { %17475 = vst [vmem:[#allocation280_spill] sm:$0xff] %v13086_v55  ;;  %17478 = vst [vmem:[#allocation281_spill] sm:$0xff] %v13090_v6  ;;  %v17484_v44 = vld [vmem:[#allocation172_spill] sm:$0xff]  ;;  %v4761_v48 = vmul.f32 0.5, %v17486_v22  ;;  %v17487_v3 = vld [vmem:[#allocation53_spill] sm:$0xff]  ;;  %5822 = vtanh.f32 %v4760_v5 }
 0x296   :  { %17482 = vst [vmem:[#allocation282_spill] sm:$0xff] %v13095_v51  ;;  %v13099_v39 = vadd.f32 %v17484_v44, %v17483_v32  ;;  %v17488_v46 = vld [vmem:[#allocation173_spill] sm:$0xff]  ;;  %v17491_v14 = vld [vmem:[#allocation136_spill] sm:$0xff]  ;;  %v17493_v61 = vld [vmem:[#allocation250_spill] sm:$0xff] }
 0x297   :  { %v13104_v55 = vadd.f32 %v17488_v46, %v17487_v3  ;;  %v13108_v6 = vadd.f32 %v17491_v14, %v17490_v9  ;;  %v4762_v62 = vmul.f32 0.5, %v17493_v61  ;;  %v17494_v1 = vld [vmem:[#allocation55_spill] sm:$0xff]  ;;  %v17495_v59 = vld [vmem:[#allocation174_spill] sm:$0xff]  ;;  %v17497_v32 = vld [vmem:[#allocation56_spill] sm:$0xff]  ;;  %5824 = vtanh.f32 %v4761_v48 }
 0x298   :  { %17485 = vst [vmem:[#allocation202_spill] sm:$0xff] %v13099_v39  ;;  %v13113_v51 = vadd.f32 %v17495_v59, %v17494_v1  ;;  %v17498_v44 = vld [vmem:[#allocation348_spill] sm:$0xff]  ;;  %v17500_v53 = vld [vmem:[#allocation190_spill] sm:$0xff]  ;;  %v17501_v3 = vld [vmem:[#allocation57_spill] sm:$0xff]  ;;  %v4767_v48 = vmul.f32 0.5, %v12758_v25  ;;  %v4769_v25 = vmul.f32 0.5, %v12766_v26 }
 0x299   :  { %17489 = vst [vmem:[#allocation283_spill] sm:$0xff] %v13104_v55  ;;  %17492 = vst [vmem:[#allocation284_spill] sm:$0xff] %v13108_v6  ;;  %v13117_v39 = vadd.f32 %v17498_v44, %v17497_v32  ;;  %v4763_v22 = vmul.f32 0.5, %v17500_v53  ;;  %v17502_v46 = vld [vmem:[#allocation175_spill] sm:$0xff]  ;;  %v17504_v9 = vld [vmem:[#allocation58_spill] sm:$0xff]  ;;  %5826 = vtanh.f32 %v4762_v62  ;;  %v4768_v62 = vmul.f32 0.5, %v12762_v27 }
 0x29a   :  { %17496 = vst [vmem:[#allocation285_spill] sm:$0xff] %v13113_v51  ;;  %v13122_v55 = vadd.f32 %v17502_v46, %v17501_v3  ;;  %v17505_v14 = vld [vmem:[#allocation349_spill] sm:$0xff]  ;;  %v17507_v17 = vld [vmem:[#allocation251_spill] sm:$0xff]  ;;  %v17509_v59 = vld [vmem:[#allocation176_spill] sm:$0xff] }
 0x29b   :  { %17499 = vst [vmem:[#allocation286_spill] sm:$0xff] %v13117_v39  ;;  %v13126_v6 = vadd.f32 %v17505_v14, %v17504_v9  ;;  %v4764_v61 = vmul.f32 0.5, %v17507_v17  ;;  %v17508_v1 = vld [vmem:[#allocation59_spill] sm:$0xff]  ;;  %v17511_v32 = vld [vmem:[#allocation60_spill] sm:$0xff]  ;;  %v17512_v44 = vld [vmem:[#allocation350_spill] sm:$0xff]  ;;  %5828 = vtanh.f32 %v4763_v22  ;;  %v13174_v22 = vpop.eup %5814 }
 0x29c   :  { %17503 = vst [vmem:[#allocation287_spill] sm:$0xff] %v13122_v55  ;;  %v13131_v51 = vadd.f32 %v17509_v59, %v17508_v1  ;;  %v13135_v39 = vadd.f32 %v17512_v44, %v17511_v32  ;;  %v17514_v19 = vld [vmem:[#allocation252_spill] sm:$0xff]  ;;  %v17515_v3 = vld [vmem:[#allocation61_spill] sm:$0xff]  ;;  %v17517_v9 = vld [vmem:[#allocation62_spill] sm:$0xff] }
 0x29d   :  { %17506 = vst [vmem:[#allocation288_spill] sm:$0xff] %v13126_v6  ;;  %v4765_v53 = vmul.f32 0.5, %v17514_v19  ;;  %v17516_v46 = vld [vmem:[#allocation241_spill] sm:$0xff]  ;;  %v17518_v14 = vld [vmem:[#allocation351_spill] sm:$0xff]  ;;  %v17522_v59 = vld [vmem:[#allocation10_spill] sm:$0xff]  ;;  %5830 = vtanh.f32 %v4764_v61 }
 0x29e   :  { %17510 = vst [vmem:[#allocation289_spill] sm:$0xff] %v13131_v51  ;;  %17513 = vst [vmem:[#allocation290_spill] sm:$0xff] %v13135_v39  ;;  %v13140_v55 = vadd.f32 %v17516_v46, %v17515_v3  ;;  %v13144_v6 = vadd.f32 %v17518_v14, %v17517_v9  ;;  %v17520_v5 = vld [vmem:[#allocation191_spill] sm:$0xff]  ;;  %v17523_v32 = vld [vmem:[#allocation64_spill] sm:$0xff] }
 0x29f   :  { %v4766_v17 = vmul.f32 0.5, %v17520_v5  ;;  %v17521_v1 = vld [vmem:[#allocation63_spill] sm:$0xff]  ;;  %v17526_v19 = vld [vmem:[#allocation65_spill] sm:$0xff]  ;;  %v17527_v3 = vld [vmem:[#allocation26_spill] sm:$0xff]  ;;  %5832 = vtanh.f32 %v4765_v53  ;;  %17535 = vst [vmem:[#allocation294_spill] sm:$0xff] %v13174_v22 }
 0x2a0   :  { %17519 = vst [vmem:[#allocation291_spill] sm:$0xff] %v13144_v6  ;;  %v13149_v51 = vadd.f32 %v17522_v59, %v17521_v1  ;;  %v17524_v44 = vld [vmem:[#allocation163_spill] sm:$0xff]  ;;  %v13158_v46 = vadd.f32 %v17527_v3, %v17526_v19  ;;  %v17528_v9 = vld [vmem:[#allocation66_spill] sm:$0xff]  ;;  %v17529_v14 = vld [vmem:[#allocation352_spill] sm:$0xff] }
 0x2a1   :  { %v13153_v39 = vadd.f32 %v17524_v44, %v17523_v32  ;;  %v13162_v6 = vadd.f32 %v17529_v14, %v17528_v9  ;;  %v17530_v5 = vld [vmem:[#allocation67_spill] sm:$0xff]  ;;  %v17532_v32 = vld [vmem:[#allocation68_spill] sm:$0xff]  ;;  %v17533_v44 = vld [vmem:[#allocation353_spill] sm:$0xff]  ;;  %5834 = vtanh.f32 %v4766_v17 }
 0x2a2   :  { %v17531_v1 = vld [vmem:[#allocation27_spill] sm:$0xff]  ;;  %v17536_v19 = vld [vmem:[#allocation69_spill] sm:$0xff]  ;;  %v17538_v14 = vld [vmem:[#allocation70_spill] sm:$0xff]  ;;  %5836 = vtanh.f32 %v4767_v48 }
 0x2a3   :  { %17525 = vst [vmem:[#allocation292_spill] sm:$0xff] %v13153_v39  ;;  %v13167_v59 = vadd.f32 %v17531_v1, %v17530_v5  ;;  %v13171_v39 = vadd.f32 %v17533_v44, %v17532_v32  ;;  %v17537_v3 = vld [vmem:[#allocation167_spill] sm:$0xff]  ;;  %v4770_v5 = vmul.f32 0.5, %v12770_v41  ;;  %v13185_v1 = vpop.eup %5816  ;;  %v17543_v44 = vld [vmem:[#allocation178_spill] sm:$0xff]  ;;  %v17544_v26 = vld [vmem:[#allocation72_spill] sm:$0xff]  ;;  %5838 = vtanh.f32 %v4768_v62 }
 0x2a4   :  { %v13178_v9 = vadd.f32 %v17537_v3, %v17536_v19  ;;  %v17539_v27 = vld [vmem:[#allocation171_spill] sm:$0xff]  ;;  %17541 = vst [vmem:[#allocation296_spill] sm:$0xff] %v13185_v1  ;;  %v17545_v53 = vld [vmem:[#allocation180_spill] sm:$0xff]  ;;  %v4771_v19 = vmul.f32 0.5, %v12774_v35  ;;  %v13196_v3 = vpop.eup %5818  ;;  %v17550_v41 = vld [vmem:[#allocation74_spill] sm:$0xff]  ;;  %5840 = vtanh.f32 %v4769_v25 }
 0x2a5   :  { %17534 = vst [vmem:[#allocation293_spill] sm:$0xff] %v13171_v39  ;;  %v13182_v61 = vadd.f32 %v17539_v27, %v17538_v14  ;;  %v17542_v32 = vld [vmem:[#allocation71_spill] sm:$0xff]  ;;  %v13193_v22 = vadd.f32 %v17545_v53, %v17544_v26  ;;  %17547 = vst [vmem:[#allocation298_spill] sm:$0xff] %v13196_v3  ;;  %v17548_v14 = vld [vmem:[#allocation73_spill] sm:$0xff]  ;;  %5842 = vtanh.f32 %v4770_v5 }
 0x2a6   :  { %v13189_v39 = vadd.f32 %v17543_v44, %v17542_v32  ;;  %v17549_v27 = vld [vmem:[#allocation181_spill] sm:$0xff]  ;;  %v17551_v17 = vld [vmem:[#allocation182_spill] sm:$0xff]  ;;  %v4772_v32 = vmul.f32 0.5, %v12778_v36  ;;  %v13207_v44 = vpop.eup %5820  ;;  %v17554_v26 = vld [vmem:[#allocation75_spill] sm:$0xff]  ;;  %5844 = vtanh.f32 %v4771_v19  ;;  %v4778_v19 = vmul.f32 0.5, %v12802_v20 }
 0x2a7   :  { %17540 = vst [vmem:[#allocation295_spill] sm:$0xff] %v13182_v61  ;;  %17546 = vst [vmem:[#allocation297_spill] sm:$0xff] %v13193_v22  ;;  %v13200_v61 = vadd.f32 %v17549_v27, %v17548_v14  ;;  %v13204_v1 = vadd.f32 %v17551_v17, %v17550_v41  ;;  %v17555_v53 = vld [vmem:[#allocation183_spill] sm:$0xff]  ;;  %v17556_v35 = vld [vmem:[#allocation76_spill] sm:$0xff]  ;;  %v4773_v14 = vmul.f32 0.5, %v12782_v16  ;;  %v13218_v27 = vpop.eup %5822 }
 0x2a8   :  { %17553 = vst [vmem:[#allocation300_spill] sm:$0xff] %v13207_v44  ;;  %v13211_v22 = vadd.f32 %v17555_v53, %v17554_v26  ;;  %v17557_v48 = vld [vmem:[#allocation184_spill] sm:$0xff]  ;;  %17559 = vst [vmem:[#allocation302_spill] sm:$0xff] %v13218_v27  ;;  %v17560_v41 = vld [vmem:[#allocation77_spill] sm:$0xff]  ;;  %v4774_v26 = vmul.f32 0.5, %v12786_v31  ;;  %v13229_v53 = vpop.eup %5824  ;;  %5846 = vtanh.f32 %v4772_v32 }
 0x2a9   :  { %17552 = vst [vmem:[#allocation299_spill] sm:$0xff] %v13204_v1  ;;  %v13215_v3 = vadd.f32 %v17557_v48, %v17556_v35  ;;  %v17561_v17 = vld [vmem:[#allocation185_spill] sm:$0xff]  ;;  %v17562_v36 = vld [vmem:[#allocation78_spill] sm:$0xff]  ;;  %17565 = vst [vmem:[#allocation304_spill] sm:$0xff] %v13229_v53  ;;  %5848 = vtanh.f32 %v4773_v14  ;;  %v4785_v14 = vmul.f32 0.5, %v12830_v28  ;;  %v13287_v28 = vmul.f32 0.5, %v12858_v10 }
 0x2aa   :  { %v13222_v1 = vadd.f32 %v17561_v17, %v17560_v41  ;;  %v17563_v62 = vld [vmem:[#allocation186_spill] sm:$0xff]  ;;  %v17566_v35 = vld [vmem:[#allocation79_spill] sm:$0xff]  ;;  %v17568_v16 = vld [vmem:[#allocation80_spill] sm:$0xff]  ;;  %v4775_v41 = vmul.f32 0.5, %v12790_v52  ;;  %v13240_v17 = vpop.eup %5826  ;;  %v4777_v52 = vmul.f32 0.5, %v12798_v13  ;;  %5850 = vtanh.f32 %v4774_v26 }
 0x2ab   :  { %17558 = vst [vmem:[#allocation301_spill] sm:$0xff] %v13215_v3  ;;  %v13226_v44 = vadd.f32 %v17563_v62, %v17562_v36  ;;  %v17567_v48 = vld [vmem:[#allocation242_spill] sm:$0xff]  ;;  %v17569_v25 = vld [vmem:[#allocation187_spill] sm:$0xff]  ;;  %17571 = vst [vmem:[#allocation306_spill] sm:$0xff] %v13240_v17  ;;  %v4784_v13 = vmul.f32 0.5, %v12826_v18  ;;  %v4788_v26 = vmul.f32 0.5, %v12842_v4 }
 0x2ac   :  { %v13233_v3 = vadd.f32 %v17567_v48, %v17566_v35  ;;  %v13237_v27 = vadd.f32 %v17569_v25, %v17568_v16  ;;  %v17572_v36 = vld [vmem:[#allocation81_spill] sm:$0xff]  ;;  %v17573_v62 = vld [vmem:[#allocation243_spill] sm:$0xff]  ;;  %v17574_v31 = vld [vmem:[#allocation82_spill] sm:$0xff]  ;;  %v4776_v35 = vmul.f32 0.5, %v12794_v58  ;;  %v13251_v48 = vpop.eup %5828  ;;  %v4781_v58 = vmul.f32 0.5, %v12814_v42 }
 0x2ad   :  { %17564 = vst [vmem:[#allocation303_spill] sm:$0xff] %v13226_v44  ;;  %v13244_v44 = vadd.f32 %v17573_v62, %v17572_v36  ;;  %v17575_v5 = vld [vmem:[#allocation244_spill] sm:$0xff]  ;;  %17576 = vst [vmem:[#allocation307_spill] sm:$0xff] %v13251_v48  ;;  %v17577_v16 = vld [vmem:[#allocation83_spill] sm:$0xff]  ;;  %v13259_v36 = vpop.eup %5830  ;;  %v4779_v62 = vmul.f32 0.5, %v12806_v43  ;;  %5852 = vtanh.f32 %v4775_v41  ;;  %v4786_v43 = vmul.f32 0.5, %v12834_v24 }
 0x2ae   :  { %17570 = vst [vmem:[#allocation305_spill] sm:$0xff] %v13237_v27  ;;  %v13248_v53 = vadd.f32 %v17575_v5, %v17574_v31  ;;  %v17578_v25 = vld [vmem:[#allocation188_spill] sm:$0xff]  ;;  %17579 = vst [vmem:[#allocation308_spill] sm:$0xff] %v13259_v36  ;;  %v4780_v31 = vmul.f32 0.5, %v12810_v11  ;;  %v13264_v32 = vpop.eup %5832  ;;  %v4782_v5 = vmul.f32 0.5, %v12818_v7  ;;  %v4787_v11 = vmul.f32 0.5, %v12838_v37 }
 0x2af   :  { %v13255_v27 = vadd.f32 %v17578_v25, %v17577_v16  ;;  %17580 = vst [vmem:[#allocation309_spill] sm:$0xff] %v13264_v32  ;;  %v4783_v16 = vmul.f32 0.5, %v12822_v57  ;;  %v13269_v20 = vpop.eup %5834  ;;  %5854 = vtanh.f32 %v4776_v35  ;;  %v4789_v7 = vmul.f32 0.5, %v12846_v54 }
 0x2b0   :  { %17581 = vst [vmem:[#allocation310_spill] sm:$0xff] %v13269_v20  ;;  %v13274_v42 = vpop.eup %5836  ;;  %v13279_v57 = vmul.f32 0.5, %v12850_v29  ;;  %5856 = vtanh.f32 %v4777_v52  ;;  %v13284_v41 = vmul.f32 0.5, %v12854_v2  ;;  %v13290_v24 = vmul.f32 0.5, %v12862_v0 }
 0x2b1   :  { %17582 = vst [vmem:[#allocation311_spill] sm:$0xff] %v13274_v42  ;;  %v13281_v18 = vpop.eup %5838  ;;  %5858 = vtanh.f32 %v4778_v19  ;;  %v13295_v4 = vmul.f32 0.5, %v12866_v8  ;;  %v13298_v54 = vmul.f32 0.5, %v12870_v45  ;;  %v13301_v29 = vmul.f32 0.5, %v12874_v47 }
 0x2b2   :  { %17583 = vst [vmem:[#allocation312_spill] sm:$0xff] %v13281_v18  ;;  %v13292_v37 = vpop.eup %5840  ;;  %5860 = vtanh.f32 %v4779_v62  ;;  %v13306_v10 = vmul.f32 0.5, %v12878_v63  ;;  %v13309_v0 = vmul.f32 0.5, %v12882_v34  ;;  %v13312_v35 = vmul.f32 0.5, %v12886_v56  ;;  %v17590_v62 = vld [vmem:[#allocation253_spill] sm:$0xff] }
 0x2b3   :  { %17584 = vst [vmem:[#allocation313_spill] sm:$0xff] %v13292_v37  ;;  %v13303_v2 = vpop.eup %5842  ;;  %5862 = vtanh.f32 %v4780_v31  ;;  %v13317_v45 = vmul.f32 0.5, %v12890_v23  ;;  %v13320_v47 = vmul.f32 0.5, %v12894_v30  ;;  %v13323_v25 = vmul.f32 0.5, %v12898_v40 }
 0x2b4   :  { %17585 = vst [vmem:[#allocation314_spill] sm:$0xff] %v13303_v2  ;;  %v13314_v8 = vpop.eup %5844  ;;  %5864 = vtanh.f32 %v4781_v58  ;;  %v13328_v34 = vmul.f32 0.5, %v12902_v15  ;;  %v13331_v56 = vmul.f32 0.5, %v12906_v60  ;;  %v13334_v52 = vmul.f32 0.5, %v12910_v12 }
 0x2b5   :  { %17586 = vst [vmem:[#allocation315_spill] sm:$0xff] %v13314_v8  ;;  %v13325_v63 = vpop.eup %5846  ;;  %5866 = vtanh.f32 %v4782_v5  ;;  %v13339_v30 = vmul.f32 0.5, %v12914_v49  ;;  %v13342_v40 = vmul.f32 0.5, %v12918_v21  ;;  %v13345_v19 = vmul.f32 0.5, %v12922_v38  ;;  %v17592_v21 = vld [vmem:[#allocation254_spill] sm:$0xff]  ;;  %v17593_v38 = vld [vmem:[#allocation255_spill] sm:$0xff] }
 0x2b6   :  { %17587 = vst [vmem:[#allocation316_spill] sm:$0xff] %v13325_v63  ;;  %v13336_v23 = vpop.eup %5848  ;;  %5868 = vtanh.f32 %v4783_v16  ;;  %v13350_v60 = vmul.f32 0.5, %v12926_v50  ;;  %v13353_v12 = vmul.f32 0.5, %v12930_v33  ;;  %v13356_v31 = vmul.f32 0.5, %v17590_v62  ;;  %v17594_v16 = vld [vmem:[#allocation192_spill] sm:$0xff]  ;;  %v17597_v62 = vld [vmem:[#allocation257_spill] sm:$0xff] }
 0x2b7   :  { %17588 = vst [vmem:[#allocation317_spill] sm:$0xff] %v13336_v23  ;;  %v13347_v15 = vpop.eup %5850  ;;  %5870 = vtanh.f32 %v4784_v13  ;;  %v13361_v58 = vmul.f32 0.5, %v17592_v21  ;;  %v13364_v5 = vmul.f32 0.5, %v17593_v38  ;;  %v17596_v33 = vld [vmem:[#allocation256_spill] sm:$0xff]  ;;  %v13375_v63 = vmul.f32 0.5, %v17597_v62  ;;  %v17598_v13 = vld [vmem:[#allocation258_spill] sm:$0xff] }
 0x2b8   :  { %17589 = vst [vmem:[#allocation318_spill] sm:$0xff] %v13347_v15  ;;  %v13358_v49 = vpop.eup %5852  ;;  %v13367_v15 = vmul.f32 0.5, %v17594_v16  ;;  %5872 = vtanh.f32 %v4785_v14  ;;  %v13372_v23 = vmul.f32 0.5, %v17596_v33  ;;  %v17600_v38 = vld [vmem:[#allocation193_spill] sm:$0xff]  ;;  %v17601_v16 = vld [vmem:[#allocation259_spill] sm:$0xff]  ;;  %v17602_v14 = vld [vmem:[#allocation260_spill] sm:$0xff] }
 0x2b9   :  { %17591 = vst [vmem:[#allocation319_spill] sm:$0xff] %v13358_v49  ;;  %v13369_v50 = vpop.eup %5854  ;;  %v13378_v49 = vmul.f32 0.5, %v17598_v13  ;;  %5874 = vtanh.f32 %v4786_v43  ;;  %v13383_v8 = vmul.f32 0.5, %v17600_v38  ;;  %v13386_v2 = vmul.f32 0.5, %v17601_v16  ;;  %v17604_v62 = vld [vmem:[#allocation194_spill] sm:$0xff]  ;;  %v17605_v13 = vld [vmem:[#allocation261_spill] sm:$0xff] }
 0x2ba   :  { %17595 = vst [vmem:[#allocation320_spill] sm:$0xff] %v13369_v50  ;;  %v13380_v21 = vpop.eup %5856  ;;  %v13389_v50 = vmul.f32 0.5, %v17602_v14  ;;  %5876 = vtanh.f32 %v4787_v11  ;;  %v13394_v37 = vmul.f32 0.5, %v17604_v62  ;;  %v13397_v18 = vmul.f32 0.5, %v17605_v13  ;;  %v17606_v43 = vld [vmem:[#allocation262_spill] sm:$0xff]  ;;  %v17608_v16 = vld [vmem:[#allocation263_spill] sm:$0xff] }
 0x2bb   :  { %17599 = vst [vmem:[#allocation321_spill] sm:$0xff] %v13380_v21  ;;  %v13391_v33 = vpop.eup %5858  ;;  %v13400_v21 = vmul.f32 0.5, %v17606_v43  ;;  %5878 = vtanh.f32 %v4788_v26  ;;  %v13405_v42 = vmul.f32 0.5, %v17608_v16  ;;  %v17609_v14 = vld [vmem:[#allocation195_spill] sm:$0xff]  ;;  %v17610_v11 = vld [vmem:[#allocation264_spill] sm:$0xff]  ;;  %v17612_v13 = vld [vmem:[#allocation265_spill] sm:$0xff] }
 0x2bc   :  { %17603 = vst [vmem:[#allocation322_spill] sm:$0xff] %v13391_v33  ;;  %v13402_v38 = vpop.eup %5860  ;;  %v13408_v20 = vmul.f32 0.5, %v17609_v14  ;;  %v13411_v33 = vmul.f32 0.5, %v17610_v11  ;;  %5880 = vtanh.f32 %v4789_v7  ;;  %v13416_v32 = vmul.f32 0.5, %v17612_v13  ;;  %v17613_v43 = vld [vmem:[#allocation266_spill] sm:$0xff]  ;;  %v17615_v26 = vld [vmem:[#allocation196_spill] sm:$0xff] }
 0x2bd   :  { %17607 = vst [vmem:[#allocation323_spill] sm:$0xff] %v13402_v38  ;;  %v13413_v62 = vpop.eup %5862  ;;  %v13419_v36 = vmul.f32 0.5, %v17613_v43  ;;  %v13422_v38 = vmul.f32 0.5, %v17615_v26  ;;  %5882 = vtanh.f32 %v13279_v57  ;;  %v17618_v14 = vld [vmem:[#allocation267_spill] sm:$0xff]  ;;  %v17619_v11 = vld [vmem:[#allocation268_spill] sm:$0xff]  ;;  %v17624_v43 = vld [vmem:[#allocation269_spill] sm:$0xff] }
 0x2be   :  { %17611 = vst [vmem:[#allocation84_spill] sm:$0xff] %v13413_v62  ;;  %v13425_v16 = vpop.eup %5864  ;;  %v13428_v48 = vmul.f32 0.5, %v17618_v14  ;;  %v13431_v7 = vmul.f32 0.5, %v17619_v11  ;;  %v17621_v62 = vld [vmem:[#allocation197_spill] sm:$0xff]  ;;  %5884 = vtanh.f32 %v13284_v41  ;;  %v13440_v26 = vmul.f32 0.5, %v17624_v43  ;;  %v17630_v11 = vld [vmem:[#allocation198_spill] sm:$0xff] }
 0x2bf   :  { %17614 = vst [vmem:[#allocation370_spill] sm:$0xff] %v13419_v36  ;;  %17616 = vst [vmem:[#allocation85_spill] sm:$0xff] %v13422_v38  ;;  %v13434_v17 = vmul.f32 0.5, %v17621_v62  ;;  %v13437_v13 = vpop.eup %5866  ;;  %v17625_v38 = vld [vmem:[#allocation270_spill] sm:$0xff]  ;;  %5886 = vtanh.f32 %v13287_v28  ;;  %v13452_v62 = vmul.f32 0.5, %v17630_v11  ;;  %v17642_v11 = vld [vmem:[#allocation276_spill] sm:$0xff] }
 0x2c0   :  { %17617 = vst [vmem:[#allocation371_spill] sm:$0xff] %v13425_v16  ;;  %17620 = vst [vmem:[#allocation86_spill] sm:$0xff] %v13431_v7  ;;  %v13443_v57 = vmul.f32 0.5, %v17625_v38  ;;  %v17627_v16 = vld [vmem:[#allocation271_spill] sm:$0xff]  ;;  %v13449_v14 = vpop.eup %5868  ;;  %5888 = vtanh.f32 %v13290_v24  ;;  %v17636_v43 = vld [vmem:[#allocation274_spill] sm:$0xff] }
 0x2c1   :  { %17622 = vst [vmem:[#allocation372_spill] sm:$0xff] %v13434_v17  ;;  %17623 = vst [vmem:[#allocation87_spill] sm:$0xff] %v13437_v13  ;;  %v13446_v36 = vmul.f32 0.5, %v17627_v16  ;;  %v17631_v17 = vld [vmem:[#allocation272_spill] sm:$0xff]  ;;  %v17633_v13 = vld [vmem:[#allocation273_spill] sm:$0xff]  ;;  %v13461_v38 = vpop.eup %5870  ;;  %v13464_v16 = vmul.f32 0.5, %v17636_v43  ;;  %5890 = vtanh.f32 %v13295_v4 }
 0x2c2   :  { %17626 = vst [vmem:[#allocation373_spill] sm:$0xff] %v13443_v57  ;;  %17629 = vst [vmem:[#allocation374_spill] sm:$0xff] %v13449_v14  ;;  %v13455_v41 = vmul.f32 0.5, %v17631_v17  ;;  %v13458_v7 = vmul.f32 0.5, %v17633_v13  ;;  %v17639_v14 = vld [vmem:[#allocation275_spill] sm:$0xff]  ;;  %v13473_v17 = vpop.eup %5872  ;;  %v13476_v13 = vmul.f32 0.5, %v17642_v11  ;;  %5892 = vtanh.f32 %v13298_v54 }
 0x2c3   :  { %17628 = vst [vmem:[#allocation88_spill] sm:$0xff] %v13446_v36  ;;  %17635 = vst [vmem:[#allocation90_spill] sm:$0xff] %v13461_v38  ;;  %v17637_v36 = vld [vmem:[#allocation199_spill] sm:$0xff]  ;;  %v13470_v57 = vmul.f32 0.5, %v17639_v14  ;;  %v17645_v38 = vld [vmem:[#allocation277_spill] sm:$0xff]  ;;  %5894 = vtanh.f32 %v13301_v29 }
 0x2c4   :  { %17632 = vst [vmem:[#allocation89_spill] sm:$0xff] %v13455_v41  ;;  %17634 = vst [vmem:[#allocation375_spill] sm:$0xff] %v13458_v7  ;;  %v13467_v28 = vmul.f32 0.5, %v17637_v36  ;;  %v17643_v7 = vld [vmem:[#allocation200_spill] sm:$0xff]  ;;  %v13482_v41 = vmul.f32 0.5, %v17645_v38  ;;  %v13485_v36 = vpop.eup %5874  ;;  %v17648_v43 = vld [vmem:[#allocation278_spill] sm:$0xff]  ;;  %5896 = vtanh.f32 %v13306_v10 }
 0x2c5   :  { %17640 = vst [vmem:[#allocation91_spill] sm:$0xff] %v13470_v57  ;;  %17641 = vst [vmem:[#allocation377_spill] sm:$0xff] %v13473_v17  ;;  %v13479_v24 = vmul.f32 0.5, %v17643_v7  ;;  %v13488_v14 = vmul.f32 0.5, %v17648_v43  ;;  %v17649_v57 = vld [vmem:[#allocation279_spill] sm:$0xff]  ;;  %v17651_v17 = vld [vmem:[#allocation201_spill] sm:$0xff]  ;;  %v13497_v7 = vpop.eup %5876  ;;  %5898 = vtanh.f32 %v13309_v0 }
 0x2c6   :  { %17638 = vst [vmem:[#allocation376_spill] sm:$0xff] %v13467_v28  ;;  %17646 = vst [vmem:[#allocation378_spill] sm:$0xff] %v13482_v41  ;;  %v13491_v4 = vmul.f32 0.5, %v17649_v57  ;;  %v13494_v28 = vmul.f32 0.5, %v17651_v17  ;;  %v17654_v11 = vld [vmem:[#allocation280_spill] sm:$0xff]  ;;  %v17656_v41 = vld [vmem:[#allocation281_spill] sm:$0xff]  ;;  %v13509_v57 = vpop.eup %5878  ;;  %5900 = vtanh.f32 %v13312_v35 }
 0x2c7   :  { %17644 = vst [vmem:[#allocation92_spill] sm:$0xff] %v13479_v24  ;;  %17647 = vst [vmem:[#allocation93_spill] sm:$0xff] %v13485_v36  ;;  %v13500_v38 = vmul.f32 0.5, %v17654_v11  ;;  %v13503_v54 = vmul.f32 0.5, %v17656_v41  ;;  %v17658_v36 = vld [vmem:[#allocation282_spill] sm:$0xff]  ;;  %v13521_v41 = vpop.eup %5880  ;;  %v17666_v11 = vld [vmem:[#allocation285_spill] sm:$0xff]  ;;  %5902 = vtanh.f32 %v13317_v45 }
 0x2c8   :  { %17650 = vst [vmem:[#allocation379_spill] sm:$0xff] %v13491_v4  ;;  %17652 = vst [vmem:[#allocation94_spill] sm:$0xff] %v13494_v28  ;;  %v13506_v24 = vmul.f32 0.5, %v17658_v36  ;;  %v17660_v43 = vld [vmem:[#allocation202_spill] sm:$0xff]  ;;  %v17662_v28 = vld [vmem:[#allocation283_spill] sm:$0xff]  ;;  %v13524_v36 = vmul.f32 0.5, %v17666_v11  ;;  %5904 = vtanh.f32 %v13320_v47 }
 0x2c9   :  { %17653 = vst [vmem:[#allocation380_spill] sm:$0xff] %v13497_v7  ;;  %17655 = vst [vmem:[#allocation95_spill] sm:$0xff] %v13500_v38  ;;  %v13512_v17 = vmul.f32 0.5, %v17660_v43  ;;  %v13515_v29 = vmul.f32 0.5, %v17662_v28  ;;  %v17664_v7 = vld [vmem:[#allocation284_spill] sm:$0xff]  ;;  %v13533_v28 = vpop.eup %5882  ;;  %v17674_v11 = vld [vmem:[#allocation291_spill] sm:$0xff]  ;;  %5906 = vtanh.f32 %v13323_v25 }
 0x2ca   :  { %17657 = vst [vmem:[#allocation381_spill] sm:$0xff] %v13503_v54  ;;  %17659 = vst [vmem:[#allocation96_spill] sm:$0xff] %v13506_v24  ;;  %v13518_v4 = vmul.f32 0.5, %v17664_v7  ;;  %v17667_v24 = vld [vmem:[#allocation286_spill] sm:$0xff]  ;;  %v17668_v54 = vld [vmem:[#allocation287_spill] sm:$0xff]  ;;  %v13551_v35 = vmul.f32 0.5, %v17674_v11  ;;  %5908 = vtanh.f32 %v13328_v34 }
 0x2cb   :  { %17661 = vst [vmem:[#allocation382_spill] sm:$0xff] %v13512_v17  ;;  %17663 = vst [vmem:[#allocation97_spill] sm:$0xff] %v13515_v29  ;;  %v13527_v10 = vmul.f32 0.5, %v17667_v24  ;;  %v13530_v38 = vmul.f32 0.5, %v17668_v54  ;;  %v17670_v43 = vld [vmem:[#allocation288_spill] sm:$0xff]  ;;  %v17672_v29 = vld [vmem:[#allocation290_spill] sm:$0xff]  ;;  %v13545_v24 = vpop.eup %5884  ;;  %5910 = vtanh.f32 %v13331_v56 }
 0x2cc   :  { %17665 = vst [vmem:[#allocation383_spill] sm:$0xff] %v13518_v4  ;;  %v13536_v7 = vmul.f32 0.5, %v17670_v43  ;;  %v17671_v4 = vld [vmem:[#allocation289_spill] sm:$0xff]  ;;  %v13542_v17 = vmul.f32 0.5, %v17672_v29  ;;  %v13548_v54 = vmul.f32 0.5, %v13140_v55  ;;  %17675 = vst [vmem:[#allocation99_spill] sm:$0xff] %v13551_v35  ;;  %5912 = vtanh.f32 %v13334_v52 }
 0x2cd   :  { %17669 = vst [vmem:[#allocation98_spill] sm:$0xff] %v13530_v38  ;;  %v13539_v0 = vmul.f32 0.5, %v17671_v4  ;;  %v13554_v38 = vmul.f32 0.5, %v13149_v51  ;;  %v13557_v4 = vpop.eup %5886  ;;  %v17677_v43 = vld [vmem:[#allocation292_spill] sm:$0xff]  ;;  %v13563_v45 = vmul.f32 0.5, %v13158_v46  ;;  %v13572_v51 = vmul.f32 0.5, %v13167_v59 }
 0x2ce   :  { %17673 = vst [vmem:[#allocation384_spill] sm:$0xff] %v13542_v17  ;;  %v13560_v29 = vmul.f32 0.5, %v17677_v43  ;;  %v13566_v17 = vmul.f32 0.5, %v13162_v6  ;;  %v13569_v55 = vpop.eup %5888  ;;  %v17682_v11 = vld [vmem:[#allocation293_spill] sm:$0xff]  ;;  %v17685_v43 = vld [vmem:[#allocation295_spill] sm:$0xff]  ;;  %v13587_v25 = vmul.f32 0.5, %v13189_v39  ;;  %5914 = vtanh.f32 %v13339_v30 }
 0x2cf   :  { %17676 = vst [vmem:[#allocation385_spill] sm:$0xff] %v13554_v38  ;;  %17679 = vst [vmem:[#allocation386_spill] sm:$0xff] %v13563_v45  ;;  %v13575_v47 = vmul.f32 0.5, %v17682_v11  ;;  %v13578_v38 = vmul.f32 0.5, %v13178_v9  ;;  %v13581_v46 = vpop.eup %5890  ;;  %v13584_v6 = vmul.f32 0.5, %v17685_v43  ;;  %v13596_v9 = vmul.f32 0.5, %v13200_v61 }
 0x2d0   :  { %17678 = vst [vmem:[#allocation100_spill] sm:$0xff] %v13560_v29  ;;  %17680 = vst [vmem:[#allocation101_spill] sm:$0xff] %v13566_v17  ;;  %v17688_v17 = vld [vmem:[#allocation297_spill] sm:$0xff]  ;;  %v13593_v59 = vpop.eup %5892  ;;  %v17691_v11 = vld [vmem:[#allocation299_spill] sm:$0xff]  ;;  %v13611_v56 = vmul.f32 0.5, %v13222_v1  ;;  %5916 = vtanh.f32 %v13342_v40  ;;  %v13635_v30 = vmul.f32 0.5, %v13255_v27 }
 0x2d1   :  { %17681 = vst [vmem:[#allocation102_spill] sm:$0xff] %v13572_v51  ;;  %17683 = vst [vmem:[#allocation103_spill] sm:$0xff] %v13575_v47  ;;  %v13590_v45 = vmul.f32 0.5, %v17688_v17  ;;  %v13599_v34 = vmul.f32 0.5, %v17691_v11  ;;  %v13605_v39 = vpop.eup %5894  ;;  %v17694_v43 = vld [vmem:[#allocation301_spill] sm:$0xff]  ;;  %5918 = vtanh.f32 %v13345_v19 }
 0x2d2   :  { %17684 = vst [vmem:[#allocation104_spill] sm:$0xff] %v13578_v38  ;;  %17686 = vst [vmem:[#allocation105_spill] sm:$0xff] %v13584_v6  ;;  %v13602_v38 = vmul.f32 0.5, %v13211_v22  ;;  %v13608_v17 = vmul.f32 0.5, %v17694_v43  ;;  %v13617_v61 = vpop.eup %5896  ;;  %v13620_v22 = vmul.f32 0.5, %v13233_v3  ;;  %v17700_v11 = vld [vmem:[#allocation305_spill] sm:$0xff]  ;;  %5920 = vtanh.f32 %v13350_v60 }
 0x2d3   :  { %17687 = vst [vmem:[#allocation106_spill] sm:$0xff] %v13587_v25  ;;  %17689 = vst [vmem:[#allocation107_spill] sm:$0xff] %v13590_v45  ;;  %v17697_v45 = vld [vmem:[#allocation303_spill] sm:$0xff]  ;;  %v13623_v52 = vmul.f32 0.5, %v17700_v11  ;;  %v13629_v1 = vpop.eup %5898  ;;  %v17705_v43 = vld [vmem:[#allocation354_spill] sm:$0xff]  ;;  %5922 = vtanh.f32 %v13353_v12 }
 0x2d4   :  { %17690 = vst [vmem:[#allocation108_spill] sm:$0xff] %v13596_v9  ;;  %17692 = vst [vmem:[#allocation109_spill] sm:$0xff] %v13599_v34  ;;  %v13614_v25 = vmul.f32 0.5, %v17697_v45  ;;  %v13632_v45 = vmul.f32 0.5, %v13248_v53  ;;  %v13641_v3 = vpop.eup %5900  ;;  %v17707_v11 = vld [vmem:[#allocation355_spill] sm:$0xff]  ;;  %v17713_v53 = vld [vmem:[#allocation358_spill] sm:$0xff]  ;;  %5924 = vtanh.f32 %v13356_v31 }
 0x2d5   :  { %17693 = vst [vmem:[#allocation110_spill] sm:$0xff] %v13602_v38  ;;  %17695 = vst [vmem:[#allocation111_spill] sm:$0xff] %v13608_v17  ;;  %v13626_v38 = vmul.f32 0.5, %v13244_v44  ;;  %v13644_v44 = vmul.f32 0.5, %v17707_v11  ;;  %v13653_v27 = vpop.eup %5902  ;;  %v17719_v11 = vld [vmem:[#allocation361_spill] sm:$0xff]  ;;  %5926 = vtanh.f32 %v13361_v58 }
 0x2d6   :  { %17696 = vst [vmem:[#allocation112_spill] sm:$0xff] %v13611_v56  ;;  %17698 = vst [vmem:[#allocation113_spill] sm:$0xff] %v13614_v25  ;;  %v13638_v25 = vmul.f32 0.5, %v17705_v43  ;;  %v13656_v43 = vmul.f32 0.5, %v17713_v53  ;;  %v17725_v53 = vld [vmem:[#allocation364_spill] sm:$0xff]  ;;  %5928 = vtanh.f32 %v13364_v5 }
 0x2d7   :  { %17699 = vst [vmem:[#allocation114_spill] sm:$0xff] %v13620_v22  ;;  %17701 = vst [vmem:[#allocation115_spill] sm:$0xff] %v13623_v52  ;;  %v17711_v52 = vld [vmem:[#allocation357_spill] sm:$0xff]  ;;  %5930 = vtanh.f32 %v13367_v15 }
 0x2d8   :  { %17702 = vst [vmem:[#allocation116_spill] sm:$0xff] %v13626_v38  ;;  %17703 = vst [vmem:[#allocation117_spill] sm:$0xff] %v13632_v45  ;;  %v17709_v38 = vld [vmem:[#allocation356_spill] sm:$0xff]  ;;  %v13650_v22 = vmul.f32 0.5, %v17711_v52  ;;  %v13668_v52 = vmul.f32 0.5, %v17719_v11  ;;  %v17731_v11 = vld [vmem:[#allocation367_spill] sm:$0xff]  ;;  %5932 = vtanh.f32 %v13372_v23 }
 0x2d9   :  { %17704 = vst [vmem:[#allocation118_spill] sm:$0xff] %v13635_v30  ;;  %17706 = vst [vmem:[#allocation119_spill] sm:$0xff] %v13638_v25  ;;  %v13647_v40 = vmul.f32 0.5, %v17709_v38  ;;  %v17715_v25 = vld [vmem:[#allocation359_spill] sm:$0xff]  ;;  %v17717_v30 = vld [vmem:[#allocation360_spill] sm:$0xff]  ;;  %v13665_v38 = vpop.eup %5904  ;;  %5934 = vtanh.f32 %v13375_v63 }
 0x2da   :  { %17708 = vst [vmem:[#allocation120_spill] sm:$0xff] %v13644_v44  ;;  %17712 = vst [vmem:[#allocation122_spill] sm:$0xff] %v13650_v22  ;;  %v13659_v19 = vmul.f32 0.5, %v17715_v25  ;;  %v13662_v45 = vmul.f32 0.5, %v17717_v30  ;;  %v17721_v22 = vld [vmem:[#allocation362_spill] sm:$0xff]  ;;  %v13677_v25 = vpop.eup %5906  ;;  %v13680_v30 = vmul.f32 0.5, %v17725_v53  ;;  %5936 = vtanh.f32 %v13378_v49 }
 0x2db   :  { %17710 = vst [vmem:[#allocation121_spill] sm:$0xff] %v13647_v40  ;;  %17714 = vst [vmem:[#allocation123_spill] sm:$0xff] %v13656_v43  ;;  %v13671_v60 = vmul.f32 0.5, %v17721_v22  ;;  %v17723_v40 = vld [vmem:[#allocation363_spill] sm:$0xff]  ;;  %v13689_v22 = vpop.eup %5908  ;;  %v17737_v53 = vld [vmem:[#allocation137_spill] sm:$0xff]  ;;  %5938 = vtanh.f32 %v13383_v8 }
 0x2dc   :  { %17716 = vst [vmem:[#allocation124_spill] sm:$0xff] %v13659_v19  ;;  %17718 = vst [vmem:[#allocation125_spill] sm:$0xff] %v13662_v45  ;;  %v13674_v44 = vmul.f32 0.5, %v17723_v40  ;;  %v17727_v45 = vld [vmem:[#allocation365_spill] sm:$0xff]  ;;  %v17729_v19 = vld [vmem:[#allocation366_spill] sm:$0xff]  ;;  %v13692_v40 = vmul.f32 0.5, %v17731_v11  ;;  %5940 = vtanh.f32 %v13386_v2 }
 0x2dd   :  { %17720 = vst [vmem:[#allocation126_spill] sm:$0xff] %v13668_v52  ;;  %17722 = vst [vmem:[#allocation127_spill] sm:$0xff] %v13671_v60  ;;  %v13683_v12 = vmul.f32 0.5, %v17727_v45  ;;  %v13686_v43 = vmul.f32 0.5, %v17729_v19  ;;  %v17735_v60 = vld [vmem:[#allocation369_spill] sm:$0xff]  ;;  %v13701_v45 = vpop.eup %5910  ;;  %v13704_v19 = vmul.f32 0.5, %v17737_v53  ;;  %5942 = vtanh.f32 %v13389_v50 }
 0x2de   :  { %17724 = vst [vmem:[#allocation128_spill] sm:$0xff] %v13674_v44  ;;  %17726 = vst [vmem:[#allocation129_spill] sm:$0xff] %v13680_v30  ;;  %v17733_v44 = vld [vmem:[#allocation368_spill] sm:$0xff]  ;;  %v13698_v52 = vmul.f32 0.5, %v17735_v60  ;;  %v17749_v53 = vld [vmem:[#allocation143_spill] sm:$0xff] }
 0x2df   :  { %17728 = vst [vmem:[#allocation130_spill] sm:$0xff] %v13683_v12  ;;  %17730 = vst [vmem:[#allocation131_spill] sm:$0xff] %v13686_v43  ;;  %v13695_v31 = vmul.f32 0.5, %v17733_v44  ;;  %v17739_v43 = vld [vmem:[#allocation138_spill] sm:$0xff]  ;;  %v17741_v12 = vld [vmem:[#allocation139_spill] sm:$0xff]  ;;  %v13713_v44 = vpop.eup %5912  ;;  %5944 = vtanh.f32 %v13394_v37 }
 0x2e0   :  { %17732 = vst [vmem:[#allocation132_spill] sm:$0xff] %v13692_v40  ;;  %17736 = vst [vmem:[#allocation134_spill] sm:$0xff] %v13698_v52  ;;  %v13707_v58 = vmul.f32 0.5, %v17739_v43  ;;  %v13710_v30 = vmul.f32 0.5, %v17741_v12  ;;  %v17743_v11 = vld [vmem:[#allocation140_spill] sm:$0xff]  ;;  %v17745_v52 = vld [vmem:[#allocation141_spill] sm:$0xff]  ;;  %v13725_v43 = vpop.eup %5914  ;;  %5946 = vtanh.f32 %v13397_v18 }
 0x2e1   :  { %17734 = vst [vmem:[#allocation133_spill] sm:$0xff] %v13695_v31  ;;  %17738 = vst [vmem:[#allocation135_spill] sm:$0xff] %v13704_v19  ;;  %v13716_v60 = vmul.f32 0.5, %v17743_v11  ;;  %v13719_v5 = vmul.f32 0.5, %v17745_v52  ;;  %v17747_v31 = vld [vmem:[#allocation142_spill] sm:$0xff]  ;;  %v13728_v12 = vmul.f32 0.5, %v17749_v53  ;;  %v13737_v52 = vpop.eup %5916  ;;  %5948 = vtanh.f32 %v13400_v21 }
 0x2e2   :  { %17740 = vst [vmem:[#allocation11_spill] sm:$0xff] %v13707_v58  ;;  %17742 = vst [vmem:[#allocation12_spill] sm:$0xff] %v13710_v30  ;;  %v13722_v40 = vmul.f32 0.5, %v17747_v31  ;;  %v17751_v30 = vld [vmem:[#allocation144_spill] sm:$0xff]  ;;  %v17753_v58 = vld [vmem:[#allocation145_spill] sm:$0xff] }
 0x2e3   :  { %17744 = vst [vmem:[#allocation13_spill] sm:$0xff] %v13716_v60  ;;  %17746 = vst [vmem:[#allocation203_spill] sm:$0xff] %v13719_v5  ;;  %v13731_v15 = vmul.f32 0.5, %v17751_v30  ;;  %v13734_v19 = vmul.f32 0.5, %v17753_v58  ;;  %v17755_v11 = vld [vmem:[#allocation146_spill] sm:$0xff]  ;;  %v17759_v5 = vld [vmem:[#allocation148_spill] sm:$0xff]  ;;  %v13749_v30 = vpop.eup %5918  ;;  %5950 = vtanh.f32 %v13405_v42 }
 0x2e4   :  { %17748 = vst [vmem:[#allocation14_spill] sm:$0xff] %v13722_v40  ;;  %17750 = vst [vmem:[#allocation15_spill] sm:$0xff] %v13728_v12  ;;  %v13740_v31 = vmul.f32 0.5, %v17755_v11  ;;  %v17757_v40 = vld [vmem:[#allocation147_spill] sm:$0xff]  ;;  %v13746_v60 = vmul.f32 0.5, %v17759_v5  ;;  %v17761_v53 = vld [vmem:[#allocation6_spill] sm:$0xff] }
 0x2e5   :  { %17752 = vst [vmem:[#allocation16_spill] sm:$0xff] %v13731_v15  ;;  %17754 = vst [vmem:[#allocation204_spill] sm:$0xff] %v13734_v19  ;;  %v13743_v23 = vmul.f32 0.5, %v17757_v40  ;;  %v13752_v58 = vmul.f32 0.5, %v17761_v53  ;;  %v17763_v19 = vld [vmem:[#allocation7_spill] sm:$0xff]  ;;  %v17765_v15 = vld [vmem:[#allocation149_spill] sm:$0xff]  ;;  %v13761_v40 = vpop.eup %5920  ;;  %5952 = vtanh.f32 %v13408_v20 }
 0x2e6   :  { %17756 = vst [vmem:[#allocation17_spill] sm:$0xff] %v13740_v31  ;;  %17760 = vst [vmem:[#allocation19_spill] sm:$0xff] %v13746_v60  ;;  %v13755_v63 = vmul.f32 0.5, %v17763_v19  ;;  %v13758_v12 = vmul.f32 0.5, %v17765_v15  ;;  %v17767_v11 = vld [vmem:[#allocation8_spill] sm:$0xff]  ;;  %v17769_v60 = vld [vmem:[#allocation9_spill] sm:$0xff]  ;;  %v13773_v19 = vpop.eup %5922  ;;  %5954 = vtanh.f32 %v13411_v33 }
 0x2e7   :  { %17758 = vst [vmem:[#allocation18_spill] sm:$0xff] %v13743_v23  ;;  %17762 = vst [vmem:[#allocation20_spill] sm:$0xff] %v13752_v58  ;;  %v13764_v5 = vmul.f32 0.5, %v17767_v11  ;;  %v13767_v49 = vmul.f32 0.5, %v17769_v60  ;;  %v17771_v23 = vld [vmem:[#allocation150_spill] sm:$0xff]  ;;  %v17773_v53 = vld [vmem:[#allocation151_spill] sm:$0xff]  ;;  %v13785_v60 = vpop.eup %5924  ;;  %5956 = vtanh.f32 %v13416_v32 }
 0x2e8   :  { %17764 = vst [vmem:[#allocation21_spill] sm:$0xff] %v13755_v63  ;;  %17766 = vst [vmem:[#allocation334_spill] sm:$0xff] %v13758_v12  ;;  %v13770_v31 = vmul.f32 0.5, %v17771_v23  ;;  %v13776_v15 = vmul.f32 0.5, %v17773_v53  ;;  %v17775_v12 = vld [vmem:[#allocation152_spill] sm:$0xff]  ;;  %v17777_v63 = vld [vmem:[#allocation153_spill] sm:$0xff] }
 0x2e9   :  { %17768 = vst [vmem:[#allocation22_spill] sm:$0xff] %v13764_v5  ;;  %17770 = vst [vmem:[#allocation232_spill] sm:$0xff] %v13767_v49  ;;  %v13779_v8 = vmul.f32 0.5, %v17775_v12  ;;  %v13782_v58 = vmul.f32 0.5, %v17777_v63  ;;  %v17779_v11 = vld [vmem:[#allocation154_spill] sm:$0xff]  ;;  %v17783_v49 = vld [vmem:[#allocation155_spill] sm:$0xff]  ;;  %v13797_v12 = vpop.eup %5926 }
 0x2ea   :  { %17772 = vst [vmem:[#allocation23_spill] sm:$0xff] %v13770_v31  ;;  %17774 = vst [vmem:[#allocation335_spill] sm:$0xff] %v13776_v15  ;;  %v13788_v23 = vmul.f32 0.5, %v17779_v11  ;;  %v17781_v31 = vld [vmem:[#allocation205_spill] sm:$0xff]  ;;  %v13794_v5 = vmul.f32 0.5, %v17783_v49  ;;  %v17785_v53 = vld [vmem:[#allocation206_spill] sm:$0xff] }
 0x2eb   :  { %17776 = vst [vmem:[#allocation24_spill] sm:$0xff] %v13779_v8  ;;  %17778 = vst [vmem:[#allocation233_spill] sm:$0xff] %v13782_v58  ;;  %v13791_v2 = vmul.f32 0.5, %v17781_v31  ;;  %v13800_v63 = vmul.f32 0.5, %v17785_v53  ;;  %v17787_v58 = vld [vmem:[#allocation207_spill] sm:$0xff]  ;;  %v17789_v8 = vld [vmem:[#allocation208_spill] sm:$0xff]  ;;  %v13809_v31 = vpop.eup %5928 }
 0x2ec   :  { %17780 = vst [vmem:[#allocation25_spill] sm:$0xff] %v13788_v23  ;;  %17784 = vst [vmem:[#allocation177_spill] sm:$0xff] %v13794_v5  ;;  %v13803_v50 = vmul.f32 0.5, %v17787_v58  ;;  %v13806_v15 = vmul.f32 0.5, %v17789_v8  ;;  %v17791_v11 = vld [vmem:[#allocation209_spill] sm:$0xff]  ;;  %v17793_v5 = vld [vmem:[#allocation156_spill] sm:$0xff]  ;;  %v13821_v58 = vpop.eup %5930 }
 0x2ed   :  { %17782 = vst [vmem:[#allocation234_spill] sm:$0xff] %v13791_v2  ;;  %17786 = vst [vmem:[#allocation336_spill] sm:$0xff] %v13800_v63  ;;  %v13812_v49 = vmul.f32 0.5, %v17791_v11  ;;  %v13815_v37 = vmul.f32 0.5, %v17793_v5  ;;  %v17795_v2 = vld [vmem:[#allocation210_spill] sm:$0xff]  ;;  %v17797_v53 = vld [vmem:[#allocation211_spill] sm:$0xff]  ;;  %v13833_v5 = vpop.eup %5932 }
 0x2ee   :  { %17788 = vst [vmem:[#allocation179_spill] sm:$0xff] %v13803_v50  ;;  %17790 = vst [vmem:[#allocation235_spill] sm:$0xff] %v13806_v15  ;;  %v13818_v23 = vmul.f32 0.5, %v17795_v2  ;;  %v13824_v8 = vmul.f32 0.5, %v17797_v53  ;;  %v17799_v15 = vld [vmem:[#allocation212_spill] sm:$0xff]  ;;  %v17801_v50 = vld [vmem:[#allocation157_spill] sm:$0xff] }
 0x2ef   :  { %17792 = vst [vmem:[#allocation28_spill] sm:$0xff] %v13812_v49  ;;  %17794 = vst [vmem:[#allocation337_spill] sm:$0xff] %v13815_v37  ;;  %v13827_v18 = vmul.f32 0.5, %v17799_v15  ;;  %v13830_v63 = vmul.f32 0.5, %v17801_v50  ;;  %v17803_v11 = vld [vmem:[#allocation213_spill] sm:$0xff]  ;;  %v17807_v37 = vld [vmem:[#allocation215_spill] sm:$0xff]  ;;  %v13845_v15 = vpop.eup %5934 }
 0x2f0   :  { %17796 = vst [vmem:[#allocation29_spill] sm:$0xff] %v13818_v23  ;;  %17798 = vst [vmem:[#allocation236_spill] sm:$0xff] %v13824_v8  ;;  %v13836_v2 = vmul.f32 0.5, %v17803_v11  ;;  %v17805_v23 = vld [vmem:[#allocation214_spill] sm:$0xff]  ;;  %v13842_v49 = vmul.f32 0.5, %v17807_v37  ;;  %v17809_v53 = vld [vmem:[#allocation216_spill] sm:$0xff] }
 0x2f1   :  { %17800 = vst [vmem:[#allocation30_spill] sm:$0xff] %v13827_v18  ;;  %17802 = vst [vmem:[#allocation338_spill] sm:$0xff] %v13830_v63  ;;  %v13839_v21 = vmul.f32 0.5, %v17805_v23  ;;  %v13848_v50 = vmul.f32 0.5, %v17809_v53  ;;  %v17811_v63 = vld [vmem:[#allocation217_spill] sm:$0xff]  ;;  %v17813_v18 = vld [vmem:[#allocation218_spill] sm:$0xff]  ;;  %v13857_v23 = vpop.eup %5936 }
 0x2f2   :  { %17804 = vst [vmem:[#allocation31_spill] sm:$0xff] %v13836_v2  ;;  %17808 = vst [vmem:[#allocation32_spill] sm:$0xff] %v13842_v49  ;;  %v13851_v42 = vmul.f32 0.5, %v17811_v63  ;;  %v13854_v8 = vmul.f32 0.5, %v17813_v18  ;;  %v17815_v11 = vld [vmem:[#allocation219_spill] sm:$0xff]  ;;  %v17817_v49 = vld [vmem:[#allocation158_spill] sm:$0xff]  ;;  %v13869_v63 = vpop.eup %5938 }
 0x2f3   :  { %17806 = vst [vmem:[#allocation237_spill] sm:$0xff] %v13839_v21  ;;  %17810 = vst [vmem:[#allocation339_spill] sm:$0xff] %v13848_v50  ;;  %v13860_v37 = vmul.f32 0.5, %v17815_v11  ;;  %v13863_v20 = vmul.f32 0.5, %v17817_v49  ;;  %v17819_v21 = vld [vmem:[#allocation220_spill] sm:$0xff]  ;;  %v17827_v11 = vld [vmem:[#allocation370_spill] sm:$0xff]  ;;  %v13881_v49 = vpop.eup %5940 }
 0x2f4   :  { %17812 = vst [vmem:[#allocation33_spill] sm:$0xff] %v13851_v42  ;;  %17814 = vst [vmem:[#allocation5_spill] sm:$0xff] %v13854_v8  ;;  %v13866_v2 = vmul.f32 0.5, %v17819_v21  ;;  %v17821_v53 = vld [vmem:[#allocation324_spill] sm:$0xff]  ;;  %v17823_v8 = vld [vmem:[#allocation221_spill] sm:$0xff]  ;;  %5958 = vtanh.f32 %v17827_v11 }
 0x2f5   :  { %17816 = vst [vmem:[#allocation34_spill] sm:$0xff] %v13860_v37  ;;  %17818 = vst [vmem:[#allocation340_spill] sm:$0xff] %v13863_v20  ;;  %v13872_v18 = vmul.f32 0.5, %v17821_v53  ;;  %v13875_v33 = vmul.f32 0.5, %v17823_v8  ;;  %v17825_v42 = vld [vmem:[#allocation222_spill] sm:$0xff]  ;;  %v17828_v20 = vld [vmem:[#allocation325_spill] sm:$0xff]  ;;  %v13893_v8 = vpop.eup %5942 }
 0x2f6   :  { %17820 = vst [vmem:[#allocation35_spill] sm:$0xff] %v13866_v2  ;;  %v13878_v50 = vmul.f32 0.5, %v17825_v42  ;;  %v13884_v21 = vmul.f32 0.5, %v17828_v20  ;;  %v17830_v2 = vld [vmem:[#allocation159_spill] sm:$0xff]  ;;  %v17832_v37 = vld [vmem:[#allocation326_spill] sm:$0xff]  ;;  %v17834_v53 = vld [vmem:[#allocation85_spill] sm:$0xff] }
 0x2f7   :  { %17822 = vst [vmem:[#allocation162_spill] sm:$0xff] %v13872_v18  ;;  %17824 = vst [vmem:[#allocation36_spill] sm:$0xff] %v13875_v33  ;;  %v13887_v32 = vmul.f32 0.5, %v17830_v2  ;;  %v13890_v56 = vmul.f32 0.5, %v17832_v37  ;;  %5960 = vtanh.f32 %v17834_v53  ;;  %v17835_v33 = vld [vmem:[#allocation223_spill] sm:$0xff]  ;;  %v17839_v18 = vld [vmem:[#allocation224_spill] sm:$0xff]  ;;  %v13905_v2 = vpop.eup %5944 }
 0x2f8   :  { %17826 = vst [vmem:[#allocation341_spill] sm:$0xff] %v13878_v50  ;;  %17829 = vst [vmem:[#allocation37_spill] sm:$0xff] %v13884_v21  ;;  %v13896_v42 = vmul.f32 0.5, %v17835_v33  ;;  %v17837_v50 = vld [vmem:[#allocation327_spill] sm:$0xff]  ;;  %v13902_v17 = vmul.f32 0.5, %v17839_v18  ;;  %5962 = vtanh.f32 %v13428_v48  ;;  %v17841_v20 = vld [vmem:[#allocation160_spill] sm:$0xff] }
 0x2f9   :  { %17831 = vst [vmem:[#allocation238_spill] sm:$0xff] %v13887_v32  ;;  %17833 = vst [vmem:[#allocation38_spill] sm:$0xff] %v13890_v56  ;;  %v13899_v11 = vmul.f32 0.5, %v17837_v50  ;;  %v13908_v37 = vmul.f32 0.5, %v17841_v20  ;;  %v17843_v56 = vld [vmem:[#allocation328_spill] sm:$0xff]  ;;  %v17845_v32 = vld [vmem:[#allocation161_spill] sm:$0xff]  ;;  %v13917_v50 = vpop.eup %5946 }
 0x2fa   :  { %17836 = vst [vmem:[#allocation164_spill] sm:$0xff] %v13896_v42  ;;  %17840 = vst [vmem:[#allocation342_spill] sm:$0xff] %v13902_v17  ;;  %v13911_v53 = vmul.f32 0.5, %v17843_v56  ;;  %v13914_v21 = vmul.f32 0.5, %v17845_v32  ;;  %v17847_v33 = vld [vmem:[#allocation86_spill] sm:$0xff]  ;;  %v17850_v17 = vld [vmem:[#allocation225_spill] sm:$0xff]  ;;  %v13929_v56 = vpop.eup %5948 }
 0x2fb   :  { %17838 = vst [vmem:[#allocation39_spill] sm:$0xff] %v13899_v11  ;;  %17842 = vst [vmem:[#allocation245_spill] sm:$0xff] %v13908_v37  ;;  %5964 = vtanh.f32 %v17847_v33  ;;  %v17848_v11 = vld [vmem:[#allocation329_spill] sm:$0xff]  ;;  %v13923_v48 = vmul.f32 0.5, %v17850_v17  ;;  %v17852_v42 = vld [vmem:[#allocation330_spill] sm:$0xff]  ;;  %v13941_v17 = vpop.eup %5950 }
 0x2fc   :  { %17844 = vst [vmem:[#allocation40_spill] sm:$0xff] %v13911_v53  ;;  %17846 = vst [vmem:[#allocation165_spill] sm:$0xff] %v13914_v21  ;;  %v13920_v18 = vmul.f32 0.5, %v17848_v11  ;;  %v13926_v34 = vmul.f32 0.5, %v17852_v42  ;;  %v17854_v20 = vld [vmem:[#allocation372_spill] sm:$0xff]  ;;  %v17855_v53 = vld [vmem:[#allocation226_spill] sm:$0xff] }
 0x2fd   :  { %17851 = vst [vmem:[#allocation343_spill] sm:$0xff] %v13923_v48  ;;  %5966 = vtanh.f32 %v17854_v20  ;;  %v13932_v32 = vmul.f32 0.5, %v17855_v53  ;;  %v17857_v21 = vld [vmem:[#allocation227_spill] sm:$0xff]  ;;  %v17861_v11 = vld [vmem:[#allocation228_spill] sm:$0xff]  ;;  %v17865_v48 = vld [vmem:[#allocation229_spill] sm:$0xff] }
 0x2fe   :  { %17849 = vst [vmem:[#allocation41_spill] sm:$0xff] %v13920_v18  ;;  %17853 = vst [vmem:[#allocation42_spill] sm:$0xff] %v13926_v34  ;;  %v13935_v33 = vmul.f32 0.5, %v17857_v21  ;;  %v17859_v37 = vld [vmem:[#allocation331_spill] sm:$0xff]  ;;  %5968 = vtanh.f32 %v13440_v26  ;;  %v13944_v42 = vmul.f32 0.5, %v17861_v11  ;;  %v17863_v34 = vld [vmem:[#allocation332_spill] sm:$0xff]  ;;  %v13953_v21 = vpop.eup %5952 }
 0x2ff   :  { %17856 = vst [vmem:[#allocation166_spill] sm:$0xff] %v13932_v32  ;;  %v13938_v9 = vmul.f32 0.5, %v17859_v37  ;;  %v13947_v20 = vmul.f32 0.5, %v17863_v34  ;;  %v13950_v18 = vmul.f32 0.5, %v17865_v48  ;;  %v17867_v53 = vld [vmem:[#allocation373_spill] sm:$0xff]  ;;  %v17872_v32 = vld [vmem:[#allocation231_spill] sm:$0xff]  ;;  %v13965_v34 = vpop.eup %5954 }
 0x300   :  { %17858 = vst [vmem:[#allocation246_spill] sm:$0xff] %v13935_v33  ;;  %17862 = vst [vmem:[#allocation344_spill] sm:$0xff] %v13944_v42  ;;  %5970 = vtanh.f32 %v17867_v53  ;;  %v17868_v33 = vld [vmem:[#allocation230_spill] sm:$0xff]  ;;  %v13962_v6 = vmul.f32 0.5, %v17872_v32  ;;  %v17874_v11 = vld [vmem:[#allocation88_spill] sm:$0xff] }
 0x301   :  { %17860 = vst [vmem:[#allocation43_spill] sm:$0xff] %v13938_v9  ;;  %17864 = vst [vmem:[#allocation44_spill] sm:$0xff] %v13947_v20  ;;  %v13956_v37 = vmul.f32 0.5, %v17868_v33  ;;  %v17870_v9 = vld [vmem:[#allocation333_spill] sm:$0xff]  ;;  %5972 = vtanh.f32 %v17874_v11  ;;  %v17875_v48 = vld [vmem:[#allocation294_spill] sm:$0xff] }
 0x302   :  { %17866 = vst [vmem:[#allocation239_spill] sm:$0xff] %v13950_v18  ;;  %v13959_v26 = vmul.f32 0.5, %v17870_v9  ;;  %17873 = vst [vmem:[#allocation247_spill] sm:$0xff] %v13962_v6  ;;  %5974 = vtanh.f32 %v13452_v62  ;;  %v13969_v18 = vmul.f32 0.5, %v17875_v48  ;;  %v17877_v53 = vld [vmem:[#allocation296_spill] sm:$0xff]  ;;  %v17879_v33 = vld [vmem:[#allocation298_spill] sm:$0xff]  ;;  %v13977_v9 = vpop.eup %5956 }
 0x303   :  { %17869 = vst [vmem:[#allocation45_spill] sm:$0xff] %v13956_v37  ;;  %v13972_v20 = vmul.f32 0.5, %v17877_v53  ;;  %v13975_v37 = vmul.f32 0.5, %v17879_v33  ;;  %v17882_v32 = vld [vmem:[#allocation300_spill] sm:$0xff]  ;;  %v17884_v11 = vld [vmem:[#allocation302_spill] sm:$0xff]  ;;  %v13989_v48 = vpop.eup %5958  ;;  %v17888_v53 = vld [vmem:[#allocation375_spill] sm:$0xff] }
 0x304   :  { %17871 = vst [vmem:[#allocation168_spill] sm:$0xff] %v13959_v26  ;;  %17876 = vst [vmem:[#allocation46_spill] sm:$0xff] %v13969_v18  ;;  %v17881_v26 = vld [vmem:[#allocation89_spill] sm:$0xff]  ;;  %v13981_v6 = vmul.f32 0.5, %v17882_v32  ;;  %v13984_v42 = vmul.f32 0.5, %v17884_v11  ;;  %v17886_v62 = vld [vmem:[#allocation304_spill] sm:$0xff]  ;;  %v14001_v32 = vpop.eup %5960 }
 0x305   :  { %17878 = vst [vmem:[#allocation345_spill] sm:$0xff] %v13972_v20  ;;  %17880 = vst [vmem:[#allocation47_spill] sm:$0xff] %v13975_v37  ;;  %5976 = vtanh.f32 %v17881_v26  ;;  %v13987_v47 = vmul.f32 0.5, %v17886_v62  ;;  %v17889_v20 = vld [vmem:[#allocation306_spill] sm:$0xff]  ;;  %v17891_v37 = vld [vmem:[#allocation307_spill] sm:$0xff] }
 0x306   :  { %17883 = vst [vmem:[#allocation169_spill] sm:$0xff] %v13981_v6  ;;  %17885 = vst [vmem:[#allocation48_spill] sm:$0xff] %v13984_v42  ;;  %5978 = vtanh.f32 %v17888_v53  ;;  %v13993_v33 = vmul.f32 0.5, %v17889_v20  ;;  %v13996_v18 = vmul.f32 0.5, %v17891_v37  ;;  %v17893_v26 = vld [vmem:[#allocation308_spill] sm:$0xff]  ;;  %v17895_v11 = vld [vmem:[#allocation309_spill] sm:$0xff]  ;;  %v14013_v20 = vpop.eup %5962 }
 0x307   :  { %17887 = vst [vmem:[#allocation346_spill] sm:$0xff] %v13987_v47  ;;  %v13999_v51 = vmul.f32 0.5, %v17893_v26  ;;  %5980 = vtanh.f32 %v13464_v16  ;;  %v14005_v62 = vmul.f32 0.5, %v17895_v11  ;;  %v17897_v47 = vld [vmem:[#allocation310_spill] sm:$0xff]  ;;  %v17899_v53 = vld [vmem:[#allocation311_spill] sm:$0xff]  ;;  %v17901_v37 = vld [vmem:[#allocation376_spill] sm:$0xff]  ;;  %v14025_v11 = vpop.eup %5964 }
 0x308   :  { %17890 = vst [vmem:[#allocation189_spill] sm:$0xff] %v13993_v33  ;;  %17892 = vst [vmem:[#allocation49_spill] sm:$0xff] %v13996_v18  ;;  %v14008_v42 = vmul.f32 0.5, %v17897_v47  ;;  %v14011_v6 = vmul.f32 0.5, %v17899_v53  ;;  %5982 = vtanh.f32 %v17901_v37  ;;  %v17902_v18 = vld [vmem:[#allocation312_spill] sm:$0xff]  ;;  %v17906_v16 = vld [vmem:[#allocation314_spill] sm:$0xff] }
 0x309   :  { %17894 = vst [vmem:[#allocation240_spill] sm:$0xff] %v13999_v51  ;;  %17896 = vst [vmem:[#allocation50_spill] sm:$0xff] %v14005_v62  ;;  %v14017_v26 = vmul.f32 0.5, %v17902_v18  ;;  %v17904_v51 = vld [vmem:[#allocation313_spill] sm:$0xff]  ;;  %v14023_v29 = vmul.f32 0.5, %v17906_v16  ;;  %v17908_v47 = vld [vmem:[#allocation91_spill] sm:$0xff]  ;;  %v14037_v18 = vpop.eup %5966 }
 0x30a   :  { %17898 = vst [vmem:[#allocation347_spill] sm:$0xff] %v14008_v42  ;;  %17900 = vst [vmem:[#allocation248_spill] sm:$0xff] %v14011_v6  ;;  %v14020_v33 = vmul.f32 0.5, %v17904_v51  ;;  %5984 = vtanh.f32 %v17908_v47  ;;  %v17909_v42 = vld [vmem:[#allocation315_spill] sm:$0xff]  ;;  %v17911_v6 = vld [vmem:[#allocation316_spill] sm:$0xff] }
 0x30b   :  { %17903 = vst [vmem:[#allocation51_spill] sm:$0xff] %v14017_v26  ;;  %17907 = vst [vmem:[#allocation52_spill] sm:$0xff] %v14023_v29  ;;  %v14029_v53 = vmul.f32 0.5, %v17909_v42  ;;  %v14032_v62 = vmul.f32 0.5, %v17911_v6  ;;  %v17913_v37 = vld [vmem:[#allocation317_spill] sm:$0xff]  ;;  %5986 = vtanh.f32 %v13476_v13  ;;  %v17916_v51 = vld [vmem:[#allocation318_spill] sm:$0xff]  ;;  %v14049_v42 = vpop.eup %5968 }
 0x30c   :  { %17905 = vst [vmem:[#allocation170_spill] sm:$0xff] %v14020_v33  ;;  %v14035_v35 = vmul.f32 0.5, %v17913_v37  ;;  %17915 = vst [vmem:[#allocation173_spill] sm:$0xff] %v14037_v18  ;;  %v14041_v16 = vmul.f32 0.5, %v17916_v51  ;;  %v17918_v29 = vld [vmem:[#allocation319_spill] sm:$0xff]  ;;  %v17920_v47 = vld [vmem:[#allocation320_spill] sm:$0xff]  ;;  %v14061_v51 = vpop.eup %5970 }
 0x30d   :  { %17910 = vst [vmem:[#allocation172_spill] sm:$0xff] %v14029_v53  ;;  %17912 = vst [vmem:[#allocation249_spill] sm:$0xff] %v14032_v62  ;;  %v14044_v33 = vmul.f32 0.5, %v17918_v29  ;;  %v14047_v26 = vmul.f32 0.5, %v17920_v47  ;;  %v17923_v6 = vld [vmem:[#allocation92_spill] sm:$0xff]  ;;  %v17924_v62 = vld [vmem:[#allocation321_spill] sm:$0xff] }
 0x30e   :  { %17914 = vst [vmem:[#allocation53_spill] sm:$0xff] %v14035_v35  ;;  %17917 = vst [vmem:[#allocation54_spill] sm:$0xff] %v14041_v16  ;;  %5988 = vtanh.f32 %v17923_v6  ;;  %v14053_v37 = vmul.f32 0.5, %v17924_v62  ;;  %v17926_v35 = vld [vmem:[#allocation322_spill] sm:$0xff]  ;;  %v17928_v13 = vld [vmem:[#allocation323_spill] sm:$0xff]  ;;  %v14073_v62 = vpop.eup %5972 }
 0x30f   :  { %17919 = vst [vmem:[#allocation136_spill] sm:$0xff] %v14044_v33  ;;  %17921 = vst [vmem:[#allocation250_spill] sm:$0xff] %v14047_v26  ;;  %v14056_v53 = vmul.f32 0.5, %v17926_v35  ;;  %v14059_v18 = vmul.f32 0.5, %v17928_v13  ;;  %v17930_v29 = vld [vmem:[#allocation378_spill] sm:$0xff]  ;;  %v17931_v33 = vld [vmem:[#allocation84_spill] sm:$0xff] }
 0x310   :  { %17922 = vst [vmem:[#allocation55_spill] sm:$0xff] %v14049_v42  ;;  %17925 = vst [vmem:[#allocation174_spill] sm:$0xff] %v14053_v37  ;;  %5990 = vtanh.f32 %v17930_v29  ;;  %v14065_v47 = vmul.f32 0.5, %v17931_v33  ;;  %v17933_v26 = vld [vmem:[#allocation371_spill] sm:$0xff]  ;;  %v17937_v35 = vld [vmem:[#allocation374_spill] sm:$0xff]  ;;  %v14085_v33 = vpop.eup %5974 }
 0x311   :  { %17927 = vst [vmem:[#allocation56_spill] sm:$0xff] %v14056_v53  ;;  %17929 = vst [vmem:[#allocation348_spill] sm:$0xff] %v14059_v18  ;;  %v14068_v16 = vmul.f32 0.5, %v17933_v26  ;;  %v17935_v6 = vld [vmem:[#allocation87_spill] sm:$0xff]  ;;  %5992 = vtanh.f32 %v13488_v14  ;;  %v14077_v13 = vmul.f32 0.5, %v17937_v35  ;;  %v17938_v18 = vld [vmem:[#allocation90_spill] sm:$0xff]  ;;  %v14097_v35 = vpop.eup %5976 }
 0x312   :  { %17932 = vst [vmem:[#allocation190_spill] sm:$0xff] %v14065_v47  ;;  %v14071_v42 = vmul.f32 0.5, %v17935_v6  ;;  %v14080_v53 = vmul.f32 0.5, %v17938_v18  ;;  %v17939_v29 = vld [vmem:[#allocation377_spill] sm:$0xff]  ;;  %v17941_v26 = vld [vmem:[#allocation379_spill] sm:$0xff]  ;;  %v14095_v14 = vmul.f32 0.5, %v13509_v57 }
 0x313   :  { %17934 = vst [vmem:[#allocation57_spill] sm:$0xff] %v14068_v16  ;;  %v14083_v37 = vmul.f32 0.5, %v17939_v29  ;;  %5994 = vtanh.f32 %v17941_v26  ;;  %v17942_v16 = vld [vmem:[#allocation93_spill] sm:$0xff]  ;;  %v17945_v18 = vld [vmem:[#allocation94_spill] sm:$0xff]  ;;  %v14101_v29 = vmul.f32 0.5, %v13521_v41  ;;  %v14107_v26 = vmul.f32 0.5, %v13545_v24 }
 0x314   :  { %17936 = vst [vmem:[#allocation175_spill] sm:$0xff] %v14071_v42  ;;  %v14089_v6 = vmul.f32 0.5, %v17942_v16  ;;  %v17943_v42 = vld [vmem:[#allocation380_spill] sm:$0xff]  ;;  %17944 = vst [vmem:[#allocation349_spill] sm:$0xff] %v14095_v14  ;;  %5996 = vtanh.f32 %v17945_v18  ;;  %v14109_v16 = vpop.eup %5978  ;;  %v14113_v57 = vmul.f32 0.5, %v13557_v4  ;;  %v14116_v14 = vmul.f32 0.5, %v13569_v55 }
 0x315   :  { %17940 = vst [vmem:[#allocation58_spill] sm:$0xff] %v14083_v37  ;;  %v14092_v47 = vmul.f32 0.5, %v17943_v42  ;;  %v14104_v37 = vmul.f32 0.5, %v13533_v28  ;;  %17946 = vst [vmem:[#allocation251_spill] sm:$0xff] %v14107_v26  ;;  %v17947_v42 = vld [vmem:[#allocation95_spill] sm:$0xff]  ;;  %v14119_v18 = vmul.f32 0.5, %v13581_v46  ;;  %v14121_v41 = vpop.eup %5980 }
 0x316   :  { %5998 = vtanh.f32 %v17947_v42  ;;  %v17949_v28 = vld [vmem:[#allocation381_spill] sm:$0xff]  ;;  %v14125_v24 = vmul.f32 0.5, %v13593_v59  ;;  %v14128_v26 = vmul.f32 0.5, %v13605_v39  ;;  %v14131_v42 = vmul.f32 0.5, %v13617_v61  ;;  %v14133_v4 = vpop.eup %5982  ;;  %v17951_v55 = vld [vmem:[#allocation96_spill] sm:$0xff]  ;;  %v17953_v39 = vld [vmem:[#allocation382_spill] sm:$0xff] }
 0x317   :  { %17948 = vst [vmem:[#allocation59_spill] sm:$0xff] %v14119_v18  ;;  %6000 = vtanh.f32 %v17949_v28  ;;  %v14137_v46 = vmul.f32 0.5, %v13629_v1  ;;  %v14140_v18 = vmul.f32 0.5, %v13641_v3  ;;  %v14143_v28 = vmul.f32 0.5, %v13653_v27  ;;  %v14145_v59 = vpop.eup %5984  ;;  %v17955_v3 = vld [vmem:[#allocation97_spill] sm:$0xff] }
 0x318   :  { %17950 = vst [vmem:[#allocation176_spill] sm:$0xff] %v14131_v42  ;;  %6002 = vtanh.f32 %v17951_v55  ;;  %v14149_v61 = vmul.f32 0.5, %v13665_v38  ;;  %v14152_v42 = vmul.f32 0.5, %v13677_v25  ;;  %v14155_v55 = vmul.f32 0.5, %v13689_v22  ;;  %v14157_v1 = vpop.eup %5986 }
 0x319   :  { %17952 = vst [vmem:[#allocation60_spill] sm:$0xff] %v14143_v28  ;;  %6004 = vtanh.f32 %v17953_v39  ;;  %v14161_v27 = vmul.f32 0.5, %v13701_v45  ;;  %v14164_v28 = vmul.f32 0.5, %v13713_v44  ;;  %v14167_v39 = vmul.f32 0.5, %v13725_v43  ;;  %v5989_v38 = vpop.eup %5988 }
 0x31a   :  { %17954 = vst [vmem:[#allocation350_spill] sm:$0xff] %v14149_v61  ;;  %6006 = vtanh.f32 %v17955_v3  ;;  %v17956_v61 = vld [vmem:[#allocation383_spill] sm:$0xff]  ;;  %v14171_v25 = vmul.f32 0.5, %v13737_v52  ;;  %v14174_v22 = vmul.f32 0.5, %v13749_v30  ;;  %v14177_v3 = vmul.f32 0.5, %v13761_v40  ;;  %v5991_v45 = vpop.eup %5990 }
 0x31b   :  { %6008 = vtanh.f32 %v17956_v61  ;;  %v14181_v44 = vmul.f32 0.5, %v13773_v19  ;;  %v14184_v43 = vmul.f32 0.5, %v13785_v60  ;;  %v14187_v61 = vmul.f32 0.5, %v13797_v12  ;;  %v5993_v52 = vpop.eup %5992 }
 0x31c   :  { %6010 = vtanh.f32 %v13524_v36  ;;  %v14191_v30 = vmul.f32 0.5, %v13809_v31  ;;  %v14194_v40 = vmul.f32 0.5, %v13821_v58  ;;  %v14197_v36 = vmul.f32 0.5, %v13833_v5 }
 0x31d   :  { %17957 = vst [vmem:[#allocation252_spill] sm:$0xff] %v14181_v44  ;;  %6012 = vtanh.f32 %v13527_v10  ;;  %v5995_v19 = vpop.eup %5994  ;;  %v17958_v44 = vld [vmem:[#allocation98_spill] sm:$0xff]  ;;  %v14201_v60 = vmul.f32 0.5, %v13845_v15  ;;  %v14204_v12 = vmul.f32 0.5, %v13857_v23  ;;  %v14207_v10 = vmul.f32 0.5, %v13869_v63 }
 0x31e   :  { %6014 = vtanh.f32 %v17958_v44  ;;  %v5997_v31 = vpop.eup %5996  ;;  %v14211_v58 = vmul.f32 0.5, %v13881_v49  ;;  %v14214_v5 = vmul.f32 0.5, %v13893_v8  ;;  %v14217_v44 = vmul.f32 0.5, %v13905_v2 }
 0x31f   :  { %6016 = vtanh.f32 %v13536_v7  ;;  %v14221_v23 = vmul.f32 0.5, %v13917_v50  ;;  %v14224_v63 = vmul.f32 0.5, %v13929_v56  ;;  %v14227_v7 = vmul.f32 0.5, %v13941_v17 }
 0x320   :  { %17959 = vst [vmem:[#allocation61_spill] sm:$0xff] %v14211_v58  ;;  %v5999_v15 = vpop.eup %5998  ;;  %6018 = vtanh.f32 %v13539_v0  ;;  %v17960_v58 = vld [vmem:[#allocation384_spill] sm:$0xff]  ;;  %v14231_v8 = vmul.f32 0.5, %v13953_v21  ;;  %v14234_v2 = vmul.f32 0.5, %v13965_v34  ;;  %v14237_v0 = vmul.f32 0.5, %v13977_v9  ;;  %v17967_v9 = vld [vmem:[#allocation173_spill] sm:$0xff] }
 0x321   :  { %v6001_v49 = vpop.eup %6000  ;;  %6020 = vtanh.f32 %v17960_v58  ;;  %v14241_v56 = vmul.f32 0.5, %v13989_v48  ;;  %v14244_v17 = vmul.f32 0.5, %v14001_v32  ;;  %v14247_v58 = vmul.f32 0.5, %v14013_v20 }
 0x322   :  { %17961 = vst [vmem:[#allocation241_spill] sm:$0xff] %v14231_v8  ;;  %17962 = vst [vmem:[#allocation62_spill] sm:$0xff] %v14234_v2  ;;  %v6003_v50 = vpop.eup %6002  ;;  %6022 = vtanh.f32 %v13548_v54  ;;  %v17965_v8 = vld [vmem:[#allocation99_spill] sm:$0xff]  ;;  %v14251_v34 = vmul.f32 0.5, %v14025_v11  ;;  %v14261_v32 = vmul.f32 0.5, %v14061_v51  ;;  %v14264_v20 = vmul.f32 0.5, %v14073_v62 }
 0x323   :  { %17963 = vst [vmem:[#allocation351_spill] sm:$0xff] %v14237_v0  ;;  %17964 = vst [vmem:[#allocation191_spill] sm:$0xff] %v14241_v56  ;;  %v6005_v21 = vpop.eup %6004  ;;  %6024 = vtanh.f32 %v17965_v8  ;;  %v14254_v0 = vmul.f32 0.5, %v17967_v9  ;;  %v17968_v2 = vld [vmem:[#allocation55_spill] sm:$0xff]  ;;  %v17969_v56 = vld [vmem:[#allocation385_spill] sm:$0xff]  ;;  %v14267_v8 = vmul.f32 0.5, %v14085_v33 }
 0x324   :  { %17966 = vst [vmem:[#allocation63_spill] sm:$0xff] %v14251_v34  ;;  %v14257_v54 = vmul.f32 0.5, %v17968_v2  ;;  %v6007_v48 = vpop.eup %6006  ;;  %6026 = vtanh.f32 %v17969_v56  ;;  %17970 = vst [vmem:[#allocation10_spill] sm:$0xff] %v14261_v32  ;;  %v17971_v34 = vld [vmem:[#allocation100_spill] sm:$0xff]  ;;  %v14271_v9 = vmul.f32 0.5, %v14097_v35  ;;  %v14274_v2 = vmul.f32 0.5, %v14109_v16 }
 0x325   :  { %v6009_v11 = vpop.eup %6008  ;;  %6028 = vtanh.f32 %v17971_v34  ;;  %v14277_v56 = vmul.f32 0.5, %v14121_v41  ;;  %v17975_v32 = vld [vmem:[#allocation386_spill] sm:$0xff]  ;;  %v14281_v62 = vmul.f32 0.5, %v14133_v4  ;;  %v14284_v33 = vmul.f32 0.5, %v14145_v59 }
 0x326   :  { %17972 = vst [vmem:[#allocation64_spill] sm:$0xff] %v14271_v9  ;;  %17973 = vst [vmem:[#allocation163_spill] sm:$0xff] %v14274_v2  ;;  %v6011_v51 = vpop.eup %6010  ;;  %6030 = vtanh.f32 %v17975_v32  ;;  %v14287_v34 = vmul.f32 0.5, %v14157_v1  ;;  %v17979_v9 = vld [vmem:[#allocation101_spill] sm:$0xff]  ;;  %v14290_v16 = vmul.f32 0.5, %v5989_v38  ;;  %v14292_v2 = vmul.f32 0.5, %v5991_v45 }
 0x327   :  { %17974 = vst [vmem:[#allocation65_spill] sm:$0xff] %v14277_v56  ;;  %17976 = vst [vmem:[#allocation26_spill] sm:$0xff] %v14281_v62  ;;  %v6013_v35 = vpop.eup %6012  ;;  %6032 = vtanh.f32 %v17979_v9  ;;  %v14294_v41 = vmul.f32 0.5, %v5993_v52  ;;  %v17981_v32 = vld [vmem:[#allocation102_spill] sm:$0xff]  ;;  %v14297_v4 = vmul.f32 0.5, %v5995_v19  ;;  %v14299_v62 = vmul.f32 0.5, %v5997_v31 }
 0x328   :  { %17977 = vst [vmem:[#allocation66_spill] sm:$0xff] %v14284_v33  ;;  %17978 = vst [vmem:[#allocation352_spill] sm:$0xff] %v14287_v34  ;;  %v6015_v56 = vpop.eup %6014  ;;  %6034 = vtanh.f32 %v17981_v32  ;;  %v14301_v59 = vmul.f32 0.5, %v5999_v15  ;;  %v17983_v34 = vld [vmem:[#allocation103_spill] sm:$0xff]  ;;  %v14304_v33 = vmul.f32 0.5, %v6001_v49  ;;  %v14306_v38 = vmul.f32 0.5, %v6003_v50 }
 0x329   :  { %17980 = vst [vmem:[#allocation67_spill] sm:$0xff] %v14294_v41  ;;  %v6017_v1 = vpop.eup %6016  ;;  %6036 = vtanh.f32 %v17983_v34  ;;  %v14308_v45 = vmul.f32 0.5, %v6005_v21  ;;  %v17985_v9 = vld [vmem:[#allocation104_spill] sm:$0xff]  ;;  %v14311_v41 = vmul.f32 0.5, %v6007_v48  ;;  %v14313_v19 = vmul.f32 0.5, %v6009_v11  ;;  %v17988_v32 = vld [vmem:[#allocation105_spill] sm:$0xff] }
 0x32a   :  { %17982 = vst [vmem:[#allocation27_spill] sm:$0xff] %v14301_v59  ;;  %v6019_v52 = vpop.eup %6018  ;;  %6038 = vtanh.f32 %v17985_v9  ;;  %v14315_v31 = vmul.f32 0.5, %v6011_v51  ;;  %v14318_v59 = vmul.f32 0.5, %v6013_v35  ;;  %v14320_v49 = vmul.f32 0.5, %v6015_v56  ;;  %v17992_v34 = vld [vmem:[#allocation106_spill] sm:$0xff]  ;;  %v17998_v35 = vld [vmem:[#allocation345_spill] sm:$0xff] }
 0x32b   :  { %17984 = vst [vmem:[#allocation68_spill] sm:$0xff] %v14308_v45  ;;  %17986 = vst [vmem:[#allocation353_spill] sm:$0xff] %v14313_v19  ;;  %v6021_v15 = vpop.eup %6020  ;;  %6040 = vtanh.f32 %v17988_v32  ;;  %v14322_v50 = vmul.f32 0.5, %v6017_v1  ;;  %v14325_v45 = vmul.f32 0.5, %v6019_v52  ;;  %v17995_v11 = vld [vmem:[#allocation46_spill] sm:$0xff]  ;;  %v5384_v32 = vadd.f32 0.5, %v17998_v35 }
 0x32c   :  { %17987 = vst [vmem:[#allocation69_spill] sm:$0xff] %v14315_v31  ;;  %17989 = vst [vmem:[#allocation167_spill] sm:$0xff] %v14318_v59  ;;  %v6023_v21 = vpop.eup %6022  ;;  %6042 = vtanh.f32 %v17992_v34  ;;  %v14327_v48 = vmul.f32 0.5, %v6021_v15  ;;  %v5383_v9 = vadd.f32 0.5, %v17995_v11  ;;  %v17996_v31 = vld [vmem:[#allocation107_spill] sm:$0xff]  ;;  %v18001_v52 = vld [vmem:[#allocation169_spill] sm:$0xff] }
 0x32d   :  { %17990 = vst [vmem:[#allocation70_spill] sm:$0xff] %v14320_v49  ;;  %17991 = vst [vmem:[#allocation171_spill] sm:$0xff] %v14322_v50  ;;  %v6025_v51 = vpop.eup %6024  ;;  %6044 = vtanh.f32 %v17996_v31  ;;  %v14331_v19 = vmul.f32 0.5, %v6023_v21  ;;  %v17999_v56 = vld [vmem:[#allocation47_spill] sm:$0xff]  ;;  %v18000_v50 = vld [vmem:[#allocation108_spill] sm:$0xff]  ;;  %v5386_v34 = vadd.f32 0.5, %v18001_v52 }
 0x32e   :  { %17993 = vst [vmem:[#allocation71_spill] sm:$0xff] %v14325_v45  ;;  %17994 = vst [vmem:[#allocation178_spill] sm:$0xff] %v14327_v48  ;;  %v5385_v49 = vadd.f32 0.5, %v17999_v56  ;;  %v6027_v1 = vpop.eup %6026  ;;  %6046 = vtanh.f32 %v18000_v50  ;;  %v14336_v59 = vmul.f32 0.5, %v6025_v51  ;;  %v18002_v15 = vld [vmem:[#allocation48_spill] sm:$0xff]  ;;  %v18003_v21 = vld [vmem:[#allocation109_spill] sm:$0xff] }
 0x32f   :  { %17997 = vst [vmem:[#allocation72_spill] sm:$0xff] %v14331_v19  ;;  %v5387_v48 = vadd.f32 0.5, %v18002_v15  ;;  %5592 = vst [vmem:[%s15412_s3] sm:$0x3f] %v5383_v9  ;;  %v6029_v31 = vpop.eup %6028  ;;  %6048 = vtanh.f32 %v18003_v21  ;;  %v14344_v11 = vmul.f32 0.5, %v6027_v1  ;;  %v18004_v35 = vld [vmem:[#allocation346_spill] sm:$0xff]  ;;  %v18005_v19 = vld [vmem:[#allocation189_spill] sm:$0xff] }
 0x330   :  { %v5388_v56 = vadd.f32 0.5, %v18004_v35  ;;  %v5389_v45 = vadd.f32 0.5, %v18005_v19  ;;  %5593 = vst [vmem:[%s15412_s3 + $0x8] sm:$0x3f] %v5384_v32  ;;  %5594 = vst [vmem:[%s15412_s3 + $0x10] sm:$0x3f] %v5385_v49  ;;  %v6031_v50 = vpop.eup %6030 }
 0x331   :  { %v18006_v51 = vld [vmem:[#allocation110_spill] sm:$0xff]  ;;  %v14355_v9 = vmul.f32 0.5, %v6029_v31  ;;  %v18008_v52 = vld [vmem:[#allocation49_spill] sm:$0xff]  ;;  %v18009_v15 = vld [vmem:[#allocation240_spill] sm:$0xff]  ;;  %5595 = vst [vmem:[%s15412_s3 + $0x18] sm:$0x3f] %v5386_v34  ;;  %v6033_v19 = vpop.eup %6032 }
 0x332   :  { %6050 = vtanh.f32 %v18006_v51  ;;  %v5390_v1 = vadd.f32 0.5, %v18008_v52  ;;  %v5391_v21 = vadd.f32 0.5, %v18009_v15  ;;  %5596 = vst [vmem:[%s15412_s3 + $0x20] sm:$0x3f] %v5387_v48  ;;  %v18010_v32 = vld [vmem:[#allocation111_spill] sm:$0xff]  ;;  %v14366_v49 = vmul.f32 0.5, %v6031_v50  ;;  %v6035_v34 = vpop.eup %6034 }
 0x333   :  { %18007 = vst [vmem:[#allocation180_spill] sm:$0xff] %v14355_v9  ;;  %6052 = vtanh.f32 %v18010_v32  ;;  %v18012_v35 = vld [vmem:[#allocation50_spill] sm:$0xff]  ;;  %v18013_v51 = vld [vmem:[#allocation347_spill] sm:$0xff]  ;;  %5597 = vst [vmem:[%s15412_s3 + $0x28] sm:$0x3f] %v5388_v56  ;;  %v14377_v48 = vmul.f32 0.5, %v6033_v19  ;;  %v6037_v56 = vpop.eup %6036 }
 0x334   :  { %18011 = vst [vmem:[#allocation73_spill] sm:$0xff] %v14366_v49  ;;  %v5392_v31 = vadd.f32 0.5, %v18012_v35  ;;  %v5393_v9 = vadd.f32 0.5, %v18013_v51  ;;  %5598 = vst [vmem:[%s15412_s3 + $0x30] sm:$0x3f] %v5389_v45  ;;  %v18014_v52 = vld [vmem:[#allocation112_spill] sm:$0xff] }
 0x335   :  { %6054 = vtanh.f32 %v18014_v52  ;;  %18015 = vst [vmem:[#allocation181_spill] sm:$0xff] %v14377_v48  ;;  %v18016_v15 = vld [vmem:[#allocation248_spill] sm:$0xff]  ;;  %v18017_v32 = vld [vmem:[#allocation51_spill] sm:$0xff]  ;;  %5599 = vst [vmem:[%s15412_s3 + $0x38] sm:$0x3f] %v5390_v1  ;;  %v14388_v45 = vmul.f32 0.5, %v6035_v34  ;;  %v6039_v1 = vpop.eup %6038 }
 0x336   :  { %v5394_v50 = vadd.f32 0.5, %v18016_v15  ;;  %v5395_v49 = vadd.f32 0.5, %v18017_v32  ;;  %5600 = vst [vmem:[%s15412_s3 + $0x40] sm:$0x3f] %v5391_v21  ;;  %v18018_v35 = vld [vmem:[#allocation113_spill] sm:$0xff]  ;;  %v18020_v51 = vld [vmem:[#allocation170_spill] sm:$0xff] }
 0x337   :  { %6056 = vtanh.f32 %v18018_v35  ;;  %18019 = vst [vmem:[#allocation74_spill] sm:$0xff] %v14388_v45  ;;  %v5396_v19 = vadd.f32 0.5, %v18020_v51  ;;  %v18021_v52 = vld [vmem:[#allocation52_spill] sm:$0xff]  ;;  %5601 = vst [vmem:[%s15412_s3 + $0x48] sm:$0x3f] %v5392_v31  ;;  %v18022_v15 = vld [vmem:[#allocation114_spill] sm:$0xff]  ;;  %v6041_v31 = vpop.eup %6040 }
 0x338   :  { %v5397_v48 = vadd.f32 0.5, %v18021_v52  ;;  %5602 = vst [vmem:[%s15412_s3 + $0x50] sm:$0x3f] %v5393_v9  ;;  %6058 = vtanh.f32 %v18022_v15  ;;  %v14399_v21 = vmul.f32 0.5, %v6037_v56  ;;  %v18024_v32 = vld [vmem:[#allocation172_spill] sm:$0xff]  ;;  %v18025_v35 = vld [vmem:[#allocation249_spill] sm:$0xff] }
 0x339   :  { %v5398_v34 = vadd.f32 0.5, %v18024_v32  ;;  %v5399_v45 = vadd.f32 0.5, %v18025_v35  ;;  %5603 = vst [vmem:[%s15412_s3 + $0x58] sm:$0x3f] %v5394_v50  ;;  %5604 = vst [vmem:[%s15412_s3 + $0x60] sm:$0x3f] %v5395_v49  ;;  %v6043_v50 = vpop.eup %6042 }
 0x33a   :  { %18023 = vst [vmem:[#allocation182_spill] sm:$0xff] %v14399_v21  ;;  %v18026_v51 = vld [vmem:[#allocation115_spill] sm:$0xff]  ;;  %v14410_v9 = vmul.f32 0.5, %v6039_v1  ;;  %v18028_v52 = vld [vmem:[#allocation53_spill] sm:$0xff]  ;;  %v18029_v15 = vld [vmem:[#allocation54_spill] sm:$0xff]  ;;  %v14421_v49 = vmul.f32 0.5, %v6041_v31 }
 0x33b   :  { %6060 = vtanh.f32 %v18026_v51  ;;  %v5400_v56 = vadd.f32 0.5, %v18028_v52  ;;  %v5401_v21 = vadd.f32 0.5, %v18029_v15  ;;  %5605 = vst [vmem:[%s15412_s3 + $0x68] sm:$0x3f] %v5396_v19  ;;  %5606 = vst [vmem:[%s15412_s3 + $0x70] sm:$0x3f] %v5397_v48  ;;  %v6045_v19 = vpop.eup %6044 }
 0x33c   :  { %18027 = vst [vmem:[#allocation75_spill] sm:$0xff] %v14410_v9  ;;  %v18030_v32 = vld [vmem:[#allocation116_spill] sm:$0xff]  ;;  %18031 = vst [vmem:[#allocation183_spill] sm:$0xff] %v14421_v49  ;;  %v18033_v51 = vld [vmem:[#allocation250_spill] sm:$0xff]  ;;  %v14432_v48 = vmul.f32 0.5, %v6043_v50 }
 0x33d   :  { %6062 = vtanh.f32 %v18030_v32  ;;  %v18032_v35 = vld [vmem:[#allocation136_spill] sm:$0xff]  ;;  %v5403_v9 = vadd.f32 0.5, %v18033_v51  ;;  %5607 = vst [vmem:[%s15412_s3 + $0x78] sm:$0x3f] %v5398_v34  ;;  %5608 = vst [vmem:[%s15412_s3 + $0x80] sm:$0x3f] %v5399_v45  ;;  %v6047_v34 = vpop.eup %6046 }
 0x33e   :  { %v5402_v1 = vadd.f32 0.5, %v18032_v35  ;;  %v18034_v52 = vld [vmem:[#allocation117_spill] sm:$0xff]  ;;  %18035 = vst [vmem:[#allocation76_spill] sm:$0xff] %v14432_v48  ;;  %v18036_v15 = vld [vmem:[#allocation174_spill] sm:$0xff]  ;;  %v18037_v32 = vld [vmem:[#allocation56_spill] sm:$0xff]  ;;  %v14443_v45 = vmul.f32 0.5, %v6045_v19 }
 0x33f   :  { %6064 = vtanh.f32 %v18034_v52  ;;  %v5404_v31 = vadd.f32 0.5, %v18036_v15  ;;  %v5405_v49 = vadd.f32 0.5, %v18037_v32  ;;  %5609 = vst [vmem:[%s15412_s3 + $0x88] sm:$0x3f] %v5400_v56  ;;  %5610 = vst [vmem:[%s15412_s3 + $0x90] sm:$0x3f] %v5401_v21  ;;  %v6049_v56 = vpop.eup %6048 }
 0x340   :  { %v18038_v35 = vld [vmem:[#allocation118_spill] sm:$0xff]  ;;  %18039 = vst [vmem:[#allocation184_spill] sm:$0xff] %v14443_v45  ;;  %v18040_v51 = vld [vmem:[#allocation348_spill] sm:$0xff]  ;;  %5611 = vst [vmem:[%s15412_s3 + $0x98] sm:$0x3f] %v5402_v1  ;;  %v14454_v21 = vmul.f32 0.5, %v6047_v34  ;;  %v6051_v1 = vpop.eup %6050 }
 0x341   :  { %6066 = vtanh.f32 %v18038_v35  ;;  %v5406_v50 = vadd.f32 0.5, %v18040_v51  ;;  %v18041_v52 = vld [vmem:[#allocation190_spill] sm:$0xff]  ;;  %5612 = vst [vmem:[%s15412_s3 + $0xa0] sm:$0x3f] %v5403_v9  ;;  %v18042_v15 = vld [vmem:[#allocation119_spill] sm:$0xff]  ;;  %v18043_v32 = vld [vmem:[#allocation57_spill] sm:$0xff] }
 0x342   :  { %v5407_v48 = vadd.f32 0.5, %v18041_v52  ;;  %6068 = vtanh.f32 %v18042_v15  ;;  %v5408_v19 = vadd.f32 0.5, %v18043_v32  ;;  %v18044_v35 = vld [vmem:[#allocation175_spill] sm:$0xff]  ;;  %5613 = vst [vmem:[%s15412_s3 + $0xa8] sm:$0x3f] %v5404_v31  ;;  %v18045_v51 = vld [vmem:[#allocation120_spill] sm:$0xff]  ;;  %v6053_v31 = vpop.eup %6052 }
 0x343   :  { %v5409_v45 = vadd.f32 0.5, %v18044_v35  ;;  %5614 = vst [vmem:[%s15412_s3 + $0xb0] sm:$0x3f] %v5405_v49  ;;  %6070 = vtanh.f32 %v18045_v51  ;;  %v14465_v9 = vmul.f32 0.5, %v6049_v56  ;;  %v5410_v34 = vadd.f32 0.5, %v14077_v13  ;;  %v18046_v15 = vld [vmem:[#allocation121_spill] sm:$0xff] }
 0x344   :  { %v5411_v52 = vadd.f32 0.5, %v14080_v53  ;;  %5615 = vst [vmem:[%s15412_s3 + $0xb8] sm:$0x3f] %v5406_v50  ;;  %5616 = vst [vmem:[%s15412_s3 + $0xc0] sm:$0x3f] %v5407_v48  ;;  %6072 = vtanh.f32 %v18046_v15  ;;  %v14476_v49 = vmul.f32 0.5, %v6051_v1  ;;  %v6055_v53 = vpop.eup %6054 }
 0x345   :  { %v18047_v32 = vld [vmem:[#allocation58_spill] sm:$0xff]  ;;  %v5413_v35 = vadd.f32 0.5, %v14089_v6  ;;  %5617 = vst [vmem:[%s15412_s3 + $0xc8] sm:$0x3f] %v5408_v19  ;;  %5618 = vst [vmem:[%s15412_s3 + $0xd0] sm:$0x3f] %v5409_v45  ;;  %v6057_v6 = vpop.eup %6056 }
 0x346   :  { %v5412_v56 = vadd.f32 0.5, %v18047_v32  ;;  %v18048_v13 = vld [vmem:[#allocation122_spill] sm:$0xff]  ;;  %v14487_v48 = vmul.f32 0.5, %v6053_v31  ;;  %v5414_v50 = vadd.f32 0.5, %v14092_v47  ;;  %v18049_v1 = vld [vmem:[#allocation349_spill] sm:$0xff]  ;;  %v18050_v19 = vld [vmem:[#allocation123_spill] sm:$0xff]  ;;  %v6059_v47 = vpop.eup %6058 }
 0x347   :  { %6074 = vtanh.f32 %v18048_v13  ;;  %v5415_v51 = vadd.f32 0.5, %v18049_v1  ;;  %5619 = vst [vmem:[%s15412_s3 + $0xd8] sm:$0x3f] %v5410_v34  ;;  %5620 = vst [vmem:[%s15412_s3 + $0xe0] sm:$0x3f] %v5411_v52  ;;  %v14498_v45 = vmul.f32 0.5, %v6055_v53 }
 0x348   :  { %6076 = vtanh.f32 %v18050_v19  ;;  %v5416_v31 = vadd.f32 0.5, %v14101_v29  ;;  %v5417_v15 = vadd.f32 0.5, %v14104_v37  ;;  %5621 = vst [vmem:[%s15412_s3 + $0xe8] sm:$0x3f] %v5412_v56  ;;  %5622 = vst [vmem:[%s15412_s3 + $0xf0] sm:$0x3f] %v5413_v35  ;;  %v6061_v37 = vpop.eup %6060 }
 0x349   :  { %v18051_v34 = vld [vmem:[#allocation124_spill] sm:$0xff]  ;;  %v14509_v52 = vmul.f32 0.5, %v6057_v6  ;;  %v18052_v32 = vld [vmem:[#allocation251_spill] sm:$0xff]  ;;  %v5419_v13 = vadd.f32 0.5, %v14113_v57  ;;  %5623 = vst [vmem:[%s15412_s3 + $0xf8] sm:$0x3f] %v5414_v50  ;;  %v6063_v57 = vpop.eup %6062 }
 0x34a   :  { %6078 = vtanh.f32 %v18051_v34  ;;  %v5418_v53 = vadd.f32 0.5, %v18052_v32  ;;  %5624 = vst [vmem:[%s15412_s3 + $0x100] sm:$0x3f] %v5415_v51  ;;  %v18053_v29 = vld [vmem:[#allocation125_spill] sm:$0xff]  ;;  %v14520_v56 = vmul.f32 0.5, %v6059_v47  ;;  %v5420_v35 = vadd.f32 0.5, %v14116_v14  ;;  %v6065_v14 = vpop.eup %6064 }
 0x34b   :  { %6080 = vtanh.f32 %v18053_v29  ;;  %v18054_v1 = vld [vmem:[#allocation59_spill] sm:$0xff]  ;;  %5625 = vst [vmem:[%s15412_s3 + $0x108] sm:$0x3f] %v5416_v31  ;;  %5626 = vst [vmem:[%s15412_s3 + $0x110] sm:$0x3f] %v5417_v15  ;;  %v18055_v50 = vld [vmem:[#allocation126_spill] sm:$0xff] }
 0x34c   :  { %v5421_v6 = vadd.f32 0.5, %v18054_v1  ;;  %6082 = vtanh.f32 %v18055_v50  ;;  %v14531_v51 = vmul.f32 0.5, %v6061_v37  ;;  %v5422_v19 = vadd.f32 0.5, %v14125_v24  ;;  %5627 = vst [vmem:[%s15412_s3 + $0x118] sm:$0x3f] %v5418_v53  ;;  %v18056_v31 = vld [vmem:[#allocation127_spill] sm:$0xff] }
 0x34d   :  { %v5423_v47 = vadd.f32 0.5, %v14128_v26  ;;  %5628 = vst [vmem:[%s15412_s3 + $0x120] sm:$0x3f] %v5419_v13  ;;  %6084 = vtanh.f32 %v18056_v31  ;;  %v14542_v15 = vmul.f32 0.5, %v6063_v57  ;;  %v18057_v34 = vld [vmem:[#allocation176_spill] sm:$0xff]  ;;  %v5425_v37 = vadd.f32 0.5, %v14137_v46  ;;  %v6067_v26 = vpop.eup %6066 }
 0x34e   :  { %v5424_v32 = vadd.f32 0.5, %v18057_v34  ;;  %5629 = vst [vmem:[%s15412_s3 + $0x128] sm:$0x3f] %v5420_v35  ;;  %5630 = vst [vmem:[%s15412_s3 + $0x130] sm:$0x3f] %v5421_v6  ;;  %v18058_v24 = vld [vmem:[#allocation128_spill] sm:$0xff]  ;;  %v6069_v46 = vpop.eup %6068 }
 0x34f   :  { %6086 = vtanh.f32 %v18058_v24  ;;  %v14553_v53 = vmul.f32 0.5, %v6065_v14  ;;  %v5426_v13 = vadd.f32 0.5, %v14140_v18  ;;  %v18059_v29 = vld [vmem:[#allocation60_spill] sm:$0xff]  ;;  %5631 = vst [vmem:[%s15412_s3 + $0x138] sm:$0x3f] %v5422_v19  ;;  %v18060_v35 = vld [vmem:[#allocation129_spill] sm:$0xff]  ;;  %v6071_v18 = vpop.eup %6070 }
 0x350   :  { %v5427_v1 = vadd.f32 0.5, %v18059_v29  ;;  %5632 = vst [vmem:[%s15412_s3 + $0x140] sm:$0x3f] %v5423_v47  ;;  %6088 = vtanh.f32 %v18060_v35  ;;  %v14564_v6 = vmul.f32 0.5, %v6067_v26  ;;  %v18061_v57 = vld [vmem:[#allocation350_spill] sm:$0xff]  ;;  %v5429_v14 = vadd.f32 0.5, %v14152_v42  ;;  %v6073_v42 = vpop.eup %6072 }
 0x351   :  { %v5428_v50 = vadd.f32 0.5, %v18061_v57  ;;  %5633 = vst [vmem:[%s15412_s3 + $0x148] sm:$0x3f] %v5424_v32  ;;  %5634 = vst [vmem:[%s15412_s3 + $0x150] sm:$0x3f] %v5425_v37  ;;  %v18062_v19 = vld [vmem:[#allocation130_spill] sm:$0xff] }
 0x352   :  { %6090 = vtanh.f32 %v18062_v19  ;;  %v14575_v47 = vmul.f32 0.5, %v6069_v46  ;;  %v5430_v31 = vadd.f32 0.5, %v14155_v55  ;;  %v5431_v34 = vadd.f32 0.5, %v14161_v27  ;;  %5635 = vst [vmem:[%s15412_s3 + $0x158] sm:$0x3f] %v5426_v13  ;;  %v18063_v32 = vld [vmem:[#allocation131_spill] sm:$0xff]  ;;  %v6075_v55 = vpop.eup %6074 }
 0x353   :  { %5636 = vst [vmem:[%s15412_s3 + $0x160] sm:$0x3f] %v5427_v1  ;;  %6092 = vtanh.f32 %v18063_v32  ;;  %v14586_v37 = vmul.f32 0.5, %v6071_v18  ;;  %v5432_v26 = vadd.f32 0.5, %v14164_v28  ;;  %v5433_v24 = vadd.f32 0.5, %v14167_v39  ;;  %v18064_v27 = vld [vmem:[#allocation132_spill] sm:$0xff]  ;;  %v6077_v28 = vpop.eup %6076 }
 0x354   :  { %5637 = vst [vmem:[%s15412_s3 + $0x168] sm:$0x3f] %v5428_v50  ;;  %5638 = vst [vmem:[%s15412_s3 + $0x170] sm:$0x3f] %v5429_v14  ;;  %6094 = vtanh.f32 %v18064_v27  ;;  %v14597_v13 = vmul.f32 0.5, %v6073_v42  ;;  %v5434_v29 = vadd.f32 0.5, %v14171_v25  ;;  %v6079_v25 = vpop.eup %6078 }
 0x355   :  { %v5435_v1 = vadd.f32 0.5, %v14174_v22  ;;  %5639 = vst [vmem:[%s15412_s3 + $0x178] sm:$0x3f] %v5430_v31  ;;  %5640 = vst [vmem:[%s15412_s3 + $0x180] sm:$0x3f] %v5431_v34  ;;  %v18065_v39 = vld [vmem:[#allocation133_spill] sm:$0xff] }
 0x356   :  { %6096 = vtanh.f32 %v18065_v39  ;;  %v14608_v46 = vmul.f32 0.5, %v6075_v55  ;;  %v5436_v35 = vadd.f32 0.5, %v14177_v3  ;;  %v18066_v57 = vld [vmem:[#allocation252_spill] sm:$0xff]  ;;  %5641 = vst [vmem:[%s15412_s3 + $0x188] sm:$0x3f] %v5432_v26  ;;  %v18067_v22 = vld [vmem:[#allocation134_spill] sm:$0xff]  ;;  %v6081_v3 = vpop.eup %6080 }
 0x357   :  { %v5437_v50 = vadd.f32 0.5, %v18066_v57  ;;  %5642 = vst [vmem:[%s15412_s3 + $0x190] sm:$0x3f] %v5433_v24  ;;  %6098 = vtanh.f32 %v18067_v22  ;;  %v14619_v14 = vmul.f32 0.5, %v6077_v28  ;;  %v5438_v18 = vadd.f32 0.5, %v14184_v43  ;;  %v18068_v31 = vld [vmem:[#allocation135_spill] sm:$0xff]  ;;  %v6083_v43 = vpop.eup %6082 }
 0x358   :  { %v5439_v19 = vadd.f32 0.5, %v14187_v61  ;;  %5643 = vst [vmem:[%s15412_s3 + $0x198] sm:$0x3f] %v5434_v29  ;;  %5644 = vst [vmem:[%s15412_s3 + $0x1a0] sm:$0x3f] %v5435_v1  ;;  %6100 = vtanh.f32 %v18068_v31  ;;  %v14630_v34 = vmul.f32 0.5, %v6079_v25 }
 0x359   :  { %v5440_v42 = vadd.f32 0.5, %v14191_v30  ;;  %v5441_v32 = vadd.f32 0.5, %v14194_v40  ;;  %5645 = vst [vmem:[%s15412_s3 + $0x1a8] sm:$0x3f] %v5436_v35  ;;  %5646 = vst [vmem:[%s15412_s3 + $0x1b0] sm:$0x3f] %v5437_v50  ;;  %v6085_v30 = vpop.eup %6084 }
 0x35a   :  { %v18069_v61 = vld [vmem:[#allocation11_spill] sm:$0xff]  ;;  %v14641_v26 = vmul.f32 0.5, %v6081_v3  ;;  %v5442_v24 = vadd.f32 0.5, %v14197_v36  ;;  %v5443_v55 = vadd.f32 0.5, %v14201_v60  ;;  %5647 = vst [vmem:[%s15412_s3 + $0x1b8] sm:$0x3f] %v5438_v18  ;;  %v6087_v36 = vpop.eup %6086 }
 0x35b   :  { %6102 = vtanh.f32 %v18069_v61  ;;  %5648 = vst [vmem:[%s15412_s3 + $0x1c0] sm:$0x3f] %v5439_v19  ;;  %v18070_v40 = vld [vmem:[#allocation12_spill] sm:$0xff]  ;;  %v14652_v27 = vmul.f32 0.5, %v6083_v43  ;;  %v5444_v29 = vadd.f32 0.5, %v14204_v12  ;;  %v5445_v1 = vadd.f32 0.5, %v14207_v10  ;;  %v6089_v12 = vpop.eup %6088 }
 0x35c   :  { %6104 = vtanh.f32 %v18070_v40  ;;  %5649 = vst [vmem:[%s15412_s3 + $0x1c8] sm:$0x3f] %v5440_v42  ;;  %5650 = vst [vmem:[%s15412_s3 + $0x1d0] sm:$0x3f] %v5441_v32  ;;  %v18071_v60 = vld [vmem:[#allocation13_spill] sm:$0xff]  ;;  %v14663_v28 = vmul.f32 0.5, %v6085_v30 }
 0x35d   :  { %6106 = vtanh.f32 %v18071_v60  ;;  %v18072_v39 = vld [vmem:[#allocation61_spill] sm:$0xff]  ;;  %v5447_v57 = vadd.f32 0.5, %v14214_v5  ;;  %5651 = vst [vmem:[%s15412_s3 + $0x1d8] sm:$0x3f] %v5442_v24  ;;  %5652 = vst [vmem:[%s15412_s3 + $0x1e0] sm:$0x3f] %v5443_v55  ;;  %v6091_v5 = vpop.eup %6090 }
 0x35e   :  { %v5446_v35 = vadd.f32 0.5, %v18072_v39  ;;  %v18073_v10 = vld [vmem:[#allocation203_spill] sm:$0xff]  ;;  %v14674_v50 = vmul.f32 0.5, %v6087_v36  ;;  %v5448_v25 = vadd.f32 0.5, %v14217_v44  ;;  %v5449_v22 = vadd.f32 0.5, %v14221_v23  ;;  %v18074_v18 = vld [vmem:[#allocation14_spill] sm:$0xff]  ;;  %v6093_v44 = vpop.eup %6092 }
 0x35f   :  { %6108 = vtanh.f32 %v18073_v10  ;;  %5653 = vst [vmem:[%s15412_s3 + $0x1e8] sm:$0x3f] %v5444_v29  ;;  %5654 = vst [vmem:[%s15412_s3 + $0x1f0] sm:$0x3f] %v5445_v1  ;;  %v14685_v19 = vmul.f32 0.5, %v6089_v12  ;;  %v5450_v3 = vadd.f32 0.5, %v14224_v63  ;;  %v6095_v63 = vpop.eup %6094 }
 0x360   :  { %6110 = vtanh.f32 %v18074_v18  ;;  %v5451_v31 = vadd.f32 0.5, %v14227_v7  ;;  %5655 = vst [vmem:[%s15412_s3 + $0x1f8] sm:$0x3f] %v5446_v35  ;;  %5656 = vst [vmem:[%s15412_s3 + $0x200] sm:$0x3f] %v5447_v57  ;;  %v18075_v23 = vld [vmem:[#allocation15_spill] sm:$0xff]  ;;  %v6097_v36 = vpop.eup %6096 }
 0x361   :  { %6112 = vtanh.f32 %v18075_v23  ;;  %v14696_v42 = vmul.f32 0.5, %v6091_v5  ;;  %v18076_v32 = vld [vmem:[#allocation241_spill] sm:$0xff]  ;;  %v18077_v61 = vld [vmem:[#allocation62_spill] sm:$0xff]  ;;  %5657 = vst [vmem:[%s15412_s3 + $0x208] sm:$0x3f] %v5448_v25  ;;  %v18078_v7 = vld [vmem:[#allocation16_spill] sm:$0xff]  ;;  %v6099_v12 = vpop.eup %6098 }
 0x362   :  { %v5452_v43 = vadd.f32 0.5, %v18076_v32  ;;  %v5453_v24 = vadd.f32 0.5, %v18077_v61  ;;  %5658 = vst [vmem:[%s15412_s3 + $0x210] sm:$0x3f] %v5449_v22  ;;  %6114 = vtanh.f32 %v18078_v7  ;;  %v14707_v55 = vmul.f32 0.5, %v6093_v44  ;;  %v18079_v30 = vld [vmem:[#allocation351_spill] sm:$0xff] }
 0x363   :  { %v5454_v40 = vadd.f32 0.5, %v18079_v30  ;;  %v18080_v29 = vld [vmem:[#allocation191_spill] sm:$0xff]  ;;  %5659 = vst [vmem:[%s15412_s3 + $0x218] sm:$0x3f] %v5450_v3  ;;  %5660 = vst [vmem:[%s15412_s3 + $0x220] sm:$0x3f] %v5451_v31 }
 0x364   :  { %v5455_v1 = vadd.f32 0.5, %v18080_v29  ;;  %v18081_v60 = vld [vmem:[#allocation204_spill] sm:$0xff]  ;;  %v14718_v39 = vmul.f32 0.5, %v6095_v63  ;;  %v5456_v35 = vadd.f32 0.5, %v14244_v17  ;;  %v5457_v57 = vadd.f32 0.5, %v14247_v58  ;;  %v18082_v10 = vld [vmem:[#allocation17_spill] sm:$0xff]  ;;  %v6101_v17 = vpop.eup %6100 }
 0x365   :  { %6116 = vtanh.f32 %v18081_v60  ;;  %5661 = vst [vmem:[%s15412_s3 + $0x228] sm:$0x3f] %v5452_v43  ;;  %5662 = vst [vmem:[%s15412_s3 + $0x230] sm:$0x3f] %v5453_v24  ;;  %v14729_v25 = vmul.f32 0.5, %v6097_v36  ;;  %v18083_v22 = vld [vmem:[#allocation63_spill] sm:$0xff] }
 0x366   :  { %6118 = vtanh.f32 %v18082_v10  ;;  %v5458_v5 = vadd.f32 0.5, %v18083_v22  ;;  %v5459_v18 = vadd.f32 0.5, %v14254_v0  ;;  %5663 = vst [vmem:[%s15412_s3 + $0x238] sm:$0x3f] %v5454_v40  ;;  %5664 = vst [vmem:[%s15412_s3 + $0x240] sm:$0x3f] %v5455_v1  ;;  %v6103_v0 = vpop.eup %6102 }
 0x367   :  { %v18084_v58 = vld [vmem:[#allocation18_spill] sm:$0xff]  ;;  %v14740_v3 = vmul.f32 0.5, %v6099_v12  ;;  %v5460_v31 = vadd.f32 0.5, %v14257_v54  ;;  %5665 = vst [vmem:[%s15412_s3 + $0x248] sm:$0x3f] %v5456_v35  ;;  %v18086_v32 = vld [vmem:[#allocation19_spill] sm:$0xff]  ;;  %v6105_v54 = vpop.eup %6104 }
 0x368   :  { %6120 = vtanh.f32 %v18084_v58  ;;  %v18085_v44 = vld [vmem:[#allocation10_spill] sm:$0xff]  ;;  %5666 = vst [vmem:[%s15412_s3 + $0x250] sm:$0x3f] %v5457_v57  ;;  %v14751_v43 = vmul.f32 0.5, %v6101_v17  ;;  %v5462_v61 = vadd.f32 0.5, %v14264_v20  ;;  %v5463_v24 = vadd.f32 0.5, %v14267_v8  ;;  %v6107_v20 = vpop.eup %6106 }
 0x369   :  { %v5461_v23 = vadd.f32 0.5, %v18085_v44  ;;  %6122 = vtanh.f32 %v18086_v32  ;;  %5667 = vst [vmem:[%s15412_s3 + $0x258] sm:$0x3f] %v5458_v5  ;;  %5668 = vst [vmem:[%s15412_s3 + $0x260] sm:$0x3f] %v5459_v18  ;;  %v18087_v63 = vld [vmem:[#allocation20_spill] sm:$0xff]  ;;  %v6109_v10 = vpop.eup %6108 }
 0x36a   :  { %6124 = vtanh.f32 %v18087_v63  ;;  %v14762_v7 = vmul.f32 0.5, %v6103_v0  ;;  %v18088_v30 = vld [vmem:[#allocation64_spill] sm:$0xff]  ;;  %v18089_v29 = vld [vmem:[#allocation163_spill] sm:$0xff]  ;;  %5669 = vst [vmem:[%s15412_s3 + $0x268] sm:$0x3f] %v5460_v31  ;;  %v18090_v8 = vld [vmem:[#allocation21_spill] sm:$0xff]  ;;  %v6111_v44 = vpop.eup %6110 }
 0x36b   :  { %v5464_v40 = vadd.f32 0.5, %v18088_v30  ;;  %v5465_v1 = vadd.f32 0.5, %v18089_v29  ;;  %5670 = vst [vmem:[%s15412_s3 + $0x270] sm:$0x3f] %v5461_v23  ;;  %6126 = vtanh.f32 %v18090_v8  ;;  %v14773_v36 = vmul.f32 0.5, %v6105_v54  ;;  %v18091_v60 = vld [vmem:[#allocation65_spill] sm:$0xff] }
 0x36c   :  { %v5466_v35 = vadd.f32 0.5, %v18091_v60  ;;  %v18092_v57 = vld [vmem:[#allocation26_spill] sm:$0xff]  ;;  %5671 = vst [vmem:[%s15412_s3 + $0x278] sm:$0x3f] %v5462_v61  ;;  %5672 = vst [vmem:[%s15412_s3 + $0x280] sm:$0x3f] %v5463_v24  ;;  %v6113_v24 = vpop.eup %6112 }
 0x36d   :  { %v5467_v12 = vadd.f32 0.5, %v18092_v57  ;;  %v18093_v22 = vld [vmem:[#allocation334_spill] sm:$0xff]  ;;  %v14784_v5 = vmul.f32 0.5, %v6107_v20  ;;  %v18095_v58 = vld [vmem:[#allocation352_spill] sm:$0xff]  ;;  %5673 = vst [vmem:[%s15412_s3 + $0x288] sm:$0x3f] %v5464_v40 }
 0x36e   :  { %6128 = vtanh.f32 %v18093_v22  ;;  %v18094_v18 = vld [vmem:[#allocation66_spill] sm:$0xff]  ;;  %v5469_v31 = vadd.f32 0.5, %v18095_v58  ;;  %5674 = vst [vmem:[%s15412_s3 + $0x290] sm:$0x3f] %v5465_v1  ;;  %v14795_v0 = vmul.f32 0.5, %v6109_v10  ;;  %v5470_v32 = vadd.f32 0.5, %v14290_v16 }
 0x36f   :  { %v5468_v17 = vadd.f32 0.5, %v18094_v18  ;;  %v18096_v23 = vld [vmem:[#allocation22_spill] sm:$0xff]  ;;  %v5471_v61 = vadd.f32 0.5, %v14292_v2  ;;  %5675 = vst [vmem:[%s15412_s3 + $0x298] sm:$0x3f] %v5466_v35  ;;  %v18097_v54 = vld [vmem:[#allocation232_spill] sm:$0xff]  ;;  %v6115_v2 = vpop.eup %6114 }
 0x370   :  { %6130 = vtanh.f32 %v18096_v23  ;;  %5676 = vst [vmem:[%s15412_s3 + $0x2a0] sm:$0x3f] %v5467_v12  ;;  %v14806_v63 = vmul.f32 0.5, %v6111_v44  ;;  %v18098_v30 = vld [vmem:[#allocation67_spill] sm:$0xff]  ;;  %v5473_v29 = vadd.f32 0.5, %v14297_v4  ;;  %v14817_v1 = vmul.f32 0.5, %v6113_v24  ;;  %v6117_v4 = vpop.eup %6116 }
 0x371   :  { %6132 = vtanh.f32 %v18097_v54  ;;  %v5472_v40 = vadd.f32 0.5, %v18098_v30  ;;  %5677 = vst [vmem:[%s15412_s3 + $0x2a8] sm:$0x3f] %v5468_v17  ;;  %5678 = vst [vmem:[%s15412_s3 + $0x2b0] sm:$0x3f] %v5469_v31  ;;  %v18099_v16 = vld [vmem:[#allocation23_spill] sm:$0xff] }
 0x372   :  { %6134 = vtanh.f32 %v18099_v16  ;;  %v5474_v20 = vadd.f32 0.5, %v14299_v62  ;;  %v18100_v8 = vld [vmem:[#allocation27_spill] sm:$0xff]  ;;  %5679 = vst [vmem:[%s15412_s3 + $0x2b8] sm:$0x3f] %v5470_v32  ;;  %5680 = vst [vmem:[%s15412_s3 + $0x2c0] sm:$0x3f] %v5471_v61  ;;  %v6119_v62 = vpop.eup %6118 }
 0x373   :  { %v5475_v60 = vadd.f32 0.5, %v18100_v8  ;;  %v18101_v35 = vld [vmem:[#allocation335_spill] sm:$0xff]  ;;  %v14828_v57 = vmul.f32 0.5, %v6115_v2  ;;  %v5476_v12 = vadd.f32 0.5, %v14304_v33  ;;  %v5477_v10 = vadd.f32 0.5, %v14306_v38  ;;  %v18102_v22 = vld [vmem:[#allocation24_spill] sm:$0xff]  ;;  %v6121_v33 = vpop.eup %6120 }
 0x374   :  { %6136 = vtanh.f32 %v18101_v35  ;;  %5681 = vst [vmem:[%s15412_s3 + $0x2c8] sm:$0x3f] %v5472_v40  ;;  %5682 = vst [vmem:[%s15412_s3 + $0x2d0] sm:$0x3f] %v5473_v29  ;;  %v14839_v18 = vmul.f32 0.5, %v6117_v4  ;;  %v18103_v17 = vld [vmem:[#allocation68_spill] sm:$0xff] }
 0x375   :  { %6138 = vtanh.f32 %v18102_v22  ;;  %v5478_v58 = vadd.f32 0.5, %v18103_v17  ;;  %v5479_v31 = vadd.f32 0.5, %v14311_v41  ;;  %5683 = vst [vmem:[%s15412_s3 + $0x2d8] sm:$0x3f] %v5474_v20  ;;  %5684 = vst [vmem:[%s15412_s3 + $0x2e0] sm:$0x3f] %v5475_v60  ;;  %v6123_v41 = vpop.eup %6122 }
 0x376   :  { %v18104_v38 = vld [vmem:[#allocation233_spill] sm:$0xff]  ;;  %v14850_v44 = vmul.f32 0.5, %v6119_v62  ;;  %5685 = vst [vmem:[%s15412_s3 + $0x2e8] sm:$0x3f] %v5476_v12  ;;  %5686 = vst [vmem:[%s15412_s3 + $0x2f0] sm:$0x3f] %v5477_v10  ;;  %v6125_v20 = vpop.eup %6124 }
 0x377   :  { %6140 = vtanh.f32 %v18104_v38  ;;  %v18105_v23 = vld [vmem:[#allocation353_spill] sm:$0xff]  ;;  %v14861_v30 = vmul.f32 0.5, %v6121_v33  ;;  %v18108_v40 = vld [vmem:[#allocation167_spill] sm:$0xff]  ;;  %v18109_v2 = vld [vmem:[#allocation70_spill] sm:$0xff]  ;;  %5687 = vst [vmem:[%s15412_s3 + $0x2f8] sm:$0x3f] %v5478_v58  ;;  %v6127_v62 = vpop.eup %6126 }
 0x378   :  { %v5480_v32 = vadd.f32 0.5, %v18105_v23  ;;  %v18106_v61 = vld [vmem:[#allocation69_spill] sm:$0xff]  ;;  %v5482_v29 = vadd.f32 0.5, %v18108_v40  ;;  %v5483_v16 = vadd.f32 0.5, %v18109_v2  ;;  %5688 = vst [vmem:[%s15412_s3 + $0x300] sm:$0x3f] %v5479_v31  ;;  %v6129_v23 = vpop.eup %6128 }
 0x379   :  { %v5481_v24 = vadd.f32 0.5, %v18106_v61  ;;  %v18107_v54 = vld [vmem:[#allocation25_spill] sm:$0xff]  ;;  %v18110_v8 = vld [vmem:[#allocation234_spill] sm:$0xff]  ;;  %v14872_v60 = vmul.f32 0.5, %v6123_v41  ;;  %v18111_v4 = vld [vmem:[#allocation171_spill] sm:$0xff]  ;;  %v14883_v17 = vmul.f32 0.5, %v6125_v20 }
 0x37a   :  { %6142 = vtanh.f32 %v18107_v54  ;;  %v5484_v35 = vadd.f32 0.5, %v18111_v4  ;;  %v18112_v12 = vld [vmem:[#allocation71_spill] sm:$0xff]  ;;  %5689 = vst [vmem:[%s15412_s3 + $0x308] sm:$0x3f] %v5480_v32  ;;  %v18113_v22 = vld [vmem:[#allocation177_spill] sm:$0xff]  ;;  %v18114_v58 = vld [vmem:[#allocation178_spill] sm:$0xff]  ;;  %v6131_v54 = vpop.eup %6130 }
 0x37b   :  { %6144 = vtanh.f32 %v18110_v8  ;;  %v5485_v10 = vadd.f32 0.5, %v18112_v12  ;;  %5690 = vst [vmem:[%s15412_s3 + $0x310] sm:$0x3f] %v5481_v24  ;;  %v5486_v31 = vadd.f32 0.5, %v18114_v58  ;;  %v18115_v33 = vld [vmem:[#allocation72_spill] sm:$0xff]  ;;  %v14894_v61 = vmul.f32 0.5, %v6127_v62 }
 0x37c   :  { %6146 = vtanh.f32 %v18113_v22  ;;  %v5487_v38 = vadd.f32 0.5, %v18115_v33  ;;  %5691 = vst [vmem:[%s15412_s3 + $0x318] sm:$0x3f] %v5482_v29  ;;  %5692 = vst [vmem:[%s15412_s3 + $0x320] sm:$0x3f] %v5483_v16  ;;  %v18116_v32 = vld [vmem:[#allocation336_spill] sm:$0xff] }
 0x37d   :  { %6148 = vtanh.f32 %v18116_v32  ;;  %v5488_v24 = vadd.f32 0.5, %v14336_v59  ;;  %v5489_v41 = vadd.f32 0.5, %v14344_v11  ;;  %5693 = vst [vmem:[%s15412_s3 + $0x328] sm:$0x3f] %v5484_v35  ;;  %5694 = vst [vmem:[%s15412_s3 + $0x330] sm:$0x3f] %v5485_v10  ;;  %v6133_v59 = vpop.eup %6132 }
 0x37e   :  { %v18117_v40 = vld [vmem:[#allocation179_spill] sm:$0xff]  ;;  %v14905_v29 = vmul.f32 0.5, %v6129_v23  ;;  %v18118_v2 = vld [vmem:[#allocation180_spill] sm:$0xff]  ;;  %v18119_v20 = vld [vmem:[#allocation73_spill] sm:$0xff]  ;;  %5695 = vst [vmem:[%s15412_s3 + $0x338] sm:$0x3f] %v5486_v31  ;;  %v6135_v22 = vpop.eup %6134 }
 0x37f   :  { %6150 = vtanh.f32 %v18117_v40  ;;  %v5490_v16 = vadd.f32 0.5, %v18118_v2  ;;  %v5491_v8 = vadd.f32 0.5, %v18119_v20  ;;  %5696 = vst [vmem:[%s15412_s3 + $0x340] sm:$0x3f] %v5487_v38  ;;  %v18120_v11 = vld [vmem:[#allocation235_spill] sm:$0xff]  ;;  %v14916_v4 = vmul.f32 0.5, %v6131_v54 }
 0x380   :  { %6152 = vtanh.f32 %v18120_v11  ;;  %v18121_v35 = vld [vmem:[#allocation181_spill] sm:$0xff]  ;;  %v18122_v10 = vld [vmem:[#allocation74_spill] sm:$0xff]  ;;  %5697 = vst [vmem:[%s15412_s3 + $0x348] sm:$0x3f] %v5488_v24  ;;  %5698 = vst [vmem:[%s15412_s3 + $0x350] sm:$0x3f] %v5489_v41  ;;  %v6137_v24 = vpop.eup %6136 }
 0x381   :  { %v5492_v12 = vadd.f32 0.5, %v18121_v35  ;;  %v5493_v62 = vadd.f32 0.5, %v18122_v10  ;;  %v18123_v58 = vld [vmem:[#allocation28_spill] sm:$0xff]  ;;  %v14927_v31 = vmul.f32 0.5, %v6133_v59  ;;  %v18124_v33 = vld [vmem:[#allocation182_spill] sm:$0xff]  ;;  %v18125_v23 = vld [vmem:[#allocation75_spill] sm:$0xff] }
 0x382   :  { %6154 = vtanh.f32 %v18123_v58  ;;  %v5494_v38 = vadd.f32 0.5, %v18124_v33  ;;  %v5495_v32 = vadd.f32 0.5, %v18125_v23  ;;  %5699 = vst [vmem:[%s15412_s3 + $0x358] sm:$0x3f] %v5490_v16  ;;  %5700 = vst [vmem:[%s15412_s3 + $0x360] sm:$0x3f] %v5491_v8  ;;  %v6139_v16 = vpop.eup %6138 }
 0x383   :  { %v18126_v54 = vld [vmem:[#allocation337_spill] sm:$0xff]  ;;  %v14938_v41 = vmul.f32 0.5, %v6135_v22  ;;  %v18127_v40 = vld [vmem:[#allocation183_spill] sm:$0xff]  ;;  %v18128_v20 = vld [vmem:[#allocation76_spill] sm:$0xff]  ;;  %5701 = vst [vmem:[%s15412_s3 + $0x368] sm:$0x3f] %v5492_v12  ;;  %v6141_v12 = vpop.eup %6140 }
 0x384   :  { %6156 = vtanh.f32 %v18126_v54  ;;  %v5496_v2 = vadd.f32 0.5, %v18127_v40  ;;  %v5497_v59 = vadd.f32 0.5, %v18128_v20  ;;  %5702 = vst [vmem:[%s15412_s3 + $0x370] sm:$0x3f] %v5493_v62  ;;  %v18129_v11 = vld [vmem:[#allocation29_spill] sm:$0xff]  ;;  %v14949_v8 = vmul.f32 0.5, %v6137_v24 }
 0x385   :  { %6158 = vtanh.f32 %v18129_v11  ;;  %v18130_v35 = vld [vmem:[#allocation184_spill] sm:$0xff]  ;;  %v5499_v22 = vadd.f32 0.5, %v14454_v21  ;;  %5703 = vst [vmem:[%s15412_s3 + $0x378] sm:$0x3f] %v5494_v38  ;;  %5704 = vst [vmem:[%s15412_s3 + $0x380] sm:$0x3f] %v5495_v32  ;;  %v6143_v21 = vpop.eup %6142 }
 0x386   :  { %v5498_v10 = vadd.f32 0.5, %v18130_v35  ;;  %v18131_v58 = vld [vmem:[#allocation236_spill] sm:$0xff]  ;;  %v14960_v62 = vmul.f32 0.5, %v6139_v16  ;;  %v5500_v33 = vadd.f32 0.5, %v14465_v9  ;;  %v5501_v23 = vadd.f32 0.5, %v14476_v49  ;;  %v18132_v38 = vld [vmem:[#allocation30_spill] sm:$0xff]  ;;  %v6145_v9 = vpop.eup %6144 }
 0x387   :  { %6160 = vtanh.f32 %v18131_v58  ;;  %5705 = vst [vmem:[%s15412_s3 + $0x388] sm:$0x3f] %v5496_v2  ;;  %5706 = vst [vmem:[%s15412_s3 + $0x390] sm:$0x3f] %v5497_v59  ;;  %v14971_v32 = vmul.f32 0.5, %v6141_v12  ;;  %v5502_v24 = vadd.f32 0.5, %v14487_v48  ;;  %v6147_v48 = vpop.eup %6146 }
 0x388   :  { %6162 = vtanh.f32 %v18132_v38  ;;  %v5503_v54 = vadd.f32 0.5, %v14498_v45  ;;  %5707 = vst [vmem:[%s15412_s3 + $0x398] sm:$0x3f] %v5498_v10  ;;  %5708 = vst [vmem:[%s15412_s3 + $0x3a0] sm:$0x3f] %v5499_v22  ;;  %v18133_v49 = vld [vmem:[#allocation338_spill] sm:$0xff] }
 0x389   :  { %6164 = vtanh.f32 %v18133_v49  ;;  %v14982_v40 = vmul.f32 0.5, %v6143_v21  ;;  %v5504_v2 = vadd.f32 0.5, %v14509_v52  ;;  %v5505_v20 = vadd.f32 0.5, %v14520_v56  ;;  %5709 = vst [vmem:[%s15412_s3 + $0x3a8] sm:$0x3f] %v5500_v33  ;;  %v18134_v45 = vld [vmem:[#allocation31_spill] sm:$0xff]  ;;  %v6149_v52 = vpop.eup %6148 }
 0x38a   :  { %5710 = vst [vmem:[%s15412_s3 + $0x3b0] sm:$0x3f] %v5501_v23  ;;  %6166 = vtanh.f32 %v18134_v45  ;;  %v14993_v59 = vmul.f32 0.5, %v6145_v9  ;;  %v5506_v16 = vadd.f32 0.5, %v14531_v51  ;;  %v5507_v11 = vadd.f32 0.5, %v14542_v15  ;;  %v18135_v56 = vld [vmem:[#allocation237_spill] sm:$0xff]  ;;  %v6151_v51 = vpop.eup %6150 }
 0x38b   :  { %5711 = vst [vmem:[%s15412_s3 + $0x3b8] sm:$0x3f] %v5502_v24  ;;  %5712 = vst [vmem:[%s15412_s3 + $0x3c0] sm:$0x3f] %v5503_v54  ;;  %6168 = vtanh.f32 %v18135_v56  ;;  %v15004_v35 = vmul.f32 0.5, %v6147_v48  ;;  %v5508_v10 = vadd.f32 0.5, %v14553_v53  ;;  %v6153_v53 = vpop.eup %6152 }
 0x38c   :  { %v5509_v22 = vadd.f32 0.5, %v14564_v6  ;;  %5713 = vst [vmem:[%s15412_s3 + $0x3c8] sm:$0x3f] %v5504_v2  ;;  %5714 = vst [vmem:[%s15412_s3 + $0x3d0] sm:$0x3f] %v5505_v20  ;;  %v18136_v15 = vld [vmem:[#allocation32_spill] sm:$0xff] }
 0x38d   :  { %6170 = vtanh.f32 %v18136_v15  ;;  %v15015_v12 = vmul.f32 0.5, %v6149_v52  ;;  %v5510_v58 = vadd.f32 0.5, %v14575_v47  ;;  %v5511_v33 = vadd.f32 0.5, %v14586_v37  ;;  %5715 = vst [vmem:[%s15412_s3 + $0x3d8] sm:$0x3f] %v5506_v16  ;;  %v18137_v6 = vld [vmem:[#allocation339_spill] sm:$0xff]  ;;  %v6155_v47 = vpop.eup %6154 }
 0x38e   :  { %5716 = vst [vmem:[%s15412_s3 + $0x3e0] sm:$0x3f] %v5507_v11  ;;  %6172 = vtanh.f32 %v18137_v6  ;;  %v15026_v23 = vmul.f32 0.5, %v6151_v51  ;;  %v5512_v21 = vadd.f32 0.5, %v14597_v13  ;;  %v5513_v38 = vadd.f32 0.5, %v14608_v46  ;;  %v18138_v37 = vld [vmem:[#allocation33_spill] sm:$0xff]  ;;  %v6157_v13 = vpop.eup %6156 }
 0x38f   :  { %5717 = vst [vmem:[%s15412_s3 + $0x3e8] sm:$0x3f] %v5508_v10  ;;  %5718 = vst [vmem:[%s15412_s3 + $0x3f0] sm:$0x3f] %v5509_v22  ;;  %6174 = vtanh.f32 %v18138_v37  ;;  %v15037_v24 = vmul.f32 0.5, %v6153_v53  ;;  %v5514_v54 = vadd.f32 0.5, %v14619_v14  ;;  %v6159_v14 = vpop.eup %6158 }
 0x390   :  { %v5515_v9 = vadd.f32 0.5, %v14630_v34  ;;  %5719 = vst [vmem:[%s15412_s3 + $0x3f8] sm:$0x3f] %v5510_v58  ;;  %5720 = vst [vmem:[%s15412_s3 + $0x400] sm:$0x3f] %v5511_v33  ;;  %v18139_v46 = vld [vmem:[#allocation5_spill] sm:$0xff] }
 0x391   :  { %6176 = vtanh.f32 %v18139_v46  ;;  %v15048_v49 = vmul.f32 0.5, %v6155_v47  ;;  %v5516_v2 = vadd.f32 0.5, %v14641_v26  ;;  %v5517_v20 = vadd.f32 0.5, %v14652_v27  ;;  %5721 = vst [vmem:[%s15412_s3 + $0x408] sm:$0x3f] %v5512_v21  ;;  %v18140_v34 = vld [vmem:[#allocation34_spill] sm:$0xff]  ;;  %v6161_v26 = vpop.eup %6160 }
 0x392   :  { %5722 = vst [vmem:[%s15412_s3 + $0x410] sm:$0x3f] %v5513_v38  ;;  %6178 = vtanh.f32 %v18140_v34  ;;  %v15059_v48 = vmul.f32 0.5, %v6157_v13  ;;  %v5518_v45 = vadd.f32 0.5, %v14663_v28  ;;  %v5519_v16 = vadd.f32 0.5, %v14674_v50  ;;  %v18141_v27 = vld [vmem:[#allocation340_spill] sm:$0xff]  ;;  %v6163_v28 = vpop.eup %6162 }
 0x393   :  { %5723 = vst [vmem:[%s15412_s3 + $0x418] sm:$0x3f] %v5514_v54  ;;  %5724 = vst [vmem:[%s15412_s3 + $0x420] sm:$0x3f] %v5515_v9  ;;  %6180 = vtanh.f32 %v18141_v27  ;;  %v15070_v11 = vmul.f32 0.5, %v6159_v14  ;;  %v5520_v52 = vadd.f32 0.5, %v14685_v19  ;;  %v6165_v19 = vpop.eup %6164 }
 0x394   :  { %v5521_v56 = vadd.f32 0.5, %v14696_v42  ;;  %5725 = vst [vmem:[%s15412_s3 + $0x428] sm:$0x3f] %v5516_v2  ;;  %5726 = vst [vmem:[%s15412_s3 + $0x430] sm:$0x3f] %v5517_v20  ;;  %v18142_v50 = vld [vmem:[#allocation35_spill] sm:$0xff] }
 0x395   :  { %6182 = vtanh.f32 %v18142_v50  ;;  %v15081_v10 = vmul.f32 0.5, %v6161_v26  ;;  %v5522_v22 = vadd.f32 0.5, %v14707_v55  ;;  %v5523_v51 = vadd.f32 0.5, %v14718_v39  ;;  %5727 = vst [vmem:[%s15412_s3 + $0x438] sm:$0x3f] %v5518_v45  ;;  %v18143_v42 = vld [vmem:[#allocation162_spill] sm:$0xff]  ;;  %v6167_v55 = vpop.eup %6166 }
 0x396   :  { %5728 = vst [vmem:[%s15412_s3 + $0x440] sm:$0x3f] %v5519_v16  ;;  %6184 = vtanh.f32 %v18143_v42  ;;  %v15092_v15 = vmul.f32 0.5, %v6163_v28  ;;  %v5524_v58 = vadd.f32 0.5, %v14729_v25  ;;  %v5525_v33 = vadd.f32 0.5, %v14740_v3  ;;  %v18144_v39 = vld [vmem:[#allocation36_spill] sm:$0xff]  ;;  %v6169_v25 = vpop.eup %6168 }
 0x397   :  { %5729 = vst [vmem:[%s15412_s3 + $0x448] sm:$0x3f] %v5520_v52  ;;  %5730 = vst [vmem:[%s15412_s3 + $0x450] sm:$0x3f] %v5521_v56  ;;  %6186 = vtanh.f32 %v18144_v39  ;;  %v15103_v53 = vmul.f32 0.5, %v6165_v19  ;;  %v5526_v6 = vadd.f32 0.5, %v14751_v43  ;;  %v6171_v43 = vpop.eup %6170 }
 0x398   :  { %v5527_v21 = vadd.f32 0.5, %v14762_v7  ;;  %5731 = vst [vmem:[%s15412_s3 + $0x458] sm:$0x3f] %v5522_v22  ;;  %5732 = vst [vmem:[%s15412_s3 + $0x460] sm:$0x3f] %v5523_v51  ;;  %v18145_v3 = vld [vmem:[#allocation341_spill] sm:$0xff] }
 0x399   :  { %6188 = vtanh.f32 %v18145_v3  ;;  %v15114_v38 = vmul.f32 0.5, %v6167_v55  ;;  %v5528_v47 = vadd.f32 0.5, %v14773_v36  ;;  %v5529_v37 = vadd.f32 0.5, %v14784_v5  ;;  %5733 = vst [vmem:[%s15412_s3 + $0x468] sm:$0x3f] %v5524_v58  ;;  %v18146_v7 = vld [vmem:[#allocation37_spill] sm:$0xff]  ;;  %v6173_v36 = vpop.eup %6172 }
 0x39a   :  { %5734 = vst [vmem:[%s15412_s3 + $0x470] sm:$0x3f] %v5525_v33  ;;  %6190 = vtanh.f32 %v18146_v7  ;;  %v15125_v54 = vmul.f32 0.5, %v6169_v25  ;;  %v5530_v9 = vadd.f32 0.5, %v14795_v0  ;;  %v5531_v13 = vadd.f32 0.5, %v14806_v63  ;;  %v18147_v5 = vld [vmem:[#allocation238_spill] sm:$0xff]  ;;  %v6175_v0 = vpop.eup %6174 }
 0x39b   :  { %5735 = vst [vmem:[%s15412_s3 + $0x478] sm:$0x3f] %v5526_v6  ;;  %5736 = vst [vmem:[%s15412_s3 + $0x480] sm:$0x3f] %v5527_v21  ;;  %6192 = vtanh.f32 %v18147_v5  ;;  %v15136_v46 = vmul.f32 0.5, %v6171_v43  ;;  %v5532_v2 = vadd.f32 0.5, %v14817_v1  ;;  %v6177_v1 = vpop.eup %6176 }
 0x39c   :  { %v5533_v20 = vadd.f32 0.5, %v14828_v57  ;;  %5737 = vst [vmem:[%s15412_s3 + $0x488] sm:$0x3f] %v5528_v47  ;;  %5738 = vst [vmem:[%s15412_s3 + $0x490] sm:$0x3f] %v5529_v37  ;;  %v18148_v63 = vld [vmem:[#allocation38_spill] sm:$0xff] }
 0x39d   :  { %6194 = vtanh.f32 %v18148_v63  ;;  %v15147_v14 = vmul.f32 0.5, %v6173_v36  ;;  %v5534_v34 = vadd.f32 0.5, %v14839_v18  ;;  %v5535_v45 = vadd.f32 0.5, %v14850_v44  ;;  %5739 = vst [vmem:[%s15412_s3 + $0x498] sm:$0x3f] %v5530_v9  ;;  %v18149_v57 = vld [vmem:[#allocation164_spill] sm:$0xff]  ;;  %v6179_v18 = vpop.eup %6178 }
 0x39e   :  { %5740 = vst [vmem:[%s15412_s3 + $0x4a0] sm:$0x3f] %v5531_v13  ;;  %6196 = vtanh.f32 %v18149_v57  ;;  %v15158_v16 = vmul.f32 0.5, %v6175_v0  ;;  %v5536_v26 = vadd.f32 0.5, %v14861_v30  ;;  %v5537_v27 = vadd.f32 0.5, %v14872_v60  ;;  %v18150_v44 = vld [vmem:[#allocation39_spill] sm:$0xff]  ;;  %v6181_v30 = vpop.eup %6180 }
 0x39f   :  { %5741 = vst [vmem:[%s15412_s3 + $0x4a8] sm:$0x3f] %v5532_v2  ;;  %5742 = vst [vmem:[%s15412_s3 + $0x4b0] sm:$0x3f] %v5533_v20  ;;  %6198 = vtanh.f32 %v18150_v44  ;;  %v15169_v52 = vmul.f32 0.5, %v6177_v1  ;;  %v5538_v56 = vadd.f32 0.5, %v14883_v17  ;;  %v6183_v17 = vpop.eup %6182 }
 0x3a0   :  { %v5539_v28 = vadd.f32 0.5, %v14894_v61  ;;  %5743 = vst [vmem:[%s15412_s3 + $0x4b8] sm:$0x3f] %v5534_v34  ;;  %5744 = vst [vmem:[%s15412_s3 + $0x4c0] sm:$0x3f] %v5535_v45  ;;  %v18151_v60 = vld [vmem:[#allocation342_spill] sm:$0xff] }
 0x3a1   :  { %6200 = vtanh.f32 %v18151_v60  ;;  %v15180_v50 = vmul.f32 0.5, %v6179_v18  ;;  %v5540_v22 = vadd.f32 0.5, %v14905_v29  ;;  %v5541_v51 = vadd.f32 0.5, %v14916_v4  ;;  %5745 = vst [vmem:[%s15412_s3 + $0x4c8] sm:$0x3f] %v5536_v26  ;;  %v18152_v61 = vld [vmem:[#allocation245_spill] sm:$0xff]  ;;  %v6185_v29 = vpop.eup %6184 }
 0x3a2   :  { %5746 = vst [vmem:[%s15412_s3 + $0x4d0] sm:$0x3f] %v5537_v27  ;;  %6202 = vtanh.f32 %v18152_v61  ;;  %v15191_v19 = vmul.f32 0.5, %v6181_v30  ;;  %v5542_v42 = vadd.f32 0.5, %v14927_v31  ;;  %v5543_v58 = vadd.f32 0.5, %v14938_v41  ;;  %v18153_v4 = vld [vmem:[#allocation40_spill] sm:$0xff]  ;;  %v6187_v31 = vpop.eup %6186 }
 0x3a3   :  { %5747 = vst [vmem:[%s15412_s3 + $0x4d8] sm:$0x3f] %v5538_v56  ;;  %5748 = vst [vmem:[%s15412_s3 + $0x4e0] sm:$0x3f] %v5539_v28  ;;  %6204 = vtanh.f32 %v18153_v4  ;;  %v15202_v33 = vmul.f32 0.5, %v6183_v17  ;;  %v5544_v55 = vadd.f32 0.5, %v14949_v8  ;;  %v6189_v8 = vpop.eup %6188 }
 0x3a4   :  { %v5545_v39 = vadd.f32 0.5, %v14960_v62  ;;  %5749 = vst [vmem:[%s15412_s3 + $0x4e8] sm:$0x3f] %v5540_v22  ;;  %5750 = vst [vmem:[%s15412_s3 + $0x4f0] sm:$0x3f] %v5541_v51  ;;  %v18154_v41 = vld [vmem:[#allocation165_spill] sm:$0xff] }
 0x3a5   :  { %6206 = vtanh.f32 %v18154_v41  ;;  %v15213_v6 = vmul.f32 0.5, %v6185_v29  ;;  %v5546_v21 = vadd.f32 0.5, %v14971_v32  ;;  %v5547_v25 = vadd.f32 0.5, %v14982_v40  ;;  %5751 = vst [vmem:[%s15412_s3 + $0x4f8] sm:$0x3f] %v5542_v42  ;;  %v18155_v62 = vld [vmem:[#allocation41_spill] sm:$0xff]  ;;  %v6191_v32 = vpop.eup %6190 }
 0x3a6   :  { %5752 = vst [vmem:[%s15412_s3 + $0x500] sm:$0x3f] %v5543_v58  ;;  %6208 = vtanh.f32 %v18155_v62  ;;  %v15224_v3 = vmul.f32 0.5, %v6187_v31  ;;  %v5548_v47 = vadd.f32 0.5, %v14993_v59  ;;  %v5549_v37 = vadd.f32 0.5, %v15004_v35  ;;  %v18156_v40 = vld [vmem:[#allocation343_spill] sm:$0xff]  ;;  %v6193_v59 = vpop.eup %6192 }
 0x3a7   :  { %5753 = vst [vmem:[%s15412_s3 + $0x508] sm:$0x3f] %v5544_v55  ;;  %5754 = vst [vmem:[%s15412_s3 + $0x510] sm:$0x3f] %v5545_v39  ;;  %6210 = vtanh.f32 %v18156_v40  ;;  %v15235_v43 = vmul.f32 0.5, %v6189_v8  ;;  %v5550_v7 = vadd.f32 0.5, %v15015_v12  ;;  %v6195_v12 = vpop.eup %6194 }
 0x3a8   :  { %v5551_v9 = vadd.f32 0.5, %v15026_v23  ;;  %5755 = vst [vmem:[%s15412_s3 + $0x518] sm:$0x3f] %v5546_v21  ;;  %5756 = vst [vmem:[%s15412_s3 + $0x520] sm:$0x3f] %v5547_v25  ;;  %v18157_v35 = vld [vmem:[#allocation42_spill] sm:$0xff] }
 0x3a9   :  { %6212 = vtanh.f32 %v18157_v35  ;;  %v15246_v13 = vmul.f32 0.5, %v6191_v32  ;;  %v5552_v36 = vadd.f32 0.5, %v15037_v24  ;;  %v5553_v5 = vadd.f32 0.5, %v15048_v49  ;;  %5757 = vst [vmem:[%s15412_s3 + $0x528] sm:$0x3f] %v5548_v47  ;;  %v18158_v23 = vld [vmem:[#allocation166_spill] sm:$0xff]  ;;  %v6197_v24 = vpop.eup %6196 }
 0x3aa   :  { %5758 = vst [vmem:[%s15412_s3 + $0x530] sm:$0x3f] %v5549_v37  ;;  %6214 = vtanh.f32 %v18158_v23  ;;  %v5363_v2 = vmul.f32 0.5, %v6193_v59  ;;  %v5554_v20 = vadd.f32 0.5, %v15059_v48  ;;  %v5555_v0 = vadd.f32 0.5, %v15070_v11  ;;  %v18159_v49 = vld [vmem:[#allocation246_spill] sm:$0xff]  ;;  %v6199_v48 = vpop.eup %6198 }
 0x3ab   :  { %5759 = vst [vmem:[%s15412_s3 + $0x538] sm:$0x3f] %v5550_v7  ;;  %5760 = vst [vmem:[%s15412_s3 + $0x540] sm:$0x3f] %v5551_v9  ;;  %6216 = vtanh.f32 %v18159_v49  ;;  %v5364_v63 = vmul.f32 0.5, %v6195_v12  ;;  %v5556_v34 = vadd.f32 0.5, %v15081_v10  ;;  %v6201_v10 = vpop.eup %6200 }
 0x3ac   :  { %v5557_v45 = vadd.f32 0.5, %v15092_v15  ;;  %5761 = vst [vmem:[%s15412_s3 + $0x548] sm:$0x3f] %v5552_v36  ;;  %5762 = vst [vmem:[%s15412_s3 + $0x550] sm:$0x3f] %v5553_v5  ;;  %v18160_v11 = vld [vmem:[#allocation43_spill] sm:$0xff] }
 0x3ad   :  { %6218 = vtanh.f32 %v18160_v11  ;;  %v5365_v1 = vmul.f32 0.5, %v6197_v24  ;;  %v5558_v57 = vadd.f32 0.5, %v15103_v53  ;;  %v5559_v26 = vadd.f32 0.5, %v15114_v38  ;;  %5763 = vst [vmem:[%s15412_s3 + $0x558] sm:$0x3f] %v5554_v20  ;;  %v18161_v15 = vld [vmem:[#allocation344_spill] sm:$0xff]  ;;  %v6203_v53 = vpop.eup %6202 }
 0x3ae   :  { %5764 = vst [vmem:[%s15412_s3 + $0x560] sm:$0x3f] %v5555_v0  ;;  %6220 = vtanh.f32 %v18161_v15  ;;  %v5366_v27 = vmul.f32 0.5, %v6199_v48  ;;  %v5560_v18 = vadd.f32 0.5, %v15125_v54  ;;  %v5561_v44 = vadd.f32 0.5, %v15136_v46  ;;  %v18162_v38 = vld [vmem:[#allocation44_spill] sm:$0xff]  ;;  %v6205_v54 = vpop.eup %6204 }
 0x3af   :  { %5765 = vst [vmem:[%s15412_s3 + $0x568] sm:$0x3f] %v5556_v34  ;;  %5766 = vst [vmem:[%s15412_s3 + $0x570] sm:$0x3f] %v5557_v45  ;;  %6222 = vtanh.f32 %v18162_v38  ;;  %v5367_v56 = vmul.f32 0.5, %v6201_v10  ;;  %v5562_v28 = vadd.f32 0.5, %v15147_v14  ;;  %v6207_v14 = vpop.eup %6206 }
 0x3b0   :  { %v5563_v30 = vadd.f32 0.5, %v15158_v16  ;;  %5767 = vst [vmem:[%s15412_s3 + $0x578] sm:$0x3f] %v5558_v57  ;;  %5768 = vst [vmem:[%s15412_s3 + $0x580] sm:$0x3f] %v5559_v26  ;;  %v18163_v46 = vld [vmem:[#allocation239_spill] sm:$0xff] }
 0x3b1   :  { %6224 = vtanh.f32 %v18163_v46  ;;  %v5368_v60 = vmul.f32 0.5, %v6203_v53  ;;  %v5564_v22 = vadd.f32 0.5, %v15169_v52  ;;  %v5565_v51 = vadd.f32 0.5, %v15180_v50  ;;  %5769 = vst [vmem:[%s15412_s3 + $0x588] sm:$0x3f] %v5560_v18  ;;  %v18164_v16 = vld [vmem:[#allocation45_spill] sm:$0xff]  ;;  %v6209_v52 = vpop.eup %6208 }
 0x3b2   :  { %5770 = vst [vmem:[%s15412_s3 + $0x590] sm:$0x3f] %v5561_v44  ;;  %6226 = vtanh.f32 %v18164_v16  ;;  %v5369_v17 = vmul.f32 0.5, %v6205_v54  ;;  %v5566_v61 = vadd.f32 0.5, %v15191_v19  ;;  %v5567_v42 = vadd.f32 0.5, %v15202_v33  ;;  %v18165_v50 = vld [vmem:[#allocation168_spill] sm:$0xff]  ;;  %v6211_v19 = vpop.eup %6210 }
 0x3b3   :  { %5771 = vst [vmem:[%s15412_s3 + $0x598] sm:$0x3f] %v5562_v28  ;;  %5772 = vst [vmem:[%s15412_s3 + $0x5a0] sm:$0x3f] %v5563_v30  ;;  %6228 = vtanh.f32 %v18165_v50  ;;  %v5370_v58 = vmul.f32 0.5, %v6207_v14  ;;  %v5568_v29 = vadd.f32 0.5, %v15213_v6  ;;  %v6213_v41 = vpop.eup %6212 }
 0x3b4   :  { %v5569_v4 = vadd.f32 0.5, %v15224_v3  ;;  %5773 = vst [vmem:[%s15412_s3 + $0x5a8] sm:$0x3f] %v5564_v22  ;;  %5774 = vst [vmem:[%s15412_s3 + $0x5b0] sm:$0x3f] %v5565_v51  ;;  %v18166_v33 = vld [vmem:[#allocation247_spill] sm:$0xff]  ;;  %v6215_v62 = vpop.eup %6214 }
 0x3b5   :  { %6230 = vtanh.f32 %v18166_v33  ;;  %v5371_v55 = vmul.f32 0.5, %v6209_v52  ;;  %v5570_v39 = vadd.f32 0.5, %v15235_v43  ;;  %v5571_v31 = vadd.f32 0.5, %v15246_v13  ;;  %5775 = vst [vmem:[%s15412_s3 + $0x5b8] sm:$0x3f] %v5566_v61  ;;  %v6217_v40 = vpop.eup %6216 }
 0x3b6   :  { %5776 = vst [vmem:[%s15412_s3 + $0x5c0] sm:$0x3f] %v5567_v42  ;;  %v5372_v6 = vmul.f32 0.5, %v6211_v19  ;;  %v5572_v21 = vadd.f32 0.5, %v5363_v2  ;;  %v5573_v25 = vadd.f32 0.5, %v5364_v63  ;;  %v5574_v8 = vadd.f32 0.5, %v5365_v1 }
 0x3b7   :  { %5777 = vst [vmem:[%s15412_s3 + $0x5c8] sm:$0x3f] %v5568_v29  ;;  %5778 = vst [vmem:[%s15412_s3 + $0x5d0] sm:$0x3f] %v5569_v4  ;;  %v5373_v3 = vmul.f32 0.5, %v6213_v41  ;;  %v5575_v47 = vadd.f32 0.5, %v5366_v27  ;;  %v6219_v35 = vpop.eup %6218 }
 0x3b8   :  { %v5576_v37 = vadd.f32 0.5, %v5367_v56  ;;  %v5577_v32 = vadd.f32 0.5, %v5368_v60  ;;  %5779 = vst [vmem:[%s15412_s3 + $0x5d8] sm:$0x3f] %v5570_v39  ;;  %5780 = vst [vmem:[%s15412_s3 + $0x5e0] sm:$0x3f] %v5571_v31  ;;  %v6221_v12 = vpop.eup %6220 }
 0x3b9   :  { %v5374_v43 = vmul.f32 0.5, %v6215_v62  ;;  %v5578_v7 = vadd.f32 0.5, %v5369_v17  ;;  %v5579_v9 = vadd.f32 0.5, %v5370_v58  ;;  %v5580_v59 = vadd.f32 0.5, %v5371_v55  ;;  %5781 = vst [vmem:[%s15412_s3 + $0x5e8] sm:$0x3f] %v5572_v21  ;;  %v6223_v20 = vpop.eup %6222 }
 0x3ba   :  { %5782 = vst [vmem:[%s15412_s3 + $0x5f0] sm:$0x3f] %v5573_v25  ;;  %5783 = vst [vmem:[%s15412_s3 + $0x5f8] sm:$0x3f] %v5574_v8  ;;  %v5375_v13 = vmul.f32 0.5, %v6217_v40  ;;  %v5581_v36 = vadd.f32 0.5, %v5372_v6 }
 0x3bb   :  { %v5582_v5 = vadd.f32 0.5, %v5373_v3  ;;  %5784 = vst [vmem:[%s15412_s3 + $0x600] sm:$0x3f] %v5575_v47  ;;  %5785 = vst [vmem:[%s15412_s3 + $0x608] sm:$0x3f] %v5576_v37  ;;  %v5376_v23 = vmul.f32 0.5, %v6219_v35  ;;  %v6225_v49 = vpop.eup %6224 }
 0x3bc   :  { %5786 = vst [vmem:[%s15412_s3 + $0x610] sm:$0x3f] %v5577_v32  ;;  %v5583_v2 = vadd.f32 0.5, %v5374_v43  ;;  %5787 = vst [vmem:[%s15412_s3 + $0x618] sm:$0x3f] %v5578_v7  ;;  %v5377_v0 = vmul.f32 0.5, %v6221_v12  ;;  %v6227_v45 = vpop.eup %6226 }
 0x3bd   :  { %5788 = vst [vmem:[%s15412_s3 + $0x620] sm:$0x3f] %v5579_v9  ;;  %5789 = vst [vmem:[%s15412_s3 + $0x628] sm:$0x3f] %v5580_v59  ;;  %v5584_v24 = vadd.f32 0.5, %v5375_v13  ;;  %v5378_v63 = vmul.f32 0.5, %v6223_v20  ;;  %v6229_v1 = vpop.eup %6228 }
 0x3be   :  { %5790 = vst [vmem:[%s15412_s3 + $0x630] sm:$0x3f] %v5581_v36  ;;  %5791 = vst [vmem:[%s15412_s3 + $0x638] sm:$0x3f] %v5582_v5  ;;  %v5585_v34 = vadd.f32 0.5, %v5376_v23  ;;  %v5379_v48 = vmul.f32 0.5, %v6225_v49 }
 0x3bf   :  { %5792 = vst [vmem:[%s15412_s3 + $0x640] sm:$0x3f] %v5583_v2  ;;  %v5586_v11 = vadd.f32 0.5, %v5377_v0  ;;  %5793 = vst [vmem:[%s15412_s3 + $0x648] sm:$0x3f] %v5584_v24  ;;  %v5380_v57 = vmul.f32 0.5, %v6227_v45  ;;  %v6231_v10 = vpop.eup %6230 }
 0x3c0   :  { %v5587_v26 = vadd.f32 0.5, %v5378_v63  ;;  %5794 = vst [vmem:[%s15412_s3 + $0x650] sm:$0x3f] %v5585_v34  ;;  %v5381_v15 = vmul.f32 0.5, %v6229_v1  ;;  %v5588_v27 = vadd.f32 0.5, %v5379_v48  ;;  %v5382_v18 = vmul.f32 0.5, %v6231_v10 }
 0x3c1   :  { %5795 = vst [vmem:[%s15412_s3 + $0x658] sm:$0x3f] %v5586_v11  ;;  %v5589_v44 = vadd.f32 0.5, %v5380_v57 }
 0x3c2   :  { %5796 = vst [vmem:[%s15412_s3 + $0x660] sm:$0x3f] %v5587_v26  ;;  %v5590_v53 = vadd.f32 0.5, %v5381_v15  ;;  %5797 = vst [vmem:[%s15412_s3 + $0x668] sm:$0x3f] %v5588_v27  ;;  %v5591_v38 = vadd.f32 0.5, %v5382_v18 }
 0x3c3   :  { %5798 = vst [vmem:[%s15412_s3 + $0x670] sm:$0x3f] %v5589_v44 }
 0x3c4   :  { %5799 = vst [vmem:[%s15412_s3 + $0x678] sm:$0x3f] %v5590_v53  ;;  %5800 = vst [vmem:[%s15412_s3 + $0x680] sm:$0x3f] %v5591_v38 }
 0x3c5   :  { %5805 = vsyncpa [#allocation3], 1 }

</bundles_post_ra>
